<compile_context>
chip_gen: v6e
topology: v6e:2x2x1
jax: 0.10.0
libtpu: 0.0.40
codegen_flags: <defaults>
</compile_context>

<pallas_src>
import functools

import jax
import jax.numpy as jnp
from jax import lax
from jax.experimental import pallas as pl
from jax.experimental.pallas import tpu as pltpu


# ----------------------------------------------------------------------------
# small math helpers (used both inside the kernel and in the pure-JAX reference)
# ----------------------------------------------------------------------------
def _sigmoid(x):
    # explicit formulation (exp lowers to the EUP) so kernel and reference match
    return 1.0 / (1.0 + jnp.exp(-x))


def _matT(x, w):
    # x: (m, k), w: (n, k)  (PyTorch Linear layout)  ->  (m, n) == x @ w.T,
    # f32 accumulation on the MXU.
    return lax.dot_general(x, w, (((1,), (1,)), ((), ())),
                           preferred_element_type=jnp.float32)


def _round_up(x, m):
    return ((x + m - 1) // m) * m


# ----------------------------------------------------------------------------
# Fused encoder + decoder kernel (single invocation, everything VMEM-resident)
# ----------------------------------------------------------------------------
def _lrl_init_lral_fused_kernel(
        x_ref, amask_ref,
        w1e_ref, b1e_ref, wihe_ref, whhe_ref, bge_ref, w2p_ref, b2_ref,
        w1d_ref, b1d_ref, wihd_ref, whhd_ref, bgd_ref,
        wq_ref, bq_ref, wk_ref, bk_ref, wv_ref, bv_ref, w3p_ref, b3p_ref,
        out_ref, attn_ref, henc_sc):
    T, B, d0p = out_ref.shape
    S = T
    e2p = henc_sc.shape[1]
    d3 = wq_ref.shape[0]
    f32 = jnp.float32

    # ---------------- Encoder: LinearPack -> LSTM -> lin_2 ----------------
    # Hoisted time-invariant matmuls over the whole (T*B) token set:
    # lin_1 (LinearPack) and the input half of all 4 LSTM gates (bias folded in).
    # TODO(synk): LinearPack source not provided; assumed Linear -> ReLU.
    a_all = jnp.maximum(_matT(x_ref[...], w1e_ref[...]) + b1e_ref[...], 0.0)
    gi_all = _matT(a_all, wihe_ref[...]) + bge_ref[...]          # (T*B, 4*e2p)

    h = jnp.zeros((B, e2p), f32)
    c = jnp.zeros((B, e2p), f32)
    # Fully-unrolled recurrence (static t -> static slices); only h @ W_hh^T
    # and the gate elementwise ops remain on the per-step critical path.
    for t in range(T):
        g = gi_all[t * B:(t + 1) * B, :] + _matT(h, whhe_ref[...])
        i_g = _sigmoid(g[:, 0:e2p])
        f_g = _sigmoid(g[:, e2p:2 * e2p])
        g_g = jnp.tanh(g[:, 2 * e2p:3 * e2p])
        o_g = _sigmoid(g[:, 3 * e2p:4 * e2p])
        c = f_g * c + i_g * g_g
        h = o_g * jnp.tanh(c)
        henc_sc[pl.ds(t * B, B), :] = h       # time-major rows: row = t*B + b

    # lin_2 hoisted out of the loop (one (T*B, e2p) matmul), then the
    # loop-invariant attention K/V projections of the encoder memory, one shot.
    enc_flat = _matT(henc_sc[...], w2p_ref[...]) + b2_ref[...]   # (T*B, d3)
    k_flat = _matT(enc_flat, wk_ref[...]) + bk_ref[...]
    v_flat = _matT(enc_flat, wv_ref[...]) + bv_ref[...]
    k_b = jnp.transpose(k_flat.reshape(S, B, d3), (1, 0, 2))     # (B, S, d3)
    v_b = jnp.transpose(v_flat.reshape(S, B, d3), (1, 0, 2))     # (B, S, d3)

    # ------------- Decoder: lin_1 -> LSTMCell -> masked SDPA -> lin_3 -------
    # TODO(synk): ScaledDotProductAttention source not provided; assumed learned
    # Q/K/V Linears, 1/sqrt(qk_out) scaling, masked_fill(mask==0, -1e9), softmax.
    amask = amask_ref[...]                                       # (B, S), 1 = valid
    scale = 1.0 / float(d3) ** 0.5
    neg_big = jnp.float32(-1e9)

    # hoist bias broadcasts out of the unrolled loop (broadcast_in_dim isn't CSE'd)
    b1d_b = jnp.broadcast_to(b1d_ref[...], (B, b1d_ref.shape[1]))
    bgd_b = jnp.broadcast_to(bgd_ref[...], (B, 4 * d3))
    bq_b = jnp.broadcast_to(bq_ref[...], (B, d3))
    b3p_b = jnp.broadcast_to(b3p_ref[...], (B, d0p))

    h = jnp.zeros((B, d3), f32)               # decoder.inits: h0 = c0 = 0
    c = jnp.zeros((B, d3), f32)
    x = jnp.zeros((B, d0p), f32)              # init_in = zeros token (lane-padded)
    for t in range(S):
        # lin_1 (LinearPack) on the fed-back token; padded cols of W1 are zero.
        a = jnp.maximum(_matT(x, w1d_ref[...]) + b1d_b, 0.0)

        # LSTM cell, fused 4-gate matmuls (PyTorch gate order i, f, g, o).
        g = _matT(a, wihd_ref[...]) + _matT(h, whhd_ref[...]) + bgd_b
        i_g = _sigmoid(g[:, 0:d3])
        f_g = _sigmoid(g[:, d3:2 * d3])
        g_g = jnp.tanh(g[:, 2 * d3:3 * d3])
        o_g = _sigmoid(g[:, 3 * d3:4 * d3])
        c = f_g * c + i_g * g_g
        h = o_g * jnp.tanh(c)

        # Batched single-query attention: broadcast-multiply + reduce (no M=1
        # MXU matmuls, no per-batch loops / concatenates).
        q = _matT(h, wq_ref[...]) + bq_b                         # (B, d3)
        s = jnp.sum(q[:, None, :] * k_b, axis=-1) * scale        # (B, S)
        s = jnp.where(amask > 0.5, s, neg_big)
        s = s - jnp.max(s, axis=-1, keepdims=True)
        e = jnp.exp(s)
        # exact divide kept (denominator is only (B,1) scalars; preserves the
        # tight match to the reference -- pl.reciprocal(approx=True) optional).
        attn = e / jnp.sum(e, axis=-1, keepdims=True)            # (B, S)
        ctx = jnp.sum(attn[:, :, None] * v_b, axis=1)            # (B, d3)

        # lin_3 (output feature dim zero-padded to 128 -> lane-dense stores).
        out = _matT(ctx, w3p_ref[...]) + b3p_b                   # (B, d0p)

        # mask_it: zero padded time positions of the stacked outputs.
        # TODO(synk): mask_it source not provided; assumed outputs * mask.
        out_ref[t] = (out * amask[:, t:t + 1]).astype(out_ref.dtype)
        attn_ref[t] = attn.astype(attn_ref.dtype)
        x = out                                                  # fed back unmasked


# ----------------------------------------------------------------------------
# One-time parameter preparation (outside the jitted per-call path)
# ----------------------------------------------------------------------------
def prepare_params(params):
    """Pad / fuse PyTorch-layout weights into the kernel layouts (run once)."""
    ep, dp = params["enc"], params["dec"]
    e1 = ep["w1"].shape[0]
    e2 = ep["w_hh"].shape[1]
    e3 = ep["w2"].shape[0]
    d1 = dp["w1"].shape[0]
    d3 = dp["w_hh"].shape[1]
    d0 = dp["w3"].shape[0]

    # Encoder hidden padded 56 -> 64 so fused-gate slices are lane-aligned.
    # Exact: padded gate rows/bias are 0 -> preacts 0 -> c_pad stays 0, h_pad=0,
    # and the padded columns of W_hh / lin_2 are also 0.
    e2p = _round_up(e2, 64)
    # Decoder fed-back feature dim padded to 128 -> lane-dense output stores.
    d0p = _round_up(d0, 128)

    def pad_gate_rows(w, hid, hid_p):
        w4 = w.reshape(4, hid, w.shape[1])
        return (jnp.zeros((4, hid_p, w.shape[1]), jnp.float32)
                .at[:, :hid, :].set(w4).reshape(4 * hid_p, w.shape[1]))

    def pad_cols(w, cols_p):
        return jnp.zeros((w.shape[0], cols_p), jnp.float32).at[:, :w.shape[1]].set(w)

    # encoder
    wihe = pad_gate_rows(ep["w_ih"], e2, e2p)                    # (4*e2p, e1)
    whhe = pad_cols(pad_gate_rows(ep["w_hh"], e2, e2p), e2p)     # (4*e2p, e2p)
    bge = (jnp.zeros((4, e2p), jnp.float32)
           .at[:, :e2].set((ep["b_ih"] + ep["b_hh"]).reshape(4, e2))
           .reshape(1, 4 * e2p))
    w2p = pad_cols(ep["w2"], e2p)                                # (e3, e2p)

    # decoder
    w3p = jnp.zeros((d0p, d3), jnp.float32).at[:d0].set(dp["w3"])
    b3p = jnp.zeros((1, d0p), jnp.float32).at[0, :d0].set(dp["b3"])
    w1dp = pad_cols(dp["w1"], d0p)                               # (d1, d0p)
    bgd = (dp["b_ih"] + dp["b_hh"]).reshape(1, 4 * d3)

    arrs = dict(
        w1e=ep["w1"], b1e=ep["b1"].reshape(1, e1),
        wihe=wihe, whhe=whhe, bge=bge, w2p=w2p, b2=ep["b2"].reshape(1, e3),
        w1dp=w1dp, b1d=dp["b1"].reshape(1, d1),
        wihd=dp["w_ih"], whhd=dp["w_hh"], bgd=bgd,
        wq=dp["wq"], bq=dp["bq"].reshape(1, d3),
        wk=dp["wk"], bk=dp["bk"].reshape(1, d3),
        wv=dp["wv"], bv=dp["bv"].reshape(1, d3),
        w3p=w3p, b3p=b3p,
    )
    meta = dict(d0=int(d0), d0p=int(d0p), e2p=int(e2p))
    return arrs, meta


# ----------------------------------------------------------------------------
# Forward wrapper (jitted): one fused pallas_call, everything VMEM-resident
# ----------------------------------------------------------------------------
def lrl_init_lral_net_forward(inputs, input_lens, in_mask, *, prep, d0, d0p, e2p):
    # pack_padded_sequence / pad_packed_sequence are emulated by running the
    # LSTM over the padded tail: the attention mask excludes padded encoder
    # positions (weight exactly 0) and mask_it zeroes padded outputs, so the
    # returned (dec_out, attn_w) are identical; hence input_lens is unused.
    del input_lens
    B, T, f_in = inputs.shape
    x_tm = jnp.transpose(inputs, (1, 0, 2)).reshape(T * B, f_in)  # time-major tokens
    amask = in_mask.astype(jnp.float32)                           # (B, T), 1 = valid

    vmem = pl.BlockSpec(memory_space=pltpu.MemorySpace.VMEM)
    out_tm, attn_tm = pl.pallas_call(
        _lrl_init_lral_fused_kernel,
        out_shape=(jax.ShapeDtypeStruct((T, B, d0p), jnp.float32),
                   jax.ShapeDtypeStruct((T, B, T), jnp.float32)),
        in_specs=[vmem] * 22,
        out_specs=(vmem, vmem),
        scratch_shapes=[pltpu.VMEM((T * B, e2p), jnp.float32)],   # encoder memory
    )(x_tm, amask,
      prep["w1e"], prep["b1e"], prep["wihe"], prep["whhe"], prep["bge"],
      prep["w2p"], prep["b2"],
      prep["w1dp"], prep["b1d"], prep["wihd"], prep["whhd"], prep["bgd"],
      prep["wq"], prep["bq"], prep["wk"], prep["bk"], prep["wv"], prep["bv"],
      prep["w3p"], prep["b3p"])

    dec_out = jnp.transpose(out_tm, (1, 0, 2))[:, :, :d0]   # drop lane padding
    attn_w = jnp.transpose(attn_tm, (1, 0, 2))
    return dec_out, attn_w


# ----------------------------------------------------------------------------
# Parameter init (PyTorch Linear/LSTM-style layouts) and pure-JAX reference
# ----------------------------------------------------------------------------
def init_params(key, enc_size_list, dec_size_list):
    e0, e1, e2, e3 = enc_size_list
    d0, d1, _, d3 = dec_size_list

    def lin(k, out_d, in_d):
        bound = 1.0 / (in_d ** 0.5)
        kw, kb = jax.random.split(k)
        return (jax.random.uniform(kw, (out_d, in_d), jnp.float32, -bound, bound),
                jax.random.uniform(kb, (out_d,), jnp.float32, -bound, bound))

    ks = jax.random.split(key, 11)
    enc_w1, enc_b1 = lin(ks[0], e1, e0)
    enc_wih, enc_bih = lin(ks[1], 4 * e2, e1)
    enc_whh, enc_bhh = lin(ks[2], 4 * e2, e2)
    enc_w2, enc_b2 = lin(ks[3], e3, e2)

    dec_w1, dec_b1 = lin(ks[4], d1, d0)
    dec_wih, dec_bih = lin(ks[5], 4 * d3, d1)
    dec_whh, dec_bhh = lin(ks[6], 4 * d3, d3)
    wq, bq = lin(ks[7], d3, d3)
    wk, bk = lin(ks[8], d3, d3)
    wv, bv = lin(ks[9], d3, d3)
    w3, b3 = lin(ks[10], d0, d3)

    return {
        "enc": {"w1": enc_w1, "b1": enc_b1, "w_ih": enc_wih, "b_ih": enc_bih,
                "w_hh": enc_whh, "b_hh": enc_bhh, "w2": enc_w2, "b2": enc_b2},
        "dec": {"w1": dec_w1, "b1": dec_b1, "w_ih": dec_wih, "b_ih": dec_bih,
                "w_hh": dec_whh, "b_hh": dec_bhh,
                "wq": wq, "bq": bq, "wk": wk, "bk": bk, "wv": wv, "bv": bv,
                "w3": w3, "b3": b3},
    }


def _reference_forward(inputs, in_mask, params):
    ep, dp = params["enc"], params["dec"]
    B, T, _ = inputs.shape
    e2 = ep["w_hh"].shape[1]
    d3 = dp["w_hh"].shape[1]
    d0 = dp["w3"].shape[0]
    maskf = in_mask.astype(jnp.float32)

    def lstm_cell(x, h, c, w_ih, w_hh, b_ih, b_hh):
        hd = w_hh.shape[1]
        gates = x @ w_ih.T + b_ih + h @ w_hh.T + b_hh
        gi, gf = gates[:, 0:hd], gates[:, hd:2 * hd]
        gg, go = gates[:, 2 * hd:3 * hd], gates[:, 3 * hd:4 * hd]
        c_new = _sigmoid(gf) * c + _sigmoid(gi) * jnp.tanh(gg)
        return _sigmoid(go) * jnp.tanh(c_new), c_new

    # encoder (pack/pad emulated by zeroing padded-position outputs)
    a = jnp.maximum(jnp.einsum("btf,of->bto", inputs, ep["w1"]) + ep["b1"], 0.0)
    h = jnp.zeros((B, e2), jnp.float32)
    c = jnp.zeros((B, e2), jnp.float32)
    enc_h = []
    for t in range(T):
        h, c = lstm_cell(a[:, t, :], h, c, ep["w_ih"], ep["w_hh"], ep["b_ih"], ep["b_hh"])
        enc_h.append(h * maskf[:, t:t + 1])
    enc_h = jnp.stack(enc_h, axis=1)
    hid_r = jnp.einsum("bth,oh->bto", enc_h, ep["w2"]) + ep["b2"]

    # decoder
    K = jnp.einsum("btd,od->bto", hid_r, dp["wk"]) + dp["bk"]
    V = jnp.einsum("btd,od->bto", hid_r, dp["wv"]) + dp["bv"]
    h = jnp.zeros((B, d3), jnp.float32)
    c = jnp.zeros((B, d3), jnp.float32)
    x_in = jnp.zeros((B, d0), jnp.float32)
    scale = 1.0 / float(d3) ** 0.5
    outs, attns = [], []
    for _ in range(T):
        a1 = jnp.maximum(x_in @ dp["w1"].T + dp["b1"], 0.0)
        h, c = lstm_cell(a1, h, c, dp["w_ih"], dp["w_hh"], dp["b_ih"], dp["b_hh"])
        q = h @ dp["wq"].T + dp["bq"]
        scores = jnp.einsum("bd,bsd->bs", q, K) * scale
        scores = jnp.where(maskf > 0.5, scores, -1e9)
        scores = scores - jnp.max(scores, axis=-1, keepdims=True)
        e = jnp.exp(scores)
        attn = e / jnp.sum(e, axis=-1, keepdims=True)
        ctx = jnp.einsum("bs,bsd->bd", attn, V)
        out = ctx @ dp["w3"].T + dp["b3"]
        outs.append(out)
        attns.append(attn)
        x_in = out
    dec_out = jnp.stack(outs, axis=1) * maskf[:, :, None]
    attn_w = jnp.stack(attns, axis=1)
    return dec_out, attn_w


if __name__ == "__main__":
    key = jax.random.PRNGKey(0)
    k_x, k_p = jax.random.split(key)

    enc_size_list = [32, 48, 56, 64]   # [feat_in, lin1, lstm_hidden, enc_out]
    dec_size_list = [32, 48, 56, 64]   # [token/out, lin1, (unused), lstm_hidden]
    B, T = 2, 8

    inputs = jax.random.normal(k_x, (B, T, enc_size_list[0]), dtype=jnp.float32)
    input_lens = jnp.array([8, 5], dtype=jnp.int32)
    in_mask = (jnp.arange(T)[None, :] < input_lens[:, None]).astype(jnp.float32)

    params = init_params(k_p, enc_size_list, dec_size_list)

    # one-time weight padding / gate fusion, outside the per-call jitted path
    prep, meta = prepare_params(params)
    forward = jax.jit(functools.partial(
        lrl_init_lral_net_forward, prep=prep,
        d0=meta["d0"], d0p=meta["d0p"], e2p=meta["e2p"]))

    dec_out, attn_w = forward(inputs, input_lens, in_mask)
    dec_out = jax.block_until_ready(dec_out)
    attn_w = jax.block_until_ready(attn_w)

    ref_out, ref_attn = _reference_forward(inputs, in_mask, params)

    assert dec_out.shape == (B, T, dec_size_list[0])
    assert attn_w.shape == (B, T, T)
    assert jnp.allclose(dec_out, ref_out, atol=1e-3, rtol=1e-3), \
        float(jnp.max(jnp.abs(dec_out - ref_out)))
    assert jnp.allclose(attn_w, ref_attn, atol=1e-3, rtol=1e-3), \
        float(jnp.max(jnp.abs(attn_w - ref_attn)))

    print("KERNEL_OK")
</pallas_src>

<mosaic_0001>
module attributes {stable_mosaic.version = 11 : i64} {
  func.func @_lrl_init_lral_fused_kernel(%arg0: memref<16x32xf32, #tpu.memory_space<vmem>>, %arg1: memref<2x8xf32, #tpu.memory_space<vmem>>, %arg2: memref<48x32xf32, #tpu.memory_space<vmem>>, %arg3: memref<1x48xf32, #tpu.memory_space<vmem>>, %arg4: memref<256x48xf32, #tpu.memory_space<vmem>>, %arg5: memref<256x64xf32, #tpu.memory_space<vmem>>, %arg6: memref<1x256xf32, #tpu.memory_space<vmem>>, %arg7: memref<64x64xf32, #tpu.memory_space<vmem>>, %arg8: memref<1x64xf32, #tpu.memory_space<vmem>>, %arg9: memref<48x128xf32, #tpu.memory_space<vmem>>, %arg10: memref<1x48xf32, #tpu.memory_space<vmem>>, %arg11: memref<256x48xf32, #tpu.memory_space<vmem>>, %arg12: memref<256x64xf32, #tpu.memory_space<vmem>>, %arg13: memref<1x256xf32, #tpu.memory_space<vmem>>, %arg14: memref<64x64xf32, #tpu.memory_space<vmem>>, %arg15: memref<1x64xf32, #tpu.memory_space<vmem>>, %arg16: memref<64x64xf32, #tpu.memory_space<vmem>>, %arg17: memref<1x64xf32, #tpu.memory_space<vmem>>, %arg18: memref<64x64xf32, #tpu.memory_space<vmem>>, %arg19: memref<1x64xf32, #tpu.memory_space<vmem>>, %arg20: memref<128x64xf32, #tpu.memory_space<vmem>>, %arg21: memref<1x128xf32, #tpu.memory_space<vmem>>, %arg22: memref<8x2x128xf32, #tpu.memory_space<vmem>>, %arg23: memref<8x2x8xf32, #tpu.memory_space<vmem>>, %arg24: memref<16x64xf32, #tpu.memory_space<vmem>>) attributes {dimension_semantics = [], scalar_prefetch = 0 : i64, scratch_operands = 1 : i64, tpu.core_type = #tpu.core_type<tc>} {
    %c0 = arith.constant 0 : index
    %c0_0 = arith.constant 0 : index
    %0 = vector.load %arg0[%c0, %c0_0] : memref<16x32xf32, #tpu.memory_space<vmem>>, vector<16x32xf32>
    %c0_1 = arith.constant 0 : index
    %c0_2 = arith.constant 0 : index
    %1 = vector.load %arg2[%c0_1, %c0_2] : memref<48x32xf32, #tpu.memory_space<vmem>>, vector<48x32xf32>
    %cst = arith.constant dense<0.000000e+00> : vector<16x48xf32>
    %2 = tpu.matmul %0, %1, %cst {dimension_numbers = #tpu.dot_dimension_numbers<[1], [1], [0], [0], [0, 0, 1, 0], [], []>} : vector<16x32xf32>, vector<48x32xf32>, vector<16x48xf32> -> vector<16x48xf32>
    %c0_3 = arith.constant 0 : index
    %c0_4 = arith.constant 0 : index
    %3 = vector.load %arg3[%c0_3, %c0_4] : memref<1x48xf32, #tpu.memory_space<vmem>>, vector<1x48xf32>
    %4 = vector.broadcast %3 : vector<1x48xf32> to vector<16x48xf32>
    %5 = arith.addf %2, %4 : vector<16x48xf32>
    %cst_5 = arith.constant 0.000000e+00 : f32
    %6 = vector.broadcast %cst_5 : f32 to vector<16x48xf32>
    %7 = arith.maximumf %5, %6 : vector<16x48xf32>
    %c0_6 = arith.constant 0 : index
    %c0_7 = arith.constant 0 : index
    %8 = vector.load %arg4[%c0_6, %c0_7] : memref<256x48xf32, #tpu.memory_space<vmem>>, vector<256x48xf32>
    %cst_8 = arith.constant dense<0.000000e+00> : vector<16x256xf32>
    %9 = tpu.matmul %7, %8, %cst_8 {dimension_numbers = #tpu.dot_dimension_numbers<[1], [1], [0], [0], [0, 0, 1, 0], [], []>} : vector<16x48xf32>, vector<256x48xf32>, vector<16x256xf32> -> vector<16x256xf32>
    %c0_9 = arith.constant 0 : index
    %c0_10 = arith.constant 0 : index
    %10 = vector.load %arg6[%c0_9, %c0_10] : memref<1x256xf32, #tpu.memory_space<vmem>>, vector<1x256xf32>
    %11 = vector.broadcast %10 : vector<1x256xf32> to vector<16x256xf32>
    %12 = arith.addf %9, %11 : vector<16x256xf32>
    %cst_11 = arith.constant 0.000000e+00 : f32
    %13 = vector.broadcast %cst_11 : f32 to vector<2x64xf32>
    %cst_12 = arith.constant 0.000000e+00 : f32
    %14 = vector.broadcast %cst_12 : f32 to vector<2x64xf32>
    %15 = vector.extract_strided_slice %12 {offsets = [0, 0], sizes = [2, 256], strides = [1, 1]} : vector<16x256xf32> to vector<2x256xf32>
    %c0_13 = arith.constant 0 : index
    %c0_14 = arith.constant 0 : index
    %16 = vector.load %arg5[%c0_13, %c0_14] : memref<256x64xf32, #tpu.memory_space<vmem>>, vector<256x64xf32>
    %cst_15 = arith.constant dense<0.000000e+00> : vector<2x256xf32>
    %17 = tpu.matmul %13, %16, %cst_15 {dimension_numbers = #tpu.dot_dimension_numbers<[1], [1], [0], [0], [0, 0, 1, 0], [], []>} : vector<2x64xf32>, vector<256x64xf32>, vector<2x256xf32> -> vector<2x256xf32>
    %18 = arith.addf %15, %17 : vector<2x256xf32>
    %19 = vector.extract_strided_slice %18 {offsets = [0, 0], sizes = [2, 64], strides = [1, 1]} : vector<2x256xf32> to vector<2x64xf32>
    %cst_16 = arith.constant 0.000000e+00 : f32
    %20 = vector.broadcast %cst_16 : f32 to vector<2x64xf32>
    %21 = arith.subf %20, %19 : vector<2x64xf32>
    %22 = math.exp %21 : vector<2x64xf32>
    %cst_17 = arith.constant 1.000000e+00 : f32
    %23 = vector.broadcast %cst_17 : f32 to vector<2x64xf32>
    %24 = arith.addf %23, %22 : vector<2x64xf32>
    %cst_18 = arith.constant 1.000000e+00 : f32
    %25 = vector.broadcast %cst_18 : f32 to vector<2x64xf32>
    %26 = arith.divf %25, %24 : vector<2x64xf32>
    %27 = vector.extract_strided_slice %18 {offsets = [0, 64], sizes = [2, 64], strides = [1, 1]} : vector<2x256xf32> to vector<2x64xf32>
    %cst_19 = arith.constant 0.000000e+00 : f32
    %28 = vector.broadcast %cst_19 : f32 to vector<2x64xf32>
    %29 = arith.subf %28, %27 : vector<2x64xf32>
    %30 = math.exp %29 : vector<2x64xf32>
    %cst_20 = arith.constant 1.000000e+00 : f32
    %31 = vector.broadcast %cst_20 : f32 to vector<2x64xf32>
    %32 = arith.addf %31, %30 : vector<2x64xf32>
    %cst_21 = arith.constant 1.000000e+00 : f32
    %33 = vector.broadcast %cst_21 : f32 to vector<2x64xf32>
    %34 = arith.divf %33, %32 : vector<2x64xf32>
    %35 = vector.extract_strided_slice %18 {offsets = [0, 128], sizes = [2, 64], strides = [1, 1]} : vector<2x256xf32> to vector<2x64xf32>
    %36 = math.tanh %35 : vector<2x64xf32>
    %37 = vector.extract_strided_slice %18 {offsets = [0, 192], sizes = [2, 64], strides = [1, 1]} : vector<2x256xf32> to vector<2x64xf32>
    %cst_22 = arith.constant 0.000000e+00 : f32
    %38 = vector.broadcast %cst_22 : f32 to vector<2x64xf32>
    %39 = arith.subf %38, %37 : vector<2x64xf32>
    %40 = math.exp %39 : vector<2x64xf32>
    %cst_23 = arith.constant 1.000000e+00 : f32
    %41 = vector.broadcast %cst_23 : f32 to vector<2x64xf32>
    %42 = arith.addf %41, %40 : vector<2x64xf32>
    %cst_24 = arith.constant 1.000000e+00 : f32
    %43 = vector.broadcast %cst_24 : f32 to vector<2x64xf32>
    %44 = arith.divf %43, %42 : vector<2x64xf32>
    %45 = arith.mulf %34, %14 : vector<2x64xf32>
    %46 = arith.mulf %26, %36 : vector<2x64xf32>
    %47 = arith.addf %45, %46 : vector<2x64xf32>
    %48 = math.tanh %47 : vector<2x64xf32>
    %49 = arith.mulf %44, %48 : vector<2x64xf32>
    %c0_25 = arith.constant 0 : index
    %c0_26 = arith.constant 0 : index
    %50 = vector.load %arg24[%c0_25, %c0_26] : memref<16x64xf32, #tpu.memory_space<vmem>>, vector<2x64xf32>
    tpu.vector_store %arg24[%c0_25, %c0_26], %49 {strides = array<i32>} : memref<16x64xf32, #tpu.memory_space<vmem>>, vector<2x64xf32>,
    %51 = vector.extract_strided_slice %12 {offsets = [2, 0], sizes = [2, 256], strides = [1, 1]} : vector<16x256xf32> to vector<2x256xf32>
    %c0_27 = arith.constant 0 : index
    %c0_28 = arith.constant 0 : index
    %52 = vector.load %arg5[%c0_27, %c0_28] : memref<256x64xf32, #tpu.memory_space<vmem>>, vector<256x64xf32>
    %cst_29 = arith.constant dense<0.000000e+00> : vector<2x256xf32>
    %53 = tpu.matmul %49, %52, %cst_29 {dimension_numbers = #tpu.dot_dimension_numbers<[1], [1], [0], [0], [0, 0, 1, 0], [], []>} : vector<2x64xf32>, vector<256x64xf32>, vector<2x256xf32> -> vector<2x256xf32>
    %54 = arith.addf %51, %53 : vector<2x256xf32>
    %55 = vector.extract_strided_slice %54 {offsets = [0, 0], sizes = [2, 64], strides = [1, 1]} : vector<2x256xf32> to vector<2x64xf32>
    %cst_30 = arith.constant 0.000000e+00 : f32
    %56 = vector.broadcast %cst_30 : f32 to vector<2x64xf32>
    %57 = arith.subf %56, %55 : vector<2x64xf32>
    %58 = math.exp %57 : vector<2x64xf32>
    %cst_31 = arith.constant 1.000000e+00 : f32
    %59 = vector.broadcast %cst_31 : f32 to vector<2x64xf32>
    %60 = arith.addf %59, %58 : vector<2x64xf32>
    %cst_32 = arith.constant 1.000000e+00 : f32
    %61 = vector.broadcast %cst_32 : f32 to vector<2x64xf32>
    %62 = arith.divf %61, %60 : vector<2x64xf32>
    %63 = vector.extract_strided_slice %54 {offsets = [0, 64], sizes = [2, 64], strides = [1, 1]} : vector<2x256xf32> to vector<2x64xf32>
    %cst_33 = arith.constant 0.000000e+00 : f32
    %64 = vector.broadcast %cst_33 : f32 to vector<2x64xf32>
    %65 = arith.subf %64, %63 : vector<2x64xf32>
    %66 = math.exp %65 : vector<2x64xf32>
    %cst_34 = arith.constant 1.000000e+00 : f32
    %67 = vector.broadcast %cst_34 : f32 to vector<2x64xf32>
    %68 = arith.addf %67, %66 : vector<2x64xf32>
    %cst_35 = arith.constant 1.000000e+00 : f32
    %69 = vector.broadcast %cst_35 : f32 to vector<2x64xf32>
    %70 = arith.divf %69, %68 : vector<2x64xf32>
    %71 = vector.extract_strided_slice %54 {offsets = [0, 128], sizes = [2, 64], strides = [1, 1]} : vector<2x256xf32> to vector<2x64xf32>
    %72 = math.tanh %71 : vector<2x64xf32>
    %73 = vector.extract_strided_slice %54 {offsets = [0, 192], sizes = [2, 64], strides = [1, 1]} : vector<2x256xf32> to vector<2x64xf32>
    %cst_36 = arith.constant 0.000000e+00 : f32
    %74 = vector.broadcast %cst_36 : f32 to vector<2x64xf32>
    %75 = arith.subf %74, %73 : vector<2x64xf32>
    %76 = math.exp %75 : vector<2x64xf32>
    %cst_37 = arith.constant 1.000000e+00 : f32
    %77 = vector.broadcast %cst_37 : f32 to vector<2x64xf32>
    %78 = arith.addf %77, %76 : vector<2x64xf32>
    %cst_38 = arith.constant 1.000000e+00 : f32
    %79 = vector.broadcast %cst_38 : f32 to vector<2x64xf32>
    %80 = arith.divf %79, %78 : vector<2x64xf32>
    %81 = arith.mulf %70, %47 : vector<2x64xf32>
    %82 = arith.mulf %62, %72 : vector<2x64xf32>
    %83 = arith.addf %81, %82 : vector<2x64xf32>
    %84 = math.tanh %83 : vector<2x64xf32>
    %85 = arith.mulf %80, %84 : vector<2x64xf32>
    %c2 = arith.constant 2 : index
    %c0_39 = arith.constant 0 : index
    %86 = vector.load %arg24[%c2, %c0_39] : memref<16x64xf32, #tpu.memory_space<vmem>>, vector<2x64xf32>
    tpu.vector_store %arg24[%c2, %c0_39], %85 {strides = array<i32>} : memref<16x64xf32, #tpu.memory_space<vmem>>, vector<2x64xf32>,
    %87 = vector.extract_strided_slice %12 {offsets = [4, 0], sizes = [2, 256], strides = [1, 1]} : vector<16x256xf32> to vector<2x256xf32>
    %c0_40 = arith.constant 0 : index
    %c0_41 = arith.constant 0 : index
    %88 = vector.load %arg5[%c0_40, %c0_41] : memref<256x64xf32, #tpu.memory_space<vmem>>, vector<256x64xf32>
    %cst_42 = arith.constant dense<0.000000e+00> : vector<2x256xf32>
    %89 = tpu.matmul %85, %88, %cst_42 {dimension_numbers = #tpu.dot_dimension_numbers<[1], [1], [0], [0], [0, 0, 1, 0], [], []>} : vector<2x64xf32>, vector<256x64xf32>, vector<2x256xf32> -> vector<2x256xf32>
    %90 = arith.addf %87, %89 : vector<2x256xf32>
    %91 = vector.extract_strided_slice %90 {offsets = [0, 0], sizes = [2, 64], strides = [1, 1]} : vector<2x256xf32> to vector<2x64xf32>
    %cst_43 = arith.constant 0.000000e+00 : f32
    %92 = vector.broadcast %cst_43 : f32 to vector<2x64xf32>
    %93 = arith.subf %92, %91 : vector<2x64xf32>
    %94 = math.exp %93 : vector<2x64xf32>
    %cst_44 = arith.constant 1.000000e+00 : f32
    %95 = vector.broadcast %cst_44 : f32 to vector<2x64xf32>
    %96 = arith.addf %95, %94 : vector<2x64xf32>
    %cst_45 = arith.constant 1.000000e+00 : f32
    %97 = vector.broadcast %cst_45 : f32 to vector<2x64xf32>
    %98 = arith.divf %97, %96 : vector<2x64xf32>
    %99 = vector.extract_strided_slice %90 {offsets = [0, 64], sizes = [2, 64], strides = [1, 1]} : vector<2x256xf32> to vector<2x64xf32>
    %cst_46 = arith.constant 0.000000e+00 : f32
    %100 = vector.broadcast %cst_46 : f32 to vector<2x64xf32>
    %101 = arith.subf %100, %99 : vector<2x64xf32>
    %102 = math.exp %101 : vector<2x64xf32>
    %cst_47 = arith.constant 1.000000e+00 : f32
    %103 = vector.broadcast %cst_47 : f32 to vector<2x64xf32>
    %104 = arith.addf %103, %102 : vector<2x64xf32>
    %cst_48 = arith.constant 1.000000e+00 : f32
    %105 = vector.broadcast %cst_48 : f32 to vector<2x64xf32>
    %106 = arith.divf %105, %104 : vector<2x64xf32>
    %107 = vector.extract_strided_slice %90 {offsets = [0, 128], sizes = [2, 64], strides = [1, 1]} : vector<2x256xf32> to vector<2x64xf32>
    %108 = math.tanh %107 : vector<2x64xf32>
    %109 = vector.extract_strided_slice %90 {offsets = [0, 192], sizes = [2, 64], strides = [1, 1]} : vector<2x256xf32> to vector<2x64xf32>
    %cst_49 = arith.constant 0.000000e+00 : f32
    %110 = vector.broadcast %cst_49 : f32 to vector<2x64xf32>
    %111 = arith.subf %110, %109 : vector<2x64xf32>
    %112 = math.exp %111 : vector<2x64xf32>
    %cst_50 = arith.constant 1.000000e+00 : f32
    %113 = vector.broadcast %cst_50 : f32 to vector<2x64xf32>
    %114 = arith.addf %113, %112 : vector<2x64xf32>
    %cst_51 = arith.constant 1.000000e+00 : f32
    %115 = vector.broadcast %cst_51 : f32 to vector<2x64xf32>
    %116 = arith.divf %115, %114 : vector<2x64xf32>
    %117 = arith.mulf %106, %83 : vector<2x64xf32>
    %118 = arith.mulf %98, %108 : vector<2x64xf32>
    %119 = arith.addf %117, %118 : vector<2x64xf32>
    %120 = math.tanh %119 : vector<2x64xf32>
    %121 = arith.mulf %116, %120 : vector<2x64xf32>
    %c4 = arith.constant 4 : index
    %c0_52 = arith.constant 0 : index
    %122 = vector.load %arg24[%c4, %c0_52] : memref<16x64xf32, #tpu.memory_space<vmem>>, vector<2x64xf32>
    tpu.vector_store %arg24[%c4, %c0_52], %121 {strides = array<i32>} : memref<16x64xf32, #tpu.memory_space<vmem>>, vector<2x64xf32>,
    %123 = vector.extract_strided_slice %12 {offsets = [6, 0], sizes = [2, 256], strides = [1, 1]} : vector<16x256xf32> to vector<2x256xf32>
    %c0_53 = arith.constant 0 : index
    %c0_54 = arith.constant 0 : index
    %124 = vector.load %arg5[%c0_53, %c0_54] : memref<256x64xf32, #tpu.memory_space<vmem>>, vector<256x64xf32>
    %cst_55 = arith.constant dense<0.000000e+00> : vector<2x256xf32>
    %125 = tpu.matmul %121, %124, %cst_55 {dimension_numbers = #tpu.dot_dimension_numbers<[1], [1], [0], [0], [0, 0, 1, 0], [], []>} : vector<2x64xf32>, vector<256x64xf32>, vector<2x256xf32> -> vector<2x256xf32>
    %126 = arith.addf %123, %125 : vector<2x256xf32>
    %127 = vector.extract_strided_slice %126 {offsets = [0, 0], sizes = [2, 64], strides = [1, 1]} : vector<2x256xf32> to vector<2x64xf32>
    %cst_56 = arith.constant 0.000000e+00 : f32
    %128 = vector.broadcast %cst_56 : f32 to vector<2x64xf32>
    %129 = arith.subf %128, %127 : vector<2x64xf32>
    %130 = math.exp %129 : vector<2x64xf32>
    %cst_57 = arith.constant 1.000000e+00 : f32
    %131 = vector.broadcast %cst_57 : f32 to vector<2x64xf32>
    %132 = arith.addf %131, %130 : vector<2x64xf32>
    %cst_58 = arith.constant 1.000000e+00 : f32
    %133 = vector.broadcast %cst_58 : f32 to vector<2x64xf32>
    %134 = arith.divf %133, %132 : vector<2x64xf32>
    %135 = vector.extract_strided_slice %126 {offsets = [0, 64], sizes = [2, 64], strides = [1, 1]} : vector<2x256xf32> to vector<2x64xf32>
    %cst_59 = arith.constant 0.000000e+00 : f32
    %136 = vector.broadcast %cst_59 : f32 to vector<2x64xf32>
    %137 = arith.subf %136, %135 : vector<2x64xf32>
    %138 = math.exp %137 : vector<2x64xf32>
    %cst_60 = arith.constant 1.000000e+00 : f32
    %139 = vector.broadcast %cst_60 : f32 to vector<2x64xf32>
    %140 = arith.addf %139, %138 : vector<2x64xf32>
    %cst_61 = arith.constant 1.000000e+00 : f32
    %141 = vector.broadcast %cst_61 : f32 to vector<2x64xf32>
    %142 = arith.divf %141, %140 : vector<2x64xf32>
    %143 = vector.extract_strided_slice %126 {offsets = [0, 128], sizes = [2, 64], strides = [1, 1]} : vector<2x256xf32> to vector<2x64xf32>
    %144 = math.tanh %143 : vector<2x64xf32>
    %145 = vector.extract_strided_slice %126 {offsets = [0, 192], sizes = [2, 64], strides = [1, 1]} : vector<2x256xf32> to vector<2x64xf32>
    %cst_62 = arith.constant 0.000000e+00 : f32
    %146 = vector.broadcast %cst_62 : f32 to vector<2x64xf32>
    %147 = arith.subf %146, %145 : vector<2x64xf32>
    %148 = math.exp %147 : vector<2x64xf32>
    %cst_63 = arith.constant 1.000000e+00 : f32
    %149 = vector.broadcast %cst_63 : f32 to vector<2x64xf32>
    %150 = arith.addf %149, %148 : vector<2x64xf32>
    %cst_64 = arith.constant 1.000000e+00 : f32
    %151 = vector.broadcast %cst_64 : f32 to vector<2x64xf32>
    %152 = arith.divf %151, %150 : vector<2x64xf32>
    %153 = arith.mulf %142, %119 : vector<2x64xf32>
    %154 = arith.mulf %134, %144 : vector<2x64xf32>
    %155 = arith.addf %153, %154 : vector<2x64xf32>
    %156 = math.tanh %155 : vector<2x64xf32>
    %157 = arith.mulf %152, %156 : vector<2x64xf32>
    %c6 = arith.constant 6 : index
    %c0_65 = arith.constant 0 : index
    %158 = vector.load %arg24[%c6, %c0_65] : memref<16x64xf32, #tpu.memory_space<vmem>>, vector<2x64xf32>
    tpu.vector_store %arg24[%c6, %c0_65], %157 {strides = array<i32>} : memref<16x64xf32, #tpu.memory_space<vmem>>, vector<2x64xf32>,
    %159 = vector.extract_strided_slice %12 {offsets = [8, 0], sizes = [2, 256], strides = [1, 1]} : vector<16x256xf32> to vector<2x256xf32>
    %c0_66 = arith.constant 0 : index
    %c0_67 = arith.constant 0 : index
    %160 = vector.load %arg5[%c0_66, %c0_67] : memref<256x64xf32, #tpu.memory_space<vmem>>, vector<256x64xf32>
    %cst_68 = arith.constant dense<0.000000e+00> : vector<2x256xf32>
    %161 = tpu.matmul %157, %160, %cst_68 {dimension_numbers = #tpu.dot_dimension_numbers<[1], [1], [0], [0], [0, 0, 1, 0], [], []>} : vector<2x64xf32>, vector<256x64xf32>, vector<2x256xf32> -> vector<2x256xf32>
    %162 = arith.addf %159, %161 : vector<2x256xf32>
    %163 = vector.extract_strided_slice %162 {offsets = [0, 0], sizes = [2, 64], strides = [1, 1]} : vector<2x256xf32> to vector<2x64xf32>
    %cst_69 = arith.constant 0.000000e+00 : f32
    %164 = vector.broadcast %cst_69 : f32 to vector<2x64xf32>
    %165 = arith.subf %164, %163 : vector<2x64xf32>
    %166 = math.exp %165 : vector<2x64xf32>
    %cst_70 = arith.constant 1.000000e+00 : f32
    %167 = vector.broadcast %cst_70 : f32 to vector<2x64xf32>
    %168 = arith.addf %167, %166 : vector<2x64xf32>
    %cst_71 = arith.constant 1.000000e+00 : f32
    %169 = vector.broadcast %cst_71 : f32 to vector<2x64xf32>
    %170 = arith.divf %169, %168 : vector<2x64xf32>
    %171 = vector.extract_strided_slice %162 {offsets = [0, 64], sizes = [2, 64], strides = [1, 1]} : vector<2x256xf32> to vector<2x64xf32>
    %cst_72 = arith.constant 0.000000e+00 : f32
    %172 = vector.broadcast %cst_72 : f32 to vector<2x64xf32>
    %173 = arith.subf %172, %171 : vector<2x64xf32>
    %174 = math.exp %173 : vector<2x64xf32>
    %cst_73 = arith.constant 1.000000e+00 : f32
    %175 = vector.broadcast %cst_73 : f32 to vector<2x64xf32>
    %176 = arith.addf %175, %174 : vector<2x64xf32>
    %cst_74 = arith.constant 1.000000e+00 : f32
    %177 = vector.broadcast %cst_74 : f32 to vector<2x64xf32>
    %178 = arith.divf %177, %176 : vector<2x64xf32>
    %179 = vector.extract_strided_slice %162 {offsets = [0, 128], sizes = [2, 64], strides = [1, 1]} : vector<2x256xf32> to vector<2x64xf32>
    %180 = math.tanh %179 : vector<2x64xf32>
    %181 = vector.extract_strided_slice %162 {offsets = [0, 192], sizes = [2, 64], strides = [1, 1]} : vector<2x256xf32> to vector<2x64xf32>
    %cst_75 = arith.constant 0.000000e+00 : f32
    %182 = vector.broadcast %cst_75 : f32 to vector<2x64xf32>
    %183 = arith.subf %182, %181 : vector<2x64xf32>
    %184 = math.exp %183 : vector<2x64xf32>
    %cst_76 = arith.constant 1.000000e+00 : f32
    %185 = vector.broadcast %cst_76 : f32 to vector<2x64xf32>
    %186 = arith.addf %185, %184 : vector<2x64xf32>
    %cst_77 = arith.constant 1.000000e+00 : f32
    %187 = vector.broadcast %cst_77 : f32 to vector<2x64xf32>
    %188 = arith.divf %187, %186 : vector<2x64xf32>
    %189 = arith.mulf %178, %155 : vector<2x64xf32>
    %190 = arith.mulf %170, %180 : vector<2x64xf32>
    %191 = arith.addf %189, %190 : vector<2x64xf32>
    %192 = math.tanh %191 : vector<2x64xf32>
    %193 = arith.mulf %188, %192 : vector<2x64xf32>
    %c8 = arith.constant 8 : index
    %c0_78 = arith.constant 0 : index
    %194 = vector.load %arg24[%c8, %c0_78] : memref<16x64xf32, #tpu.memory_space<vmem>>, vector<2x64xf32>
    tpu.vector_store %arg24[%c8, %c0_78], %193 {strides = array<i32>} : memref<16x64xf32, #tpu.memory_space<vmem>>, vector<2x64xf32>,
    %195 = vector.extract_strided_slice %12 {offsets = [10, 0], sizes = [2, 256], strides = [1, 1]} : vector<16x256xf32> to vector<2x256xf32>
    %c0_79 = arith.constant 0 : index
    %c0_80 = arith.constant 0 : index
    %196 = vector.load %arg5[%c0_79, %c0_80] : memref<256x64xf32, #tpu.memory_space<vmem>>, vector<256x64xf32>
    %cst_81 = arith.constant dense<0.000000e+00> : vector<2x256xf32>
    %197 = tpu.matmul %193, %196, %cst_81 {dimension_numbers = #tpu.dot_dimension_numbers<[1], [1], [0], [0], [0, 0, 1, 0], [], []>} : vector<2x64xf32>, vector<256x64xf32>, vector<2x256xf32> -> vector<2x256xf32>
    %198 = arith.addf %195, %197 : vector<2x256xf32>
    %199 = vector.extract_strided_slice %198 {offsets = [0, 0], sizes = [2, 64], strides = [1, 1]} : vector<2x256xf32> to vector<2x64xf32>
    %cst_82 = arith.constant 0.000000e+00 : f32
    %200 = vector.broadcast %cst_82 : f32 to vector<2x64xf32>
    %201 = arith.subf %200, %199 : vector<2x64xf32>
    %202 = math.exp %201 : vector<2x64xf32>
    %cst_83 = arith.constant 1.000000e+00 : f32
    %203 = vector.broadcast %cst_83 : f32 to vector<2x64xf32>
    %204 = arith.addf %203, %202 : vector<2x64xf32>
    %cst_84 = arith.constant 1.000000e+00 : f32
    %205 = vector.broadcast %cst_84 : f32 to vector<2x64xf32>
    %206 = arith.divf %205, %204 : vector<2x64xf32>
    %207 = vector.extract_strided_slice %198 {offsets = [0, 64], sizes = [2, 64], strides = [1, 1]} : vector<2x256xf32> to vector<2x64xf32>
    %cst_85 = arith.constant 0.000000e+00 : f32
    %208 = vector.broadcast %cst_85 : f32 to vector<2x64xf32>
    %209 = arith.subf %208, %207 : vector<2x64xf32>
    %210 = math.exp %209 : vector<2x64xf32>
    %cst_86 = arith.constant 1.000000e+00 : f32
    %211 = vector.broadcast %cst_86 : f32 to vector<2x64xf32>
    %212 = arith.addf %211, %210 : vector<2x64xf32>
    %cst_87 = arith.constant 1.000000e+00 : f32
    %213 = vector.broadcast %cst_87 : f32 to vector<2x64xf32>
    %214 = arith.divf %213, %212 : vector<2x64xf32>
    %215 = vector.extract_strided_slice %198 {offsets = [0, 128], sizes = [2, 64], strides = [1, 1]} : vector<2x256xf32> to vector<2x64xf32>
    %216 = math.tanh %215 : vector<2x64xf32>
    %217 = vector.extract_strided_slice %198 {offsets = [0, 192], sizes = [2, 64], strides = [1, 1]} : vector<2x256xf32> to vector<2x64xf32>
    %cst_88 = arith.constant 0.000000e+00 : f32
    %218 = vector.broadcast %cst_88 : f32 to vector<2x64xf32>
    %219 = arith.subf %218, %217 : vector<2x64xf32>
    %220 = math.exp %219 : vector<2x64xf32>
    %cst_89 = arith.constant 1.000000e+00 : f32
    %221 = vector.broadcast %cst_89 : f32 to vector<2x64xf32>
    %222 = arith.addf %221, %220 : vector<2x64xf32>
    %cst_90 = arith.constant 1.000000e+00 : f32
    %223 = vector.broadcast %cst_90 : f32 to vector<2x64xf32>
    %224 = arith.divf %223, %222 : vector<2x64xf32>
    %225 = arith.mulf %214, %191 : vector<2x64xf32>
    %226 = arith.mulf %206, %216 : vector<2x64xf32>
    %227 = arith.addf %225, %226 : vector<2x64xf32>
    %228 = math.tanh %227 : vector<2x64xf32>
    %229 = arith.mulf %224, %228 : vector<2x64xf32>
    %c10 = arith.constant 10 : index
    %c0_91 = arith.constant 0 : index
    %230 = vector.load %arg24[%c10, %c0_91] : memref<16x64xf32, #tpu.memory_space<vmem>>, vector<2x64xf32>
    tpu.vector_store %arg24[%c10, %c0_91], %229 {strides = array<i32>} : memref<16x64xf32, #tpu.memory_space<vmem>>, vector<2x64xf32>,
    %231 = vector.extract_strided_slice %12 {offsets = [12, 0], sizes = [2, 256], strides = [1, 1]} : vector<16x256xf32> to vector<2x256xf32>
    %c0_92 = arith.constant 0 : index
    %c0_93 = arith.constant 0 : index
    %232 = vector.load %arg5[%c0_92, %c0_93] : memref<256x64xf32, #tpu.memory_space<vmem>>, vector<256x64xf32>
    %cst_94 = arith.constant dense<0.000000e+00> : vector<2x256xf32>
    %233 = tpu.matmul %229, %232, %cst_94 {dimension_numbers = #tpu.dot_dimension_numbers<[1], [1], [0], [0], [0, 0, 1, 0], [], []>} : vector<2x64xf32>, vector<256x64xf32>, vector<2x256xf32> -> vector<2x256xf32>
    %234 = arith.addf %231, %233 : vector<2x256xf32>
    %235 = vector.extract_strided_slice %234 {offsets = [0, 0], sizes = [2, 64], strides = [1, 1]} : vector<2x256xf32> to vector<2x64xf32>
    %cst_95 = arith.constant 0.000000e+00 : f32
    %236 = vector.broadcast %cst_95 : f32 to vector<2x64xf32>
    %237 = arith.subf %236, %235 : vector<2x64xf32>
    %238 = math.exp %237 : vector<2x64xf32>
    %cst_96 = arith.constant 1.000000e+00 : f32
    %239 = vector.broadcast %cst_96 : f32 to vector<2x64xf32>
    %240 = arith.addf %239, %238 : vector<2x64xf32>
    %cst_97 = arith.constant 1.000000e+00 : f32
    %241 = vector.broadcast %cst_97 : f32 to vector<2x64xf32>
    %242 = arith.divf %241, %240 : vector<2x64xf32>
    %243 = vector.extract_strided_slice %234 {offsets = [0, 64], sizes = [2, 64], strides = [1, 1]} : vector<2x256xf32> to vector<2x64xf32>
    %cst_98 = arith.constant 0.000000e+00 : f32
    %244 = vector.broadcast %cst_98 : f32 to vector<2x64xf32>
    %245 = arith.subf %244, %243 : vector<2x64xf32>
    %246 = math.exp %245 : vector<2x64xf32>
    %cst_99 = arith.constant 1.000000e+00 : f32
    %247 = vector.broadcast %cst_99 : f32 to vector<2x64xf32>
    %248 = arith.addf %247, %246 : vector<2x64xf32>
    %cst_100 = arith.constant 1.000000e+00 : f32
    %249 = vector.broadcast %cst_100 : f32 to vector<2x64xf32>
    %250 = arith.divf %249, %248 : vector<2x64xf32>
    %251 = vector.extract_strided_slice %234 {offsets = [0, 128], sizes = [2, 64], strides = [1, 1]} : vector<2x256xf32> to vector<2x64xf32>
    %252 = math.tanh %251 : vector<2x64xf32>
    %253 = vector.extract_strided_slice %234 {offsets = [0, 192], sizes = [2, 64], strides = [1, 1]} : vector<2x256xf32> to vector<2x64xf32>
    %cst_101 = arith.constant 0.000000e+00 : f32
    %254 = vector.broadcast %cst_101 : f32 to vector<2x64xf32>
    %255 = arith.subf %254, %253 : vector<2x64xf32>
    %256 = math.exp %255 : vector<2x64xf32>
    %cst_102 = arith.constant 1.000000e+00 : f32
    %257 = vector.broadcast %cst_102 : f32 to vector<2x64xf32>
    %258 = arith.addf %257, %256 : vector<2x64xf32>
    %cst_103 = arith.constant 1.000000e+00 : f32
    %259 = vector.broadcast %cst_103 : f32 to vector<2x64xf32>
    %260 = arith.divf %259, %258 : vector<2x64xf32>
    %261 = arith.mulf %250, %227 : vector<2x64xf32>
    %262 = arith.mulf %242, %252 : vector<2x64xf32>
    %263 = arith.addf %261, %262 : vector<2x64xf32>
    %264 = math.tanh %263 : vector<2x64xf32>
    %265 = arith.mulf %260, %264 : vector<2x64xf32>
    %c12 = arith.constant 12 : index
    %c0_104 = arith.constant 0 : index
    %266 = vector.load %arg24[%c12, %c0_104] : memref<16x64xf32, #tpu.memory_space<vmem>>, vector<2x64xf32>
    tpu.vector_store %arg24[%c12, %c0_104], %265 {strides = array<i32>} : memref<16x64xf32, #tpu.memory_space<vmem>>, vector<2x64xf32>,
    %267 = vector.extract_strided_slice %12 {offsets = [14, 0], sizes = [2, 256], strides = [1, 1]} : vector<16x256xf32> to vector<2x256xf32>
    %c0_105 = arith.constant 0 : index
    %c0_106 = arith.constant 0 : index
    %268 = vector.load %arg5[%c0_105, %c0_106] : memref<256x64xf32, #tpu.memory_space<vmem>>, vector<256x64xf32>
    %cst_107 = arith.constant dense<0.000000e+00> : vector<2x256xf32>
    %269 = tpu.matmul %265, %268, %cst_107 {dimension_numbers = #tpu.dot_dimension_numbers<[1], [1], [0], [0], [0, 0, 1, 0], [], []>} : vector<2x64xf32>, vector<256x64xf32>, vector<2x256xf32> -> vector<2x256xf32>
    %270 = arith.addf %267, %269 : vector<2x256xf32>
    %271 = vector.extract_strided_slice %270 {offsets = [0, 0], sizes = [2, 64], strides = [1, 1]} : vector<2x256xf32> to vector<2x64xf32>
    %cst_108 = arith.constant 0.000000e+00 : f32
    %272 = vector.broadcast %cst_108 : f32 to vector<2x64xf32>
    %273 = arith.subf %272, %271 : vector<2x64xf32>
    %274 = math.exp %273 : vector<2x64xf32>
    %cst_109 = arith.constant 1.000000e+00 : f32
    %275 = vector.broadcast %cst_109 : f32 to vector<2x64xf32>
    %276 = arith.addf %275, %274 : vector<2x64xf32>
    %cst_110 = arith.constant 1.000000e+00 : f32
    %277 = vector.broadcast %cst_110 : f32 to vector<2x64xf32>
    %278 = arith.divf %277, %276 : vector<2x64xf32>
    %279 = vector.extract_strided_slice %270 {offsets = [0, 64], sizes = [2, 64], strides = [1, 1]} : vector<2x256xf32> to vector<2x64xf32>
    %cst_111 = arith.constant 0.000000e+00 : f32
    %280 = vector.broadcast %cst_111 : f32 to vector<2x64xf32>
    %281 = arith.subf %280, %279 : vector<2x64xf32>
    %282 = math.exp %281 : vector<2x64xf32>
    %cst_112 = arith.constant 1.000000e+00 : f32
    %283 = vector.broadcast %cst_112 : f32 to vector<2x64xf32>
    %284 = arith.addf %283, %282 : vector<2x64xf32>
    %cst_113 = arith.constant 1.000000e+00 : f32
    %285 = vector.broadcast %cst_113 : f32 to vector<2x64xf32>
    %286 = arith.divf %285, %284 : vector<2x64xf32>
    %287 = vector.extract_strided_slice %270 {offsets = [0, 128], sizes = [2, 64], strides = [1, 1]} : vector<2x256xf32> to vector<2x64xf32>
    %288 = math.tanh %287 : vector<2x64xf32>
    %289 = vector.extract_strided_slice %270 {offsets = [0, 192], sizes = [2, 64], strides = [1, 1]} : vector<2x256xf32> to vector<2x64xf32>
    %cst_114 = arith.constant 0.000000e+00 : f32
    %290 = vector.broadcast %cst_114 : f32 to vector<2x64xf32>
    %291 = arith.subf %290, %289 : vector<2x64xf32>
    %292 = math.exp %291 : vector<2x64xf32>
    %cst_115 = arith.constant 1.000000e+00 : f32
    %293 = vector.broadcast %cst_115 : f32 to vector<2x64xf32>
    %294 = arith.addf %293, %292 : vector<2x64xf32>
    %cst_116 = arith.constant 1.000000e+00 : f32
    %295 = vector.broadcast %cst_116 : f32 to vector<2x64xf32>
    %296 = arith.divf %295, %294 : vector<2x64xf32>
    %297 = arith.mulf %286, %263 : vector<2x64xf32>
    %298 = arith.mulf %278, %288 : vector<2x64xf32>
    %299 = arith.addf %297, %298 : vector<2x64xf32>
    %300 = math.tanh %299 : vector<2x64xf32>
    %301 = arith.mulf %296, %300 : vector<2x64xf32>
    %c14 = arith.constant 14 : index
    %c0_117 = arith.constant 0 : index
    %302 = vector.load %arg24[%c14, %c0_117] : memref<16x64xf32, #tpu.memory_space<vmem>>, vector<2x64xf32>
    tpu.vector_store %arg24[%c14, %c0_117], %301 {strides = array<i32>} : memref<16x64xf32, #tpu.memory_space<vmem>>, vector<2x64xf32>,
    %c0_118 = arith.constant 0 : index
    %c0_119 = arith.constant 0 : index
    %303 = vector.load %arg24[%c0_118, %c0_119] : memref<16x64xf32, #tpu.memory_space<vmem>>, vector<16x64xf32>
    %c0_120 = arith.constant 0 : index
    %c0_121 = arith.constant 0 : index
    %304 = vector.load %arg7[%c0_120, %c0_121] : memref<64x64xf32, #tpu.memory_space<vmem>>, vector<64x64xf32>
    %cst_122 = arith.constant dense<0.000000e+00> : vector<16x64xf32>
    %305 = tpu.matmul %303, %304, %cst_122 {dimension_numbers = #tpu.dot_dimension_numbers<[1], [1], [0], [0], [0, 0, 1, 0], [], []>} : vector<16x64xf32>, vector<64x64xf32>, vector<16x64xf32> -> vector<16x64xf32>
    %c0_123 = arith.constant 0 : index
    %c0_124 = arith.constant 0 : index
    %306 = vector.load %arg8[%c0_123, %c0_124] : memref<1x64xf32, #tpu.memory_space<vmem>>, vector<1x64xf32>
    %307 = vector.broadcast %306 : vector<1x64xf32> to vector<16x64xf32>
    %308 = arith.addf %305, %307 : vector<16x64xf32>
    %c0_125 = arith.constant 0 : index
    %c0_126 = arith.constant 0 : index
    %309 = vector.load %arg16[%c0_125, %c0_126] : memref<64x64xf32, #tpu.memory_space<vmem>>, vector<64x64xf32>
    %cst_127 = arith.constant dense<0.000000e+00> : vector<16x64xf32>
    %310 = tpu.matmul %308, %309, %cst_127 {dimension_numbers = #tpu.dot_dimension_numbers<[1], [1], [0], [0], [0, 0, 1, 0], [], []>} : vector<16x64xf32>, vector<64x64xf32>, vector<16x64xf32> -> vector<16x64xf32>
    %c0_128 = arith.constant 0 : index
    %c0_129 = arith.constant 0 : index
    %311 = vector.load %arg17[%c0_128, %c0_129] : memref<1x64xf32, #tpu.memory_space<vmem>>, vector<1x64xf32>
    %312 = vector.broadcast %311 : vector<1x64xf32> to vector<16x64xf32>
    %313 = arith.addf %310, %312 : vector<16x64xf32>
    %c0_130 = arith.constant 0 : index
    %c0_131 = arith.constant 0 : index
    %314 = vector.load %arg18[%c0_130, %c0_131] : memref<64x64xf32, #tpu.memory_space<vmem>>, vector<64x64xf32>
    %cst_132 = arith.constant dense<0.000000e+00> : vector<16x64xf32>
    %315 = tpu.matmul %308, %314, %cst_132 {dimension_numbers = #tpu.dot_dimension_numbers<[1], [1], [0], [0], [0, 0, 1, 0], [], []>} : vector<16x64xf32>, vector<64x64xf32>, vector<16x64xf32> -> vector<16x64xf32>
    %c0_133 = arith.constant 0 : index
    %c0_134 = arith.constant 0 : index
    %316 = vector.load %arg19[%c0_133, %c0_134] : memref<1x64xf32, #tpu.memory_space<vmem>>, vector<1x64xf32>
    %317 = vector.broadcast %316 : vector<1x64xf32> to vector<16x64xf32>
    %318 = arith.addf %315, %317 : vector<16x64xf32>
    %319 = vector.shape_cast %313 : vector<16x64xf32> to vector<8x2x64xf32>
    %320 = tpu.transpose %319, [1, 0, 2] : vector<8x2x64xf32> -> vector<2x8x64xf32>
    %321 = vector.shape_cast %318 : vector<16x64xf32> to vector<8x2x64xf32>
    %322 = tpu.transpose %321, [1, 0, 2] : vector<8x2x64xf32> -> vector<2x8x64xf32>
    %c0_135 = arith.constant 0 : index
    %c0_136 = arith.constant 0 : index
    %323 = vector.load %arg1[%c0_135, %c0_136] : memref<2x8xf32, #tpu.memory_space<vmem>>, vector<2x8xf32>
    %c0_137 = arith.constant 0 : index
    %c0_138 = arith.constant 0 : index
    %324 = vector.load %arg10[%c0_137, %c0_138] : memref<1x48xf32, #tpu.memory_space<vmem>>, vector<1x48xf32>
    %325 = vector.shape_cast %324 : vector<1x48xf32> to vector<1x48xf32>
    %326 = vector.broadcast %325 : vector<1x48xf32> to vector<2x48xf32>
    %c0_139 = arith.constant 0 : index
    %c0_140 = arith.constant 0 : index
    %327 = vector.load %arg13[%c0_139, %c0_140] : memref<1x256xf32, #tpu.memory_space<vmem>>, vector<1x256xf32>
    %328 = vector.shape_cast %327 : vector<1x256xf32> to vector<1x256xf32>
    %329 = vector.broadcast %328 : vector<1x256xf32> to vector<2x256xf32>
    %c0_141 = arith.constant 0 : index
    %c0_142 = arith.constant 0 : index
    %330 = vector.load %arg15[%c0_141, %c0_142] : memref<1x64xf32, #tpu.memory_space<vmem>>, vector<1x64xf32>
    %331 = vector.shape_cast %330 : vector<1x64xf32> to vector<1x64xf32>
    %332 = vector.broadcast %331 : vector<1x64xf32> to vector<2x64xf32>
    %c0_143 = arith.constant 0 : index
    %c0_144 = arith.constant 0 : index
    %333 = vector.load %arg21[%c0_143, %c0_144] : memref<1x128xf32, #tpu.memory_space<vmem>>, vector<1x128xf32>
    %334 = vector.shape_cast %333 : vector<1x128xf32> to vector<1x128xf32>
    %335 = vector.broadcast %334 : vector<1x128xf32> to vector<2x128xf32>
    %cst_145 = arith.constant 0.000000e+00 : f32
    %336 = vector.broadcast %cst_145 : f32 to vector<2x64xf32>
    %cst_146 = arith.constant 0.000000e+00 : f32
    %337 = vector.broadcast %cst_146 : f32 to vector<2x64xf32>
    %cst_147 = arith.constant 0.000000e+00 : f32
    %338 = vector.broadcast %cst_147 : f32 to vector<2x128xf32>
    %c0_148 = arith.constant 0 : index
    %c0_149 = arith.constant 0 : index
    %339 = vector.load %arg9[%c0_148, %c0_149] : memref<48x128xf32, #tpu.memory_space<vmem>>, vector<48x128xf32>
    %cst_150 = arith.constant dense<0.000000e+00> : vector<2x48xf32>
    %340 = tpu.matmul %338, %339, %cst_150 {dimension_numbers = #tpu.dot_dimension_numbers<[1], [1], [0], [0], [0, 0, 1, 0], [], []>} : vector<2x128xf32>, vector<48x128xf32>, vector<2x48xf32> -> vector<2x48xf32>
    %341 = arith.addf %340, %326 : vector<2x48xf32>
    %cst_151 = arith.constant 0.000000e+00 : f32
    %342 = vector.broadcast %cst_151 : f32 to vector<2x48xf32>
    %343 = arith.maximumf %341, %342 : vector<2x48xf32>
    %c0_152 = arith.constant 0 : index
    %c0_153 = arith.constant 0 : index
    %344 = vector.load %arg11[%c0_152, %c0_153] : memref<256x48xf32, #tpu.memory_space<vmem>>, vector<256x48xf32>
    %cst_154 = arith.constant dense<0.000000e+00> : vector<2x256xf32>
    %345 = tpu.matmul %343, %344, %cst_154 {dimension_numbers = #tpu.dot_dimension_numbers<[1], [1], [0], [0], [0, 0, 1, 0], [], []>} : vector<2x48xf32>, vector<256x48xf32>, vector<2x256xf32> -> vector<2x256xf32>
    %c0_155 = arith.constant 0 : index
    %c0_156 = arith.constant 0 : index
    %346 = vector.load %arg12[%c0_155, %c0_156] : memref<256x64xf32, #tpu.memory_space<vmem>>, vector<256x64xf32>
    %cst_157 = arith.constant dense<0.000000e+00> : vector<2x256xf32>
    %347 = tpu.matmul %336, %346, %cst_157 {dimension_numbers = #tpu.dot_dimension_numbers<[1], [1], [0], [0], [0, 0, 1, 0], [], []>} : vector<2x64xf32>, vector<256x64xf32>, vector<2x256xf32> -> vector<2x256xf32>
    %348 = arith.addf %345, %347 : vector<2x256xf32>
    %349 = arith.addf %348, %329 : vector<2x256xf32>
    %350 = vector.extract_strided_slice %349 {offsets = [0, 0], sizes = [2, 64], strides = [1, 1]} : vector<2x256xf32> to vector<2x64xf32>
    %cst_158 = arith.constant 0.000000e+00 : f32
    %351 = vector.broadcast %cst_158 : f32 to vector<2x64xf32>
    %352 = arith.subf %351, %350 : vector<2x64xf32>
    %353 = math.exp %352 : vector<2x64xf32>
    %cst_159 = arith.constant 1.000000e+00 : f32
    %354 = vector.broadcast %cst_159 : f32 to vector<2x64xf32>
    %355 = arith.addf %354, %353 : vector<2x64xf32>
    %cst_160 = arith.constant 1.000000e+00 : f32
    %356 = vector.broadcast %cst_160 : f32 to vector<2x64xf32>
    %357 = arith.divf %356, %355 : vector<2x64xf32>
    %358 = vector.extract_strided_slice %349 {offsets = [0, 64], sizes = [2, 64], strides = [1, 1]} : vector<2x256xf32> to vector<2x64xf32>
    %cst_161 = arith.constant 0.000000e+00 : f32
    %359 = vector.broadcast %cst_161 : f32 to vector<2x64xf32>
    %360 = arith.subf %359, %358 : vector<2x64xf32>
    %361 = math.exp %360 : vector<2x64xf32>
    %cst_162 = arith.constant 1.000000e+00 : f32
    %362 = vector.broadcast %cst_162 : f32 to vector<2x64xf32>
    %363 = arith.addf %362, %361 : vector<2x64xf32>
    %cst_163 = arith.constant 1.000000e+00 : f32
    %364 = vector.broadcast %cst_163 : f32 to vector<2x64xf32>
    %365 = arith.divf %364, %363 : vector<2x64xf32>
    %366 = vector.extract_strided_slice %349 {offsets = [0, 128], sizes = [2, 64], strides = [1, 1]} : vector<2x256xf32> to vector<2x64xf32>
    %367 = math.tanh %366 : vector<2x64xf32>
    %368 = vector.extract_strided_slice %349 {offsets = [0, 192], sizes = [2, 64], strides = [1, 1]} : vector<2x256xf32> to vector<2x64xf32>
    %cst_164 = arith.constant 0.000000e+00 : f32
    %369 = vector.broadcast %cst_164 : f32 to vector<2x64xf32>
    %370 = arith.subf %369, %368 : vector<2x64xf32>
    %371 = math.exp %370 : vector<2x64xf32>
    %cst_165 = arith.constant 1.000000e+00 : f32
    %372 = vector.broadcast %cst_165 : f32 to vector<2x64xf32>
    %373 = arith.addf %372, %371 : vector<2x64xf32>
    %cst_166 = arith.constant 1.000000e+00 : f32
    %374 = vector.broadcast %cst_166 : f32 to vector<2x64xf32>
    %375 = arith.divf %374, %373 : vector<2x64xf32>
    %376 = arith.mulf %365, %337 : vector<2x64xf32>
    %377 = arith.mulf %357, %367 : vector<2x64xf32>
    %378 = arith.addf %376, %377 : vector<2x64xf32>
    %379 = math.tanh %378 : vector<2x64xf32>
    %380 = arith.mulf %375, %379 : vector<2x64xf32>
    %c0_167 = arith.constant 0 : index
    %c0_168 = arith.constant 0 : index
    %381 = vector.load %arg14[%c0_167, %c0_168] : memref<64x64xf32, #tpu.memory_space<vmem>>, vector<64x64xf32>
    %cst_169 = arith.constant dense<0.000000e+00> : vector<2x64xf32>
    %382 = tpu.matmul %380, %381, %cst_169 {dimension_numbers = #tpu.dot_dimension_numbers<[1], [1], [0], [0], [0, 0, 1, 0], [], []>} : vector<2x64xf32>, vector<64x64xf32>, vector<2x64xf32> -> vector<2x64xf32>
    %383 = arith.addf %382, %332 : vector<2x64xf32>
    %384 = vector.shape_cast %383 : vector<2x64xf32> to vector<2x1x64xf32>
    %385 = vector.broadcast %384 : vector<2x1x64xf32> to vector<2x8x64xf32>
    %386 = arith.mulf %385, %320 : vector<2x8x64xf32>
    %cst_170 = arith.constant dense<0.000000e+00> : vector<2x8xf32>
    %387 = vector.multi_reduction <add>, %386, %cst_170 [2] : vector<2x8x64xf32> to vector<2x8xf32>
    %cst_171 = arith.constant 1.250000e-01 : f32
    %388 = vector.broadcast %cst_171 : f32 to vector<2x8xf32>
    %389 = arith.mulf %387, %388 : vector<2x8xf32>
    %cst_172 = arith.constant 5.000000e-01 : f32
    %390 = vector.broadcast %cst_172 : f32 to vector<2x8xf32>
    %391 = arith.cmpf ogt, %323, %390 : vector<2x8xf32>
    %cst_173 = arith.constant -1.000000e+09 : f32
    %392 = vector.broadcast %cst_173 : f32 to vector<2x8xf32>
    %393 = arith.select %391, %389, %392 : vector<2x8xi1>, vector<2x8xf32>
    %cst_174 = arith.constant dense<0xFF800000> : vector<2xf32>
    %394 = vector.multi_reduction <maximumf>, %393, %cst_174 [1] : vector<2x8xf32> to vector<2xf32>
    %395 = vector.shape_cast %394 : vector<2xf32> to vector<2x1xf32>
    %396 = vector.broadcast %395 : vector<2x1xf32> to vector<2x8xf32>
    %397 = arith.subf %393, %396 : vector<2x8xf32>
    %398 = math.exp %397 : vector<2x8xf32>
    %cst_175 = arith.constant dense<0.000000e+00> : vector<2xf32>
    %399 = vector.multi_reduction <add>, %398, %cst_175 [1] : vector<2x8xf32> to vector<2xf32>
    %400 = vector.shape_cast %399 : vector<2xf32> to vector<2x1xf32>
    %401 = vector.broadcast %400 : vector<2x1xf32> to vector<2x8xf32>
    %402 = arith.divf %398, %401 : vector<2x8xf32>
    %403 = vector.shape_cast %402 : vector<2x8xf32> to vector<2x8x1xf32>
    %404 = vector.broadcast %403 : vector<2x8x1xf32> to vector<2x8x64xf32>
    %405 = arith.mulf %404, %322 : vector<2x8x64xf32>
    %cst_176 = arith.constant dense<0.000000e+00> : vector<2x64xf32>
    %406 = vector.multi_reduction <add>, %405, %cst_176 [1] : vector<2x8x64xf32> to vector<2x64xf32>
    %c0_177 = arith.constant 0 : index
    %c0_178 = arith.constant 0 : index
    %407 = vector.load %arg20[%c0_177, %c0_178] : memref<128x64xf32, #tpu.memory_space<vmem>>, vector<128x64xf32>
    %cst_179 = arith.constant dense<0.000000e+00> : vector<2x128xf32>
    %408 = tpu.matmul %406, %407, %cst_179 {dimension_numbers = #tpu.dot_dimension_numbers<[1], [1], [0], [0], [0, 0, 1, 0], [], []>} : vector<2x64xf32>, vector<128x64xf32>, vector<2x128xf32> -> vector<2x128xf32>
    %409 = arith.addf %408, %335 : vector<2x128xf32>
    %410 = vector.extract_strided_slice %323 {offsets = [0, 0], sizes = [2, 1], strides = [1, 1]} : vector<2x8xf32> to vector<2x1xf32>
    %411 = vector.broadcast %410 : vector<2x1xf32> to vector<2x128xf32>
    %412 = arith.mulf %409, %411 : vector<2x128xf32>
    %c0_180 = arith.constant 0 : index
    %c0_181 = arith.constant 0 : index
    %c0_182 = arith.constant 0 : index
    %413 = vector.load %arg22[%c0_180, %c0_181, %c0_182] : memref<8x2x128xf32, #tpu.memory_space<vmem>>, vector<1x2x128xf32>
    %414 = vector.shape_cast %413 : vector<1x2x128xf32> to vector<2x128xf32>
    %415 = vector.shape_cast %412 : vector<2x128xf32> to vector<1x2x128xf32>
    tpu.vector_store %arg22[%c0_180, %c0_181, %c0_182], %415 {strides = array<i32>} : memref<8x2x128xf32, #tpu.memory_space<vmem>>, vector<1x2x128xf32>,
    %c0_183 = arith.constant 0 : index
    %c0_184 = arith.constant 0 : index
    %c0_185 = arith.constant 0 : index
    %416 = vector.load %arg23[%c0_183, %c0_184, %c0_185] : memref<8x2x8xf32, #tpu.memory_space<vmem>>, vector<1x2x8xf32>
    %417 = vector.shape_cast %416 : vector<1x2x8xf32> to vector<2x8xf32>
    %418 = vector.shape_cast %402 : vector<2x8xf32> to vector<1x2x8xf32>
    tpu.vector_store %arg23[%c0_183, %c0_184, %c0_185], %418 {strides = array<i32>} : memref<8x2x8xf32, #tpu.memory_space<vmem>>, vector<1x2x8xf32>,
    %c0_186 = arith.constant 0 : index
    %c0_187 = arith.constant 0 : index
    %419 = vector.load %arg9[%c0_186, %c0_187] : memref<48x128xf32, #tpu.memory_space<vmem>>, vector<48x128xf32>
    %cst_188 = arith.constant dense<0.000000e+00> : vector<2x48xf32>
    %420 = tpu.matmul %409, %419, %cst_188 {dimension_numbers = #tpu.dot_dimension_numbers<[1], [1], [0], [0], [0, 0, 1, 0], [], []>} : vector<2x128xf32>, vector<48x128xf32>, vector<2x48xf32> -> vector<2x48xf32>
    %421 = arith.addf %420, %326 : vector<2x48xf32>
    %cst_189 = arith.constant 0.000000e+00 : f32
    %422 = vector.broadcast %cst_189 : f32 to vector<2x48xf32>
    %423 = arith.maximumf %421, %422 : vector<2x48xf32>
    %c0_190 = arith.constant 0 : index
    %c0_191 = arith.constant 0 : index
    %424 = vector.load %arg11[%c0_190, %c0_191] : memref<256x48xf32, #tpu.memory_space<vmem>>, vector<256x48xf32>
    %cst_192 = arith.constant dense<0.000000e+00> : vector<2x256xf32>
    %425 = tpu.matmul %423, %424, %cst_192 {dimension_numbers = #tpu.dot_dimension_numbers<[1], [1], [0], [0], [0, 0, 1, 0], [], []>} : vector<2x48xf32>, vector<256x48xf32>, vector<2x256xf32> -> vector<2x256xf32>
    %c0_193 = arith.constant 0 : index
    %c0_194 = arith.constant 0 : index
    %426 = vector.load %arg12[%c0_193, %c0_194] : memref<256x64xf32, #tpu.memory_space<vmem>>, vector<256x64xf32>
    %cst_195 = arith.constant dense<0.000000e+00> : vector<2x256xf32>
    %427 = tpu.matmul %380, %426, %cst_195 {dimension_numbers = #tpu.dot_dimension_numbers<[1], [1], [0], [0], [0, 0, 1, 0], [], []>} : vector<2x64xf32>, vector<256x64xf32>, vector<2x256xf32> -> vector<2x256xf32>
    %428 = arith.addf %425, %427 : vector<2x256xf32>
    %429 = arith.addf %428, %329 : vector<2x256xf32>
    %430 = vector.extract_strided_slice %429 {offsets = [0, 0], sizes = [2, 64], strides = [1, 1]} : vector<2x256xf32> to vector<2x64xf32>
    %cst_196 = arith.constant 0.000000e+00 : f32
    %431 = vector.broadcast %cst_196 : f32 to vector<2x64xf32>
    %432 = arith.subf %431, %430 : vector<2x64xf32>
    %433 = math.exp %432 : vector<2x64xf32>
    %cst_197 = arith.constant 1.000000e+00 : f32
    %434 = vector.broadcast %cst_197 : f32 to vector<2x64xf32>
    %435 = arith.addf %434, %433 : vector<2x64xf32>
    %cst_198 = arith.constant 1.000000e+00 : f32
    %436 = vector.broadcast %cst_198 : f32 to vector<2x64xf32>
    %437 = arith.divf %436, %435 : vector<2x64xf32>
    %438 = vector.extract_strided_slice %429 {offsets = [0, 64], sizes = [2, 64], strides = [1, 1]} : vector<2x256xf32> to vector<2x64xf32>
    %cst_199 = arith.constant 0.000000e+00 : f32
    %439 = vector.broadcast %cst_199 : f32 to vector<2x64xf32>
    %440 = arith.subf %439, %438 : vector<2x64xf32>
    %441 = math.exp %440 : vector<2x64xf32>
    %cst_200 = arith.constant 1.000000e+00 : f32
    %442 = vector.broadcast %cst_200 : f32 to vector<2x64xf32>
    %443 = arith.addf %442, %441 : vector<2x64xf32>
    %cst_201 = arith.constant 1.000000e+00 : f32
    %444 = vector.broadcast %cst_201 : f32 to vector<2x64xf32>
    %445 = arith.divf %444, %443 : vector<2x64xf32>
    %446 = vector.extract_strided_slice %429 {offsets = [0, 128], sizes = [2, 64], strides = [1, 1]} : vector<2x256xf32> to vector<2x64xf32>
    %447 = math.tanh %446 : vector<2x64xf32>
    %448 = vector.extract_strided_slice %429 {offsets = [0, 192], sizes = [2, 64], strides = [1, 1]} : vector<2x256xf32> to vector<2x64xf32>
    %cst_202 = arith.constant 0.000000e+00 : f32
    %449 = vector.broadcast %cst_202 : f32 to vector<2x64xf32>
    %450 = arith.subf %449, %448 : vector<2x64xf32>
    %451 = math.exp %450 : vector<2x64xf32>
    %cst_203 = arith.constant 1.000000e+00 : f32
    %452 = vector.broadcast %cst_203 : f32 to vector<2x64xf32>
    %453 = arith.addf %452, %451 : vector<2x64xf32>
    %cst_204 = arith.constant 1.000000e+00 : f32
    %454 = vector.broadcast %cst_204 : f32 to vector<2x64xf32>
    %455 = arith.divf %454, %453 : vector<2x64xf32>
    %456 = arith.mulf %445, %378 : vector<2x64xf32>
    %457 = arith.mulf %437, %447 : vector<2x64xf32>
    %458 = arith.addf %456, %457 : vector<2x64xf32>
    %459 = math.tanh %458 : vector<2x64xf32>
    %460 = arith.mulf %455, %459 : vector<2x64xf32>
    %c0_205 = arith.constant 0 : index
    %c0_206 = arith.constant 0 : index
    %461 = vector.load %arg14[%c0_205, %c0_206] : memref<64x64xf32, #tpu.memory_space<vmem>>, vector<64x64xf32>
    %cst_207 = arith.constant dense<0.000000e+00> : vector<2x64xf32>
    %462 = tpu.matmul %460, %461, %cst_207 {dimension_numbers = #tpu.dot_dimension_numbers<[1], [1], [0], [0], [0, 0, 1, 0], [], []>} : vector<2x64xf32>, vector<64x64xf32>, vector<2x64xf32> -> vector<2x64xf32>
    %463 = arith.addf %462, %332 : vector<2x64xf32>
    %464 = vector.shape_cast %463 : vector<2x64xf32> to vector<2x1x64xf32>
    %465 = vector.broadcast %464 : vector<2x1x64xf32> to vector<2x8x64xf32>
    %466 = arith.mulf %465, %320 : vector<2x8x64xf32>
    %cst_208 = arith.constant dense<0.000000e+00> : vector<2x8xf32>
    %467 = vector.multi_reduction <add>, %466, %cst_208 [2] : vector<2x8x64xf32> to vector<2x8xf32>
    %cst_209 = arith.constant 1.250000e-01 : f32
    %468 = vector.broadcast %cst_209 : f32 to vector<2x8xf32>
    %469 = arith.mulf %467, %468 : vector<2x8xf32>
    %cst_210 = arith.constant 5.000000e-01 : f32
    %470 = vector.broadcast %cst_210 : f32 to vector<2x8xf32>
    %471 = arith.cmpf ogt, %323, %470 : vector<2x8xf32>
    %cst_211 = arith.constant -1.000000e+09 : f32
    %472 = vector.broadcast %cst_211 : f32 to vector<2x8xf32>
    %473 = arith.select %471, %469, %472 : vector<2x8xi1>, vector<2x8xf32>
    %cst_212 = arith.constant dense<0xFF800000> : vector<2xf32>
    %474 = vector.multi_reduction <maximumf>, %473, %cst_212 [1] : vector<2x8xf32> to vector<2xf32>
    %475 = vector.shape_cast %474 : vector<2xf32> to vector<2x1xf32>
    %476 = vector.broadcast %475 : vector<2x1xf32> to vector<2x8xf32>
    %477 = arith.subf %473, %476 : vector<2x8xf32>
    %478 = math.exp %477 : vector<2x8xf32>
    %cst_213 = arith.constant dense<0.000000e+00> : vector<2xf32>
    %479 = vector.multi_reduction <add>, %478, %cst_213 [1] : vector<2x8xf32> to vector<2xf32>
    %480 = vector.shape_cast %479 : vector<2xf32> to vector<2x1xf32>
    %481 = vector.broadcast %480 : vector<2x1xf32> to vector<2x8xf32>
    %482 = arith.divf %478, %481 : vector<2x8xf32>
    %483 = vector.shape_cast %482 : vector<2x8xf32> to vector<2x8x1xf32>
    %484 = vector.broadcast %483 : vector<2x8x1xf32> to vector<2x8x64xf32>
    %485 = arith.mulf %484, %322 : vector<2x8x64xf32>
    %cst_214 = arith.constant dense<0.000000e+00> : vector<2x64xf32>
    %486 = vector.multi_reduction <add>, %485, %cst_214 [1] : vector<2x8x64xf32> to vector<2x64xf32>
    %c0_215 = arith.constant 0 : index
    %c0_216 = arith.constant 0 : index
    %487 = vector.load %arg20[%c0_215, %c0_216] : memref<128x64xf32, #tpu.memory_space<vmem>>, vector<128x64xf32>
    %cst_217 = arith.constant dense<0.000000e+00> : vector<2x128xf32>
    %488 = tpu.matmul %486, %487, %cst_217 {dimension_numbers = #tpu.dot_dimension_numbers<[1], [1], [0], [0], [0, 0, 1, 0], [], []>} : vector<2x64xf32>, vector<128x64xf32>, vector<2x128xf32> -> vector<2x128xf32>
    %489 = arith.addf %488, %335 : vector<2x128xf32>
    %490 = vector.extract_strided_slice %323 {offsets = [0, 1], sizes = [2, 1], strides = [1, 1]} : vector<2x8xf32> to vector<2x1xf32>
    %491 = vector.broadcast %490 : vector<2x1xf32> to vector<2x128xf32>
    %492 = arith.mulf %489, %491 : vector<2x128xf32>
    %c1 = arith.constant 1 : index
    %c0_218 = arith.constant 0 : index
    %c0_219 = arith.constant 0 : index
    %493 = vector.load %arg22[%c1, %c0_218, %c0_219] : memref<8x2x128xf32, #tpu.memory_space<vmem>>, vector<1x2x128xf32>
    %494 = vector.shape_cast %493 : vector<1x2x128xf32> to vector<2x128xf32>
    %495 = vector.shape_cast %492 : vector<2x128xf32> to vector<1x2x128xf32>
    tpu.vector_store %arg22[%c1, %c0_218, %c0_219], %495 {strides = array<i32>} : memref<8x2x128xf32, #tpu.memory_space<vmem>>, vector<1x2x128xf32>,
    %c1_220 = arith.constant 1 : index
    %c0_221 = arith.constant 0 : index
    %c0_222 = arith.constant 0 : index
    %496 = vector.load %arg23[%c1_220, %c0_221, %c0_222] : memref<8x2x8xf32, #tpu.memory_space<vmem>>, vector<1x2x8xf32>
    %497 = vector.shape_cast %496 : vector<1x2x8xf32> to vector<2x8xf32>
    %498 = vector.shape_cast %482 : vector<2x8xf32> to vector<1x2x8xf32>
    tpu.vector_store %arg23[%c1_220, %c0_221, %c0_222], %498 {strides = array<i32>} : memref<8x2x8xf32, #tpu.memory_space<vmem>>, vector<1x2x8xf32>,
    %c0_223 = arith.constant 0 : index
    %c0_224 = arith.constant 0 : index
    %499 = vector.load %arg9[%c0_223, %c0_224] : memref<48x128xf32, #tpu.memory_space<vmem>>, vector<48x128xf32>
    %cst_225 = arith.constant dense<0.000000e+00> : vector<2x48xf32>
    %500 = tpu.matmul %489, %499, %cst_225 {dimension_numbers = #tpu.dot_dimension_numbers<[1], [1], [0], [0], [0, 0, 1, 0], [], []>} : vector<2x128xf32>, vector<48x128xf32>, vector<2x48xf32> -> vector<2x48xf32>
    %501 = arith.addf %500, %326 : vector<2x48xf32>
    %cst_226 = arith.constant 0.000000e+00 : f32
    %502 = vector.broadcast %cst_226 : f32 to vector<2x48xf32>
    %503 = arith.maximumf %501, %502 : vector<2x48xf32>
    %c0_227 = arith.constant 0 : index
    %c0_228 = arith.constant 0 : index
    %504 = vector.load %arg11[%c0_227, %c0_228] : memref<256x48xf32, #tpu.memory_space<vmem>>, vector<256x48xf32>
    %cst_229 = arith.constant dense<0.000000e+00> : vector<2x256xf32>
    %505 = tpu.matmul %503, %504, %cst_229 {dimension_numbers = #tpu.dot_dimension_numbers<[1], [1], [0], [0], [0, 0, 1, 0], [], []>} : vector<2x48xf32>, vector<256x48xf32>, vector<2x256xf32> -> vector<2x256xf32>
    %c0_230 = arith.constant 0 : index
    %c0_231 = arith.constant 0 : index
    %506 = vector.load %arg12[%c0_230, %c0_231] : memref<256x64xf32, #tpu.memory_space<vmem>>, vector<256x64xf32>
    %cst_232 = arith.constant dense<0.000000e+00> : vector<2x256xf32>
    %507 = tpu.matmul %460, %506, %cst_232 {dimension_numbers = #tpu.dot_dimension_numbers<[1], [1], [0], [0], [0, 0, 1, 0], [], []>} : vector<2x64xf32>, vector<256x64xf32>, vector<2x256xf32> -> vector<2x256xf32>
    %508 = arith.addf %505, %507 : vector<2x256xf32>
    %509 = arith.addf %508, %329 : vector<2x256xf32>
    %510 = vector.extract_strided_slice %509 {offsets = [0, 0], sizes = [2, 64], strides = [1, 1]} : vector<2x256xf32> to vector<2x64xf32>
    %cst_233 = arith.constant 0.000000e+00 : f32
    %511 = vector.broadcast %cst_233 : f32 to vector<2x64xf32>
    %512 = arith.subf %511, %510 : vector<2x64xf32>
    %513 = math.exp %512 : vector<2x64xf32>
    %cst_234 = arith.constant 1.000000e+00 : f32
    %514 = vector.broadcast %cst_234 : f32 to vector<2x64xf32>
    %515 = arith.addf %514, %513 : vector<2x64xf32>
    %cst_235 = arith.constant 1.000000e+00 : f32
    %516 = vector.broadcast %cst_235 : f32 to vector<2x64xf32>
    %517 = arith.divf %516, %515 : vector<2x64xf32>
    %518 = vector.extract_strided_slice %509 {offsets = [0, 64], sizes = [2, 64], strides = [1, 1]} : vector<2x256xf32> to vector<2x64xf32>
    %cst_236 = arith.constant 0.000000e+00 : f32
    %519 = vector.broadcast %cst_236 : f32 to vector<2x64xf32>
    %520 = arith.subf %519, %518 : vector<2x64xf32>
    %521 = math.exp %520 : vector<2x64xf32>
    %cst_237 = arith.constant 1.000000e+00 : f32
    %522 = vector.broadcast %cst_237 : f32 to vector<2x64xf32>
    %523 = arith.addf %522, %521 : vector<2x64xf32>
    %cst_238 = arith.constant 1.000000e+00 : f32
    %524 = vector.broadcast %cst_238 : f32 to vector<2x64xf32>
    %525 = arith.divf %524, %523 : vector<2x64xf32>
    %526 = vector.extract_strided_slice %509 {offsets = [0, 128], sizes = [2, 64], strides = [1, 1]} : vector<2x256xf32> to vector<2x64xf32>
    %527 = math.tanh %526 : vector<2x64xf32>
    %528 = vector.extract_strided_slice %509 {offsets = [0, 192], sizes = [2, 64], strides = [1, 1]} : vector<2x256xf32> to vector<2x64xf32>
    %cst_239 = arith.constant 0.000000e+00 : f32
    %529 = vector.broadcast %cst_239 : f32 to vector<2x64xf32>
    %530 = arith.subf %529, %528 : vector<2x64xf32>
    %531 = math.exp %530 : vector<2x64xf32>
    %cst_240 = arith.constant 1.000000e+00 : f32
    %532 = vector.broadcast %cst_240 : f32 to vector<2x64xf32>
    %533 = arith.addf %532, %531 : vector<2x64xf32>
    %cst_241 = arith.constant 1.000000e+00 : f32
    %534 = vector.broadcast %cst_241 : f32 to vector<2x64xf32>
    %535 = arith.divf %534, %533 : vector<2x64xf32>
    %536 = arith.mulf %525, %458 : vector<2x64xf32>
    %537 = arith.mulf %517, %527 : vector<2x64xf32>
    %538 = arith.addf %536, %537 : vector<2x64xf32>
    %539 = math.tanh %538 : vector<2x64xf32>
    %540 = arith.mulf %535, %539 : vector<2x64xf32>
    %c0_242 = arith.constant 0 : index
    %c0_243 = arith.constant 0 : index
    %541 = vector.load %arg14[%c0_242, %c0_243] : memref<64x64xf32, #tpu.memory_space<vmem>>, vector<64x64xf32>
    %cst_244 = arith.constant dense<0.000000e+00> : vector<2x64xf32>
    %542 = tpu.matmul %540, %541, %cst_244 {dimension_numbers = #tpu.dot_dimension_numbers<[1], [1], [0], [0], [0, 0, 1, 0], [], []>} : vector<2x64xf32>, vector<64x64xf32>, vector<2x64xf32> -> vector<2x64xf32>
    %543 = arith.addf %542, %332 : vector<2x64xf32>
    %544 = vector.shape_cast %543 : vector<2x64xf32> to vector<2x1x64xf32>
    %545 = vector.broadcast %544 : vector<2x1x64xf32> to vector<2x8x64xf32>
    %546 = arith.mulf %545, %320 : vector<2x8x64xf32>
    %cst_245 = arith.constant dense<0.000000e+00> : vector<2x8xf32>
    %547 = vector.multi_reduction <add>, %546, %cst_245 [2] : vector<2x8x64xf32> to vector<2x8xf32>
    %cst_246 = arith.constant 1.250000e-01 : f32
    %548 = vector.broadcast %cst_246 : f32 to vector<2x8xf32>
    %549 = arith.mulf %547, %548 : vector<2x8xf32>
    %cst_247 = arith.constant 5.000000e-01 : f32
    %550 = vector.broadcast %cst_247 : f32 to vector<2x8xf32>
    %551 = arith.cmpf ogt, %323, %550 : vector<2x8xf32>
    %cst_248 = arith.constant -1.000000e+09 : f32
    %552 = vector.broadcast %cst_248 : f32 to vector<2x8xf32>
    %553 = arith.select %551, %549, %552 : vector<2x8xi1>, vector<2x8xf32>
    %cst_249 = arith.constant dense<0xFF800000> : vector<2xf32>
    %554 = vector.multi_reduction <maximumf>, %553, %cst_249 [1] : vector<2x8xf32> to vector<2xf32>
    %555 = vector.shape_cast %554 : vector<2xf32> to vector<2x1xf32>
    %556 = vector.broadcast %555 : vector<2x1xf32> to vector<2x8xf32>
    %557 = arith.subf %553, %556 : vector<2x8xf32>
    %558 = math.exp %557 : vector<2x8xf32>
    %cst_250 = arith.constant dense<0.000000e+00> : vector<2xf32>
    %559 = vector.multi_reduction <add>, %558, %cst_250 [1] : vector<2x8xf32> to vector<2xf32>
    %560 = vector.shape_cast %559 : vector<2xf32> to vector<2x1xf32>
    %561 = vector.broadcast %560 : vector<2x1xf32> to vector<2x8xf32>
    %562 = arith.divf %558, %561 : vector<2x8xf32>
    %563 = vector.shape_cast %562 : vector<2x8xf32> to vector<2x8x1xf32>
    %564 = vector.broadcast %563 : vector<2x8x1xf32> to vector<2x8x64xf32>
    %565 = arith.mulf %564, %322 : vector<2x8x64xf32>
    %cst_251 = arith.constant dense<0.000000e+00> : vector<2x64xf32>
    %566 = vector.multi_reduction <add>, %565, %cst_251 [1] : vector<2x8x64xf32> to vector<2x64xf32>
    %c0_252 = arith.constant 0 : index
    %c0_253 = arith.constant 0 : index
    %567 = vector.load %arg20[%c0_252, %c0_253] : memref<128x64xf32, #tpu.memory_space<vmem>>, vector<128x64xf32>
    %cst_254 = arith.constant dense<0.000000e+00> : vector<2x128xf32>
    %568 = tpu.matmul %566, %567, %cst_254 {dimension_numbers = #tpu.dot_dimension_numbers<[1], [1], [0], [0], [0, 0, 1, 0], [], []>} : vector<2x64xf32>, vector<128x64xf32>, vector<2x128xf32> -> vector<2x128xf32>
    %569 = arith.addf %568, %335 : vector<2x128xf32>
    %570 = vector.extract_strided_slice %323 {offsets = [0, 2], sizes = [2, 1], strides = [1, 1]} : vector<2x8xf32> to vector<2x1xf32>
    %571 = vector.broadcast %570 : vector<2x1xf32> to vector<2x128xf32>
    %572 = arith.mulf %569, %571 : vector<2x128xf32>
    %c2_255 = arith.constant 2 : index
    %c0_256 = arith.constant 0 : index
    %c0_257 = arith.constant 0 : index
    %573 = vector.load %arg22[%c2_255, %c0_256, %c0_257] : memref<8x2x128xf32, #tpu.memory_space<vmem>>, vector<1x2x128xf32>
    %574 = vector.shape_cast %573 : vector<1x2x128xf32> to vector<2x128xf32>
    %575 = vector.shape_cast %572 : vector<2x128xf32> to vector<1x2x128xf32>
    tpu.vector_store %arg22[%c2_255, %c0_256, %c0_257], %575 {strides = array<i32>} : memref<8x2x128xf32, #tpu.memory_space<vmem>>, vector<1x2x128xf32>,
    %c2_258 = arith.constant 2 : index
    %c0_259 = arith.constant 0 : index
    %c0_260 = arith.constant 0 : index
    %576 = vector.load %arg23[%c2_258, %c0_259, %c0_260] : memref<8x2x8xf32, #tpu.memory_space<vmem>>, vector<1x2x8xf32>
    %577 = vector.shape_cast %576 : vector<1x2x8xf32> to vector<2x8xf32>
    %578 = vector.shape_cast %562 : vector<2x8xf32> to vector<1x2x8xf32>
    tpu.vector_store %arg23[%c2_258, %c0_259, %c0_260], %578 {strides = array<i32>} : memref<8x2x8xf32, #tpu.memory_space<vmem>>, vector<1x2x8xf32>,
    %c0_261 = arith.constant 0 : index
    %c0_262 = arith.constant 0 : index
    %579 = vector.load %arg9[%c0_261, %c0_262] : memref<48x128xf32, #tpu.memory_space<vmem>>, vector<48x128xf32>
    %cst_263 = arith.constant dense<0.000000e+00> : vector<2x48xf32>
    %580 = tpu.matmul %569, %579, %cst_263 {dimension_numbers = #tpu.dot_dimension_numbers<[1], [1], [0], [0], [0, 0, 1, 0], [], []>} : vector<2x128xf32>, vector<48x128xf32>, vector<2x48xf32> -> vector<2x48xf32>
    %581 = arith.addf %580, %326 : vector<2x48xf32>
    %cst_264 = arith.constant 0.000000e+00 : f32
    %582 = vector.broadcast %cst_264 : f32 to vector<2x48xf32>
    %583 = arith.maximumf %581, %582 : vector<2x48xf32>
    %c0_265 = arith.constant 0 : index
    %c0_266 = arith.constant 0 : index
    %584 = vector.load %arg11[%c0_265, %c0_266] : memref<256x48xf32, #tpu.memory_space<vmem>>, vector<256x48xf32>
    %cst_267 = arith.constant dense<0.000000e+00> : vector<2x256xf32>
    %585 = tpu.matmul %583, %584, %cst_267 {dimension_numbers = #tpu.dot_dimension_numbers<[1], [1], [0], [0], [0, 0, 1, 0], [], []>} : vector<2x48xf32>, vector<256x48xf32>, vector<2x256xf32> -> vector<2x256xf32>
    %c0_268 = arith.constant 0 : index
    %c0_269 = arith.constant 0 : index
    %586 = vector.load %arg12[%c0_268, %c0_269] : memref<256x64xf32, #tpu.memory_space<vmem>>, vector<256x64xf32>
    %cst_270 = arith.constant dense<0.000000e+00> : vector<2x256xf32>
    %587 = tpu.matmul %540, %586, %cst_270 {dimension_numbers = #tpu.dot_dimension_numbers<[1], [1], [0], [0], [0, 0, 1, 0], [], []>} : vector<2x64xf32>, vector<256x64xf32>, vector<2x256xf32> -> vector<2x256xf32>
    %588 = arith.addf %585, %587 : vector<2x256xf32>
    %589 = arith.addf %588, %329 : vector<2x256xf32>
    %590 = vector.extract_strided_slice %589 {offsets = [0, 0], sizes = [2, 64], strides = [1, 1]} : vector<2x256xf32> to vector<2x64xf32>
    %cst_271 = arith.constant 0.000000e+00 : f32
    %591 = vector.broadcast %cst_271 : f32 to vector<2x64xf32>
    %592 = arith.subf %591, %590 : vector<2x64xf32>
    %593 = math.exp %592 : vector<2x64xf32>
    %cst_272 = arith.constant 1.000000e+00 : f32
    %594 = vector.broadcast %cst_272 : f32 to vector<2x64xf32>
    %595 = arith.addf %594, %593 : vector<2x64xf32>
    %cst_273 = arith.constant 1.000000e+00 : f32
    %596 = vector.broadcast %cst_273 : f32 to vector<2x64xf32>
    %597 = arith.divf %596, %595 : vector<2x64xf32>
    %598 = vector.extract_strided_slice %589 {offsets = [0, 64], sizes = [2, 64], strides = [1, 1]} : vector<2x256xf32> to vector<2x64xf32>
    %cst_274 = arith.constant 0.000000e+00 : f32
    %599 = vector.broadcast %cst_274 : f32 to vector<2x64xf32>
    %600 = arith.subf %599, %598 : vector<2x64xf32>
    %601 = math.exp %600 : vector<2x64xf32>
    %cst_275 = arith.constant 1.000000e+00 : f32
    %602 = vector.broadcast %cst_275 : f32 to vector<2x64xf32>
    %603 = arith.addf %602, %601 : vector<2x64xf32>
    %cst_276 = arith.constant 1.000000e+00 : f32
    %604 = vector.broadcast %cst_276 : f32 to vector<2x64xf32>
    %605 = arith.divf %604, %603 : vector<2x64xf32>
    %606 = vector.extract_strided_slice %589 {offsets = [0, 128], sizes = [2, 64], strides = [1, 1]} : vector<2x256xf32> to vector<2x64xf32>
    %607 = math.tanh %606 : vector<2x64xf32>
    %608 = vector.extract_strided_slice %589 {offsets = [0, 192], sizes = [2, 64], strides = [1, 1]} : vector<2x256xf32> to vector<2x64xf32>
    %cst_277 = arith.constant 0.000000e+00 : f32
    %609 = vector.broadcast %cst_277 : f32 to vector<2x64xf32>
    %610 = arith.subf %609, %608 : vector<2x64xf32>
    %611 = math.exp %610 : vector<2x64xf32>
    %cst_278 = arith.constant 1.000000e+00 : f32
    %612 = vector.broadcast %cst_278 : f32 to vector<2x64xf32>
    %613 = arith.addf %612, %611 : vector<2x64xf32>
    %cst_279 = arith.constant 1.000000e+00 : f32
    %614 = vector.broadcast %cst_279 : f32 to vector<2x64xf32>
    %615 = arith.divf %614, %613 : vector<2x64xf32>
    %616 = arith.mulf %605, %538 : vector<2x64xf32>
    %617 = arith.mulf %597, %607 : vector<2x64xf32>
    %618 = arith.addf %616, %617 : vector<2x64xf32>
    %619 = math.tanh %618 : vector<2x64xf32>
    %620 = arith.mulf %615, %619 : vector<2x64xf32>
    %c0_280 = arith.constant 0 : index
    %c0_281 = arith.constant 0 : index
    %621 = vector.load %arg14[%c0_280, %c0_281] : memref<64x64xf32, #tpu.memory_space<vmem>>, vector<64x64xf32>
    %cst_282 = arith.constant dense<0.000000e+00> : vector<2x64xf32>
    %622 = tpu.matmul %620, %621, %cst_282 {dimension_numbers = #tpu.dot_dimension_numbers<[1], [1], [0], [0], [0, 0, 1, 0], [], []>} : vector<2x64xf32>, vector<64x64xf32>, vector<2x64xf32> -> vector<2x64xf32>
    %623 = arith.addf %622, %332 : vector<2x64xf32>
    %624 = vector.shape_cast %623 : vector<2x64xf32> to vector<2x1x64xf32>
    %625 = vector.broadcast %624 : vector<2x1x64xf32> to vector<2x8x64xf32>
    %626 = arith.mulf %625, %320 : vector<2x8x64xf32>
    %cst_283 = arith.constant dense<0.000000e+00> : vector<2x8xf32>
    %627 = vector.multi_reduction <add>, %626, %cst_283 [2] : vector<2x8x64xf32> to vector<2x8xf32>
    %cst_284 = arith.constant 1.250000e-01 : f32
    %628 = vector.broadcast %cst_284 : f32 to vector<2x8xf32>
    %629 = arith.mulf %627, %628 : vector<2x8xf32>
    %cst_285 = arith.constant 5.000000e-01 : f32
    %630 = vector.broadcast %cst_285 : f32 to vector<2x8xf32>
    %631 = arith.cmpf ogt, %323, %630 : vector<2x8xf32>
    %cst_286 = arith.constant -1.000000e+09 : f32
    %632 = vector.broadcast %cst_286 : f32 to vector<2x8xf32>
    %633 = arith.select %631, %629, %632 : vector<2x8xi1>, vector<2x8xf32>
    %cst_287 = arith.constant dense<0xFF800000> : vector<2xf32>
    %634 = vector.multi_reduction <maximumf>, %633, %cst_287 [1] : vector<2x8xf32> to vector<2xf32>
    %635 = vector.shape_cast %634 : vector<2xf32> to vector<2x1xf32>
    %636 = vector.broadcast %635 : vector<2x1xf32> to vector<2x8xf32>
    %637 = arith.subf %633, %636 : vector<2x8xf32>
    %638 = math.exp %637 : vector<2x8xf32>
    %cst_288 = arith.constant dense<0.000000e+00> : vector<2xf32>
    %639 = vector.multi_reduction <add>, %638, %cst_288 [1] : vector<2x8xf32> to vector<2xf32>
    %640 = vector.shape_cast %639 : vector<2xf32> to vector<2x1xf32>
    %641 = vector.broadcast %640 : vector<2x1xf32> to vector<2x8xf32>
    %642 = arith.divf %638, %641 : vector<2x8xf32>
    %643 = vector.shape_cast %642 : vector<2x8xf32> to vector<2x8x1xf32>
    %644 = vector.broadcast %643 : vector<2x8x1xf32> to vector<2x8x64xf32>
    %645 = arith.mulf %644, %322 : vector<2x8x64xf32>
    %cst_289 = arith.constant dense<0.000000e+00> : vector<2x64xf32>
    %646 = vector.multi_reduction <add>, %645, %cst_289 [1] : vector<2x8x64xf32> to vector<2x64xf32>
    %c0_290 = arith.constant 0 : index
    %c0_291 = arith.constant 0 : index
    %647 = vector.load %arg20[%c0_290, %c0_291] : memref<128x64xf32, #tpu.memory_space<vmem>>, vector<128x64xf32>
    %cst_292 = arith.constant dense<0.000000e+00> : vector<2x128xf32>
    %648 = tpu.matmul %646, %647, %cst_292 {dimension_numbers = #tpu.dot_dimension_numbers<[1], [1], [0], [0], [0, 0, 1, 0], [], []>} : vector<2x64xf32>, vector<128x64xf32>, vector<2x128xf32> -> vector<2x128xf32>
    %649 = arith.addf %648, %335 : vector<2x128xf32>
    %650 = vector.extract_strided_slice %323 {offsets = [0, 3], sizes = [2, 1], strides = [1, 1]} : vector<2x8xf32> to vector<2x1xf32>
    %651 = vector.broadcast %650 : vector<2x1xf32> to vector<2x128xf32>
    %652 = arith.mulf %649, %651 : vector<2x128xf32>
    %c3 = arith.constant 3 : index
    %c0_293 = arith.constant 0 : index
    %c0_294 = arith.constant 0 : index
    %653 = vector.load %arg22[%c3, %c0_293, %c0_294] : memref<8x2x128xf32, #tpu.memory_space<vmem>>, vector<1x2x128xf32>
    %654 = vector.shape_cast %653 : vector<1x2x128xf32> to vector<2x128xf32>
    %655 = vector.shape_cast %652 : vector<2x128xf32> to vector<1x2x128xf32>
    tpu.vector_store %arg22[%c3, %c0_293, %c0_294], %655 {strides = array<i32>} : memref<8x2x128xf32, #tpu.memory_space<vmem>>, vector<1x2x128xf32>,
    %c3_295 = arith.constant 3 : index
    %c0_296 = arith.constant 0 : index
    %c0_297 = arith.constant 0 : index
    %656 = vector.load %arg23[%c3_295, %c0_296, %c0_297] : memref<8x2x8xf32, #tpu.memory_space<vmem>>, vector<1x2x8xf32>
    %657 = vector.shape_cast %656 : vector<1x2x8xf32> to vector<2x8xf32>
    %658 = vector.shape_cast %642 : vector<2x8xf32> to vector<1x2x8xf32>
    tpu.vector_store %arg23[%c3_295, %c0_296, %c0_297], %658 {strides = array<i32>} : memref<8x2x8xf32, #tpu.memory_space<vmem>>, vector<1x2x8xf32>,
    %c0_298 = arith.constant 0 : index
    %c0_299 = arith.constant 0 : index
    %659 = vector.load %arg9[%c0_298, %c0_299] : memref<48x128xf32, #tpu.memory_space<vmem>>, vector<48x128xf32>
    %cst_300 = arith.constant dense<0.000000e+00> : vector<2x48xf32>
    %660 = tpu.matmul %649, %659, %cst_300 {dimension_numbers = #tpu.dot_dimension_numbers<[1], [1], [0], [0], [0, 0, 1, 0], [], []>} : vector<2x128xf32>, vector<48x128xf32>, vector<2x48xf32> -> vector<2x48xf32>
    %661 = arith.addf %660, %326 : vector<2x48xf32>
    %cst_301 = arith.constant 0.000000e+00 : f32
    %662 = vector.broadcast %cst_301 : f32 to vector<2x48xf32>
    %663 = arith.maximumf %661, %662 : vector<2x48xf32>
    %c0_302 = arith.constant 0 : index
    %c0_303 = arith.constant 0 : index
    %664 = vector.load %arg11[%c0_302, %c0_303] : memref<256x48xf32, #tpu.memory_space<vmem>>, vector<256x48xf32>
    %cst_304 = arith.constant dense<0.000000e+00> : vector<2x256xf32>
    %665 = tpu.matmul %663, %664, %cst_304 {dimension_numbers = #tpu.dot_dimension_numbers<[1], [1], [0], [0], [0, 0, 1, 0], [], []>} : vector<2x48xf32>, vector<256x48xf32>, vector<2x256xf32> -> vector<2x256xf32>
    %c0_305 = arith.constant 0 : index
    %c0_306 = arith.constant 0 : index
    %666 = vector.load %arg12[%c0_305, %c0_306] : memref<256x64xf32, #tpu.memory_space<vmem>>, vector<256x64xf32>
    %cst_307 = arith.constant dense<0.000000e+00> : vector<2x256xf32>
    %667 = tpu.matmul %620, %666, %cst_307 {dimension_numbers = #tpu.dot_dimension_numbers<[1], [1], [0], [0], [0, 0, 1, 0], [], []>} : vector<2x64xf32>, vector<256x64xf32>, vector<2x256xf32> -> vector<2x256xf32>
    %668 = arith.addf %665, %667 : vector<2x256xf32>
    %669 = arith.addf %668, %329 : vector<2x256xf32>
    %670 = vector.extract_strided_slice %669 {offsets = [0, 0], sizes = [2, 64], strides = [1, 1]} : vector<2x256xf32> to vector<2x64xf32>
    %cst_308 = arith.constant 0.000000e+00 : f32
    %671 = vector.broadcast %cst_308 : f32 to vector<2x64xf32>
    %672 = arith.subf %671, %670 : vector<2x64xf32>
    %673 = math.exp %672 : vector<2x64xf32>
    %cst_309 = arith.constant 1.000000e+00 : f32
    %674 = vector.broadcast %cst_309 : f32 to vector<2x64xf32>
    %675 = arith.addf %674, %673 : vector<2x64xf32>
    %cst_310 = arith.constant 1.000000e+00 : f32
    %676 = vector.broadcast %cst_310 : f32 to vector<2x64xf32>
    %677 = arith.divf %676, %675 : vector<2x64xf32>
    %678 = vector.extract_strided_slice %669 {offsets = [0, 64], sizes = [2, 64], strides = [1, 1]} : vector<2x256xf32> to vector<2x64xf32>
    %cst_311 = arith.constant 0.000000e+00 : f32
    %679 = vector.broadcast %cst_311 : f32 to vector<2x64xf32>
    %680 = arith.subf %679, %678 : vector<2x64xf32>
    %681 = math.exp %680 : vector<2x64xf32>
    %cst_312 = arith.constant 1.000000e+00 : f32
    %682 = vector.broadcast %cst_312 : f32 to vector<2x64xf32>
    %683 = arith.addf %682, %681 : vector<2x64xf32>
    %cst_313 = arith.constant 1.000000e+00 : f32
    %684 = vector.broadcast %cst_313 : f32 to vector<2x64xf32>
    %685 = arith.divf %684, %683 : vector<2x64xf32>
    %686 = vector.extract_strided_slice %669 {offsets = [0, 128], sizes = [2, 64], strides = [1, 1]} : vector<2x256xf32> to vector<2x64xf32>
    %687 = math.tanh %686 : vector<2x64xf32>
    %688 = vector.extract_strided_slice %669 {offsets = [0, 192], sizes = [2, 64], strides = [1, 1]} : vector<2x256xf32> to vector<2x64xf32>
    %cst_314 = arith.constant 0.000000e+00 : f32
    %689 = vector.broadcast %cst_314 : f32 to vector<2x64xf32>
    %690 = arith.subf %689, %688 : vector<2x64xf32>
    %691 = math.exp %690 : vector<2x64xf32>
    %cst_315 = arith.constant 1.000000e+00 : f32
    %692 = vector.broadcast %cst_315 : f32 to vector<2x64xf32>
    %693 = arith.addf %692, %691 : vector<2x64xf32>
    %cst_316 = arith.constant 1.000000e+00 : f32
    %694 = vector.broadcast %cst_316 : f32 to vector<2x64xf32>
    %695 = arith.divf %694, %693 : vector<2x64xf32>
    %696 = arith.mulf %685, %618 : vector<2x64xf32>
    %697 = arith.mulf %677, %687 : vector<2x64xf32>
    %698 = arith.addf %696, %697 : vector<2x64xf32>
    %699 = math.tanh %698 : vector<2x64xf32>
    %700 = arith.mulf %695, %699 : vector<2x64xf32>
    %c0_317 = arith.constant 0 : index
    %c0_318 = arith.constant 0 : index
    %701 = vector.load %arg14[%c0_317, %c0_318] : memref<64x64xf32, #tpu.memory_space<vmem>>, vector<64x64xf32>
    %cst_319 = arith.constant dense<0.000000e+00> : vector<2x64xf32>
    %702 = tpu.matmul %700, %701, %cst_319 {dimension_numbers = #tpu.dot_dimension_numbers<[1], [1], [0], [0], [0, 0, 1, 0], [], []>} : vector<2x64xf32>, vector<64x64xf32>, vector<2x64xf32> -> vector<2x64xf32>
    %703 = arith.addf %702, %332 : vector<2x64xf32>
    %704 = vector.shape_cast %703 : vector<2x64xf32> to vector<2x1x64xf32>
    %705 = vector.broadcast %704 : vector<2x1x64xf32> to vector<2x8x64xf32>
    %706 = arith.mulf %705, %320 : vector<2x8x64xf32>
    %cst_320 = arith.constant dense<0.000000e+00> : vector<2x8xf32>
    %707 = vector.multi_reduction <add>, %706, %cst_320 [2] : vector<2x8x64xf32> to vector<2x8xf32>
    %cst_321 = arith.constant 1.250000e-01 : f32
    %708 = vector.broadcast %cst_321 : f32 to vector<2x8xf32>
    %709 = arith.mulf %707, %708 : vector<2x8xf32>
    %cst_322 = arith.constant 5.000000e-01 : f32
    %710 = vector.broadcast %cst_322 : f32 to vector<2x8xf32>
    %711 = arith.cmpf ogt, %323, %710 : vector<2x8xf32>
    %cst_323 = arith.constant -1.000000e+09 : f32
    %712 = vector.broadcast %cst_323 : f32 to vector<2x8xf32>
    %713 = arith.select %711, %709, %712 : vector<2x8xi1>, vector<2x8xf32>
    %cst_324 = arith.constant dense<0xFF800000> : vector<2xf32>
    %714 = vector.multi_reduction <maximumf>, %713, %cst_324 [1] : vector<2x8xf32> to vector<2xf32>
    %715 = vector.shape_cast %714 : vector<2xf32> to vector<2x1xf32>
    %716 = vector.broadcast %715 : vector<2x1xf32> to vector<2x8xf32>
    %717 = arith.subf %713, %716 : vector<2x8xf32>
    %718 = math.exp %717 : vector<2x8xf32>
    %cst_325 = arith.constant dense<0.000000e+00> : vector<2xf32>
    %719 = vector.multi_reduction <add>, %718, %cst_325 [1] : vector<2x8xf32> to vector<2xf32>
    %720 = vector.shape_cast %719 : vector<2xf32> to vector<2x1xf32>
    %721 = vector.broadcast %720 : vector<2x1xf32> to vector<2x8xf32>
    %722 = arith.divf %718, %721 : vector<2x8xf32>
    %723 = vector.shape_cast %722 : vector<2x8xf32> to vector<2x8x1xf32>
    %724 = vector.broadcast %723 : vector<2x8x1xf32> to vector<2x8x64xf32>
    %725 = arith.mulf %724, %322 : vector<2x8x64xf32>
    %cst_326 = arith.constant dense<0.000000e+00> : vector<2x64xf32>
    %726 = vector.multi_reduction <add>, %725, %cst_326 [1] : vector<2x8x64xf32> to vector<2x64xf32>
    %c0_327 = arith.constant 0 : index
    %c0_328 = arith.constant 0 : index
    %727 = vector.load %arg20[%c0_327, %c0_328] : memref<128x64xf32, #tpu.memory_space<vmem>>, vector<128x64xf32>
    %cst_329 = arith.constant dense<0.000000e+00> : vector<2x128xf32>
    %728 = tpu.matmul %726, %727, %cst_329 {dimension_numbers = #tpu.dot_dimension_numbers<[1], [1], [0], [0], [0, 0, 1, 0], [], []>} : vector<2x64xf32>, vector<128x64xf32>, vector<2x128xf32> -> vector<2x128xf32>
    %729 = arith.addf %728, %335 : vector<2x128xf32>
    %730 = vector.extract_strided_slice %323 {offsets = [0, 4], sizes = [2, 1], strides = [1, 1]} : vector<2x8xf32> to vector<2x1xf32>
    %731 = vector.broadcast %730 : vector<2x1xf32> to vector<2x128xf32>
    %732 = arith.mulf %729, %731 : vector<2x128xf32>
    %c4_330 = arith.constant 4 : index
    %c0_331 = arith.constant 0 : index
    %c0_332 = arith.constant 0 : index
    %733 = vector.load %arg22[%c4_330, %c0_331, %c0_332] : memref<8x2x128xf32, #tpu.memory_space<vmem>>, vector<1x2x128xf32>
    %734 = vector.shape_cast %733 : vector<1x2x128xf32> to vector<2x128xf32>
    %735 = vector.shape_cast %732 : vector<2x128xf32> to vector<1x2x128xf32>
    tpu.vector_store %arg22[%c4_330, %c0_331, %c0_332], %735 {strides = array<i32>} : memref<8x2x128xf32, #tpu.memory_space<vmem>>, vector<1x2x128xf32>,
    %c4_333 = arith.constant 4 : index
    %c0_334 = arith.constant 0 : index
    %c0_335 = arith.constant 0 : index
    %736 = vector.load %arg23[%c4_333, %c0_334, %c0_335] : memref<8x2x8xf32, #tpu.memory_space<vmem>>, vector<1x2x8xf32>
    %737 = vector.shape_cast %736 : vector<1x2x8xf32> to vector<2x8xf32>
    %738 = vector.shape_cast %722 : vector<2x8xf32> to vector<1x2x8xf32>
    tpu.vector_store %arg23[%c4_333, %c0_334, %c0_335], %738 {strides = array<i32>} : memref<8x2x8xf32, #tpu.memory_space<vmem>>, vector<1x2x8xf32>,
    %c0_336 = arith.constant 0 : index
    %c0_337 = arith.constant 0 : index
    %739 = vector.load %arg9[%c0_336, %c0_337] : memref<48x128xf32, #tpu.memory_space<vmem>>, vector<48x128xf32>
    %cst_338 = arith.constant dense<0.000000e+00> : vector<2x48xf32>
    %740 = tpu.matmul %729, %739, %cst_338 {dimension_numbers = #tpu.dot_dimension_numbers<[1], [1], [0], [0], [0, 0, 1, 0], [], []>} : vector<2x128xf32>, vector<48x128xf32>, vector<2x48xf32> -> vector<2x48xf32>
    %741 = arith.addf %740, %326 : vector<2x48xf32>
    %cst_339 = arith.constant 0.000000e+00 : f32
    %742 = vector.broadcast %cst_339 : f32 to vector<2x48xf32>
    %743 = arith.maximumf %741, %742 : vector<2x48xf32>
    %c0_340 = arith.constant 0 : index
    %c0_341 = arith.constant 0 : index
    %744 = vector.load %arg11[%c0_340, %c0_341] : memref<256x48xf32, #tpu.memory_space<vmem>>, vector<256x48xf32>
    %cst_342 = arith.constant dense<0.000000e+00> : vector<2x256xf32>
    %745 = tpu.matmul %743, %744, %cst_342 {dimension_numbers = #tpu.dot_dimension_numbers<[1], [1], [0], [0], [0, 0, 1, 0], [], []>} : vector<2x48xf32>, vector<256x48xf32>, vector<2x256xf32> -> vector<2x256xf32>
    %c0_343 = arith.constant 0 : index
    %c0_344 = arith.constant 0 : index
    %746 = vector.load %arg12[%c0_343, %c0_344] : memref<256x64xf32, #tpu.memory_space<vmem>>, vector<256x64xf32>
    %cst_345 = arith.constant dense<0.000000e+00> : vector<2x256xf32>
    %747 = tpu.matmul %700, %746, %cst_345 {dimension_numbers = #tpu.dot_dimension_numbers<[1], [1], [0], [0], [0, 0, 1, 0], [], []>} : vector<2x64xf32>, vector<256x64xf32>, vector<2x256xf32> -> vector<2x256xf32>
    %748 = arith.addf %745, %747 : vector<2x256xf32>
    %749 = arith.addf %748, %329 : vector<2x256xf32>
    %750 = vector.extract_strided_slice %749 {offsets = [0, 0], sizes = [2, 64], strides = [1, 1]} : vector<2x256xf32> to vector<2x64xf32>
    %cst_346 = arith.constant 0.000000e+00 : f32
    %751 = vector.broadcast %cst_346 : f32 to vector<2x64xf32>
    %752 = arith.subf %751, %750 : vector<2x64xf32>
    %753 = math.exp %752 : vector<2x64xf32>
    %cst_347 = arith.constant 1.000000e+00 : f32
    %754 = vector.broadcast %cst_347 : f32 to vector<2x64xf32>
    %755 = arith.addf %754, %753 : vector<2x64xf32>
    %cst_348 = arith.constant 1.000000e+00 : f32
    %756 = vector.broadcast %cst_348 : f32 to vector<2x64xf32>
    %757 = arith.divf %756, %755 : vector<2x64xf32>
    %758 = vector.extract_strided_slice %749 {offsets = [0, 64], sizes = [2, 64], strides = [1, 1]} : vector<2x256xf32> to vector<2x64xf32>
    %cst_349 = arith.constant 0.000000e+00 : f32
    %759 = vector.broadcast %cst_349 : f32 to vector<2x64xf32>
    %760 = arith.subf %759, %758 : vector<2x64xf32>
    %761 = math.exp %760 : vector<2x64xf32>
    %cst_350 = arith.constant 1.000000e+00 : f32
    %762 = vector.broadcast %cst_350 : f32 to vector<2x64xf32>
    %763 = arith.addf %762, %761 : vector<2x64xf32>
    %cst_351 = arith.constant 1.000000e+00 : f32
    %764 = vector.broadcast %cst_351 : f32 to vector<2x64xf32>
    %765 = arith.divf %764, %763 : vector<2x64xf32>
    %766 = vector.extract_strided_slice %749 {offsets = [0, 128], sizes = [2, 64], strides = [1, 1]} : vector<2x256xf32> to vector<2x64xf32>
    %767 = math.tanh %766 : vector<2x64xf32>
    %768 = vector.extract_strided_slice %749 {offsets = [0, 192], sizes = [2, 64], strides = [1, 1]} : vector<2x256xf32> to vector<2x64xf32>
    %cst_352 = arith.constant 0.000000e+00 : f32
    %769 = vector.broadcast %cst_352 : f32 to vector<2x64xf32>
    %770 = arith.subf %769, %768 : vector<2x64xf32>
    %771 = math.exp %770 : vector<2x64xf32>
    %cst_353 = arith.constant 1.000000e+00 : f32
    %772 = vector.broadcast %cst_353 : f32 to vector<2x64xf32>
    %773 = arith.addf %772, %771 : vector<2x64xf32>
    %cst_354 = arith.constant 1.000000e+00 : f32
    %774 = vector.broadcast %cst_354 : f32 to vector<2x64xf32>
    %775 = arith.divf %774, %773 : vector<2x64xf32>
    %776 = arith.mulf %765, %698 : vector<2x64xf32>
    %777 = arith.mulf %757, %767 : vector<2x64xf32>
    %778 = arith.addf %776, %777 : vector<2x64xf32>
    %779 = math.tanh %778 : vector<2x64xf32>
    %780 = arith.mulf %775, %779 : vector<2x64xf32>
    %c0_355 = arith.constant 0 : index
    %c0_356 = arith.constant 0 : index
    %781 = vector.load %arg14[%c0_355, %c0_356] : memref<64x64xf32, #tpu.memory_space<vmem>>, vector<64x64xf32>
    %cst_357 = arith.constant dense<0.000000e+00> : vector<2x64xf32>
    %782 = tpu.matmul %780, %781, %cst_357 {dimension_numbers = #tpu.dot_dimension_numbers<[1], [1], [0], [0], [0, 0, 1, 0], [], []>} : vector<2x64xf32>, vector<64x64xf32>, vector<2x64xf32> -> vector<2x64xf32>
    %783 = arith.addf %782, %332 : vector<2x64xf32>
    %784 = vector.shape_cast %783 : vector<2x64xf32> to vector<2x1x64xf32>
    %785 = vector.broadcast %784 : vector<2x1x64xf32> to vector<2x8x64xf32>
    %786 = arith.mulf %785, %320 : vector<2x8x64xf32>
    %cst_358 = arith.constant dense<0.000000e+00> : vector<2x8xf32>
    %787 = vector.multi_reduction <add>, %786, %cst_358 [2] : vector<2x8x64xf32> to vector<2x8xf32>
    %cst_359 = arith.constant 1.250000e-01 : f32
    %788 = vector.broadcast %cst_359 : f32 to vector<2x8xf32>
    %789 = arith.mulf %787, %788 : vector<2x8xf32>
    %cst_360 = arith.constant 5.000000e-01 : f32
    %790 = vector.broadcast %cst_360 : f32 to vector<2x8xf32>
    %791 = arith.cmpf ogt, %323, %790 : vector<2x8xf32>
    %cst_361 = arith.constant -1.000000e+09 : f32
    %792 = vector.broadcast %cst_361 : f32 to vector<2x8xf32>
    %793 = arith.select %791, %789, %792 : vector<2x8xi1>, vector<2x8xf32>
    %cst_362 = arith.constant dense<0xFF800000> : vector<2xf32>
    %794 = vector.multi_reduction <maximumf>, %793, %cst_362 [1] : vector<2x8xf32> to vector<2xf32>
    %795 = vector.shape_cast %794 : vector<2xf32> to vector<2x1xf32>
    %796 = vector.broadcast %795 : vector<2x1xf32> to vector<2x8xf32>
    %797 = arith.subf %793, %796 : vector<2x8xf32>
    %798 = math.exp %797 : vector<2x8xf32>
    %cst_363 = arith.constant dense<0.000000e+00> : vector<2xf32>
    %799 = vector.multi_reduction <add>, %798, %cst_363 [1] : vector<2x8xf32> to vector<2xf32>
    %800 = vector.shape_cast %799 : vector<2xf32> to vector<2x1xf32>
    %801 = vector.broadcast %800 : vector<2x1xf32> to vector<2x8xf32>
    %802 = arith.divf %798, %801 : vector<2x8xf32>
    %803 = vector.shape_cast %802 : vector<2x8xf32> to vector<2x8x1xf32>
    %804 = vector.broadcast %803 : vector<2x8x1xf32> to vector<2x8x64xf32>
    %805 = arith.mulf %804, %322 : vector<2x8x64xf32>
    %cst_364 = arith.constant dense<0.000000e+00> : vector<2x64xf32>
    %806 = vector.multi_reduction <add>, %805, %cst_364 [1] : vector<2x8x64xf32> to vector<2x64xf32>
    %c0_365 = arith.constant 0 : index
    %c0_366 = arith.constant 0 : index
    %807 = vector.load %arg20[%c0_365, %c0_366] : memref<128x64xf32, #tpu.memory_space<vmem>>, vector<128x64xf32>
    %cst_367 = arith.constant dense<0.000000e+00> : vector<2x128xf32>
    %808 = tpu.matmul %806, %807, %cst_367 {dimension_numbers = #tpu.dot_dimension_numbers<[1], [1], [0], [0], [0, 0, 1, 0], [], []>} : vector<2x64xf32>, vector<128x64xf32>, vector<2x128xf32> -> vector<2x128xf32>
    %809 = arith.addf %808, %335 : vector<2x128xf32>
    %810 = vector.extract_strided_slice %323 {offsets = [0, 5], sizes = [2, 1], strides = [1, 1]} : vector<2x8xf32> to vector<2x1xf32>
    %811 = vector.broadcast %810 : vector<2x1xf32> to vector<2x128xf32>
    %812 = arith.mulf %809, %811 : vector<2x128xf32>
    %c5 = arith.constant 5 : index
    %c0_368 = arith.constant 0 : index
    %c0_369 = arith.constant 0 : index
    %813 = vector.load %arg22[%c5, %c0_368, %c0_369] : memref<8x2x128xf32, #tpu.memory_space<vmem>>, vector<1x2x128xf32>
    %814 = vector.shape_cast %813 : vector<1x2x128xf32> to vector<2x128xf32>
    %815 = vector.shape_cast %812 : vector<2x128xf32> to vector<1x2x128xf32>
    tpu.vector_store %arg22[%c5, %c0_368, %c0_369], %815 {strides = array<i32>} : memref<8x2x128xf32, #tpu.memory_space<vmem>>, vector<1x2x128xf32>,
    %c5_370 = arith.constant 5 : index
    %c0_371 = arith.constant 0 : index
    %c0_372 = arith.constant 0 : index
    %816 = vector.load %arg23[%c5_370, %c0_371, %c0_372] : memref<8x2x8xf32, #tpu.memory_space<vmem>>, vector<1x2x8xf32>
    %817 = vector.shape_cast %816 : vector<1x2x8xf32> to vector<2x8xf32>
    %818 = vector.shape_cast %802 : vector<2x8xf32> to vector<1x2x8xf32>
    tpu.vector_store %arg23[%c5_370, %c0_371, %c0_372], %818 {strides = array<i32>} : memref<8x2x8xf32, #tpu.memory_space<vmem>>, vector<1x2x8xf32>,
    %c0_373 = arith.constant 0 : index
    %c0_374 = arith.constant 0 : index
    %819 = vector.load %arg9[%c0_373, %c0_374] : memref<48x128xf32, #tpu.memory_space<vmem>>, vector<48x128xf32>
    %cst_375 = arith.constant dense<0.000000e+00> : vector<2x48xf32>
    %820 = tpu.matmul %809, %819, %cst_375 {dimension_numbers = #tpu.dot_dimension_numbers<[1], [1], [0], [0], [0, 0, 1, 0], [], []>} : vector<2x128xf32>, vector<48x128xf32>, vector<2x48xf32> -> vector<2x48xf32>
    %821 = arith.addf %820, %326 : vector<2x48xf32>
    %cst_376 = arith.constant 0.000000e+00 : f32
    %822 = vector.broadcast %cst_376 : f32 to vector<2x48xf32>
    %823 = arith.maximumf %821, %822 : vector<2x48xf32>
    %c0_377 = arith.constant 0 : index
    %c0_378 = arith.constant 0 : index
    %824 = vector.load %arg11[%c0_377, %c0_378] : memref<256x48xf32, #tpu.memory_space<vmem>>, vector<256x48xf32>
    %cst_379 = arith.constant dense<0.000000e+00> : vector<2x256xf32>
    %825 = tpu.matmul %823, %824, %cst_379 {dimension_numbers = #tpu.dot_dimension_numbers<[1], [1], [0], [0], [0, 0, 1, 0], [], []>} : vector<2x48xf32>, vector<256x48xf32>, vector<2x256xf32> -> vector<2x256xf32>
    %c0_380 = arith.constant 0 : index
    %c0_381 = arith.constant 0 : index
    %826 = vector.load %arg12[%c0_380, %c0_381] : memref<256x64xf32, #tpu.memory_space<vmem>>, vector<256x64xf32>
    %cst_382 = arith.constant dense<0.000000e+00> : vector<2x256xf32>
    %827 = tpu.matmul %780, %826, %cst_382 {dimension_numbers = #tpu.dot_dimension_numbers<[1], [1], [0], [0], [0, 0, 1, 0], [], []>} : vector<2x64xf32>, vector<256x64xf32>, vector<2x256xf32> -> vector<2x256xf32>
    %828 = arith.addf %825, %827 : vector<2x256xf32>
    %829 = arith.addf %828, %329 : vector<2x256xf32>
    %830 = vector.extract_strided_slice %829 {offsets = [0, 0], sizes = [2, 64], strides = [1, 1]} : vector<2x256xf32> to vector<2x64xf32>
    %cst_383 = arith.constant 0.000000e+00 : f32
    %831 = vector.broadcast %cst_383 : f32 to vector<2x64xf32>
    %832 = arith.subf %831, %830 : vector<2x64xf32>
    %833 = math.exp %832 : vector<2x64xf32>
    %cst_384 = arith.constant 1.000000e+00 : f32
    %834 = vector.broadcast %cst_384 : f32 to vector<2x64xf32>
    %835 = arith.addf %834, %833 : vector<2x64xf32>
    %cst_385 = arith.constant 1.000000e+00 : f32
    %836 = vector.broadcast %cst_385 : f32 to vector<2x64xf32>
    %837 = arith.divf %836, %835 : vector<2x64xf32>
    %838 = vector.extract_strided_slice %829 {offsets = [0, 64], sizes = [2, 64], strides = [1, 1]} : vector<2x256xf32> to vector<2x64xf32>
    %cst_386 = arith.constant 0.000000e+00 : f32
    %839 = vector.broadcast %cst_386 : f32 to vector<2x64xf32>
    %840 = arith.subf %839, %838 : vector<2x64xf32>
    %841 = math.exp %840 : vector<2x64xf32>
    %cst_387 = arith.constant 1.000000e+00 : f32
    %842 = vector.broadcast %cst_387 : f32 to vector<2x64xf32>
    %843 = arith.addf %842, %841 : vector<2x64xf32>
    %cst_388 = arith.constant 1.000000e+00 : f32
    %844 = vector.broadcast %cst_388 : f32 to vector<2x64xf32>
    %845 = arith.divf %844, %843 : vector<2x64xf32>
    %846 = vector.extract_strided_slice %829 {offsets = [0, 128], sizes = [2, 64], strides = [1, 1]} : vector<2x256xf32> to vector<2x64xf32>
    %847 = math.tanh %846 : vector<2x64xf32>
    %848 = vector.extract_strided_slice %829 {offsets = [0, 192], sizes = [2, 64], strides = [1, 1]} : vector<2x256xf32> to vector<2x64xf32>
    %cst_389 = arith.constant 0.000000e+00 : f32
    %849 = vector.broadcast %cst_389 : f32 to vector<2x64xf32>
    %850 = arith.subf %849, %848 : vector<2x64xf32>
    %851 = math.exp %850 : vector<2x64xf32>
    %cst_390 = arith.constant 1.000000e+00 : f32
    %852 = vector.broadcast %cst_390 : f32 to vector<2x64xf32>
    %853 = arith.addf %852, %851 : vector<2x64xf32>
    %cst_391 = arith.constant 1.000000e+00 : f32
    %854 = vector.broadcast %cst_391 : f32 to vector<2x64xf32>
    %855 = arith.divf %854, %853 : vector<2x64xf32>
    %856 = arith.mulf %845, %778 : vector<2x64xf32>
    %857 = arith.mulf %837, %847 : vector<2x64xf32>
    %858 = arith.addf %856, %857 : vector<2x64xf32>
    %859 = math.tanh %858 : vector<2x64xf32>
    %860 = arith.mulf %855, %859 : vector<2x64xf32>
    %c0_392 = arith.constant 0 : index
    %c0_393 = arith.constant 0 : index
    %861 = vector.load %arg14[%c0_392, %c0_393] : memref<64x64xf32, #tpu.memory_space<vmem>>, vector<64x64xf32>
    %cst_394 = arith.constant dense<0.000000e+00> : vector<2x64xf32>
    %862 = tpu.matmul %860, %861, %cst_394 {dimension_numbers = #tpu.dot_dimension_numbers<[1], [1], [0], [0], [0, 0, 1, 0], [], []>} : vector<2x64xf32>, vector<64x64xf32>, vector<2x64xf32> -> vector<2x64xf32>
    %863 = arith.addf %862, %332 : vector<2x64xf32>
    %864 = vector.shape_cast %863 : vector<2x64xf32> to vector<2x1x64xf32>
    %865 = vector.broadcast %864 : vector<2x1x64xf32> to vector<2x8x64xf32>
    %866 = arith.mulf %865, %320 : vector<2x8x64xf32>
    %cst_395 = arith.constant dense<0.000000e+00> : vector<2x8xf32>
    %867 = vector.multi_reduction <add>, %866, %cst_395 [2] : vector<2x8x64xf32> to vector<2x8xf32>
    %cst_396 = arith.constant 1.250000e-01 : f32
    %868 = vector.broadcast %cst_396 : f32 to vector<2x8xf32>
    %869 = arith.mulf %867, %868 : vector<2x8xf32>
    %cst_397 = arith.constant 5.000000e-01 : f32
    %870 = vector.broadcast %cst_397 : f32 to vector<2x8xf32>
    %871 = arith.cmpf ogt, %323, %870 : vector<2x8xf32>
    %cst_398 = arith.constant -1.000000e+09 : f32
    %872 = vector.broadcast %cst_398 : f32 to vector<2x8xf32>
    %873 = arith.select %871, %869, %872 : vector<2x8xi1>, vector<2x8xf32>
    %cst_399 = arith.constant dense<0xFF800000> : vector<2xf32>
    %874 = vector.multi_reduction <maximumf>, %873, %cst_399 [1] : vector<2x8xf32> to vector<2xf32>
    %875 = vector.shape_cast %874 : vector<2xf32> to vector<2x1xf32>
    %876 = vector.broadcast %875 : vector<2x1xf32> to vector<2x8xf32>
    %877 = arith.subf %873, %876 : vector<2x8xf32>
    %878 = math.exp %877 : vector<2x8xf32>
    %cst_400 = arith.constant dense<0.000000e+00> : vector<2xf32>
    %879 = vector.multi_reduction <add>, %878, %cst_400 [1] : vector<2x8xf32> to vector<2xf32>
    %880 = vector.shape_cast %879 : vector<2xf32> to vector<2x1xf32>
    %881 = vector.broadcast %880 : vector<2x1xf32> to vector<2x8xf32>
    %882 = arith.divf %878, %881 : vector<2x8xf32>
    %883 = vector.shape_cast %882 : vector<2x8xf32> to vector<2x8x1xf32>
    %884 = vector.broadcast %883 : vector<2x8x1xf32> to vector<2x8x64xf32>
    %885 = arith.mulf %884, %322 : vector<2x8x64xf32>
    %cst_401 = arith.constant dense<0.000000e+00> : vector<2x64xf32>
    %886 = vector.multi_reduction <add>, %885, %cst_401 [1] : vector<2x8x64xf32> to vector<2x64xf32>
    %c0_402 = arith.constant 0 : index
    %c0_403 = arith.constant 0 : index
    %887 = vector.load %arg20[%c0_402, %c0_403] : memref<128x64xf32, #tpu.memory_space<vmem>>, vector<128x64xf32>
    %cst_404 = arith.constant dense<0.000000e+00> : vector<2x128xf32>
    %888 = tpu.matmul %886, %887, %cst_404 {dimension_numbers = #tpu.dot_dimension_numbers<[1], [1], [0], [0], [0, 0, 1, 0], [], []>} : vector<2x64xf32>, vector<128x64xf32>, vector<2x128xf32> -> vector<2x128xf32>
    %889 = arith.addf %888, %335 : vector<2x128xf32>
    %890 = vector.extract_strided_slice %323 {offsets = [0, 6], sizes = [2, 1], strides = [1, 1]} : vector<2x8xf32> to vector<2x1xf32>
    %891 = vector.broadcast %890 : vector<2x1xf32> to vector<2x128xf32>
    %892 = arith.mulf %889, %891 : vector<2x128xf32>
    %c6_405 = arith.constant 6 : index
    %c0_406 = arith.constant 0 : index
    %c0_407 = arith.constant 0 : index
    %893 = vector.load %arg22[%c6_405, %c0_406, %c0_407] : memref<8x2x128xf32, #tpu.memory_space<vmem>>, vector<1x2x128xf32>
    %894 = vector.shape_cast %893 : vector<1x2x128xf32> to vector<2x128xf32>
    %895 = vector.shape_cast %892 : vector<2x128xf32> to vector<1x2x128xf32>
    tpu.vector_store %arg22[%c6_405, %c0_406, %c0_407], %895 {strides = array<i32>} : memref<8x2x128xf32, #tpu.memory_space<vmem>>, vector<1x2x128xf32>,
    %c6_408 = arith.constant 6 : index
    %c0_409 = arith.constant 0 : index
    %c0_410 = arith.constant 0 : index
    %896 = vector.load %arg23[%c6_408, %c0_409, %c0_410] : memref<8x2x8xf32, #tpu.memory_space<vmem>>, vector<1x2x8xf32>
    %897 = vector.shape_cast %896 : vector<1x2x8xf32> to vector<2x8xf32>
    %898 = vector.shape_cast %882 : vector<2x8xf32> to vector<1x2x8xf32>
    tpu.vector_store %arg23[%c6_408, %c0_409, %c0_410], %898 {strides = array<i32>} : memref<8x2x8xf32, #tpu.memory_space<vmem>>, vector<1x2x8xf32>,
    %c0_411 = arith.constant 0 : index
    %c0_412 = arith.constant 0 : index
    %899 = vector.load %arg9[%c0_411, %c0_412] : memref<48x128xf32, #tpu.memory_space<vmem>>, vector<48x128xf32>
    %cst_413 = arith.constant dense<0.000000e+00> : vector<2x48xf32>
    %900 = tpu.matmul %889, %899, %cst_413 {dimension_numbers = #tpu.dot_dimension_numbers<[1], [1], [0], [0], [0, 0, 1, 0], [], []>} : vector<2x128xf32>, vector<48x128xf32>, vector<2x48xf32> -> vector<2x48xf32>
    %901 = arith.addf %900, %326 : vector<2x48xf32>
    %cst_414 = arith.constant 0.000000e+00 : f32
    %902 = vector.broadcast %cst_414 : f32 to vector<2x48xf32>
    %903 = arith.maximumf %901, %902 : vector<2x48xf32>
    %c0_415 = arith.constant 0 : index
    %c0_416 = arith.constant 0 : index
    %904 = vector.load %arg11[%c0_415, %c0_416] : memref<256x48xf32, #tpu.memory_space<vmem>>, vector<256x48xf32>
    %cst_417 = arith.constant dense<0.000000e+00> : vector<2x256xf32>
    %905 = tpu.matmul %903, %904, %cst_417 {dimension_numbers = #tpu.dot_dimension_numbers<[1], [1], [0], [0], [0, 0, 1, 0], [], []>} : vector<2x48xf32>, vector<256x48xf32>, vector<2x256xf32> -> vector<2x256xf32>
    %c0_418 = arith.constant 0 : index
    %c0_419 = arith.constant 0 : index
    %906 = vector.load %arg12[%c0_418, %c0_419] : memref<256x64xf32, #tpu.memory_space<vmem>>, vector<256x64xf32>
    %cst_420 = arith.constant dense<0.000000e+00> : vector<2x256xf32>
    %907 = tpu.matmul %860, %906, %cst_420 {dimension_numbers = #tpu.dot_dimension_numbers<[1], [1], [0], [0], [0, 0, 1, 0], [], []>} : vector<2x64xf32>, vector<256x64xf32>, vector<2x256xf32> -> vector<2x256xf32>
    %908 = arith.addf %905, %907 : vector<2x256xf32>
    %909 = arith.addf %908, %329 : vector<2x256xf32>
    %910 = vector.extract_strided_slice %909 {offsets = [0, 0], sizes = [2, 64], strides = [1, 1]} : vector<2x256xf32> to vector<2x64xf32>
    %cst_421 = arith.constant 0.000000e+00 : f32
    %911 = vector.broadcast %cst_421 : f32 to vector<2x64xf32>
    %912 = arith.subf %911, %910 : vector<2x64xf32>
    %913 = math.exp %912 : vector<2x64xf32>
    %cst_422 = arith.constant 1.000000e+00 : f32
    %914 = vector.broadcast %cst_422 : f32 to vector<2x64xf32>
    %915 = arith.addf %914, %913 : vector<2x64xf32>
    %cst_423 = arith.constant 1.000000e+00 : f32
    %916 = vector.broadcast %cst_423 : f32 to vector<2x64xf32>
    %917 = arith.divf %916, %915 : vector<2x64xf32>
    %918 = vector.extract_strided_slice %909 {offsets = [0, 64], sizes = [2, 64], strides = [1, 1]} : vector<2x256xf32> to vector<2x64xf32>
    %cst_424 = arith.constant 0.000000e+00 : f32
    %919 = vector.broadcast %cst_424 : f32 to vector<2x64xf32>
    %920 = arith.subf %919, %918 : vector<2x64xf32>
    %921 = math.exp %920 : vector<2x64xf32>
    %cst_425 = arith.constant 1.000000e+00 : f32
    %922 = vector.broadcast %cst_425 : f32 to vector<2x64xf32>
    %923 = arith.addf %922, %921 : vector<2x64xf32>
    %cst_426 = arith.constant 1.000000e+00 : f32
    %924 = vector.broadcast %cst_426 : f32 to vector<2x64xf32>
    %925 = arith.divf %924, %923 : vector<2x64xf32>
    %926 = vector.extract_strided_slice %909 {offsets = [0, 128], sizes = [2, 64], strides = [1, 1]} : vector<2x256xf32> to vector<2x64xf32>
    %927 = math.tanh %926 : vector<2x64xf32>
    %928 = vector.extract_strided_slice %909 {offsets = [0, 192], sizes = [2, 64], strides = [1, 1]} : vector<2x256xf32> to vector<2x64xf32>
    %cst_427 = arith.constant 0.000000e+00 : f32
    %929 = vector.broadcast %cst_427 : f32 to vector<2x64xf32>
    %930 = arith.subf %929, %928 : vector<2x64xf32>
    %931 = math.exp %930 : vector<2x64xf32>
    %cst_428 = arith.constant 1.000000e+00 : f32
    %932 = vector.broadcast %cst_428 : f32 to vector<2x64xf32>
    %933 = arith.addf %932, %931 : vector<2x64xf32>
    %cst_429 = arith.constant 1.000000e+00 : f32
    %934 = vector.broadcast %cst_429 : f32 to vector<2x64xf32>
    %935 = arith.divf %934, %933 : vector<2x64xf32>
    %936 = arith.mulf %925, %858 : vector<2x64xf32>
    %937 = arith.mulf %917, %927 : vector<2x64xf32>
    %938 = arith.addf %936, %937 : vector<2x64xf32>
    %939 = math.tanh %938 : vector<2x64xf32>
    %940 = arith.mulf %935, %939 : vector<2x64xf32>
    %c0_430 = arith.constant 0 : index
    %c0_431 = arith.constant 0 : index
    %941 = vector.load %arg14[%c0_430, %c0_431] : memref<64x64xf32, #tpu.memory_space<vmem>>, vector<64x64xf32>
    %cst_432 = arith.constant dense<0.000000e+00> : vector<2x64xf32>
    %942 = tpu.matmul %940, %941, %cst_432 {dimension_numbers = #tpu.dot_dimension_numbers<[1], [1], [0], [0], [0, 0, 1, 0], [], []>} : vector<2x64xf32>, vector<64x64xf32>, vector<2x64xf32> -> vector<2x64xf32>
    %943 = arith.addf %942, %332 : vector<2x64xf32>
    %944 = vector.shape_cast %943 : vector<2x64xf32> to vector<2x1x64xf32>
    %945 = vector.broadcast %944 : vector<2x1x64xf32> to vector<2x8x64xf32>
    %946 = arith.mulf %945, %320 : vector<2x8x64xf32>
    %cst_433 = arith.constant dense<0.000000e+00> : vector<2x8xf32>
    %947 = vector.multi_reduction <add>, %946, %cst_433 [2] : vector<2x8x64xf32> to vector<2x8xf32>
    %cst_434 = arith.constant 1.250000e-01 : f32
    %948 = vector.broadcast %cst_434 : f32 to vector<2x8xf32>
    %949 = arith.mulf %947, %948 : vector<2x8xf32>
    %cst_435 = arith.constant 5.000000e-01 : f32
    %950 = vector.broadcast %cst_435 : f32 to vector<2x8xf32>
    %951 = arith.cmpf ogt, %323, %950 : vector<2x8xf32>
    %cst_436 = arith.constant -1.000000e+09 : f32
    %952 = vector.broadcast %cst_436 : f32 to vector<2x8xf32>
    %953 = arith.select %951, %949, %952 : vector<2x8xi1>, vector<2x8xf32>
    %cst_437 = arith.constant dense<0xFF800000> : vector<2xf32>
    %954 = vector.multi_reduction <maximumf>, %953, %cst_437 [1] : vector<2x8xf32> to vector<2xf32>
    %955 = vector.shape_cast %954 : vector<2xf32> to vector<2x1xf32>
    %956 = vector.broadcast %955 : vector<2x1xf32> to vector<2x8xf32>
    %957 = arith.subf %953, %956 : vector<2x8xf32>
    %958 = math.exp %957 : vector<2x8xf32>
    %cst_438 = arith.constant dense<0.000000e+00> : vector<2xf32>
    %959 = vector.multi_reduction <add>, %958, %cst_438 [1] : vector<2x8xf32> to vector<2xf32>
    %960 = vector.shape_cast %959 : vector<2xf32> to vector<2x1xf32>
    %961 = vector.broadcast %960 : vector<2x1xf32> to vector<2x8xf32>
    %962 = arith.divf %958, %961 : vector<2x8xf32>
    %963 = vector.shape_cast %962 : vector<2x8xf32> to vector<2x8x1xf32>
    %964 = vector.broadcast %963 : vector<2x8x1xf32> to vector<2x8x64xf32>
    %965 = arith.mulf %964, %322 : vector<2x8x64xf32>
    %cst_439 = arith.constant dense<0.000000e+00> : vector<2x64xf32>
    %966 = vector.multi_reduction <add>, %965, %cst_439 [1] : vector<2x8x64xf32> to vector<2x64xf32>
    %c0_440 = arith.constant 0 : index
    %c0_441 = arith.constant 0 : index
    %967 = vector.load %arg20[%c0_440, %c0_441] : memref<128x64xf32, #tpu.memory_space<vmem>>, vector<128x64xf32>
    %cst_442 = arith.constant dense<0.000000e+00> : vector<2x128xf32>
    %968 = tpu.matmul %966, %967, %cst_442 {dimension_numbers = #tpu.dot_dimension_numbers<[1], [1], [0], [0], [0, 0, 1, 0], [], []>} : vector<2x64xf32>, vector<128x64xf32>, vector<2x128xf32> -> vector<2x128xf32>
    %969 = arith.addf %968, %335 : vector<2x128xf32>
    %970 = vector.extract_strided_slice %323 {offsets = [0, 7], sizes = [2, 1], strides = [1, 1]} : vector<2x8xf32> to vector<2x1xf32>
    %971 = vector.broadcast %970 : vector<2x1xf32> to vector<2x128xf32>
    %972 = arith.mulf %969, %971 : vector<2x128xf32>
    %c7 = arith.constant 7 : index
    %c0_443 = arith.constant 0 : index
    %c0_444 = arith.constant 0 : index
    %973 = vector.load %arg22[%c7, %c0_443, %c0_444] : memref<8x2x128xf32, #tpu.memory_space<vmem>>, vector<1x2x128xf32>
    %974 = vector.shape_cast %973 : vector<1x2x128xf32> to vector<2x128xf32>
    %975 = vector.shape_cast %972 : vector<2x128xf32> to vector<1x2x128xf32>
    tpu.vector_store %arg22[%c7, %c0_443, %c0_444], %975 {strides = array<i32>} : memref<8x2x128xf32, #tpu.memory_space<vmem>>, vector<1x2x128xf32>,
    %c7_445 = arith.constant 7 : index
    %c0_446 = arith.constant 0 : index
    %c0_447 = arith.constant 0 : index
    %976 = vector.load %arg23[%c7_445, %c0_446, %c0_447] : memref<8x2x8xf32, #tpu.memory_space<vmem>>, vector<1x2x8xf32>
    %977 = vector.shape_cast %976 : vector<1x2x8xf32> to vector<2x8xf32>
    %978 = vector.shape_cast %962 : vector<2x8xf32> to vector<1x2x8xf32>
    tpu.vector_store %arg23[%c7_445, %c0_446, %c0_447], %978 {strides = array<i32>} : memref<8x2x8xf32, #tpu.memory_space<vmem>>, vector<1x2x8xf32>,
    return
  }
}

</mosaic_0001>

<bundles_post_ra>
// kernel: lrl_init_lral_net_forward.1
= control target key start
LH: loop header
LB: loop body
LE: loop exit
PB: predicated region body
PF: predicated region fallthrough
CT: control target
= control target key end

     0   :  { %s17586_s0 = inlined_call_operand.vmem [shape: f32[16,32], index: 0, kind: input, shape index: {}]   ;;  %s17587_s1 = inlined_call_operand.vmem [shape: f32[2,8], index: 1, kind: input, shape index: {}]   ;;  %s17588_s2 = inlined_call_operand.hbm [shape: f32[48,32], index: 2, kind: input, shape index: {}]   ;;  %s17589_s3 = inlined_call_operand.hbm [shape: f32[1,48], index: 3, kind: input, shape index: {}]   ;;  %s17590_s4 = inlined_call_operand.hbm [shape: f32[256,48], index: 4, kind: input, shape index: {}]   ;;  %s17591_s5 = inlined_call_operand.hbm [shape: f32[256,64], index: 5, kind: input, shape index: {}]   ;;  %s17592_s6 = inlined_call_operand.hbm [shape: f32[1,256], index: 6, kind: input, shape index: {}]   ;;  %s17593_s7 = inlined_call_operand.hbm [shape: f32[64,64], index: 7, kind: input, shape index: {}]   ;;  %s17594_s8 = inlined_call_operand.hbm [shape: f32[1,64], index: 8, kind: input, shape index: {}]   ;;  %s17595_s9 = inlined_call_operand.hbm [shape: f32[48,128], index: 9, kind: input, shape index: {}]   ;;  %s17596_s10 = inlined_call_operand.hbm [shape: f32[1,48], index: 10, kind: input, shape index: {}]   ;;  %s17597_s11 = inlined_call_operand.hbm [shape: f32[256,48], index: 11, kind: input, shape index: {}]   ;;  %s17598_s12 = inlined_call_operand.hbm [shape: f32[256,64], index: 12, kind: input, shape index: {}]   ;;  %s17599_s13 = inlined_call_operand.vmem [shape: f32[1,256], index: 13, kind: input, shape index: {}]   ;;  %s17600_s14 = inlined_call_operand.hbm [shape: f32[64,64], index: 14, kind: input, shape index: {}]   ;;  %s17601_s15 = inlined_call_operand.hbm [shape: f32[1,64], index: 15, kind: input, shape index: {}]   ;;  %s17602_s16 = inlined_call_operand.hbm [shape: f32[64,64], index: 16, kind: input, shape index: {}]   ;;  %s17603_s17 = inlined_call_operand.hbm [shape: f32[1,64], index: 17, kind: input, shape index: {}]   ;;  %s17604_s18 = inlined_call_operand.vmem [shape: f32[64,64], index: 18, kind: input, shape index: {}]   ;;  %s17605_s19 = inlined_call_operand.vmem [shape: f32[1,64], index: 19, kind: input, shape index: {}]   ;;  %s17606_s20 = inlined_call_operand.hbm [shape: f32[128,64], index: 20, kind: input, shape index: {}]   ;;  %s17607_s21 = inlined_call_operand.vmem [shape: f32[1,128], index: 21, kind: input, shape index: {}]   ;;  %s17608_s22 = inlined_call_operand.vmem [shape: f32[8,2,128], index: 22, kind: output, shape index: {0}]   ;;  %s17609_s23 = inlined_call_operand.vmem [shape: f32[8,2,8], index: 23, kind: output, shape index: {1}]  }
   0x1   :  { %17854 = sst [smem:[#allocation99_spill]] %s17586_s0 }
   0x2   :  { %17855 = sst [smem:[#allocation100_spill]] %s17587_s1 }
   0x3   :  { %17856 = sst [smem:[#allocation101_spill]] %s17588_s2 }
   0x4   :  { %17857 = sst [smem:[#allocation102_spill]] %s17589_s3 }
   0x5   :  { %17858 = sst [smem:[#allocation103_spill]] %s17590_s4 }
   0x6   :  { %17859 = sst [smem:[#allocation104_spill]] %s17591_s5 }
   0x7   :  { %17860 = sst [smem:[#allocation105_spill]] %s17592_s6 }
   0x8   :  { %17861 = sst [smem:[#allocation106_spill]] %s17593_s7 }
   0x9   :  { %29 = vsyncpa [#allocation4], 0 }
   0xa   :  { %30 = vsyncpa [#allocation6], 0 }
   0xb   :  { %31 = vsyncpa [#allocation9], 0 }
   0xc   :  { %32 = vsyncpa [#allocation12], 0 }
   0xd   :  { %33 = vsyncpa [#allocation15], 0 }
   0xe   :  { %34 = vsyncpa [#allocation18], 0 }
   0xf   :  { %35 = vsyncpa [#allocation21], 0 }
  0x10   :  { %36 = vsyncpa [#allocation24], 0 }
  0x11   :  { %37 = vsyncpa [#allocation27], 0  ;;  %s13513_s4 = smov [#allocation5]  }
  0x12   :  { %s60_s30 = sshll.u32 %s13513_s4, 4  ;;  %s61_s30 = int_to_ptr.vmem [resolvable:$true] %s60_s30 }
  0x13   :  { %s13183_s24 = scalar_lea.vmem %s61_s30, 16  ;;  %s13187_s25 = scalar_lea.vmem %s61_s30, 32 }
  0x14   :  { %p13184_p0 = scmp.ne.s32.totalorder %s61_s30, %s13183_s24  ;;  %p13188_p1 = scmp.lt.s32.totalorder %s61_s30, %s61_s30 }
  0x15   :  { %p13189_p2 = scmp.lt.s32.totalorder %s13187_s25, %s13183_s24 }
  0x17   :  { %p13190_p3 = por %p13189_p2, %p13188_p1 }
  0x19   :  { %p13191_p4 = pnand %p13190_p3, %p13184_p0 }
  0x1b   :  { %13194 = shalt.err (!%p13191_p4)
}
  0x1c   :  { %s17862_s26 = sld [smem:[#allocation102_spill]]  ;;  %s13514_s2 = smov [#allocation8]  }
  0x1d   :  { %s81_s6 = sshll.u32 %s13514_s2, 4  ;;  %s13515_s27 = smov [#allocation11]   ;;  %s82_s6 = int_to_ptr.vmem [resolvable:$true] %s81_s6 }
  0x1e   :  { %s103_s7 = sshll.u32 %s13515_s27, 4  ;;  %s13203_s28 = scalar_lea.vmem %s82_s6, 4096  ;;  %s104_s7 = int_to_ptr.vmem [resolvable:$true] %s103_s7 }
  0x1f   :  { %p13204_p5 = scmp.ne.s32.totalorder %s82_s6, %s13203_s28  ;;  %p13208_p6 = scmp.lt.s32.totalorder %s82_s6, %s82_s6 }
  0x20   :  { %p13209_p7 = scmp.lt.s32.totalorder %s13203_s28, %s13203_s28 }
  0x22   :  { %63 = dma.hbm_to_vmem [thread:$0]  %s17862_s26, 16, %s61_s30, [#allocation6]  }
  0x23   :  { %p13210_p8 = por %p13209_p7, %p13208_p6 }
  0x25   :  { %p13211_p9 = pnand %p13210_p8, %p13204_p5 }
  0x27   :  { %13214 = shalt.err (!%p13211_p9)
}
  0x28   :  { %s13516_s29 = smov 128   ;;  %s13517_s3 = smov 8  }
  0x29   :  { %s17863_s30 = sld [smem:[#allocation104_spill]]  ;;  %s13223_s24 = scalar_lea.vmem %s104_s7, 1024 }
  0x2a   :  { %p13224_p10 = scmp.ne.s32.totalorder %s104_s7, %s13223_s24  ;;  %p13228_p11 = scmp.lt.s32.totalorder %s104_s7, %s104_s7 }
  0x2b   :  { %p13229_p12 = scmp.lt.s32.totalorder %s13223_s24, %s13223_s24 }
  0x2d   :  { %p13230_p13 = por %p13229_p12, %p13228_p11 }
  0x2f   :  { %87 = dma.hbm_to_vmem [thread:$0]  %s17863_s30, 4096, %s82_s6, [#allocation9], %s13516_s29, %s13516_s29, %s13517_s3  }
  0x30   :  { %p13231_p0 = pnand %p13230_p13, %p13224_p10 }
  0x32   :  { %13234 = shalt.err (!%p13231_p0)
}
  0x33   :  { %s17864_s1 = sld [smem:[#allocation106_spill]]  ;;  %s13518_s26 = smov [#allocation14]  }
  0x34   :  { %s125_s2 = sshll.u32 %s13518_s26, 4  ;;  %s13519_s27 = smov [#allocation17]   ;;  %s126_s2 = int_to_ptr.vmem [resolvable:$true] %s125_s2 }
  0x35   :  { %s147_s6 = sshll.u32 %s13519_s27, 4  ;;  %s13243_s28 = scalar_lea.vmem %s126_s2, 768  ;;  %s148_s6 = int_to_ptr.vmem [resolvable:$true] %s147_s6 }
  0x36   :  { %p13244_p1 = scmp.ne.s32.totalorder %s126_s2, %s13243_s28  ;;  %p13248_p2 = scmp.lt.s32.totalorder %s126_s2, %s126_s2 }
  0x37   :  { %p13249_p3 = scmp.lt.s32.totalorder %s13243_s28, %s13243_s28 }
  0x39   :  { %109 = dma.hbm_to_vmem [thread:$0]  %s17864_s1, 1024, %s104_s7, [#allocation12], %s13516_s29, %s13516_s29, %s13517_s3  }
  0x3a   :  { %p13250_p4 = por %p13249_p3, %p13248_p2 }
  0x3c   :  { %p13251_p5 = pnand %p13250_p4, %p13244_p1 }
  0x3e   :  { %13254 = shalt.err (!%p13251_p5)
}
  0x3f   :  { %131 = dma.hbm_to_vmem [thread:$0]  %s17595_s9, 768, %s126_s2, [#allocation15], %s13516_s29, %s13516_s29, %s13517_s3  }
  0x40   :  { %s13263_s7 = scalar_lea.vmem %s148_s6, 4096  ;;  %p13268_p7 = scmp.lt.s32.totalorder %s148_s6, %s148_s6 }
  0x41   :  { %p13264_p6 = scmp.ne.s32.totalorder %s148_s6, %s13263_s7  ;;  %p13269_p8 = scmp.lt.s32.totalorder %s13263_s7, %s13263_s7 }
  0x43   :  { %p13270_p9 = por %p13269_p8, %p13268_p7 }
  0x45   :  { %p13271_p10 = pnand %p13270_p9, %p13264_p6 }
  0x47   :  { %13274 = shalt.err (!%p13271_p10)
}
  0x48   :  { %153 = dma.hbm_to_vmem [thread:$0]  %s17597_s11, 4096, %s148_s6, [#allocation18], %s13516_s29, %s13516_s29, %s13517_s3  }
  0x49   :  { %s13520_s25 = smov [#allocation20]   ;;  %s13521_s1 = smov [#allocation23]  }
  0x4a   :  { %s173_s5 = sshll.u32 %s13520_s25, 4  ;;  %s195_s9 = sshll.u32 %s13521_s1, 4  ;;  %s174_s5 = int_to_ptr.vmem [resolvable:$true] %s173_s5  ;;  %s196_s9 = int_to_ptr.vmem [resolvable:$true] %s195_s9 }
  0x4b   :  { %s13283_s26 = scalar_lea.vmem %s174_s5, 1024  ;;  %p13288_p12 = scmp.lt.s32.totalorder %s174_s5, %s174_s5 }
  0x4c   :  { %p13284_p11 = scmp.ne.s32.totalorder %s174_s5, %s13283_s26  ;;  %p13289_p13 = scmp.lt.s32.totalorder %s13283_s26, %s13283_s26 }
  0x4e   :  { %p13290_p0 = por %p13289_p13, %p13288_p12 }
  0x50   :  { %p13291_p1 = pnand %p13290_p0, %p13284_p11 }
  0x52   :  { %13294 = shalt.err (!%p13291_p1)
}
  0x53   :  { %179 = dma.hbm_to_vmem [thread:$0]  %s17600_s14, 1024, %s174_s5, [#allocation21], %s13516_s29, %s13516_s29, %s13517_s3  }
  0x54   :  { %s13303_s11 = scalar_lea.vmem %s196_s9, 1024  ;;  %p13308_p3 = scmp.lt.s32.totalorder %s196_s9, %s196_s9 }
  0x55   :  { %p13304_p2 = scmp.ne.s32.totalorder %s196_s9, %s13303_s11  ;;  %p13309_p4 = scmp.lt.s32.totalorder %s13303_s11, %s13303_s11 }
  0x57   :  { %p13310_p5 = por %p13309_p4, %p13308_p3 }
  0x59   :  { %p13311_p6 = pnand %p13310_p5, %p13304_p2 }
  0x5b   :  { %13314 = shalt.err (!%p13311_p6)
}
  0x5c   :  { %201 = dma.hbm_to_vmem [thread:$0]  %s17602_s16, 1024, %s196_s9, [#allocation24], %s13516_s29, %s13516_s29, %s13517_s3  }
  0x5d   :  { %s13522_s0 = smov [#allocation3]   ;;  %s13523_s7 = smov [#allocation7]  }
  0x5e   :  { %s47_s4 = sshll.u32 %s13522_s0, 4  ;;  %s69_s14 = sshll.u32 %s13523_s7, 4  ;;  %s48_s4 = int_to_ptr.vmem [resolvable:$true] %s47_s4  ;;  %s70_s14 = int_to_ptr.vmem [resolvable:$true] %s69_s14 }
  0x5f   :  { %s13323_s30 = scalar_lea.vmem %s48_s4, 768  ;;  %p13328_p8 = scmp.lt.s32.totalorder %s48_s4, %s48_s4 }
  0x60   :  { %p13324_p7 = scmp.ne.s32.totalorder %s48_s4, %s13323_s30  ;;  %p13329_p9 = scmp.lt.s32.totalorder %s13323_s30, %s13323_s30 }
  0x62   :  { %p13330_p10 = por %p13329_p9, %p13328_p8 }
  0x64   :  { %p13331_p11 = pnand %p13330_p10, %p13324_p7 }
  0x66   :  { %13334 = shalt.err (!%p13331_p11)
}
  0x67   :  { %s17865_s5 = sld [smem:[#allocation101_spill]]  ;;  %s13343_s16 = scalar_lea.vmem %s70_s14, 4096 }
  0x68   :  { %p13344_p12 = scmp.ne.s32.totalorder %s70_s14, %s13343_s16  ;;  %p13348_p13 = scmp.lt.s32.totalorder %s70_s14, %s70_s14 }
  0x69   :  { %p13349_p0 = scmp.lt.s32.totalorder %s13343_s16, %s13343_s16 }
  0x6b   :  { %p13350_p1 = por %p13349_p0, %p13348_p13 }
  0x6d   :  { %53 = dma.hbm_to_vmem [thread:$0]  %s17865_s5, 768, %s48_s4, [#allocation4], %s13516_s29, %s13516_s29, %s13517_s3  }
  0x6e   :  { %p13351_p2 = pnand %p13350_p1, %p13344_p12 }
  0x70   :  { %13354 = shalt.err (!%p13351_p2)
}
  0x71   :  { %s17866_s26 = sld [smem:[#allocation103_spill]]  ;;  %s13524_s2 = smov [#allocation10]  }
  0x72   :  { %s94_s27 = sshll.u32 %s13524_s2, 4  ;;  %s13525_s11 = smov [#allocation13]   ;;  %s95_s27 = int_to_ptr.vmem [resolvable:$true] %s94_s27 }
  0x73   :  { %s116_s6 = sshll.u32 %s13525_s11, 4  ;;  %s13363_s28 = scalar_lea.vmem %s95_s27, 32  ;;  %s117_s6 = int_to_ptr.vmem [resolvable:$true] %s116_s6 }
  0x74   :  { %p13364_p3 = scmp.ne.s32.totalorder %s95_s27, %s13363_s28  ;;  %p13368_p4 = scmp.lt.s32.totalorder %s95_s27, %s95_s27 }
  0x75   :  { %p13369_p5 = scmp.lt.s32.totalorder %s13363_s28, %s13363_s28 }
  0x77   :  { %75 = dma.hbm_to_vmem [thread:$0]  %s17866_s26, 4096, %s70_s14, [#allocation6], %s13516_s29, %s13516_s29, %s13517_s3  }
  0x78   :  { %p13370_p6 = por %p13369_p5, %p13368_p4 }
  0x7a   :  { %p13371_p7 = pnand %p13370_p6, %p13364_p3 }
  0x7c   :  { %13374 = shalt.err (!%p13371_p7)
}
  0x7d   :  { %s17867_s7 = sld [smem:[#allocation105_spill]]  ;;  %s13383_s30 = scalar_lea.vmem %s117_s6, 16 }
  0x7e   :  { %p13384_p8 = scmp.ne.s32.totalorder %s117_s6, %s13383_s30  ;;  %s13387_s14 = scalar_lea.vmem %s117_s6, 32 }
  0x7f   :  { %p13388_p9 = scmp.lt.s32.totalorder %s117_s6, %s117_s6  ;;  %p13389_p10 = scmp.lt.s32.totalorder %s13387_s14, %s13383_s30 }
  0x81   :  { %p13390_p11 = por %p13389_p10, %p13388_p9 }
  0x83   :  { %97 = dma.hbm_to_vmem [thread:$0]  %s17867_s7, 32, %s95_s27, [#allocation9]  }
  0x84   :  { %p13391_p12 = pnand %p13390_p11, %p13384_p8 }
  0x86   :  { %13394 = shalt.err (!%p13391_p12)
}
  0x87   :  { %119 = dma.hbm_to_vmem [thread:$0]  %s17594_s8, 16, %s117_s6, [#allocation12]  }
  0x88   :  { %s13526_s5 = smov [#allocation16]   ;;  %s13527_s1 = smov [#allocation19]  }
  0x89   :  { %s138_s16 = sshll.u32 %s13526_s5, 4  ;;  %s159_s9 = sshll.u32 %s13527_s1, 4  ;;  %s139_s16 = int_to_ptr.vmem [resolvable:$true] %s138_s16  ;;  %s160_s9 = int_to_ptr.vmem [resolvable:$true] %s159_s9 }
  0x8a   :  { %s13403_s26 = scalar_lea.vmem %s139_s16, 16  ;;  %s13407_s2 = scalar_lea.vmem %s139_s16, 32 }
  0x8b   :  { %p13404_p13 = scmp.ne.s32.totalorder %s139_s16, %s13403_s26  ;;  %p13408_p0 = scmp.lt.s32.totalorder %s139_s16, %s139_s16 }
  0x8c   :  { %p13409_p1 = scmp.lt.s32.totalorder %s13407_s2, %s13403_s26 }
  0x8e   :  { %p13410_p2 = por %p13409_p1, %p13408_p0 }
  0x90   :  { %p13411_p3 = pnand %p13410_p2, %p13404_p13 }
  0x92   :  { %13414 = shalt.err (!%p13411_p3)
}
  0x93   :  { %141 = dma.hbm_to_vmem [thread:$0]  %s17596_s10, 16, %s139_s16, [#allocation15]  }
  0x94   :  { %s13423_s28 = scalar_lea.vmem %s160_s9, 4096  ;;  %p13428_p5 = scmp.lt.s32.totalorder %s160_s9, %s160_s9 }
  0x95   :  { %p13424_p4 = scmp.ne.s32.totalorder %s160_s9, %s13423_s28  ;;  %p13429_p6 = scmp.lt.s32.totalorder %s13423_s28, %s13423_s28 }
  0x97   :  { %p13430_p7 = por %p13429_p6, %p13428_p5 }
  0x99   :  { %p13431_p8 = pnand %p13430_p7, %p13424_p4 }
  0x9b   :  { %13434 = shalt.err (!%p13431_p8)
}
  0x9c   :  { %165 = dma.hbm_to_vmem [thread:$0]  %s17598_s12, 4096, %s160_s9, [#allocation18], %s13516_s29, %s13516_s29, %s13517_s3  }
  0x9d   :  { %s13528_s0 = smov [#allocation22]   ;;  %s13529_s7 = smov [#allocation25]  }
  0x9e   :  { %s186_s4 = sshll.u32 %s13528_s0, 4  ;;  %s208_s10 = sshll.u32 %s13529_s7, 4  ;;  %s187_s4 = int_to_ptr.vmem [resolvable:$true] %s186_s4  ;;  %s209_s10 = int_to_ptr.vmem [resolvable:$true] %s208_s10 }
  0x9f   :  { %s13443_s30 = scalar_lea.vmem %s187_s4, 16  ;;  %s13447_s14 = scalar_lea.vmem %s187_s4, 32 }
  0xa0   :  { %p13444_p9 = scmp.ne.s32.totalorder %s187_s4, %s13443_s30  ;;  %p13448_p10 = scmp.lt.s32.totalorder %s187_s4, %s187_s4 }
  0xa1   :  { %p13449_p11 = scmp.lt.s32.totalorder %s13447_s14, %s13443_s30 }
  0xa3   :  { %p13450_p12 = por %p13449_p11, %p13448_p10 }
  0xa5   :  { %p13451_p13 = pnand %p13450_p12, %p13444_p9 }
  0xa7   :  { %13454 = shalt.err (!%p13451_p13)
}
  0xa8   :  { %189 = dma.hbm_to_vmem [thread:$0]  %s17601_s15, 16, %s187_s4, [#allocation21]  }
  0xa9   :  { %s13463_s5 = scalar_lea.vmem %s209_s10, 16  ;;  %s13467_s12 = scalar_lea.vmem %s209_s10, 32 }
  0xaa   :  { %p13464_p0 = scmp.ne.s32.totalorder %s209_s10, %s13463_s5  ;;  %p13468_p1 = scmp.lt.s32.totalorder %s209_s10, %s209_s10 }
  0xab   :  { %p13469_p2 = scmp.lt.s32.totalorder %s13467_s12, %s13463_s5 }
  0xad   :  { %p13470_p3 = por %p13469_p2, %p13468_p1 }
  0xaf   :  { %p13471_p4 = pnand %p13470_p3, %p13464_p0 }
  0xb1   :  { %13474 = shalt.err (!%p13471_p4)
}
  0xb2   :  { %211 = dma.hbm_to_vmem [thread:$0]  %s17603_s17, 16, %s209_s10, [#allocation24]  }
  0xb3   :  { %s13530_s9 = smov [#allocation26]  }
  0xb4   :  { %s221_s26 = sshll.u32 %s13530_s9, 4  ;;  %s222_s26 = int_to_ptr.vmem [resolvable:$true] %s221_s26 }
  0xb5   :  { %s13483_s2 = scalar_lea.vmem %s222_s26, 2048  ;;  %p13488_p6 = scmp.lt.s32.totalorder %s222_s26, %s222_s26 }
  0xb6   :  { %p13484_p5 = scmp.ne.s32.totalorder %s222_s26, %s13483_s2  ;;  %p13489_p7 = scmp.lt.s32.totalorder %s13483_s2, %s13483_s2 }
  0xb8   :  { %p13490_p8 = por %p13489_p7, %p13488_p6 }
  0xba   :  { %p13491_p9 = pnand %p13490_p8, %p13484_p5 }
  0xbc   :  { %13494 = shalt.err (!%p13491_p9)
}
  0xbd   :  { %227 = dma.hbm_to_vmem [thread:$0]  %s17606_s20, 2048, %s222_s26, [#allocation27], %s13516_s29, %s13516_s29, %s13517_s3  }
  0xbe   :  { %13495 = dma.done.wait [#allocation4], 768  }
  0xbf   :  { %13496 = vsyncadd [#allocation4], 4294966528 }
  0xc0   :  { %13497 = dma.done.wait [#allocation6], 4112  }
  0xc1   :  { %13498 = vsyncadd [#allocation6], 4294963184 }
  0xc2   :  { %13499 = dma.done.wait [#allocation9], 4128  }
  0xc3   :  { %13500 = vsyncadd [#allocation9], 4294963168 }
  0xc4   :  { %13501 = dma.done.wait [#allocation12], 1040  }
  0xc5   :  { %13502 = vsyncadd [#allocation12], 4294966256 }
  0xc6   :  { %13503 = dma.done.wait [#allocation15], 784  }
  0xc7   :  { %13504 = vsyncadd [#allocation15], 4294966512 }
  0xc8   :  { %13505 = dma.done.wait [#allocation18], 8192  }
  0xc9   :  { %13506 = vsyncadd [#allocation18], 4294959104 }
  0xca   :  { %13507 = dma.done.wait [#allocation21], 1040  }
  0xcb   :  { %13508 = vsyncadd [#allocation21], 4294966256 }
  0xcc   :  { %13509 = dma.done.wait [#allocation24], 1040  }
  0xcd   :  { %13510 = vsyncadd [#allocation24], 4294966256 }
  0xce   :  { %13511 = dma.done.wait [#allocation27], 2048  }
  0xcf   :  { %13512 = vsyncadd [#allocation27], 4294965248  ;;  %vm293_vm0 = vcmask 261120   ;;  %v285_v0 = vld [vmem:[#allocation3 + $0x28] sm:$0xff]  ;;  %v284_v1 = vld [vmem:[#allocation3 + $0x20] sm:$0xff]  ;;  %vm439_vm1 = vcmask 392192  }
  0xd0   :  { %12277 = vmatprep.subr.msk.mxu0 %vm293_vm0, %v285_v0  ;;  %s17868_s29 = sld [smem:[#allocation99_spill]]  ;;  %v426_v3 = vld [vmem:[#allocation7 + $0xf8] sm:$0xff]  ;;  %v283_v5 = vld [vmem:[#allocation3 + $0x18] sm:$0xff]  ;;  %v425_v6 = vld [vmem:[#allocation7 + $0xf0] sm:$0xff]  ;;  %vm651_vm2 = vcmask 523264   ;;  %s13532_s28 = smov 64  }
  0xd1   :  { %12278 = vmatpush3.xpose.msk.msra.mxu0 %vm293_vm0, %v285_v0  ;;  %v410_v4 = vld [vmem:[#allocation7 + $0x78] sm:$0xff]  ;;  %11131 = vmatprep.subr.msk.mxu1 %vm439_vm1, %v426_v3  ;;  %v409_v7 = vld [vmem:[#allocation7 + $0x70] sm:$0xff]  ;;  %v424_v8 = vld [vmem:[#allocation7 + $0xe8] sm:$0xff]  ;;  %vm850_vm3 = vcmask 517120   ;;  %vm1090_vm4 = vcmask 519170   ;;  %vm1576_vm5 = vcmask 523270  }
  0xd2   :  { %12279 = vmatprep.subr.msk.mxu0 %vm293_vm0, %v284_v1  ;;  %11132 = vmatpush3.xpose.msk.msra.mxu1 %vm439_vm1, %v410_v4  ;;  %v282_v9 = vld [vmem:[#allocation3 + $0x10] sm:$0xff]  ;;  %v408_v10 = vld [vmem:[#allocation7 + $0x68] sm:$0xff]  ;;  %v281_v12 = vld [vmem:[#allocation3 + $0x8] sm:$0xff]  ;;  %vm1333_vm6 = vcmask 521220   ;;  %vm13533_vm7 = vmmov 0   ;;  %s17918_s17 = sld [smem:[#allocation100_spill]] }
  0xd3   :  { %11133 = vmatprep.subr.msk.mxu1 %vm439_vm1, %v425_v6  ;;  %v423_v11 = vld [vmem:[#allocation7 + $0xe0] sm:$0xff]  ;;  %v422_v14 = vld [vmem:[#allocation7 + $0xd8] sm:$0xff]  ;;  %v280_v15 = vld [vmem:[#allocation3] sm:$0xff]  ;;  %vm3796_vm8 = vcmask 1041409   ;;  %vm3800_vm10 = vcmask 58368  }
  0xd4   :  { %v407_v13 = vld [vmem:[#allocation7 + $0x60] sm:$0xff]  ;;  %v406_v16 = vld [vmem:[#allocation7 + $0x58] sm:$0xff]  ;;  %v421_v17 = vld [vmem:[#allocation7 + $0xd0] sm:$0xff] }
  0xd5   :  { %12280 = vmatpush3.xpose.msk.msra.mxu0 %vm293_vm0, %v284_v1  ;;  %v13767_v18 = vld [vmem:[#allocation8 + $0xf8] sm:$0xff]  ;;  %v405_v20 = vld [vmem:[#allocation7 + $0x50] sm:$0xff]  ;;  %v420_v22 = vld [vmem:[#allocation7 + $0xc8] sm:$0xff] }
  0xd6   :  { %v278_v2 = vld [vmem:[%s17868_s29] sm:$0xff]  ;;  %12281 = vmatprep.subr.msk.mxu0 %vm293_vm0, %v283_v5  ;;  %11134 = vmatpush3.xpose.msk.msra.mxu1 %vm439_vm1, %v409_v7  ;;  %v279_v19 = vld [vmem:[%s17868_s29 + $0x8] sm:$0xff]  ;;  %v13779_v23 = vld [vmem:[#allocation8 + $0xf0] sm:$0xff] }
  0xd7   :  { %12289 = vmatprep.mubr.msk.f32.mxu0 %vm293_vm0, %v278_v2  ;;  %11135 = vmatprep.subr.msk.mxu1 %vm439_vm1, %v424_v8  ;;  %v13777_v21 = vld [vmem:[#allocation8 + $0x78] sm:$0xff]  ;;  %v404_v24 = vld [vmem:[#allocation7 + $0x48] sm:$0xff]  ;;  %v13788_v25 = vld [vmem:[#allocation8 + $0x70] sm:$0xff]  ;;  %v17613_v8 = vmov 0.0  }
  0xd8   :  { %v419_v26 = vld [vmem:[#allocation7 + $0xc0] sm:$0xff]  ;;  %v13790_v27 = vld [vmem:[#allocation8 + $0xe8] sm:$0xff]  ;;  %v418_v30 = vld [vmem:[#allocation7 + $0xb8] sm:$0xff] }
  0xd9   :  { %12282 = vmatpush3.xpose.msk.msra.mxu0 %vm293_vm0, %v283_v5  ;;  %v403_v28 = vld [vmem:[#allocation7 + $0x40] sm:$0xff]  ;;  %v13798_v29 = vld [vmem:[#allocation8 + $0x68] sm:$0xff]  ;;  %v402_v32 = vld [vmem:[#allocation7 + $0x38] sm:$0xff] }
  0xda   :  { %12283 = vmatprep.subr.msk.mxu0 %vm293_vm0, %v282_v9  ;;  %11136 = vmatpush3.xpose.msk.msra.mxu1 %vm439_vm1, %v408_v10  ;;  %v13800_v31 = vld [vmem:[#allocation8 + $0xe0] sm:$0xff]  ;;  %v417_v34 = vld [vmem:[#allocation7 + $0xb0] sm:$0xff]  ;;  %v13810_v35 = vld [vmem:[#allocation8 + $0xd8] sm:$0xff] }
  0xdb   :  { %11137 = vmatprep.subr.msk.mxu1 %vm439_vm1, %v423_v11  ;;  %v13808_v33 = vld [vmem:[#allocation8 + $0x60] sm:$0xff]  ;;  %v401_v36 = vld [vmem:[#allocation7 + $0x30] sm:$0xff]  ;;  %v13818_v37 = vld [vmem:[#allocation8 + $0x58] sm:$0xff] }
  0xdc   :  { %v416_v38 = vld [vmem:[#allocation7 + $0xa8] sm:$0xff]  ;;  %v13820_v39 = vld [vmem:[#allocation8 + $0xd0] sm:$0xff]  ;;  %v415_v42 = vld [vmem:[#allocation7 + $0xa0] sm:$0xff] }
  0xdd   :  { %12284 = vmatpush3.xpose.msk.msra.mxu0 %vm293_vm0, %v282_v9  ;;  %v400_v40 = vld [vmem:[#allocation7 + $0x28] sm:$0xff]  ;;  %v13828_v41 = vld [vmem:[#allocation8 + $0x50] sm:$0xff]  ;;  %v399_v44 = vld [vmem:[#allocation7 + $0x20] sm:$0xff] }
  0xde   :  { %12285 = vmatprep.subr.msk.mxu0 %vm293_vm0, %v281_v12  ;;  %11138 = vmatpush3.xpose.msk.msra.mxu1 %vm439_vm1, %v407_v13  ;;  %v13830_v43 = vld [vmem:[#allocation8 + $0xc8] sm:$0xff]  ;;  %v414_v46 = vld [vmem:[#allocation7 + $0x98] sm:$0xff]  ;;  %v13840_v47 = vld [vmem:[#allocation8 + $0xc0] sm:$0xff] }
  0xdf   :  { %11139 = vmatprep.subr.msk.mxu1 %vm439_vm1, %v422_v14  ;;  %v13838_v45 = vld [vmem:[#allocation8 + $0x48] sm:$0xff]  ;;  %v398_v48 = vld [vmem:[#allocation7 + $0x18] sm:$0xff]  ;;  %v13848_v49 = vld [vmem:[#allocation8 + $0x40] sm:$0xff] }
  0xe0   :  { %v413_v50 = vld [vmem:[#allocation7 + $0x90] sm:$0xff]  ;;  %v13850_v51 = vld [vmem:[#allocation8 + $0xb8] sm:$0xff]  ;;  %v13869_v56 = vld [vmem:[#allocation8 + $0xa8] sm:$0xff] }
  0xe1   :  { %12286 = vmatpush3.xpose.msk.msra.mxu0 %vm293_vm0, %v281_v12  ;;  %v397_v52 = vld [vmem:[#allocation7 + $0x10] sm:$0xff]  ;;  %v13858_v53 = vld [vmem:[#allocation8 + $0x38] sm:$0xff]  ;;  %v13875_v57 = vld [vmem:[#allocation8 + $0x28] sm:$0xff] }
  0xe2   :  { %12287 = vmatprep.subr.msk.mxu0 %vm293_vm0, %v280_v15  ;;  %11140 = vmatpush3.xpose.msk.msra.mxu1 %vm439_vm1, %v406_v16  ;;  %v13860_v54 = vld [vmem:[#allocation8 + $0xb0] sm:$0xff]  ;;  %v13877_v58 = vld [vmem:[#allocation8 + $0xa0] sm:$0xff]  ;;  %v13885_v60 = vld [vmem:[#allocation8 + $0x98] sm:$0xff]  ;;  %v17612_v16 = vlaneseq }
  0xe3   :  { %11141 = vmatprep.subr.msk.mxu1 %vm439_vm1, %v421_v17  ;;  %v13867_v55 = vld [vmem:[#allocation8 + $0x30] sm:$0xff]  ;;  %v13883_v59 = vld [vmem:[#allocation8 + $0x20] sm:$0xff]  ;;  %v13891_v61 = vld [vmem:[#allocation8 + $0x18] sm:$0xff] }
  0xe4   :  { %v13893_v62 = vld [vmem:[#allocation8 + $0x90] sm:$0xff]  ;;  %v412_v0 = vld [vmem:[#allocation7 + $0x88] sm:$0xff]  ;;  %v411_v4 = vld [vmem:[#allocation7 + $0x80] sm:$0xff]  ;;  %v14062_v17 = vshrl.u32 %v17612_v16, 7 }
  0xe5   :  { %12288 = vmatpush3.xpose.msk.msra.mxu0 %vm293_vm0, %v280_v15  ;;  %v13899_v63 = vld [vmem:[#allocation8 + $0x10] sm:$0xff]  ;;  %v13903_v1 = vld [vmem:[#allocation8 + $0x88] sm:$0xff]  ;;  %v13913_v5 = vld [vmem:[#allocation8 + $0x80] sm:$0xff] }
  0xe6   :  { %11167 = vmatprep.subr.msk.mxu0 %vm651_vm2, %v13767_v18  ;;  %11142 = vmatpush3.xpose.msk.msra.mxu1 %vm439_vm1, %v405_v20  ;;  %v396_v2 = vld [vmem:[#allocation7 + $0x8] sm:$0xff]  ;;  %v395_v6 = vld [vmem:[#allocation7] sm:$0xff]  ;;  %v10028_v10 = vld [vmem:[#allocation5] ss:$0 sm:$0xff] }
  0xe7   :  { %11143 = vmatprep.subr.msk.mxu1 %vm439_vm1, %v420_v22  ;;  %v13908_v3 = vld [vmem:[#allocation8 + $0x8] sm:$0xff]  ;;  %v13918_v7 = vld [vmem:[#allocation8] sm:$0xff] }
  0xe8   :  { %12290 = vmatmul.mubr.msk.f32.vlgmr.msra.gmra.mxu0 %vm293_vm0, %v279_v19  ;;  %v14065_v19 = vsub.s32 0, %v14062_v17  ;;  %v427_v20 = vld [vmem:[#allocation10] sm:$0x3]  ;;  %v14802_v16 = vld [vmem:[#allocation19 + $0x10] sm:$0xff] }
  0xe9   :  { %11168 = vmatpush3.xpose.msk.msra.mxu0 %vm651_vm2, %v13777_v21  ;;  %11199 = vmatprep.mubr.f32.mxu0 %v17613_v8  ;;  %17897 = vst [vmem:[#allocation65_spill] sm:$0xff] %v14802_v16 }
  0xea   :  { %11169 = vmatprep.subr.msk.mxu0 %vm651_vm2, %v13779_v23  ;;  %11144 = vmatpush3.xpose.msk.msra.mxu1 %vm439_vm1, %v404_v24  ;;  %17869 = vst [vmem:[#allocation37_spill] sm:$0xff] %v14065_v19  ;;  %v432_v22 = vrot.slane %v427_v20, %v14065_v19 }
  0xeb   :  { %11145 = vmatprep.subr.msk.mxu1 %vm439_vm1, %v419_v26 }
  0xed   :  { %11170 = vmatpush3.xpose.msk.msra.mxu0 %vm651_vm2, %v13788_v25 }
  0xee   :  { %11171 = vmatprep.subr.msk.mxu0 %vm651_vm2, %v13790_v27  ;;  %11146 = vmatpush3.xpose.msk.msra.mxu1 %vm439_vm1, %v403_v28 }
  0xef   :  { %11147 = vmatprep.subr.msk.mxu1 %vm439_vm1, %v418_v30 }
  0xf1   :  { %11172 = vmatpush3.xpose.msk.msra.mxu0 %vm651_vm2, %v13798_v29 }
  0xf2   :  { %11173 = vmatprep.subr.msk.mxu0 %vm651_vm2, %v13800_v31  ;;  %11148 = vmatpush3.xpose.msk.msra.mxu1 %vm439_vm1, %v402_v32 }
  0xf3   :  { %11149 = vmatprep.subr.msk.mxu1 %vm439_vm1, %v417_v34 }
  0xf5   :  { %11174 = vmatpush3.xpose.msk.msra.mxu0 %vm651_vm2, %v13808_v33 }
  0xf6   :  { %11175 = vmatprep.subr.msk.mxu0 %vm651_vm2, %v13810_v35  ;;  %11150 = vmatpush3.xpose.msk.msra.mxu1 %vm439_vm1, %v401_v36 }
  0xf7   :  { %11151 = vmatprep.subr.msk.mxu1 %vm439_vm1, %v416_v38 }
  0xf9   :  { %11176 = vmatpush3.xpose.msk.msra.mxu0 %vm651_vm2, %v13818_v37 }
  0xfa   :  { %11177 = vmatprep.subr.msk.mxu0 %vm651_vm2, %v13820_v39  ;;  %11152 = vmatpush3.xpose.msk.msra.mxu1 %vm439_vm1, %v400_v40  ;;  %v14074_v40 = vsub.s32 1, %v14062_v17 }
  0xfb   :  { %11153 = vmatprep.subr.msk.mxu1 %vm439_vm1, %v415_v42 }
  0xfc   :  { %17870 = vst [vmem:[#allocation38_spill] sm:$0xff] %v14074_v40  ;;  %v14077_v42 = vrot.slane %v427_v20, %v14074_v40 }
  0xfd   :  { %11178 = vmatpush3.xpose.msk.msra.mxu0 %vm651_vm2, %v13828_v41 }
  0xfe   :  { %11179 = vmatprep.subr.msk.mxu0 %vm651_vm2, %v13830_v43  ;;  %11154 = vmatpush3.xpose.msk.msra.mxu1 %vm439_vm1, %v399_v44 }
  0xff   :  { %11155 = vmatprep.subr.msk.mxu1 %vm439_vm1, %v414_v46 }
 0x101   :  { %11180 = vmatpush3.xpose.msk.msra.mxu0 %vm651_vm2, %v13838_v45 }
 0x102   :  { %11181 = vmatprep.subr.msk.mxu0 %vm651_vm2, %v13840_v47  ;;  %11156 = vmatpush3.xpose.msk.msra.mxu1 %vm439_vm1, %v398_v48 }
 0x103   :  { %11157 = vmatprep.subr.msk.mxu1 %vm439_vm1, %v413_v50 }
 0x105   :  { %11182 = vmatpush3.xpose.msk.msra.mxu0 %vm651_vm2, %v13848_v49 }
 0x106   :  { %11183 = vmatprep.subr.msk.mxu0 %vm651_vm2, %v13850_v51  ;;  %11158 = vmatpush3.xpose.msk.msra.mxu1 %vm439_vm1, %v397_v52 }
 0x107   :  { %11159 = vmatprep.subr.msk.mxu1 %vm439_vm1, %v412_v0 }
 0x109   :  { %11184 = vmatpush3.xpose.msk.msra.mxu0 %vm651_vm2, %v13858_v53 }
 0x10a   :  { %11185 = vmatprep.subr.msk.mxu0 %vm651_vm2, %v13860_v54  ;;  %11160 = vmatpush3.xpose.msk.msra.mxu1 %vm439_vm1, %v396_v2 }
 0x10b   :  { %11161 = vmatprep.subr.msk.mxu1 %vm439_vm1, %v411_v4 }
 0x10d   :  { %11186 = vmatpush3.xpose.msk.msra.mxu0 %vm651_vm2, %v13867_v55 }
 0x10e   :  { %11187 = vmatprep.subr.msk.mxu0 %vm651_vm2, %v13869_v56  ;;  %11162 = vmatpush3.xpose.msk.msra.mxu1 %vm439_vm1, %v395_v6 }
 0x10f   :  { %11201 = vmatprep.subr.msk.mxu1 %vm651_vm2, %v13767_v18 }
 0x111   :  { %11188 = vmatpush3.xpose.msk.msra.mxu0 %vm651_vm2, %v13875_v57 }
 0x112   :  { %11189 = vmatprep.subr.msk.mxu0 %vm651_vm2, %v13877_v58 }
 0x115   :  { %11190 = vmatpush3.xpose.msk.msra.mxu0 %vm651_vm2, %v13883_v59 }
 0x116   :  { %11191 = vmatprep.subr.msk.mxu0 %vm651_vm2, %v13885_v60 }
 0x119   :  { %11192 = vmatpush3.xpose.msk.msra.mxu0 %vm651_vm2, %v13891_v61 }
 0x11a   :  { %11193 = vmatprep.subr.msk.mxu0 %vm651_vm2, %v13893_v62 }
 0x11d   :  { %11194 = vmatpush3.xpose.msk.msra.mxu0 %vm651_vm2, %v13899_v63 }
 0x11e   :  { %11195 = vmatprep.subr.msk.mxu0 %vm651_vm2, %v13903_v1 }
 0x121   :  { %11196 = vmatpush3.xpose.msk.msra.mxu0 %vm651_vm2, %v13908_v3 }
 0x122   :  { %11197 = vmatprep.subr.msk.mxu0 %vm651_vm2, %v13913_v5 }
 0x125   :  { %11198 = vmatpush3.xpose.msk.msra.mxu0 %vm651_vm2, %v13918_v7 }
 0x126   :  { %11235 = vmatprep.subr.msk.mxu0 %vm651_vm2, %v13767_v18 }
 0x128   :  { %11200 = vmatmul.mubr.f32.vlgmr.msra.gmra.mxu0 %v17613_v8 }
 0x129   :  { %11236 = vmatpush3.xpose.msk.msra.mxu0 %vm651_vm2, %v13777_v21 }
 0x12a   :  { %11237 = vmatprep.subr.msk.mxu0 %vm651_vm2, %v13779_v23 }
 0x12d   :  { %11238 = vmatpush3.xpose.msk.msra.mxu0 %vm651_vm2, %v13788_v25 }
 0x12e   :  { %11239 = vmatprep.subr.msk.mxu0 %vm651_vm2, %v13790_v27 }
 0x131   :  { %11240 = vmatpush3.xpose.msk.msra.mxu0 %vm651_vm2, %v13798_v29 }
 0x132   :  { %11241 = vmatprep.subr.msk.mxu0 %vm651_vm2, %v13800_v31 }
 0x135   :  { %11242 = vmatpush3.xpose.msk.msra.mxu0 %vm651_vm2, %v13808_v33 }
 0x136   :  { %11243 = vmatprep.subr.msk.mxu0 %vm651_vm2, %v13810_v35 }
 0x139   :  { %11244 = vmatpush3.xpose.msk.msra.mxu0 %vm651_vm2, %v13818_v37 }
 0x13a   :  { %11245 = vmatprep.subr.msk.mxu0 %vm651_vm2, %v13820_v39 }
 0x13d   :  { %11246 = vmatpush3.xpose.msk.msra.mxu0 %vm651_vm2, %v13828_v41 }
 0x13e   :  { %11247 = vmatprep.subr.msk.mxu0 %vm651_vm2, %v13830_v43 }
 0x141   :  { %11248 = vmatpush3.xpose.msk.msra.mxu0 %vm651_vm2, %v13838_v45 }
 0x142   :  { %11249 = vmatprep.subr.msk.mxu0 %vm651_vm2, %v13840_v47 }
 0x145   :  { %11250 = vmatpush3.xpose.msk.msra.mxu0 %vm651_vm2, %v13848_v49 }
 0x146   :  { %11251 = vmatprep.subr.msk.mxu0 %vm651_vm2, %v13850_v51 }
 0x149   :  { %11252 = vmatpush3.xpose.msk.msra.mxu0 %vm651_vm2, %v13858_v53 }
 0x14a   :  { %11253 = vmatprep.subr.msk.mxu0 %vm651_vm2, %v13860_v54 }
 0x14d   :  { %11254 = vmatpush3.xpose.msk.msra.mxu0 %vm651_vm2, %v13867_v55 }
 0x14e   :  { %11255 = vmatprep.subr.msk.mxu0 %vm651_vm2, %v13869_v56 }
 0x151   :  { %11256 = vmatpush3.xpose.msk.msra.mxu0 %vm651_vm2, %v13875_v57 }
 0x152   :  { %11257 = vmatprep.subr.msk.mxu0 %vm651_vm2, %v13877_v58 }
 0x155   :  { %11258 = vmatpush3.xpose.msk.msra.mxu0 %vm651_vm2, %v13883_v59 }
 0x156   :  { %11259 = vmatprep.subr.msk.mxu0 %vm651_vm2, %v13885_v60 }
 0x159   :  { %11260 = vmatpush3.xpose.msk.msra.mxu0 %vm651_vm2, %v13891_v61 }
 0x15a   :  { %11261 = vmatprep.subr.msk.mxu0 %vm651_vm2, %v13893_v62 }
 0x15d   :  { %11262 = vmatpush3.xpose.msk.msra.mxu0 %vm651_vm2, %v13899_v63 }
 0x15e   :  { %11263 = vmatprep.subr.msk.mxu0 %vm651_vm2, %v13903_v1 }
 0x161   :  { %11264 = vmatpush3.xpose.msk.msra.mxu0 %vm651_vm2, %v13908_v3 }
 0x162   :  { %11265 = vmatprep.subr.msk.mxu0 %vm651_vm2, %v13913_v5 }
 0x165   :  { %11266 = vmatpush3.xpose.msk.msra.mxu0 %vm651_vm2, %v13918_v7 }
 0x166   :  { %11303 = vmatprep.subr.msk.mxu0 %vm651_vm2, %v13767_v18 }
 0x1a8   :  { %v12291_v9 = vpop.f32.mrf.mxu0 }
 0x1a9   :  { %v390_v12 = vadd.f32 %v12291_v9, %v10028_v10 }
 0x1aa   :  { %v384_v11 = vpop.f32.mrf.mxu0 }
 0x1ab   :  { %v385_v13 = vadd.f32 %v10028_v10, %v384_v11  ;;  %v394_v15 = vmax.f32 %v390_v12, 0.0 }
 0x1ad   :  { %v393_v14 = vmax.f32 %v385_v13, 0.0 }
 0x1af   :  { %11163 = vmatprep.mubr.msk.f32.mxu1 %vm439_vm1, %v393_v14 }
 0x1b0   :  { %11164 = vmatmul.mubr.msk.f32.vlgmr.msra.gmra.mxu1 %vm439_vm1, %v393_v14 }
 0x1b1   :  { %11165 = vmatprep.mubr.msk.f32.mxu1 %vm439_vm1, %v394_v15  ;;  %11202 = vmatpush3.xpose.msk.msra.mxu1 %vm651_vm2, %v13777_v21 }
 0x1b2   :  { %11203 = vmatprep.subr.msk.mxu1 %vm651_vm2, %v13779_v23 }
 0x1b4   :  { %11166 = vmatmul.mubr.msk.f32.gmra.mxu1 %vm439_vm1, %v394_v15 }
 0x1b5   :  { %11204 = vmatpush3.xpose.msk.msra.mxu1 %vm651_vm2, %v13788_v25 }
 0x1b6   :  { %11205 = vmatprep.subr.msk.mxu1 %vm651_vm2, %v13790_v27 }
 0x1b9   :  { %11206 = vmatpush3.xpose.msk.msra.mxu1 %vm651_vm2, %v13798_v29 }
 0x1ba   :  { %11207 = vmatprep.subr.msk.mxu1 %vm651_vm2, %v13800_v31 }
 0x1bd   :  { %11208 = vmatpush3.xpose.msk.msra.mxu1 %vm651_vm2, %v13808_v33 }
 0x1be   :  { %11209 = vmatprep.subr.msk.mxu1 %vm651_vm2, %v13810_v35 }
 0x1c1   :  { %11210 = vmatpush3.xpose.msk.msra.mxu1 %vm651_vm2, %v13818_v37 }
 0x1c2   :  { %11211 = vmatprep.subr.msk.mxu1 %vm651_vm2, %v13820_v39 }
 0x1c5   :  { %11212 = vmatpush3.xpose.msk.msra.mxu1 %vm651_vm2, %v13828_v41 }
 0x1c6   :  { %11213 = vmatprep.subr.msk.mxu1 %vm651_vm2, %v13830_v43 }
 0x1c9   :  { %11214 = vmatpush3.xpose.msk.msra.mxu1 %vm651_vm2, %v13838_v45 }
 0x1ca   :  { %11215 = vmatprep.subr.msk.mxu1 %vm651_vm2, %v13840_v47 }
 0x1cd   :  { %11216 = vmatpush3.xpose.msk.msra.mxu1 %vm651_vm2, %v13848_v49 }
 0x1ce   :  { %11217 = vmatprep.subr.msk.mxu1 %vm651_vm2, %v13850_v51 }
 0x1d1   :  { %11218 = vmatpush3.xpose.msk.msra.mxu1 %vm651_vm2, %v13858_v53 }
 0x1d2   :  { %11219 = vmatprep.subr.msk.mxu1 %vm651_vm2, %v13860_v54 }
 0x1d5   :  { %11220 = vmatpush3.xpose.msk.msra.mxu1 %vm651_vm2, %v13867_v55 }
 0x1d6   :  { %11221 = vmatprep.subr.msk.mxu1 %vm651_vm2, %v13869_v56 }
 0x1d9   :  { %11222 = vmatpush3.xpose.msk.msra.mxu1 %vm651_vm2, %v13875_v57 }
 0x1da   :  { %11223 = vmatprep.subr.msk.mxu1 %vm651_vm2, %v13877_v58 }
 0x1dd   :  { %11224 = vmatpush3.xpose.msk.msra.mxu1 %vm651_vm2, %v13883_v59 }
 0x1de   :  { %11225 = vmatprep.subr.msk.mxu1 %vm651_vm2, %v13885_v60 }
 0x1e1   :  { %11226 = vmatpush3.xpose.msk.msra.mxu1 %vm651_vm2, %v13891_v61 }
 0x1e2   :  { %11227 = vmatprep.subr.msk.mxu1 %vm651_vm2, %v13893_v62 }
 0x1e5   :  { %11228 = vmatpush3.xpose.msk.msra.mxu1 %vm651_vm2, %v13899_v63 }
 0x1e6   :  { %11229 = vmatprep.subr.msk.mxu1 %vm651_vm2, %v13903_v1 }
 0x1e8   :  { %v817_v28 = vpop.f32.mrf.mxu0 }
 0x1e9   :  { %11230 = vmatpush3.xpose.msk.msra.mxu1 %vm651_vm2, %v13908_v3 }
 0x1ea   :  { %11231 = vmatprep.subr.msk.mxu1 %vm651_vm2, %v13913_v5  ;;  %v819_v46 = vpop.f32.mrf.mxu0 }
 0x1ed   :  { %11232 = vmatpush3.xpose.msk.msra.mxu1 %vm651_vm2, %v13918_v7 }
 0x1ee   :  { %11269 = vmatprep.subr.msk.mxu1 %vm651_vm2, %v13767_v18 }
 0x270   :  { %v608_v24 = vpop.f32.mrf.mxu1 }
 0x271   :  { %v14068_v26 = vadd.f32 %v608_v24, %v432_v22 }
 0x272   :  { %v610_v30 = vpop.f32.mrf.mxu1 }
 0x273   :  { %v822_v32 = vadd.f32 %v817_v28, %v14068_v26  ;;  %v14080_v44 = vadd.f32 %v610_v30, %v14077_v42 }
 0x274   :  { %v614_v34 = vpop.f32.mrf.mxu1 }
 0x275   :  { %v824_v36 = vsub.f32 0.0, %v822_v32  ;;  %v14071_v18 = vadd.f32 %v614_v34, %v432_v22  ;;  %v823_v48 = vadd.f32 %v819_v46, %v14080_v44 }
 0x276   :  { %v14150_v28 = vpop.f32.mrf.mxu1 }
 0x277   :  { %v825_v38 = vmul.f32 1.442695, %v824_v36  ;;  %v831_v6 = vsub.f32 0.0, %v823_v48 }
 0x279   :  { %12941 = vpow2.f32 %v825_v38  ;;  %v832_v9 = vmul.f32 1.442695, %v831_v6 }
 0x27a   :  { %12943 = vtanh.f32 %v823_v48 }
 0x286   :  { %v12942_v50 = vpop.eup %12941 }
 0x287   :  { %v827_v52 = vadd.f32 1.0, %v12942_v50  ;;  %v12944_v0 = vpop.eup %12943 }
 0x289   :  { %12945 = vrcp.f32 %v827_v52 }
 0x28a   :  { %12947 = vpow2.f32 %v832_v9 }
 0x296   :  { %v12946_v2 = vpop.eup %12945 }
 0x297   :  { %v838_v4 = vmul.f32 %v12946_v2, %v12944_v0  ;;  %v12948_v10 = vpop.eup %12947  ;;  %v837_v12 = vmul.f32 0.0, %v12946_v2 }
 0x298   :  { %v834_v11 = vadd.f32 1.0, %v12948_v10 }
 0x299   :  { %840 = vrot.lane.b32.xlu0 %v838_v4, %s13532_s28 }
 0x29a   :  { %12949 = vrcp.f32 %v834_v11 }
 0x2a7   :  { %v12950_v15 = vpop.eup %12949 }
 0x30b   :  { %v841_v13 = vpop.permute.xlu0 %840 }
 0x30c   :  { %v843_v14 = vadd.f32 %v841_v13, %v837_v12 }
 0x30e   :  { %12951 = vtanh.f32 %v843_v14  ;;  %v1075_v4 = vrot.slane %v843_v14, 6 }
 0x31b   :  { %v12952_v20 = vpop.eup %12951 }
 0x31c   :  { %v845_v22 = vmul.f32 %v12952_v20, %v12950_v15 }
 0x31e   :  { %847 = vrot.lane.b32.xlu0 %v845_v22, %s13532_s28 }
 0x390   :  { %v848_v24 = vpop.permute.xlu0 %847 }
 0x391   :  { %851 = vst.msk [vmem:[#allocation2] sm:$0x3] %vm850_vm3, %v848_v24  ;;  %11233 = vmatprep.mubr.msk.f32.mxu1 %vm651_vm2, %v848_v24 }
 0x392   :  { %11234 = vmatmul.mubr.msk.f32.vlgmr.msra.gmra.mxu1 %vm651_vm2, %v848_v24 }
 0x393   :  { %11270 = vmatpush3.xpose.msk.msra.mxu1 %vm651_vm2, %v13777_v21 }
 0x394   :  { %11271 = vmatprep.subr.msk.mxu1 %vm651_vm2, %v13779_v23 }
 0x397   :  { %11272 = vmatpush3.xpose.msk.msra.mxu1 %vm651_vm2, %v13788_v25 }
 0x398   :  { %11273 = vmatprep.subr.msk.mxu1 %vm651_vm2, %v13790_v27 }
 0x39b   :  { %11274 = vmatpush3.xpose.msk.msra.mxu1 %vm651_vm2, %v13798_v29 }
 0x39c   :  { %11275 = vmatprep.subr.msk.mxu1 %vm651_vm2, %v13800_v31 }
 0x39f   :  { %11276 = vmatpush3.xpose.msk.msra.mxu1 %vm651_vm2, %v13808_v33 }
 0x3a0   :  { %11277 = vmatprep.subr.msk.mxu1 %vm651_vm2, %v13810_v35 }
 0x3a3   :  { %11278 = vmatpush3.xpose.msk.msra.mxu1 %vm651_vm2, %v13818_v37 }
 0x3a4   :  { %11279 = vmatprep.subr.msk.mxu1 %vm651_vm2, %v13820_v39 }
 0x3a7   :  { %11280 = vmatpush3.xpose.msk.msra.mxu1 %vm651_vm2, %v13828_v41 }
 0x3a8   :  { %11281 = vmatprep.subr.msk.mxu1 %vm651_vm2, %v13830_v43 }
 0x3ab   :  { %11282 = vmatpush3.xpose.msk.msra.mxu1 %vm651_vm2, %v13838_v45 }
 0x3ac   :  { %11283 = vmatprep.subr.msk.mxu1 %vm651_vm2, %v13840_v47 }
 0x3af   :  { %11284 = vmatpush3.xpose.msk.msra.mxu1 %vm651_vm2, %v13848_v49 }
 0x3b0   :  { %11285 = vmatprep.subr.msk.mxu1 %vm651_vm2, %v13850_v51 }
 0x3b3   :  { %11286 = vmatpush3.xpose.msk.msra.mxu1 %vm651_vm2, %v13858_v53 }
 0x3b4   :  { %11287 = vmatprep.subr.msk.mxu1 %vm651_vm2, %v13860_v54 }
 0x3b7   :  { %11288 = vmatpush3.xpose.msk.msra.mxu1 %vm651_vm2, %v13867_v55 }
 0x3b8   :  { %11289 = vmatprep.subr.msk.mxu1 %vm651_vm2, %v13869_v56 }
 0x3bb   :  { %11290 = vmatpush3.xpose.msk.msra.mxu1 %vm651_vm2, %v13875_v57 }
 0x3bc   :  { %11291 = vmatprep.subr.msk.mxu1 %vm651_vm2, %v13877_v58 }
 0x3bf   :  { %11292 = vmatpush3.xpose.msk.msra.mxu1 %vm651_vm2, %v13883_v59 }
 0x3c0   :  { %11293 = vmatprep.subr.msk.mxu1 %vm651_vm2, %v13885_v60 }
 0x3c3   :  { %11294 = vmatpush3.xpose.msk.msra.mxu1 %vm651_vm2, %v13891_v61 }
 0x3c4   :  { %11295 = vmatprep.subr.msk.mxu1 %vm651_vm2, %v13893_v62 }
 0x3c7   :  { %11296 = vmatpush3.xpose.msk.msra.mxu1 %vm651_vm2, %v13899_v63 }
 0x3c8   :  { %11297 = vmatprep.subr.msk.mxu1 %vm651_vm2, %v13903_v1 }
 0x3cb   :  { %11298 = vmatpush3.xpose.msk.msra.mxu1 %vm651_vm2, %v13908_v3 }
 0x3cc   :  { %11299 = vmatprep.subr.msk.mxu1 %vm651_vm2, %v13913_v5 }
 0x3cf   :  { %11300 = vmatpush3.xpose.msk.msra.mxu1 %vm651_vm2, %v13918_v7 }
 0x452   :  { %v1048_v30 = vpop.f32.mrf.mxu1 }
 0x453   :  { %v1055_v32 = vrot.slane %v1048_v30, 6 }
 0x454   :  { %v1050_v46 = vpop.f32.mrf.mxu1 }
 0x455   :  { %v1059_v34 = vadd.f32 %v1055_v32, %v14068_v26  ;;  %v1056_v48 = vrot.slane %v1050_v46, 6 }
 0x457   :  { %v1061_v36 = vsub.f32 0.0, %v1059_v34  ;;  %v1060_v50 = vadd.f32 %v1056_v48, %v14080_v44 }
 0x459   :  { %v1062_v38 = vmul.f32 1.442695, %v1061_v36  ;;  %v1068_v11 = vsub.f32 0.0, %v1060_v50 }
 0x45b   :  { %12953 = vpow2.f32 %v1062_v38  ;;  %v1069_v12 = vmul.f32 1.442695, %v1068_v11 }
 0x45c   :  { %12955 = vtanh.f32 %v1060_v50 }
 0x468   :  { %v12954_v52 = vpop.eup %12953 }
 0x469   :  { %v1064_v0 = vadd.f32 1.0, %v12954_v52  ;;  %v12956_v2 = vpop.eup %12955 }
 0x46b   :  { %12957 = vrcp.f32 %v1064_v0 }
 0x46c   :  { %12959 = vpow2.f32 %v1069_v12 }
 0x478   :  { %v12958_v6 = vpop.eup %12957 }
 0x479   :  { %v1078_v9 = vmul.f32 %v12958_v6, %v12956_v2  ;;  %v1077_v10 = vmul.f32 %v12958_v6, %v1075_v4  ;;  %v12960_v13 = vpop.eup %12959 }
 0x47a   :  { %v1071_v15 = vadd.f32 1.0, %v12960_v13 }
 0x47b   :  { %1080 = vrot.lane.b32.xlu1 %v1078_v9, %s13532_s28 }
 0x47c   :  { %12961 = vrcp.f32 %v1071_v15 }
 0x489   :  { %v12962_v24 = vpop.eup %12961 }
 0x4ed   :  { %v1081_v20 = vpop.permute.xlu1 %1080 }
 0x4ee   :  { %v1083_v22 = vadd.f32 %v1081_v20, %v1077_v10 }
 0x4f0   :  { %12963 = vtanh.f32 %v1083_v22 }
 0x4fd   :  { %v12964_v30 = vpop.eup %12963 }
 0x4fe   :  { %v14155_v32 = vmul.f32 %v12964_v30, %v12962_v24 }
 0x500   :  { %v1124_v14 = vrot.slane %v14155_v32, 2 }
 0x502   :  { %1125 = vrot.lane.b32.xlu1 %v1124_v14, %s13532_s28 }
 0x574   :  { %v1126_v34 = vpop.permute.xlu1 %1125 }
 0x575   :  { %11267 = vmatprep.mubr.msk.f32.mxu0 %vm651_vm2, %v1126_v34 }
 0x576   :  { %11268 = vmatmul.mubr.msk.f32.vlgmr.msra.gmra.mxu0 %vm651_vm2, %v1126_v34 }
 0x577   :  { %11304 = vmatpush3.xpose.msk.msra.mxu0 %vm651_vm2, %v13777_v21 }
 0x578   :  { %11305 = vmatprep.subr.msk.mxu0 %vm651_vm2, %v13779_v23 }
 0x57b   :  { %11306 = vmatpush3.xpose.msk.msra.mxu0 %vm651_vm2, %v13788_v25 }
 0x57c   :  { %11307 = vmatprep.subr.msk.mxu0 %vm651_vm2, %v13790_v27 }
 0x57f   :  { %11308 = vmatpush3.xpose.msk.msra.mxu0 %vm651_vm2, %v13798_v29 }
 0x580   :  { %11309 = vmatprep.subr.msk.mxu0 %vm651_vm2, %v13800_v31 }
 0x583   :  { %11310 = vmatpush3.xpose.msk.msra.mxu0 %vm651_vm2, %v13808_v33 }
 0x584   :  { %11311 = vmatprep.subr.msk.mxu0 %vm651_vm2, %v13810_v35 }
 0x587   :  { %11312 = vmatpush3.xpose.msk.msra.mxu0 %vm651_vm2, %v13818_v37 }
 0x588   :  { %11313 = vmatprep.subr.msk.mxu0 %vm651_vm2, %v13820_v39 }
 0x58b   :  { %11314 = vmatpush3.xpose.msk.msra.mxu0 %vm651_vm2, %v13828_v41 }
 0x58c   :  { %11315 = vmatprep.subr.msk.mxu0 %vm651_vm2, %v13830_v43  ;;  %v1318_v43 = vrot.slane %v1083_v22, 6 }
 0x58f   :  { %11316 = vmatpush3.xpose.msk.msra.mxu0 %vm651_vm2, %v13838_v45 }
 0x590   :  { %11317 = vmatprep.subr.msk.mxu0 %vm651_vm2, %v13840_v47 }
 0x593   :  { %11318 = vmatpush3.xpose.msk.msra.mxu0 %vm651_vm2, %v13848_v49 }
 0x594   :  { %11319 = vmatprep.subr.msk.mxu0 %vm651_vm2, %v13850_v51 }
 0x597   :  { %11320 = vmatpush3.xpose.msk.msra.mxu0 %vm651_vm2, %v13858_v53 }
 0x598   :  { %11321 = vmatprep.subr.msk.mxu0 %vm651_vm2, %v13860_v54 }
 0x59b   :  { %11322 = vmatpush3.xpose.msk.msra.mxu0 %vm651_vm2, %v13867_v55 }
 0x59c   :  { %11323 = vmatprep.subr.msk.mxu0 %vm651_vm2, %v13869_v56 }
 0x59f   :  { %11324 = vmatpush3.xpose.msk.msra.mxu0 %vm651_vm2, %v13875_v57 }
 0x5a0   :  { %11325 = vmatprep.subr.msk.mxu0 %vm651_vm2, %v13877_v58 }
 0x5a3   :  { %11326 = vmatpush3.xpose.msk.msra.mxu0 %vm651_vm2, %v13883_v59 }
 0x5a4   :  { %11327 = vmatprep.subr.msk.mxu0 %vm651_vm2, %v13885_v60 }
 0x5a7   :  { %11328 = vmatpush3.xpose.msk.msra.mxu0 %vm651_vm2, %v13891_v61 }
 0x5a8   :  { %11329 = vmatprep.subr.msk.mxu0 %vm651_vm2, %v13893_v62 }
 0x5ab   :  { %11330 = vmatpush3.xpose.msk.msra.mxu0 %vm651_vm2, %v13899_v63 }
 0x5ac   :  { %11331 = vmatprep.subr.msk.mxu0 %vm651_vm2, %v13903_v1 }
 0x5af   :  { %11332 = vmatpush3.xpose.msk.msra.mxu0 %vm651_vm2, %v13908_v3 }
 0x5b0   :  { %11333 = vmatprep.subr.msk.mxu0 %vm651_vm2, %v13913_v5 }
 0x5b3   :  { %11334 = vmatpush3.xpose.msk.msra.mxu0 %vm651_vm2, %v13918_v7 }
 0x636   :  { %v1291_v21 = vpop.f32.mrf.mxu0 }
 0x637   :  { %v1298_v23 = vrot.slane %v1291_v21, 4 }
 0x638   :  { %v1293_v31 = vpop.f32.mrf.mxu0 }
 0x639   :  { %v1302_v25 = vadd.f32 %v1298_v23, %v14068_v26  ;;  %v1299_v33 = vrot.slane %v1293_v31, 4 }
 0x63b   :  { %v1304_v27 = vsub.f32 0.0, %v1302_v25  ;;  %v1303_v35 = vadd.f32 %v1299_v33, %v14080_v44 }
 0x63d   :  { %v1305_v29 = vmul.f32 1.442695, %v1304_v27  ;;  %v1311_v51 = vsub.f32 0.0, %v1303_v35 }
 0x63f   :  { %12965 = vpow2.f32 %v1305_v29  ;;  %v1312_v53 = vmul.f32 1.442695, %v1311_v51 }
 0x640   :  { %12967 = vtanh.f32 %v1303_v35 }
 0x64c   :  { %v12966_v37 = vpop.eup %12965 }
 0x64d   :  { %v1307_v39 = vadd.f32 1.0, %v12966_v37  ;;  %v12968_v41 = vpop.eup %12967 }
 0x64f   :  { %12969 = vrcp.f32 %v1307_v39 }
 0x650   :  { %12971 = vpow2.f32 %v1312_v53 }
 0x65c   :  { %v12970_v45 = vpop.eup %12969 }
 0x65d   :  { %v1321_v47 = vmul.f32 %v12970_v45, %v12968_v41  ;;  %v1320_v49 = vmul.f32 %v12970_v45, %v1318_v43  ;;  %v12972_v54 = vpop.eup %12971  ;;  %v14244_v45 = vadd.f32 %v14150_v28, %v14077_v42  ;;  %v14255_v42 = vld [vmem:[#allocation8 + $0x78] sm:$0xff]  ;;  %v14257_v28 = vld [vmem:[#allocation8 + $0xf0] sm:$0xff] }
 0x65e   :  { %v1314_v55 = vadd.f32 1.0, %v12972_v54 }
 0x65f   :  { %1323 = vrot.lane.b32.xlu0 %v1321_v47, %s13532_s28 }
 0x660   :  { %12973 = vrcp.f32 %v1314_v55 }
 0x66d   :  { %v12974_v36 = vpop.eup %12973 }
 0x6d1   :  { %v1324_v56 = vpop.permute.xlu0 %1323 }
 0x6d2   :  { %v1326_v57 = vadd.f32 %v1324_v56, %v1320_v49 }
 0x6d4   :  { %12975 = vtanh.f32 %v1326_v57  ;;  %v1561_v20 = vrot.slane %v1326_v57, 6 }
 0x6e1   :  { %v12976_v38 = vpop.eup %12975 }
 0x6e2   :  { %v14226_v46 = vmul.f32 %v12976_v38, %v12974_v36  ;;  %v14253_v36 = vld [vmem:[#allocation8 + $0xf8] sm:$0xff]  ;;  %v14269_v38 = vld [vmem:[#allocation8 + $0x70] sm:$0xff] }
 0x6e3   :  { %11337 = vmatprep.subr.msk.mxu1 %vm651_vm2, %v14253_v36  ;;  %11371 = vmatprep.subr.msk.mxu0 %vm651_vm2, %v14253_v36 }
 0x6e4   :  { %v1367_v48 = vrot.slane %v14226_v46, 4 }
 0x6e6   :  { %1368 = vrot.lane.b32.xlu1 %v1367_v48, %s13532_s28  ;;  %v14273_v48 = vld [vmem:[#allocation8 + $0xe8] sm:$0xff] }
 0x758   :  { %v1369_v50 = vpop.permute.xlu1 %1368 }
 0x759   :  { %11301 = vmatprep.mubr.msk.f32.mxu1 %vm651_vm2, %v1369_v50 }
 0x75a   :  { %11302 = vmatmul.mubr.msk.f32.vlgmr.msra.gmra.mxu1 %vm651_vm2, %v1369_v50  ;;  %v14281_v50 = vld [vmem:[#allocation8 + $0x68] sm:$0xff] }
 0x75b   :  { %11338 = vmatpush3.xpose.msk.msra.mxu1 %vm651_vm2, %v14255_v42 }
 0x75c   :  { %11339 = vmatprep.subr.msk.mxu1 %vm651_vm2, %v14257_v28 }
 0x75f   :  { %11340 = vmatpush3.xpose.msk.msra.mxu1 %vm651_vm2, %v14269_v38 }
 0x760   :  { %11341 = vmatprep.subr.msk.mxu1 %vm651_vm2, %v14273_v48 }
 0x763   :  { %11342 = vmatpush3.xpose.msk.msra.mxu1 %vm651_vm2, %v14281_v50 }
 0x81a   :  { %v1534_v52 = vpop.f32.mrf.mxu1 }
 0x81b   :  { %v1541_v0 = vrot.slane %v1534_v52, 2  ;;  %v14285_v52 = vld [vmem:[#allocation8 + $0xe0] sm:$0xff] }
 0x81c   :  { %v1536_v9 = vpop.f32.mrf.mxu1  ;;  %11343 = vmatprep.subr.msk.mxu1 %vm651_vm2, %v14285_v52 }
 0x81d   :  { %v1545_v2 = vadd.f32 %v1541_v0, %v14068_v26  ;;  %v1542_v10 = vrot.slane %v1536_v9, 2  ;;  %v14293_v0 = vld [vmem:[#allocation8 + $0x60] sm:$0xff]  ;;  %v14317_v9 = vld [vmem:[#allocation8 + $0x50] sm:$0xff] }
 0x81e   :  { %11344 = vmatpush3.xpose.msk.msra.mxu1 %vm651_vm2, %v14293_v0 }
 0x81f   :  { %v1547_v4 = vsub.f32 0.0, %v1545_v2  ;;  %v1546_v11 = vadd.f32 %v1542_v10, %v14080_v44  ;;  %v14297_v2 = vld [vmem:[#allocation8 + $0xd8] sm:$0xff]  ;;  %v14321_v10 = vld [vmem:[#allocation8 + $0xc8] sm:$0xff] }
 0x820   :  { %11345 = vmatprep.subr.msk.mxu1 %vm651_vm2, %v14297_v2 }
 0x821   :  { %v1548_v6 = vmul.f32 1.442695, %v1547_v4  ;;  %v1554_v14 = vsub.f32 0.0, %v1546_v11  ;;  %v14305_v4 = vld [vmem:[#allocation8 + $0x58] sm:$0xff] }
 0x822   :  { %11346 = vmatpush3.xpose.msk.msra.mxu1 %vm651_vm2, %v14305_v4 }
 0x823   :  { %12977 = vpow2.f32 %v1548_v6  ;;  %v1555_v26 = vmul.f32 1.442695, %v1554_v14  ;;  %v14309_v6 = vld [vmem:[#allocation8 + $0xd0] sm:$0xff]  ;;  %v1819_v14 = vld [vmem:[#allocation8 + $0x28] sm:$0xff] }
 0x824   :  { %12979 = vtanh.f32 %v1546_v11  ;;  %11347 = vmatprep.subr.msk.mxu1 %vm651_vm2, %v14309_v6  ;;  %v14329_v11 = vld [vmem:[#allocation8 + $0x48] sm:$0xff] }
 0x826   :  { %11348 = vmatpush3.xpose.msk.msra.mxu1 %vm651_vm2, %v14317_v9 }
 0x827   :  { %11349 = vmatprep.subr.msk.mxu1 %vm651_vm2, %v14321_v10 }
 0x82a   :  { %11350 = vmatpush3.xpose.msk.msra.mxu1 %vm651_vm2, %v14329_v11 }
 0x830   :  { %v12978_v12 = vpop.eup %12977 }
 0x831   :  { %v1550_v13 = vadd.f32 1.0, %v12978_v12  ;;  %v12980_v15 = vpop.eup %12979  ;;  %v14333_v12 = vld [vmem:[#allocation8 + $0xc0] sm:$0xff] }
 0x832   :  { %11351 = vmatprep.subr.msk.mxu1 %vm651_vm2, %v14333_v12 }
 0x833   :  { %12981 = vrcp.f32 %v1550_v13  ;;  %v14341_v13 = vld [vmem:[#allocation8 + $0x40] sm:$0xff] }
 0x834   :  { %12983 = vpow2.f32 %v1555_v26  ;;  %11352 = vmatpush3.xpose.msk.msra.mxu1 %vm651_vm2, %v14341_v13 }
 0x840   :  { %v12982_v22 = vpop.eup %12981 }
 0x841   :  { %v1564_v24 = vmul.f32 %v12982_v22, %v12980_v15  ;;  %v1563_v30 = vmul.f32 %v12982_v22, %v1561_v20  ;;  %v12984_v34 = vpop.eup %12983  ;;  %v14345_v15 = vld [vmem:[#allocation8 + $0xb8] sm:$0xff]  ;;  %v1836_v22 = vld [vmem:[#allocation8 + $0xb0] sm:$0xff] }
 0x842   :  { %v1557_v21 = vadd.f32 1.0, %v12984_v34  ;;  %11353 = vmatprep.subr.msk.mxu1 %vm651_vm2, %v14345_v15  ;;  %v1821_v20 = vld [vmem:[#allocation8 + $0x38] sm:$0xff] }
 0x843   :  { %1566 = vrot.lane.b32.xlu0 %v1564_v24, %s13532_s28  ;;  %11354 = vmatpush3.xpose.msk.msra.mxu1 %vm651_vm2, %v1821_v20  ;;  %v1820_v24 = vld [vmem:[#allocation8 + $0x30] sm:$0xff] }
 0x844   :  { %12985 = vrcp.f32 %v1557_v21  ;;  %11355 = vmatprep.subr.msk.mxu1 %vm651_vm2, %v1836_v22 }
 0x847   :  { %11356 = vmatpush3.xpose.msk.msra.mxu1 %vm651_vm2, %v1820_v24 }
 0x851   :  { %v12986_v44 = vpop.eup %12985 }
 0x8b5   :  { %v1567_v23 = vpop.permute.xlu0 %1566 }
 0x8b6   :  { %v1569_v25 = vadd.f32 %v1567_v23, %v1563_v30  ;;  %v1835_v30 = vld [vmem:[#allocation8 + $0xa8] sm:$0xff] }
 0x8b7   :  { %11357 = vmatprep.subr.msk.mxu1 %vm651_vm2, %v1835_v30 }
 0x8b8   :  { %12987 = vtanh.f32 %v1569_v25  ;;  %v1798_v54 = vrot.slane %v1569_v25, 6  ;;  %11358 = vmatpush3.xpose.msk.msra.mxu1 %vm651_vm2, %v1819_v14 }
 0x8b9   :  { %11359 = vmatprep.subr.msk.mxu1 %vm651_vm2, %v13877_v58 }
 0x8bc   :  { %11360 = vmatpush3.xpose.msk.msra.mxu1 %vm651_vm2, %v13883_v59 }
 0x8bd   :  { %11361 = vmatprep.subr.msk.mxu1 %vm651_vm2, %v13885_v60 }
 0x8c0   :  { %11362 = vmatpush3.xpose.msk.msra.mxu1 %vm651_vm2, %v13891_v61 }
 0x8c1   :  { %11363 = vmatprep.subr.msk.mxu1 %vm651_vm2, %v13893_v62 }
 0x8c4   :  { %11364 = vmatpush3.xpose.msk.msra.mxu1 %vm651_vm2, %v13899_v63 }
 0x8c5   :  { %v12988_v27 = vpop.eup %12987  ;;  %11365 = vmatprep.subr.msk.mxu1 %vm651_vm2, %v13903_v1 }
 0x8c6   :  { %v14235_v29 = vmul.f32 %v12988_v27, %v12986_v44 }
 0x8c8   :  { %v1610_v31 = vrot.slane %v14235_v29, 6  ;;  %11366 = vmatpush3.xpose.msk.msra.mxu1 %vm651_vm2, %v13908_v3 }
 0x8c9   :  { %11367 = vmatprep.subr.msk.mxu1 %vm651_vm2, %v13913_v5 }
 0x8ca   :  { %1611 = vrot.lane.b32.xlu1 %v1610_v31, %s13532_s28 }
 0x8cc   :  { %11368 = vmatpush3.xpose.msk.msra.mxu1 %vm651_vm2, %v13918_v7 }
 0x8cd   :  { %11405 = vmatprep.subr.msk.mxu1 %vm651_vm2, %v14253_v36  ;;  %v2054_v36 = vld [vmem:[#allocation8 + $0x8] sm:$0xff] }
 0x93c   :  { %v1612_v33 = vpop.permute.xlu1 %1611 }
 0x93d   :  { %11335 = vmatprep.mubr.msk.f32.mxu0 %vm651_vm2, %v1612_v33 }
 0x93e   :  { %11336 = vmatmul.mubr.msk.f32.vlgmr.msra.gmra.mxu0 %vm651_vm2, %v1612_v33 }
 0x93f   :  { %11372 = vmatpush3.xpose.msk.msra.mxu0 %vm651_vm2, %v14255_v42 }
 0x940   :  { %11373 = vmatprep.subr.msk.mxu0 %vm651_vm2, %v14257_v28 }
 0x943   :  { %11374 = vmatpush3.xpose.msk.msra.mxu0 %vm651_vm2, %v14269_v38 }
 0x944   :  { %11375 = vmatprep.subr.msk.mxu0 %vm651_vm2, %v14273_v48 }
 0x947   :  { %11376 = vmatpush3.xpose.msk.msra.mxu0 %vm651_vm2, %v14281_v50 }
 0x948   :  { %11377 = vmatprep.subr.msk.mxu0 %vm651_vm2, %v14285_v52 }
 0x94b   :  { %11378 = vmatpush3.xpose.msk.msra.mxu0 %vm651_vm2, %v14293_v0 }
 0x94c   :  { %11379 = vmatprep.subr.msk.mxu0 %vm651_vm2, %v14297_v2 }
 0x94f   :  { %11380 = vmatpush3.xpose.msk.msra.mxu0 %vm651_vm2, %v14305_v4 }
 0x950   :  { %11381 = vmatprep.subr.msk.mxu0 %vm651_vm2, %v14309_v6 }
 0x953   :  { %11382 = vmatpush3.xpose.msk.msra.mxu0 %vm651_vm2, %v14317_v9 }
 0x954   :  { %11383 = vmatprep.subr.msk.mxu0 %vm651_vm2, %v14321_v10 }
 0x957   :  { %11384 = vmatpush3.xpose.msk.msra.mxu0 %vm651_vm2, %v14329_v11 }
 0x958   :  { %11385 = vmatprep.subr.msk.mxu0 %vm651_vm2, %v14333_v12 }
 0x95b   :  { %11386 = vmatpush3.xpose.msk.msra.mxu0 %vm651_vm2, %v14341_v13 }
 0x95c   :  { %11387 = vmatprep.subr.msk.mxu0 %vm651_vm2, %v14345_v15 }
 0x95f   :  { %11388 = vmatpush3.xpose.msk.msra.mxu0 %vm651_vm2, %v1821_v20 }
 0x960   :  { %11389 = vmatprep.subr.msk.mxu0 %vm651_vm2, %v1836_v22 }
 0x963   :  { %11390 = vmatpush3.xpose.msk.msra.mxu0 %vm651_vm2, %v1820_v24 }
 0x964   :  { %11391 = vmatprep.subr.msk.mxu0 %vm651_vm2, %v1835_v30 }
 0x967   :  { %11392 = vmatpush3.xpose.msk.msra.mxu0 %vm651_vm2, %v1819_v14 }
 0x9fe   :  { %v1777_v35 = vpop.f32.mrf.mxu0 }
 0x9ff   :  { %v1782_v37 = vadd.f32 %v1777_v35, %v14071_v18 }
 0xa00   :  { %v1779_v43 = vpop.f32.mrf.mxu0 }
 0xa01   :  { %v1784_v39 = vsub.f32 0.0, %v1782_v37  ;;  %v14247_v47 = vadd.f32 %v1779_v43, %v14244_v45 }
 0xa03   :  { %v1785_v41 = vmul.f32 1.442695, %v1784_v39  ;;  %v1791_v58 = vsub.f32 0.0, %v14247_v47 }
 0xa05   :  { %12989 = vpow2.f32 %v1785_v41  ;;  %v1792_v59 = vmul.f32 1.442695, %v1791_v58 }
 0xa06   :  { %12991 = vtanh.f32 %v14247_v47 }
 0xa12   :  { %v12990_v49 = vpop.eup %12989 }
 0xa13   :  { %v1787_v51 = vadd.f32 1.0, %v12990_v49  ;;  %v12992_v53 = vpop.eup %12991  ;;  %v2073_v49 = vld [vmem:[#allocation8 + $0xa0] sm:$0xff] }
 0xa14   :  { %11393 = vmatprep.subr.msk.mxu0 %vm651_vm2, %v2073_v49 }
 0xa15   :  { %12993 = vrcp.f32 %v1787_v51  ;;  %v2057_v51 = vld [vmem:[#allocation8 + $0x20] sm:$0xff] }
 0xa16   :  { %12995 = vpow2.f32 %v1792_v59  ;;  %11394 = vmatpush3.xpose.msk.msra.mxu0 %vm651_vm2, %v2057_v51 }
 0xa22   :  { %v12994_v55 = vpop.eup %12993 }
 0xa23   :  { %v1801_v56 = vmul.f32 %v12994_v55, %v12992_v53  ;;  %v14250_v57 = vmul.f32 %v12994_v55, %v1798_v54  ;;  %v12996_v60 = vpop.eup %12995  ;;  %v2072_v53 = vld [vmem:[#allocation8 + $0x98] sm:$0xff]  ;;  %v2071_v55 = vld [vmem:[#allocation8 + $0x90] sm:$0xff] }
 0xa24   :  { %v1794_v61 = vadd.f32 1.0, %v12996_v60  ;;  %11395 = vmatprep.subr.msk.mxu0 %vm651_vm2, %v2072_v53  ;;  %v2056_v54 = vld [vmem:[#allocation8 + $0x18] sm:$0xff] }
 0xa25   :  { %1803 = vrot.lane.b32.xlu0 %v1801_v56, %s13532_s28  ;;  %11396 = vmatpush3.xpose.msk.msra.mxu0 %vm651_vm2, %v2056_v54  ;;  %v2055_v56 = vld [vmem:[#allocation8 + $0x10] sm:$0xff] }
 0xa26   :  { %12997 = vrcp.f32 %v1794_v61  ;;  %11397 = vmatprep.subr.msk.mxu0 %vm651_vm2, %v2071_v55 }
 0xa29   :  { %11398 = vmatpush3.xpose.msk.msra.mxu0 %vm651_vm2, %v2055_v56 }
 0xa33   :  { %v12998_v1 = vpop.eup %12997 }
 0xa97   :  { %v1804_v62 = vpop.permute.xlu0 %1803 }
 0xa98   :  { %v1806_v63 = vadd.f32 %v1804_v62, %v14250_v57  ;;  %v2070_v57 = vld [vmem:[#allocation8 + $0x88] sm:$0xff] }
 0xa99   :  { %11399 = vmatprep.subr.msk.mxu0 %vm651_vm2, %v2070_v57 }
 0xa9a   :  { %12999 = vtanh.f32 %v1806_v63  ;;  %v2037_v39 = vrot.slane %v1806_v63, 6  ;;  %11400 = vmatpush3.xpose.msk.msra.mxu0 %vm651_vm2, %v2054_v36 }
 0xaa7   :  { %v13000_v3 = vpop.eup %12999 }
 0xaa8   :  { %v1808_v5 = vmul.f32 %v13000_v3, %v12998_v1 }
 0xaaa   :  { %1810 = vrot.lane.b32.xlu1 %v1808_v5, %s13532_s28 }
 0xb1c   :  { %v1811_v7 = vpop.permute.xlu1 %1810 }
 0xb1d   :  { %1813 = vst.msk [vmem:[#allocation2 + $0x8] sm:$0x3] %vm850_vm3, %v1811_v7  ;;  %11369 = vmatprep.mubr.msk.f32.mxu1 %vm651_vm2, %v1811_v7 }
 0xb1e   :  { %11370 = vmatmul.mubr.msk.f32.vlgmr.msra.gmra.mxu1 %vm651_vm2, %v1811_v7 }
 0xb1f   :  { %11406 = vmatpush3.xpose.msk.msra.mxu1 %vm651_vm2, %v14255_v42  ;;  %v2069_v42 = vld [vmem:[#allocation8 + $0x80] sm:$0xff] }
 0xb20   :  { %11407 = vmatprep.subr.msk.mxu1 %vm651_vm2, %v14257_v28  ;;  %11401 = vmatprep.subr.msk.mxu0 %vm651_vm2, %v2069_v42  ;;  %v2053_v28 = vld [vmem:[#allocation8] sm:$0xff] }
 0xb21   :  { %11402 = vmatpush3.xpose.msk.msra.mxu0 %vm651_vm2, %v2053_v28 }
 0xb23   :  { %11408 = vmatpush3.xpose.msk.msra.mxu1 %vm651_vm2, %v14269_v38 }
 0xb24   :  { %11409 = vmatprep.subr.msk.mxu1 %vm651_vm2, %v14273_v48 }
 0xb27   :  { %11410 = vmatpush3.xpose.msk.msra.mxu1 %vm651_vm2, %v14281_v50 }
 0xb28   :  { %11411 = vmatprep.subr.msk.mxu1 %vm651_vm2, %v14285_v52 }
 0xb2b   :  { %11412 = vmatpush3.xpose.msk.msra.mxu1 %vm651_vm2, %v14293_v0 }
 0xb2c   :  { %11413 = vmatprep.subr.msk.mxu1 %vm651_vm2, %v14297_v2 }
 0xb2f   :  { %11414 = vmatpush3.xpose.msk.msra.mxu1 %vm651_vm2, %v14305_v4 }
 0xb30   :  { %11415 = vmatprep.subr.msk.mxu1 %vm651_vm2, %v14309_v6 }
 0xb33   :  { %11416 = vmatpush3.xpose.msk.msra.mxu1 %vm651_vm2, %v14317_v9 }
 0xb34   :  { %11417 = vmatprep.subr.msk.mxu1 %vm651_vm2, %v14321_v10 }
 0xb37   :  { %11418 = vmatpush3.xpose.msk.msra.mxu1 %vm651_vm2, %v14329_v11 }
 0xb38   :  { %11419 = vmatprep.subr.msk.mxu1 %vm651_vm2, %v14333_v12 }
 0xb3b   :  { %11420 = vmatpush3.xpose.msk.msra.mxu1 %vm651_vm2, %v14341_v13 }
 0xb3c   :  { %11421 = vmatprep.subr.msk.mxu1 %vm651_vm2, %v14345_v15 }
 0xb3f   :  { %11422 = vmatpush3.xpose.msk.msra.mxu1 %vm651_vm2, %v1821_v20 }
 0xb40   :  { %11423 = vmatprep.subr.msk.mxu1 %vm651_vm2, %v1836_v22 }
 0xb43   :  { %11424 = vmatpush3.xpose.msk.msra.mxu1 %vm651_vm2, %v1820_v24 }
 0xb44   :  { %11425 = vmatprep.subr.msk.mxu1 %vm651_vm2, %v1835_v30 }
 0xb47   :  { %11426 = vmatpush3.xpose.msk.msra.mxu1 %vm651_vm2, %v1819_v14 }
 0xb48   :  { %11427 = vmatprep.subr.msk.mxu1 %vm651_vm2, %v2073_v49 }
 0xb4b   :  { %11428 = vmatpush3.xpose.msk.msra.mxu1 %vm651_vm2, %v2057_v51 }
 0xb4c   :  { %11429 = vmatprep.subr.msk.mxu1 %vm651_vm2, %v2072_v53 }
 0xb4f   :  { %11430 = vmatpush3.xpose.msk.msra.mxu1 %vm651_vm2, %v2056_v54 }
 0xb50   :  { %11431 = vmatprep.subr.msk.mxu1 %vm651_vm2, %v2071_v55 }
 0xb53   :  { %11432 = vmatpush3.xpose.msk.msra.mxu1 %vm651_vm2, %v2055_v56 }
 0xb54   :  { %11433 = vmatprep.subr.msk.mxu1 %vm651_vm2, %v2070_v57 }
 0xb57   :  { %11434 = vmatpush3.xpose.msk.msra.mxu1 %vm651_vm2, %v2054_v36 }
 0xb58   :  { %11435 = vmatprep.subr.msk.mxu1 %vm651_vm2, %v2069_v42 }
 0xb5b   :  { %11436 = vmatpush3.xpose.msk.msra.mxu1 %vm651_vm2, %v2053_v28  ;;  %v2545_v28 = vld [vmem:[#allocation11 + $0x30] sm:$0xff] }
 0xbde   :  { %v2010_v26 = vpop.f32.mrf.mxu1 }
 0xbdf   :  { %v2017_v34 = vrot.slane %v2010_v26, 6 }
 0xbe0   :  { %v2012_v44 = vpop.f32.mrf.mxu1 }
 0xbe1   :  { %v2021_v21 = vadd.f32 %v2017_v34, %v14071_v18  ;;  %v2018_v27 = vrot.slane %v2012_v44, 6 }
 0xbe3   :  { %v2023_v23 = vsub.f32 0.0, %v2021_v21  ;;  %v2022_v31 = vadd.f32 %v2018_v27, %v14244_v45 }
 0xbe5   :  { %v2024_v25 = vmul.f32 1.442695, %v2023_v23  ;;  %v2030_v38 = vsub.f32 0.0, %v2022_v31 }
 0xbe7   :  { %13001 = vpow2.f32 %v2024_v25  ;;  %v2031_v48 = vmul.f32 1.442695, %v2030_v38  ;;  %v2543_v38 = vld [vmem:[#allocation11 + $0x20] sm:$0xff] }
 0xbe8   :  { %13003 = vtanh.f32 %v2022_v31 }
 0xbf4   :  { %v13002_v33 = vpop.eup %13001 }
 0xbf5   :  { %v2026_v35 = vadd.f32 1.0, %v13002_v33  ;;  %v13004_v37 = vpop.eup %13003 }
 0xbf7   :  { %13005 = vrcp.f32 %v2026_v35 }
 0xbf8   :  { %13007 = vpow2.f32 %v2031_v48  ;;  %v2541_v48 = vld [vmem:[#allocation11 + $0x10] sm:$0xff] }
 0xc04   :  { %v13006_v41 = vpop.eup %13005 }
 0xc05   :  { %v2040_v43 = vmul.f32 %v13006_v41, %v13004_v37  ;;  %v2039_v47 = vmul.f32 %v13006_v41, %v2037_v39  ;;  %v13008_v50 = vpop.eup %13007 }
 0xc06   :  { %v2033_v52 = vadd.f32 1.0, %v13008_v50 }
 0xc07   :  { %2042 = vrot.lane.b32.xlu0 %v2040_v43, %s13532_s28 }
 0xc08   :  { %13009 = vrcp.f32 %v2033_v52 }
 0xc15   :  { %v13010_v4 = vpop.eup %13009 }
 0xc79   :  { %v2043_v0 = vpop.permute.xlu0 %2042 }
 0xc7a   :  { %v2045_v2 = vadd.f32 %v2043_v0, %v2039_v47 }
 0xc7c   :  { %13011 = vtanh.f32 %v2045_v2  ;;  %v2279_v61 = vrot.slane %v2045_v2, 6 }
 0xc89   :  { %v13012_v6 = vpop.eup %13011 }
 0xc8a   :  { %v14453_v9 = vmul.f32 %v13012_v6, %v13010_v4 }
 0xc8c   :  { %v2085_v10 = vrot.slane %v14453_v9, 2 }
 0xc8e   :  { %2086 = vrot.lane.b32.xlu1 %v2085_v10, %s13532_s28  ;;  %v2540_v10 = vld [vmem:[#allocation11 + $0x8] sm:$0xff] }
 0xd00   :  { %v2087_v11 = vpop.permute.xlu1 %2086 }
 0xd01   :  { %11403 = vmatprep.mubr.msk.f32.mxu0 %vm651_vm2, %v2087_v11 }
 0xd02   :  { %11404 = vmatmul.mubr.msk.f32.vlgmr.msra.gmra.mxu0 %vm651_vm2, %v2087_v11  ;;  %v2539_v11 = vld [vmem:[#allocation11] sm:$0xff] }
 0xdc2   :  { %v2252_v12 = vpop.f32.mrf.mxu0 }
 0xdc3   :  { %v2259_v13 = vrot.slane %v2252_v12, 4 }
 0xdc4   :  { %v2254_v24 = vpop.f32.mrf.mxu0 }
 0xdc5   :  { %v2263_v15 = vadd.f32 %v2259_v13, %v14071_v18  ;;  %v2260_v30 = vrot.slane %v2254_v24, 4 }
 0xdc7   :  { %v2265_v20 = vsub.f32 0.0, %v2263_v15  ;;  %v2264_v14 = vadd.f32 %v2260_v30, %v14244_v45  ;;  %v2666_v15 = vld [vmem:[#allocation23 + $0x38] sm:$0xff] }
 0xdc9   :  { %v2266_v22 = vmul.f32 1.442695, %v2265_v20  ;;  %v2272_v3 = vsub.f32 0.0, %v2264_v14 }
 0xdcb   :  { %13013 = vpow2.f32 %v2266_v22  ;;  %v2273_v5 = vmul.f32 1.442695, %v2272_v3  ;;  %v2786_v3 = vld [vmem:[%s17604_s18 + $0x38] sm:$0xff] }
 0xdcc   :  { %13015 = vtanh.f32 %v2264_v14 }
 0xdd8   :  { %v13014_v58 = vpop.eup %13013 }
 0xdd9   :  { %v2268_v59 = vadd.f32 1.0, %v13014_v58  ;;  %v13016_v60 = vpop.eup %13015  ;;  %v2665_v58 = vld [vmem:[#allocation23 + $0x30] sm:$0xff] }
 0xddb   :  { %13017 = vrcp.f32 %v2268_v59  ;;  %v2664_v59 = vld [vmem:[#allocation23 + $0x28] sm:$0xff] }
 0xddc   :  { %13019 = vpow2.f32 %v2273_v5  ;;  %v14523_v5 = vld [vmem:[#allocation19 + $0xf8] sm:$0xff] }
 0xddd   :  { %11476 = vmatprep.subr.msk.mxu1 %vm651_vm2, %v14523_v5 }
 0xde8   :  { %v13018_v62 = vpop.eup %13017 }
 0xde9   :  { %v2282_v63 = vmul.f32 %v13018_v62, %v13016_v60  ;;  %v2281_v1 = vmul.f32 %v13018_v62, %v2279_v61  ;;  %v13020_v7 = vpop.eup %13019  ;;  %v2663_v60 = vld [vmem:[#allocation23 + $0x20] sm:$0xff]  ;;  %v2662_v61 = vld [vmem:[#allocation23 + $0x18] sm:$0xff]  ;;  %v2661_v62 = vld [vmem:[#allocation23 + $0x10] sm:$0xff] }
 0xdea   :  { %v2275_v26 = vadd.f32 1.0, %v13020_v7  ;;  %v14525_v7 = vld [vmem:[#allocation19 + $0x78] sm:$0xff] }
 0xdeb   :  { %2284 = vrot.lane.b32.xlu0 %v2282_v63, %s13532_s28  ;;  %v2660_v63 = vld [vmem:[#allocation23 + $0x8] sm:$0xff]  ;;  %17871 = vst [vmem:[#allocation39_spill] sm:$0xff] %v14525_v7 }
 0xdec   :  { %13021 = vrcp.f32 %v2275_v26  ;;  %v14529_v26 = vld [vmem:[#allocation19 + $0xf0] sm:$0xff] }
 0xded   :  { %17872 = vst [vmem:[#allocation40_spill] sm:$0xff] %v14529_v26 }
 0xdf9   :  { %v13022_v23 = vpop.eup %13021 }
 0xe5d   :  { %v2285_v34 = vpop.permute.xlu0 %2284 }
 0xe5e   :  { %v2287_v21 = vadd.f32 %v2285_v34, %v2281_v1  ;;  %v2659_v1 = vld [vmem:[#allocation23] sm:$0xff] }
 0xe60   :  { %13023 = vtanh.f32 %v2287_v21  ;;  %v2521_v56 = vrot.slane %v2287_v21, 6  ;;  %v10334_v21 = vld [vmem:[#allocation13] ss:$0 sm:$0xff] }
 0xe6d   :  { %v13024_v25 = vpop.eup %13023 }
 0xe6e   :  { %v2289_v44 = vmul.f32 %v13024_v25, %v13022_v23 }
 0xe70   :  { %v2327_v27 = vrot.slane %v2289_v44, 4 }
 0xe72   :  { %2328 = vrot.lane.b32.xlu1 %v2327_v27, %s13532_s28  ;;  %v2785_v27 = vld [vmem:[%s17604_s18 + $0x30] sm:$0xff] }
 0xe76   :  { %1087 = vrot.lane.b32.xlu1 %v14155_v32, %s13532_s28 }
 0xe7a   :  { %1573 = vrot.lane.b32.xlu1 %v14235_v29, %s13532_s28 }
 0xe7e   :  { %2291 = vrot.lane.b32.xlu1 %v2289_v44, %s13532_s28 }
 0xee4   :  { %v2329_v31 = vpop.permute.xlu1 %2328 }
 0xee5   :  { %11437 = vmatprep.mubr.msk.f32.mxu1 %vm651_vm2, %v2329_v31 }
 0xee6   :  { %11438 = vmatmul.mubr.msk.f32.vlgmr.msra.gmra.mxu1 %vm651_vm2, %v2329_v31  ;;  %v2784_v31 = vld [vmem:[%s17604_s18 + $0x28] sm:$0xff] }
 0xee7   :  { %11508 = vmatprep.mubr.f32.mxu1 %v17613_v8  ;;  %11477 = vmatpush3.xpose.msk.msra.mxu1 %vm651_vm2, %v14525_v7 }
 0xee8   :  { %v1088_v33 = vpop.permute.xlu1 %1087  ;;  %11478 = vmatprep.subr.msk.mxu1 %vm651_vm2, %v14529_v26 }
 0xee9   :  { %1091 = vst.msk [vmem:[#allocation2] sm:$0xc] %vm1090_vm4, %v1088_v33  ;;  %v2783_v33 = vld [vmem:[%s17604_s18 + $0x20] sm:$0xff] }
 0xeec   :  { %v1574_v35 = vpop.permute.xlu1 %1573 }
 0xeed   :  { %1577 = vst.msk [vmem:[#allocation2] sm:$0xc0] %vm1576_vm5, %v1574_v35  ;;  %v2782_v35 = vld [vmem:[%s17604_s18 + $0x18] sm:$0xff] }
 0xef0   :  { %v2292_v32 = vpop.permute.xlu1 %2291 }
 0xef1   :  { %2294 = vst.msk [vmem:[#allocation2 + $0x8] sm:$0x30] %vm1333_vm6, %v2292_v32  ;;  %v2781_v32 = vld [vmem:[%s17604_s18 + $0x10] sm:$0xff] }
 0xfa6   :  { %v2494_v29 = vpop.f32.mrf.mxu1 }
 0xfa7   :  { %v2501_v37 = vrot.slane %v2494_v29, 2  ;;  %v2780_v29 = vld [vmem:[%s17604_s18 + $0x8] sm:$0xff] }
 0xfa8   :  { %v2496_v47 = vpop.f32.mrf.mxu1 }
 0xfa9   :  { %v2505_v39 = vadd.f32 %v2501_v37, %v14071_v18  ;;  %v2502_v49 = vrot.slane %v2496_v47, 2  ;;  %v2546_v18 = vld [vmem:[#allocation11 + $0x38] sm:$0xff] }
 0xfaa   :  { %12292 = vmatprep.subr.msk.mxu0 %vm651_vm2, %v2546_v18  ;;  %v2779_v37 = vld [vmem:[%s17604_s18] sm:$0xff]  ;;  %v14590_v47 = vld [vmem:[#allocation14 + $0x10] sm:$0xff] }
 0xfab   :  { %v2507_v41 = vsub.f32 0.0, %v2505_v39  ;;  %v2506_v51 = vadd.f32 %v2502_v49, %v14244_v45  ;;  %12293 = vmatpush3.xpose.msk.msra.mxu0 %vm651_vm2, %v2546_v18  ;;  %v2544_v45 = vld [vmem:[#allocation11 + $0x28] sm:$0xff]  ;;  %v14630_v18 = vld [vmem:[#allocation17 + $0xe8] sm:$0xff] }
 0xfac   :  { %12294 = vmatprep.subr.msk.mxu0 %vm651_vm2, %v2545_v28  ;;  %v14575_v39 = vld [vmem:[#allocation14 + $0x28] sm:$0xff] }
 0xfad   :  { %v2508_v43 = vmul.f32 1.442695, %v2507_v41  ;;  %v2514_v50 = vsub.f32 0.0, %v2506_v51  ;;  %v14582_v41 = vld [vmem:[#allocation14 + $0x20] sm:$0xff]  ;;  %v14594_v49 = vld [vmem:[#allocation14 + $0x8] sm:$0xff] }
 0xfaf   :  { %13025 = vpow2.f32 %v2508_v43  ;;  %12295 = vmatpush3.xpose.msk.msra.mxu0 %vm651_vm2, %v2545_v28  ;;  %v2515_v52 = vmul.f32 1.442695, %v2514_v50  ;;  %v14586_v43 = vld [vmem:[#allocation14 + $0x18] sm:$0xff]  ;;  %v14654_v50 = vld [vmem:[#allocation19 + $0xd8] sm:$0xff] }
 0xfb0   :  { %13027 = vtanh.f32 %v2506_v51  ;;  %12296 = vmatprep.subr.msk.mxu0 %vm651_vm2, %v2544_v45  ;;  %v14598_v51 = vld [vmem:[#allocation14] sm:$0xff]  ;;  %17878 = vst [vmem:[#allocation46_spill] sm:$0xff] %v14654_v50 }
 0xfb1   :  { %v14634_v28 = vld [vmem:[#allocation17 + $0x68] sm:$0xff] }
 0xfb3   :  { %12297 = vmatpush3.xpose.msk.msra.mxu0 %vm651_vm2, %v2544_v45  ;;  %v14638_v45 = vld [vmem:[#allocation19 + $0xe0] sm:$0xff] }
 0xfb4   :  { %12298 = vmatprep.subr.msk.mxu0 %vm651_vm2, %v2543_v38  ;;  %17876 = vst [vmem:[#allocation44_spill] sm:$0xff] %v14638_v45 }
 0xfb7   :  { %12299 = vmatpush3.xpose.msk.msra.mxu0 %vm651_vm2, %v2543_v38  ;;  %v14642_v38 = vld [vmem:[#allocation19 + $0x60] sm:$0xff] }
 0xfb8   :  { %17877 = vst [vmem:[#allocation45_spill] sm:$0xff] %v14642_v38 }
 0xfbc   :  { %v13026_v53 = vpop.eup %13025 }
 0xfbd   :  { %v2510_v54 = vadd.f32 1.0, %v13026_v53  ;;  %v13028_v55 = vpop.eup %13027  ;;  %v14600_v53 = vld [vmem:[#allocation17 + $0xf8] sm:$0xff] }
 0xfbf   :  { %13029 = vrcp.f32 %v2510_v54  ;;  %v14605_v54 = vld [vmem:[#allocation17 + $0x78] sm:$0xff] }
 0xfc0   :  { %13031 = vpow2.f32 %v2515_v52  ;;  %v14658_v52 = vld [vmem:[#allocation19 + $0x58] sm:$0xff] }
 0xfc1   :  { %17879 = vst [vmem:[#allocation47_spill] sm:$0xff] %v14658_v52 }
 0xfcc   :  { %v13030_v57 = vpop.eup %13029 }
 0xfcd   :  { %v2524_v36 = vmul.f32 %v13030_v57, %v13028_v55  ;;  %v2523_v42 = vmul.f32 %v13030_v57, %v2521_v56  ;;  %v13032_v0 = vpop.eup %13031  ;;  %v14610_v55 = vld [vmem:[#allocation19 + $0x70] sm:$0xff] }
 0xfce   :  { %v2517_v2 = vadd.f32 1.0, %v13032_v0  ;;  %17873 = vst [vmem:[#allocation41_spill] sm:$0xff] %v14610_v55  ;;  %11479 = vmatpush3.xpose.msk.msra.mxu1 %vm651_vm2, %v14610_v55  ;;  %v14614_v56 = vld [vmem:[#allocation17 + $0xf0] sm:$0xff]  ;;  %v14662_v0 = vld [vmem:[#allocation17 + $0xd8] sm:$0xff] }
 0xfcf   :  { %2526 = vrot.lane.b32.xlu0 %v2524_v36, %s13532_s28  ;;  %v14618_v57 = vld [vmem:[#allocation17 + $0x70] sm:$0xff]  ;;  %v14622_v36 = vld [vmem:[#allocation19 + $0xe8] sm:$0xff] }
 0xfd0   :  { %13033 = vrcp.f32 %v2517_v2  ;;  %17874 = vst [vmem:[#allocation42_spill] sm:$0xff] %v14622_v36  ;;  %11480 = vmatprep.subr.msk.mxu1 %vm651_vm2, %v14622_v36  ;;  %v14666_v2 = vld [vmem:[#allocation17 + $0x58] sm:$0xff] }
 0xfd3   :  { %1330 = vrot.lane.b32.xlu0 %v14226_v46, %s13532_s28  ;;  %v2542_v46 = vld [vmem:[#allocation11 + $0x18] sm:$0xff] }
 0xfd4   :  { %12300 = vmatprep.subr.msk.mxu0 %vm651_vm2, %v2542_v46 }
 0xfd5   :  { %12301 = vmatpush3.xpose.msk.msra.mxu0 %vm651_vm2, %v2542_v46  ;;  %v14646_v46 = vld [vmem:[#allocation17 + $0xe0] sm:$0xff] }
 0xfd6   :  { %12302 = vmatprep.subr.msk.mxu0 %vm651_vm2, %v2541_v48 }
 0xfd7   :  { %2049 = vrot.lane.b32.xlu0 %v14453_v9, %s13532_s28 }
 0xfd9   :  { %12303 = vmatpush3.xpose.msk.msra.mxu0 %vm651_vm2, %v2541_v48  ;;  %v14650_v48 = vld [vmem:[#allocation17 + $0x60] sm:$0xff] }
 0xfda   :  { %12304 = vmatprep.subr.msk.mxu0 %vm651_vm2, %v2540_v10 }
 0xfdd   :  { %12305 = vmatpush3.xpose.msk.msra.mxu0 %vm651_vm2, %v2540_v10  ;;  %v13034_v20 = vpop.eup %13033  ;;  %v14682_v10 = vld [vmem:[#allocation17 + $0x50] sm:$0xff] }
 0xfde   :  { %12306 = vmatprep.subr.msk.mxu0 %vm651_vm2, %v2539_v11 }
 0xfe1   :  { %12307 = vmatpush3.xpose.msk.msra.mxu0 %vm651_vm2, %v2539_v11  ;;  %v14686_v11 = vld [vmem:[#allocation19 + $0xc8] sm:$0xff] }
 0xfe2   :  { %12311 = vmatprep.subr.msk.mxu0 %vm651_vm2, %v2666_v15  ;;  %17882 = vst [vmem:[#allocation50_spill] sm:$0xff] %v14686_v11 }
0x1041   :  { %v2527_v4 = vpop.permute.xlu0 %2526 }
0x1042   :  { %v2529_v6 = vadd.f32 %v2527_v4, %v2523_v42  ;;  %v14626_v42 = vld [vmem:[#allocation19 + $0x68] sm:$0xff]  ;;  %v14670_v4 = vld [vmem:[#allocation19 + $0xd0] sm:$0xff] }
0x1043   :  { %17875 = vst [vmem:[#allocation43_spill] sm:$0xff] %v14626_v42  ;;  %11481 = vmatpush3.xpose.msk.msra.mxu1 %vm651_vm2, %v14626_v42  ;;  %17880 = vst [vmem:[#allocation48_spill] sm:$0xff] %v14670_v4 }
0x1044   :  { %13035 = vtanh.f32 %v2529_v6  ;;  %11482 = vmatprep.subr.msk.mxu1 %vm651_vm2, %v14638_v45  ;;  %v14674_v6 = vld [vmem:[#allocation19 + $0x50] sm:$0xff] }
0x1045   :  { %v1331_v9 = vpop.permute.xlu0 %1330  ;;  %17881 = vst [vmem:[#allocation49_spill] sm:$0xff] %v14674_v6 }
0x1046   :  { %1334 = vst.msk [vmem:[#allocation2] sm:$0x30] %vm1333_vm6, %v1331_v9  ;;  %v14678_v9 = vld [vmem:[#allocation17 + $0xd0] sm:$0xff] }
0x1047   :  { %11483 = vmatpush3.xpose.msk.msra.mxu1 %vm651_vm2, %v14642_v38 }
0x1048   :  { %11484 = vmatprep.subr.msk.mxu1 %vm651_vm2, %v14654_v50 }
0x1049   :  { %v2050_v12 = vpop.permute.xlu0 %2049 }
0x104a   :  { %2052 = vst.msk [vmem:[#allocation2 + $0x8] sm:$0xc] %vm1090_vm4, %v2050_v12  ;;  %v14688_v12 = vld [vmem:[#allocation19 + $0x48] sm:$0xff] }
0x104b   :  { %11485 = vmatpush3.xpose.msk.msra.mxu1 %vm651_vm2, %v14658_v52  ;;  %17883 = vst [vmem:[#allocation51_spill] sm:$0xff] %v14688_v12 }
0x104c   :  { %11486 = vmatprep.subr.msk.mxu1 %vm651_vm2, %v14670_v4 }
0x104d   :  { %v2537_v13 = vld [vmem:[#allocation2] sm:$0xff] }
0x104e   :  { %12308 = vmatprep.mubr.msk.f32.mxu0 %vm651_vm2, %v2537_v13  ;;  %v14690_v13 = vld [vmem:[#allocation17 + $0xc8] sm:$0xff] }
0x104f   :  { %11487 = vmatpush3.xpose.msk.msra.mxu1 %vm651_vm2, %v14674_v6 }
0x1050   :  { %11488 = vmatprep.subr.msk.mxu1 %vm651_vm2, %v14686_v11 }
0x1051   :  { %v13036_v22 = vpop.eup %13035 }
0x1052   :  { %v2531_v24 = vmul.f32 %v13036_v22, %v13034_v20  ;;  %v14698_v20 = vld [vmem:[#allocation19 + $0xc0] sm:$0xff] }
0x1053   :  { %17884 = vst [vmem:[#allocation52_spill] sm:$0xff] %v14698_v20  ;;  %11489 = vmatpush3.xpose.msk.msra.mxu1 %vm651_vm2, %v14688_v12  ;;  %v14702_v22 = vld [vmem:[#allocation17 + $0xc0] sm:$0xff] }
0x1054   :  { %2533 = vrot.lane.b32.xlu0 %v2531_v24, %s13532_s28  ;;  %11490 = vmatprep.subr.msk.mxu1 %vm651_vm2, %v14698_v20  ;;  %v14706_v24 = vld [vmem:[#allocation19 + $0x40] sm:$0xff] }
0x1055   :  { %17885 = vst [vmem:[#allocation53_spill] sm:$0xff] %v14706_v24 }
0x1057   :  { %11491 = vmatpush3.xpose.msk.msra.mxu1 %vm651_vm2, %v14706_v24 }
0x10c6   :  { %v2534_v30 = vpop.permute.xlu0 %2533 }
0x10c7   :  { %2536 = vst.msk [vmem:[#allocation2 + $0x8] sm:$0xc0] %vm1576_vm5, %v2534_v30  ;;  %v14710_v30 = vld [vmem:[#allocation19 + $0xb8] sm:$0xff] }
0x10c8   :  { %17886 = vst [vmem:[#allocation54_spill] sm:$0xff] %v14710_v30  ;;  %11492 = vmatprep.subr.msk.mxu1 %vm651_vm2, %v14710_v30 }
0x10ce   :  { %v2538_v14 = vld [vmem:[#allocation2 + $0x8] sm:$0xff] }
0x10cf   :  { %12309 = vmatmul.mubr.msk.f32.vlgmr.msra.gmra.mxu0 %vm651_vm2, %v2538_v14  ;;  %v14714_v14 = vld [vmem:[#allocation17 + $0x40] sm:$0xff] }
0x10d0   :  { %12312 = vmatpush3.xpose.msk.msra.mxu0 %vm651_vm2, %v2666_v15  ;;  %v14696_v15 = vld [vmem:[#allocation17 + $0x48] sm:$0xff] }
0x10d1   :  { %12313 = vmatprep.subr.msk.mxu0 %vm651_vm2, %v2665_v58 }
0x10d4   :  { %12314 = vmatpush3.xpose.msk.msra.mxu0 %vm651_vm2, %v2665_v58  ;;  %v14718_v58 = vld [vmem:[#allocation17 + $0xb8] sm:$0xff] }
0x10d5   :  { %12315 = vmatprep.subr.msk.mxu0 %vm651_vm2, %v2664_v59 }
0x10d8   :  { %12316 = vmatpush3.xpose.msk.msra.mxu0 %vm651_vm2, %v2664_v59  ;;  %v14722_v59 = vld [vmem:[#allocation19 + $0x38] sm:$0xff] }
0x10d9   :  { %12317 = vmatprep.subr.msk.mxu0 %vm651_vm2, %v2663_v60  ;;  %17887 = vst [vmem:[#allocation55_spill] sm:$0xff] %v14722_v59  ;;  %11493 = vmatpush3.xpose.msk.msra.mxu1 %vm651_vm2, %v14722_v59  ;;  %v13535_v59 = vmov 1934713408  }
0x10da   :  { %v2939_v30 = vunpack.c.l.s4 %v13535_v59 }
0x10dc   :  { %12318 = vmatpush3.xpose.msk.msra.mxu0 %vm651_vm2, %v2663_v60  ;;  %v14728_v60 = vld [vmem:[#allocation17 + $0x38] sm:$0xff]  ;;  %v2940_v11 = vunpack.c.0.s8 %v2939_v30 }
0x10dd   :  { %12319 = vmatprep.subr.msk.mxu0 %vm651_vm2, %v2662_v61 }
0x10e0   :  { %12320 = vmatpush3.xpose.msk.msra.mxu0 %vm651_vm2, %v2662_v61  ;;  %v14734_v61 = vld [vmem:[#allocation19 + $0xb0] sm:$0xff] }
0x10e1   :  { %12321 = vmatprep.subr.msk.mxu0 %vm651_vm2, %v2661_v62  ;;  %17888 = vst [vmem:[#allocation56_spill] sm:$0xff] %v14734_v61  ;;  %11494 = vmatprep.subr.msk.mxu1 %vm651_vm2, %v14734_v61  ;;  %v10345_v61 = vld [vmem:[#allocation25] ss:$0 sm:$0xff] }
0x10e4   :  { %12322 = vmatpush3.xpose.msk.msra.mxu0 %vm651_vm2, %v2661_v62  ;;  %v14738_v62 = vld [vmem:[#allocation19 + $0x30] sm:$0xff] }
0x10e5   :  { %12323 = vmatprep.subr.msk.mxu0 %vm651_vm2, %v2660_v63  ;;  %17889 = vst [vmem:[#allocation57_spill] sm:$0xff] %v14738_v62  ;;  %11495 = vmatpush3.xpose.msk.msra.mxu1 %vm651_vm2, %v14738_v62 }
0x10e8   :  { %12324 = vmatpush3.xpose.msk.msra.mxu0 %vm651_vm2, %v2660_v63  ;;  %v14742_v63 = vld [vmem:[#allocation17 + $0xb0] sm:$0xff] }
0x10e9   :  { %12325 = vmatprep.subr.msk.mxu0 %vm651_vm2, %v2659_v1 }
0x10ec   :  { %12326 = vmatpush3.xpose.msk.msra.mxu0 %vm651_vm2, %v2659_v1  ;;  %v14746_v1 = vld [vmem:[#allocation17 + $0x30] sm:$0xff] }
0x10ed   :  { %12330 = vmatprep.subr.msk.mxu0 %vm651_vm2, %v2786_v3 }
0x118f   :  { %v12310_v34 = vpop.f32.mrf.mxu0 }
0x1190   :  { %v2656_v44 = vadd.f32 %v12310_v34, %v10334_v21  ;;  %v14754_v34 = vld [vmem:[#allocation19 + $0x28] sm:$0xff] }
0x1191   :  { %v2650_v23 = vpop.f32.mrf.mxu0  ;;  %17891 = vst [vmem:[#allocation59_spill] sm:$0xff] %v14754_v34 }
0x1192   :  { %v2651_v25 = vadd.f32 %v10334_v21, %v2650_v23  ;;  %v14758_v21 = vld [vmem:[#allocation17 + $0xa8] sm:$0xff] }
0x1193   :  { %v14762_v23 = vld [vmem:[#allocation17 + $0x28] sm:$0xff] }
0x1194   :  { %12327 = vmatprep.mubr.msk.f32.mxu0 %vm651_vm2, %v2651_v25 }
0x1195   :  { %12328 = vmatmul.mubr.msk.f32.vlgmr.msra.gmra.mxu0 %vm651_vm2, %v2656_v44 }
0x1196   :  { %12331 = vmatpush3.xpose.msk.msra.mxu0 %vm651_vm2, %v2786_v3  ;;  %12346 = vmatprep.mubr.msk.f32.mxu0 %vm651_vm2, %v2651_v25  ;;  %v14750_v3 = vld [vmem:[#allocation19 + $0xa8] sm:$0xff]  ;;  %v14766_v25 = vld [vmem:[#allocation19 + $0xa0] sm:$0xff] }
0x1197   :  { %12332 = vmatprep.subr.msk.mxu0 %vm651_vm2, %v2785_v27  ;;  %17890 = vst [vmem:[#allocation58_spill] sm:$0xff] %v14750_v3  ;;  %11496 = vmatprep.subr.msk.mxu1 %vm651_vm2, %v14750_v3  ;;  %17892 = vst [vmem:[#allocation60_spill] sm:$0xff] %v14766_v25  ;;  %v14842_v3 = vld [vmem:[#allocation17] sm:$0xff] }
0x1198   :  { %11497 = vmatpush3.xpose.msk.msra.mxu1 %vm651_vm2, %v14754_v34  ;;  %v14834_v34 = vld [vmem:[#allocation19] sm:$0xff]  ;;  %17907 = vst [vmem:[#allocation75_spill] sm:$0xff] %v14842_v3 }
0x1199   :  { %11498 = vmatprep.subr.msk.mxu1 %vm651_vm2, %v14766_v25  ;;  %v14830_v25 = vld [vmem:[#allocation19 + $0x80] sm:$0xff]  ;;  %17905 = vst [vmem:[#allocation73_spill] sm:$0xff] %v14834_v34 }
0x119a   :  { %12333 = vmatpush3.xpose.msk.msra.mxu0 %vm651_vm2, %v2785_v27  ;;  %v14774_v27 = vld [vmem:[#allocation17 + $0xa0] sm:$0xff]  ;;  %17904 = vst [vmem:[#allocation72_spill] sm:$0xff] %v14830_v25 }
0x119b   :  { %12334 = vmatprep.subr.msk.mxu0 %vm651_vm2, %v2784_v31 }
0x119e   :  { %12335 = vmatpush3.xpose.msk.msra.mxu0 %vm651_vm2, %v2784_v31  ;;  %v14778_v31 = vld [vmem:[#allocation17 + $0x20] sm:$0xff] }
0x119f   :  { %12336 = vmatprep.subr.msk.mxu0 %vm651_vm2, %v2783_v33 }
0x11a2   :  { %12337 = vmatpush3.xpose.msk.msra.mxu0 %vm651_vm2, %v2783_v33  ;;  %v14782_v33 = vld [vmem:[#allocation19 + $0x98] sm:$0xff] }
0x11a3   :  { %12338 = vmatprep.subr.msk.mxu0 %vm651_vm2, %v2782_v35  ;;  %17894 = vst [vmem:[#allocation62_spill] sm:$0xff] %v14782_v33 }
0x11a6   :  { %12339 = vmatpush3.xpose.msk.msra.mxu0 %vm651_vm2, %v2782_v35  ;;  %v14786_v35 = vld [vmem:[#allocation19 + $0x18] sm:$0xff] }
0x11a7   :  { %12340 = vmatprep.subr.msk.mxu0 %vm651_vm2, %v2781_v32  ;;  %17895 = vst [vmem:[#allocation63_spill] sm:$0xff] %v14786_v35 }
0x11aa   :  { %12341 = vmatpush3.xpose.msk.msra.mxu0 %vm651_vm2, %v2781_v32  ;;  %v14790_v32 = vld [vmem:[#allocation17 + $0x98] sm:$0xff] }
0x11ab   :  { %12342 = vmatprep.subr.msk.mxu0 %vm651_vm2, %v2780_v29 }
0x11ae   :  { %12343 = vmatpush3.xpose.msk.msra.mxu0 %vm651_vm2, %v2780_v29  ;;  %v14794_v29 = vld [vmem:[#allocation17 + $0x18] sm:$0xff] }
0x11af   :  { %12344 = vmatprep.subr.msk.mxu0 %vm651_vm2, %v2779_v37 }
0x11b2   :  { %12345 = vmatpush3.xpose.msk.msra.mxu0 %vm651_vm2, %v2779_v37  ;;  %v14798_v37 = vld [vmem:[#allocation19 + $0x90] sm:$0xff] }
0x11b3   :  { %12349 = vmatprep.subr.mxu0 %v17613_v8  ;;  %17896 = vst [vmem:[#allocation64_spill] sm:$0xff] %v14798_v37 }
0x11b5   :  { %12347 = vmatmul.mubr.msk.f32.vlgmr.msra.gmra.mxu0 %vm651_vm2, %v2656_v44  ;;  %v14770_v44 = vld [vmem:[#allocation19 + $0x20] sm:$0xff] }
0x11b6   :  { %12350 = vmatpush3.xpose.msra.mxu0 %v14575_v39  ;;  %12361 = vmatprep.mubr.msk.f32.mxu0 %vm13533_vm7, %v17613_v8  ;;  %17893 = vst [vmem:[#allocation61_spill] sm:$0xff] %v14770_v44 }
0x11b7   :  { %12351 = vmatprep.subr.mxu0 %v17613_v8  ;;  %11499 = vmatpush3.xpose.msk.msra.mxu1 %vm651_vm2, %v14770_v44  ;;  %v14816_v44 = vld [vmem:[#allocation19 + $0x8] sm:$0xff] }
0x11b8   :  { %11500 = vmatprep.subr.msk.mxu1 %vm651_vm2, %v14782_v33  ;;  %v14814_v33 = vld [vmem:[#allocation19 + $0x88] sm:$0xff]  ;;  %17901 = vst [vmem:[#allocation69_spill] sm:$0xff] %v14816_v44 }
0x11b9   :  { %17900 = vst [vmem:[#allocation68_spill] sm:$0xff] %v14814_v33 }
0x11ba   :  { %12352 = vmatpush3.xpose.msra.mxu0 %v14582_v41 }
0x11bb   :  { %12353 = vmatprep.subr.mxu0 %v17613_v8  ;;  %11501 = vmatpush3.xpose.msk.msra.mxu1 %vm651_vm2, %v14786_v35  ;;  %v14810_v35 = vld [vmem:[#allocation17 + $0x10] sm:$0xff] }
0x11bc   :  { %11502 = vmatprep.subr.msk.mxu1 %vm651_vm2, %v14798_v37  ;;  %17899 = vst [vmem:[#allocation67_spill] sm:$0xff] %v14810_v35  ;;  %v14818_v37 = vld [vmem:[#allocation17 + $0x88] sm:$0xff] }
0x11bd   :  { %17902 = vst [vmem:[#allocation70_spill] sm:$0xff] %v14818_v37 }
0x11be   :  { %12354 = vmatpush3.xpose.msra.mxu0 %v14586_v43 }
0x11bf   :  { %12355 = vmatprep.subr.mxu0 %v17613_v8  ;;  %11503 = vmatpush3.xpose.msk.msra.mxu1 %vm651_vm2, %v14802_v16  ;;  %v14824_v16 = vld [vmem:[#allocation17 + $0x8] sm:$0xff] }
0x11c0   :  { %11504 = vmatprep.subr.msk.mxu1 %vm651_vm2, %v14814_v33  ;;  %17903 = vst [vmem:[#allocation71_spill] sm:$0xff] %v14824_v16  ;;  %v14838_v33 = vld [vmem:[#allocation17 + $0x80] sm:$0xff] }
0x11c1   :  { %17906 = vst [vmem:[#allocation74_spill] sm:$0xff] %v14838_v33 }
0x11c2   :  { %12356 = vmatpush3.xpose.msra.mxu0 %v14590_v47 }
0x11c3   :  { %12357 = vmatprep.subr.mxu0 %v17613_v8  ;;  %11505 = vmatpush3.xpose.msk.msra.mxu1 %vm651_vm2, %v14816_v44  ;;  %v17908_v44 = vmov 0.0  }
0x11c4   :  { %11506 = vmatprep.subr.msk.mxu1 %vm651_vm2, %v14830_v25 }
0x11c6   :  { %12358 = vmatpush3.xpose.msra.mxu0 %v14594_v49 }
0x11c7   :  { %12359 = vmatprep.subr.mxu0 %v17613_v8  ;;  %11507 = vmatpush3.xpose.msk.msra.mxu1 %vm651_vm2, %v14834_v34  ;;  %v13534_v34 = vmov 1983009808  }
0x11c8   :  { %12364 = vmatprep.subr.mxu1 %v17908_v44  ;;  %v2897_v25 = vunpack.c.l.s4 %v13534_v34 }
0x11ca   :  { %12360 = vmatpush3.xpose.msra.mxu0 %v14598_v51  ;;  %11509 = vmatmul.mubr.f32.vlgmr.msra.gmra.mxu1 %v17908_v44  ;;  %v2898_v62 = vunpack.c.0.s8 %v2897_v25  ;;  %v2943_v25 = vsub.s32 %v2940_v11, %v14062_v17 }
0x11cb   :  { %11510 = vmatprep.subr.msk.mxu0 %vm439_vm1, %v14600_v53  ;;  %12380 = vmatprep.mubr.msk.f32.mxu1 %vm13533_vm7, %v17908_v44 }
0x11cc   :  { %v14852_v24 = vsub.s32 %v2898_v62, %v14062_v17 }
0x11cd   :  { %12362 = vmatmul.mubr.f32.vlgmr.msra.gmra.mxu0 %v17613_v8  ;;  %v14806_v8 = vld [vmem:[#allocation17 + $0x90] sm:$0xff] }
0x11ce   :  { %11511 = vmatpush3.xpose.msk.msra.mxu0 %vm439_vm1, %v14605_v54  ;;  %17898 = vst [vmem:[#allocation66_spill] sm:$0xff] %v14806_v8 }
0x11cf   :  { %11512 = vmatprep.subr.msk.mxu0 %vm439_vm1, %v14614_v56 }
0x11d2   :  { %11513 = vmatpush3.xpose.msk.msra.mxu0 %vm439_vm1, %v14618_v57 }
0x11d3   :  { %11514 = vmatprep.subr.msk.mxu0 %vm439_vm1, %v14630_v18 }
0x11d6   :  { %11515 = vmatpush3.xpose.msk.msra.mxu0 %vm439_vm1, %v14634_v28 }
0x11d7   :  { %11516 = vmatprep.subr.msk.mxu0 %vm439_vm1, %v14646_v46 }
0x11da   :  { %11517 = vmatpush3.xpose.msk.msra.mxu0 %vm439_vm1, %v14650_v48 }
0x11db   :  { %11518 = vmatprep.subr.msk.mxu0 %vm439_vm1, %v14662_v0 }
0x11de   :  { %11519 = vmatpush3.xpose.msk.msra.mxu0 %vm439_vm1, %v14666_v2 }
0x11df   :  { %11520 = vmatprep.subr.msk.mxu0 %vm439_vm1, %v14678_v9 }
0x11e2   :  { %11521 = vmatpush3.xpose.msk.msra.mxu0 %vm439_vm1, %v14682_v10 }
0x11e3   :  { %11522 = vmatprep.subr.msk.mxu0 %vm439_vm1, %v14690_v13 }
0x11e6   :  { %11523 = vmatpush3.xpose.msk.msra.mxu0 %vm439_vm1, %v14696_v15 }
0x11e7   :  { %11524 = vmatprep.subr.msk.mxu0 %vm439_vm1, %v14702_v22 }
0x11ea   :  { %11525 = vmatpush3.xpose.msk.msra.mxu0 %vm439_vm1, %v14714_v14 }
0x11eb   :  { %11526 = vmatprep.subr.msk.mxu0 %vm439_vm1, %v14718_v58 }
0x11ee   :  { %11527 = vmatpush3.xpose.msk.msra.mxu0 %vm439_vm1, %v14728_v60 }
0x11ef   :  { %11528 = vmatprep.subr.msk.mxu0 %vm439_vm1, %v14742_v63 }
0x11f2   :  { %11529 = vmatpush3.xpose.msk.msra.mxu0 %vm439_vm1, %v14746_v1 }
0x11f3   :  { %11530 = vmatprep.subr.msk.mxu0 %vm439_vm1, %v14758_v21 }
0x11f6   :  { %11531 = vmatpush3.xpose.msk.msra.mxu0 %vm439_vm1, %v14762_v23 }
0x11f7   :  { %11532 = vmatprep.subr.msk.mxu0 %vm439_vm1, %v14774_v27 }
0x11fa   :  { %11533 = vmatpush3.xpose.msk.msra.mxu0 %vm439_vm1, %v14778_v31 }
0x11fb   :  { %11534 = vmatprep.subr.msk.mxu0 %vm439_vm1, %v14790_v32 }
0x11fe   :  { %11535 = vmatpush3.xpose.msk.msra.mxu0 %vm439_vm1, %v14794_v29 }
0x11ff   :  { %11536 = vmatprep.subr.msk.mxu0 %vm439_vm1, %v14806_v8 }
0x1202   :  { %11537 = vmatpush3.xpose.msk.msra.mxu0 %vm439_vm1, %v14810_v35 }
0x1203   :  { %11538 = vmatprep.subr.msk.mxu0 %vm439_vm1, %v14818_v37 }
0x1206   :  { %11539 = vmatpush3.xpose.msk.msra.mxu0 %vm439_vm1, %v14824_v16 }
0x1207   :  { %11540 = vmatprep.subr.msk.mxu0 %vm439_vm1, %v14838_v33 }
0x120a   :  { %11541 = vmatpush3.xpose.msk.msra.mxu0 %vm439_vm1, %v14842_v3 }
0x120b   :  { %12383 = vmatprep.subr.mxu0 %v17908_v44 }
0x1255   :  { %v12329_v20 = vpop.f32.mrf.mxu0 }
0x1256   :  { %v2776_v12 = vadd.f32 %v12329_v20, %v10345_v61 }
0x1257   :  { %v2770_v6 = vpop.f32.mrf.mxu0 }
0x1258   :  { %v2912_v4 = vcombine.high %v2776_v12, %v2776_v12  ;;  %v2919_v52 = vrot.slane %v2776_v12, %v14852_v24  ;;  %v2771_v50 = vadd.f32 %v10345_v61, %v2770_v6 }
0x125a   :  { %v2926_v38 = vrot.slane %v2912_v4, %v14852_v24  ;;  %v2927_v45 = vcombine.high %v2919_v52, %v2919_v52  ;;  %v2895_v42 = vcombine.high %v2771_v50, %v2771_v50  ;;  %v2902_v34 = vrot.slane %v2771_v50, %v14852_v24 }
0x125c   :  { %v2928_v59 = vcombine.high %v2926_v38, %v2926_v38  ;;  %v2955_v36 = vcombine.low %v2919_v52, %v2927_v45  ;;  %v2909_v62 = vrot.slane %v2895_v42, %v14852_v24  ;;  %v2910_v55 = vcombine.high %v2902_v34, %v2902_v34 }
0x125e   :  { %v2964_v20 = vcombine.low %v2926_v38, %v2928_v59  ;;  %v2911_v30 = vcombine.high %v2909_v62, %v2909_v62  ;;  %v2937_v26 = vcombine.low %v2902_v34, %v2910_v55  ;;  %v2962_v7 = vrot.slane %v2955_v36, %v2943_v25 }
0x1260   :  { %v2971_v3 = vrot.slane %v2964_v20, %v2943_v25  ;;  %v2946_v12 = vcombine.low %v2909_v62, %v2911_v30  ;;  %v2944_v4 = vrot.slane %v2937_v26, %v2943_v25 }
0x1262   :  { %v3738_v6 = vcombine.low %v2962_v7, %v2971_v3  ;;  %v10445_v61 = vcombine.high %v2962_v7, %v2971_v3  ;;  %v2953_v33 = vrot.slane %v2946_v12, %v2943_v25  ;;  %v10356_v7 = vld [vmem:[%s17605_s19] ss:$0 sm:$0xff] }
0x1264   :  { %v3737_v16 = vcombine.low %v2944_v4, %v2953_v33  ;;  %v10444_v37 = vcombine.high %v2944_v4, %v2953_v33  ;;  %v3752_v50 = vrot.slane %v3738_v6, %v14852_v24  ;;  %v3769_v11 = vrot.slane %v10445_v61, %v14852_v24 }
0x1266   :  { %v3745_v45 = vrot.slane %v3737_v16, %v14852_v24  ;;  %v3762_v42 = vrot.slane %v10444_v37, %v14852_v24 }
0x1268   :  { %v14863_v38 = vcombine.low %v3745_v45, %v3752_v50  ;;  %v14865_v55 = vcombine.low %v3762_v42, %v3769_v11 }
0x126a   :  { %17909 = vst [vmem:[#allocation76_spill] sm:$0xff] %v14863_v38  ;;  %17910 = vst [vmem:[#allocation77_spill] sm:$0xff] %v14865_v55 }
0x1275   :  { %v12348_v26 = vpop.f32.mrf.mxu0 }
0x1276   :  { %v2890_v36 = vadd.f32 %v12348_v26, %v10356_v7 }
0x1277   :  { %v2884_v52 = vpop.f32.mrf.mxu0 }
0x1278   :  { %v2992_v3 = vcombine.high %v2890_v36, %v2890_v36  ;;  %v2999_v33 = vrot.slane %v2890_v36, %v14852_v24  ;;  %v2885_v34 = vadd.f32 %v10356_v7, %v2884_v52 }
0x127a   :  { %v3006_v59 = vrot.slane %v2992_v3, %v14852_v24  ;;  %v3007_v16 = vcombine.high %v2999_v33, %v2999_v33  ;;  %v2975_v62 = vcombine.high %v2885_v34, %v2885_v34  ;;  %v2982_v37 = vrot.slane %v2885_v34, %v14852_v24 }
0x127c   :  { %v3008_v20 = vcombine.high %v3006_v59, %v3006_v59  ;;  %v3035_v30 = vcombine.low %v2999_v33, %v3007_v16  ;;  %v2989_v12 = vrot.slane %v2975_v62, %v14852_v24  ;;  %v2990_v6 = vcombine.high %v2982_v37, %v2982_v37 }
0x127e   :  { %v3042_v61 = vrot.slane %v3035_v30, %v2943_v25  ;;  %v3044_v4 = vcombine.low %v3006_v59, %v3008_v20  ;;  %v2991_v50 = vcombine.high %v2989_v12, %v2989_v12  ;;  %v3017_v11 = vcombine.low %v2982_v37, %v2990_v6  ;;  %v14882_v37 = vld [vmem:[#allocation16] ss:$0 sm:$0xff] }
0x1280   :  { %v3051_v45 = vrot.slane %v3044_v4, %v2943_v25  ;;  %v3024_v42 = vrot.slane %v3017_v11, %v2943_v25  ;;  %v3026_v26 = vcombine.low %v2989_v12, %v2991_v50 }
0x1282   :  { %v3835_v36 = vcombine.low %v3042_v61, %v3051_v45  ;;  %v10447_v7 = vcombine.high %v3042_v61, %v3051_v45  ;;  %v3033_v52 = vrot.slane %v3026_v26, %v2943_v25 }
0x1284   :  { %v3849_v3 = vrot.slane %v3835_v36, %v14852_v24  ;;  %v3866_v35 = vrot.slane %v10447_v7, %v14852_v24  ;;  %v3834_v34 = vcombine.low %v3024_v42, %v3033_v52  ;;  %v10446_v8 = vcombine.high %v3024_v42, %v3033_v52 }
0x1286   :  { %v3842_v33 = vrot.slane %v3834_v34, %v14852_v24  ;;  %v3859_v16 = vrot.slane %v10446_v8, %v14852_v24  ;;  %v3061_v8 = vld [vmem:[%s17599_s13] sm:$0x3] }
0x1287   :  { %v14893_v24 = vrot.slane %v3061_v8, %v14065_v19  ;;  %v14897_v26 = vrot.slane %v3061_v8, %v14074_v40  ;;  %v14921_v8 = vld [vmem:[#allocation20 + $0x18] sm:$0xff] }
0x1288   :  { %v14878_v62 = vcombine.low %v3842_v33, %v3849_v3  ;;  %v14880_v59 = vcombine.low %v3859_v16, %v3866_v35 }
0x1289   :  { %17911 = vst [vmem:[#allocation78_spill] sm:$0xff] %v14893_v24  ;;  %17912 = vst [vmem:[#allocation79_spill] sm:$0xff] %v14897_v26 }
0x128a   :  { %v3390_v35 = vpop.f32.mrf.mxu1 }
0x128c   :  { %v3392_v42 = vpop.f32.mrf.mxu1 }
0x128d   :  { %v3159_v20 = vpop.f32.mrf.mxu0 }
0x128e   :  { %v3160_v30 = vadd.f32 %v14882_v37, %v3159_v20  ;;  %v14901_v20 = vld [vmem:[#allocation20 + $0x38] sm:$0xff] }
0x128f   :  { %v12363_v25 = vpop.f32.mrf.mxu0  ;;  %12365 = vmatpush3.xpose.msk.msra.mxu1 %vm651_vm2, %v14901_v20 }
0x1290   :  { %v3163_v12 = vmax.f32 %v3160_v30, 0.0  ;;  %12366 = vmatprep.subr.mxu1 %v17908_v44  ;;  %v14906_v30 = vld [vmem:[#allocation20 + $0x30] sm:$0xff]  ;;  %v14911_v25 = vld [vmem:[#allocation20 + $0x28] sm:$0xff] }
0x1292   :  { %11542 = vmatprep.mubr.msk.f32.mxu0 %vm439_vm1, %v3163_v12 }
0x1293   :  { %11543 = vmatmul.mubr.msk.f32.vlgmr.msra.gmra.mxu0 %vm439_vm1, %v3163_v12  ;;  %12367 = vmatpush3.xpose.msk.msra.mxu1 %vm651_vm2, %v14906_v30  ;;  %v14916_v12 = vld [vmem:[#allocation20 + $0x20] sm:$0xff] }
0x1294   :  { %12415 = vmatprep.mubr.msk.f32.mxu0 %vm13533_vm7, %v17908_v44  ;;  %12368 = vmatprep.subr.mxu1 %v17908_v44 }
0x1297   :  { %12369 = vmatpush3.xpose.msk.msra.mxu1 %vm651_vm2, %v14911_v25 }
0x1298   :  { %12370 = vmatprep.subr.mxu1 %v17908_v44 }
0x129b   :  { %12371 = vmatpush3.xpose.msk.msra.mxu1 %vm651_vm2, %v14916_v12 }
0x129c   :  { %12372 = vmatprep.subr.mxu1 %v17908_v44 }
0x129f   :  { %12373 = vmatpush3.xpose.msk.msra.mxu1 %vm651_vm2, %v14921_v8 }
0x12a0   :  { %12374 = vmatprep.subr.mxu1 %v17908_v44 }
0x1353   :  { %v3560_v6 = vpop.f32.mrf.mxu0 }
0x1354   :  { %v3561_v61 = vadd.f32 %v3560_v6, %v3390_v35  ;;  %v14926_v35 = vld [vmem:[#allocation20 + $0x10] sm:$0xff]  ;;  %v14931_v6 = vld [vmem:[#allocation20 + $0x8] sm:$0xff] }
0x1355   :  { %v3562_v45 = vpop.f32.mrf.mxu0  ;;  %12375 = vmatpush3.xpose.msk.msra.mxu1 %vm651_vm2, %v14926_v35 }
0x1356   :  { %v3565_v4 = vadd.f32 %v3561_v61, %v14893_v24  ;;  %v3563_v36 = vadd.f32 %v3562_v45, %v3392_v42  ;;  %12376 = vmatprep.subr.mxu1 %v17908_v44  ;;  %v14936_v61 = vld [vmem:[#allocation20] sm:$0xff] }
0x1358   :  { %v3567_v50 = vsub.f32 0.0, %v3565_v4  ;;  %v3566_v7 = vadd.f32 %v3563_v36, %v14897_v26 }
0x1359   :  { %12377 = vmatpush3.xpose.msk.msra.mxu1 %vm651_vm2, %v14931_v6 }
0x135a   :  { %v3568_v11 = vmul.f32 1.442695, %v3567_v50  ;;  %12378 = vmatprep.subr.mxu1 %v17908_v44  ;;  %v3574_v4 = vsub.f32 0.0, %v3566_v7 }
0x135c   :  { %13037 = vpow2.f32 %v3568_v11  ;;  %v3575_v50 = vmul.f32 1.442695, %v3574_v4 }
0x135d   :  { %13039 = vtanh.f32 %v3566_v7  ;;  %12379 = vmatpush3.xpose.msk.msra.mxu1 %vm651_vm2, %v14936_v61 }
0x135e   :  { %12418 = vmatprep.subr.mxu1 %v17908_v44 }
0x1369   :  { %v13038_v52 = vpop.eup %13037 }
0x136a   :  { %v3570_v3 = vadd.f32 1.0, %v13038_v52  ;;  %v13040_v34 = vpop.eup %13039 }
0x136c   :  { %13041 = vrcp.f32 %v3570_v3 }
0x136d   :  { %13043 = vpow2.f32 %v3575_v50 }
0x1379   :  { %v13042_v33 = vpop.eup %13041 }
0x137a   :  { %v3581_v16 = vmul.f32 %v13042_v33, %v13040_v34  ;;  %v13044_v11 = vpop.eup %13043  ;;  %v3580_v42 = vmul.f32 0.0, %v13042_v33  ;;  %v14964_v33 = vld [vmem:[#allocation22] ss:$0 sm:$0xff] }
0x137b   :  { %v3577_v45 = vadd.f32 1.0, %v13044_v11  ;;  %17914 = vst [vmem:[#allocation81_spill] sm:$0xff] %v14964_v33 }
0x137c   :  { %3583 = vrot.lane.b32.xlu1 %v3581_v16, %s13532_s28 }
0x137d   :  { %13045 = vrcp.f32 %v3577_v45 }
0x138a   :  { %v13046_v3 = vpop.eup %13045 }
0x13ee   :  { %v3584_v36 = vpop.permute.xlu1 %3583 }
0x13ef   :  { %v14941_v52 = vadd.f32 %v3584_v36, %v3580_v42 }
0x13f1   :  { %17913 = vst [vmem:[#allocation80_spill] sm:$0xff] %v14941_v52  ;;  %13047 = vtanh.f32 %v14941_v52 }
0x13fe   :  { %v13048_v34 = vpop.eup %13047 }
0x13ff   :  { %v3588_v16 = vmul.f32 %v13048_v34, %v13046_v3 }
0x1401   :  { %3598 = vrot.lane.b32.xlu0 %v3588_v16, %s13532_s28 }
0x1473   :  { %v14945_v26 = vpop.permute.xlu0 %3598 }
0x1474   :  { %12381 = vmatmul.mubr.msk.f32.vlgmr.msra.gmra.mxu1 %vm651_vm2, %v14945_v26 }
0x1475   :  { %12419 = vmatpush3.xpose.msra.mxu1 %v14575_v39  ;;  %12430 = vmatprep.mubr.msk.f32.mxu1 %vm13533_vm7, %v17908_v44  ;;  %v13536_v39 = vmov 1966171168  }
0x1476   :  { %12420 = vmatprep.subr.mxu1 %v17908_v44 }
0x1479   :  { %12421 = vmatpush3.xpose.msra.mxu1 %v14582_v41  ;;  %v3698_v41 = vunpack.c.l.s4 %v13536_v39  ;;  %v17916_v39 = vlaneseq }
0x147a   :  { %12422 = vmatprep.subr.mxu1 %v17908_v44 }
0x147b   :  { %v3699_v7 = vunpack.c.0.s8 %v3698_v41  ;;  %v3787_v41 = vand.u32 127, %v17916_v39 }
0x147d   :  { %12423 = vmatpush3.xpose.msra.mxu1 %v14586_v43  ;;  %v14967_v43 = vsub.s32 %v3699_v7, %v14062_v17 }
0x147e   :  { %12424 = vmatprep.subr.mxu1 %v17908_v44 }
0x147f   :  { %17915 = vst [vmem:[#allocation82_spill] sm:$0xff] %v14967_v43 }
0x1481   :  { %12425 = vmatpush3.xpose.msra.mxu1 %v14590_v47 }
0x1482   :  { %12426 = vmatprep.subr.mxu1 %v17908_v44 }
0x1485   :  { %12427 = vmatpush3.xpose.msra.mxu1 %v14594_v49 }
0x1486   :  { %12428 = vmatprep.subr.mxu1 %v17908_v44 }
0x1489   :  { %12429 = vmatpush3.xpose.msra.mxu1 %v14598_v51 }
0x148a   :  { %11577 = vmatprep.subr.msk.mxu1 %vm651_vm2, %v14523_v5 }
0x1534   :  { %v3692_v47 = vpop.f32.mrf.mxu1 }
0x1535   :  { %v3693_v4 = vadd.f32 %v14964_v33, %v3692_v47  ;;  %v14981_v47 = vsub.s32 %v3787_v41, %v14062_v17  ;;  %v14996_v41 = vld [vmem:[#allocation26 + $0x78] sm:$0xff]  ;;  %v15077_v33 = vld [vmem:[#allocation26] sm:$0xff] }
0x1536   :  { %v12382_v50 = vpop.f32.mrf.mxu1  ;;  %12384 = vmatpush3.xpose.msk.msra.mxu0 %vm651_vm2, %v14996_v41  ;;  %17927 = vst [vmem:[#allocation92_spill] sm:$0xff] %v15077_v33 }
0x1537   :  { %v3703_v49 = vrot.slane %v3693_v4, %v14967_v43  ;;  %17917 = vst [vmem:[#allocation83_spill] sm:$0xff] %v14981_v47  ;;  %12385 = vmatprep.subr.mxu0 %v17908_v44 }
0x1539   :  { %v3704_v11 = vcombine.high %v3703_v49, %v3703_v49  ;;  %v3711_v51 = vrot.slane %v3703_v49, %v14967_v43  ;;  %v14986_v49 = vld [vmem:[%s17918_s17] sm:$0x3] }
0x153a   :  { %17919 = vst [vmem:[#allocation84_spill] sm:$0xff] %v14986_v49  ;;  %vm3783_vm9 = vcmp.gt.f32.partialorder %v14986_v49, 0.5  ;;  %v15061_v49 = vld [vmem:[#allocation26 + $0x10] sm:$0xff] }
0x153b   :  { %v3722_v45 = vrot.slane %v3711_v51, %v14065_v19  ;;  %v3718_v5 = vrot.slane %v3704_v11, %v14967_v43  ;;  %17925 = vst [vmem:[#allocation90_spill] sm:$0xff] %v15061_v49 }
0x153d   :  { %v3773_v42 = vmul.f32 %v14863_v38, %v3722_v45  ;;  %v3726_v36 = vrot.slane %v3718_v5, %v14065_v19 }
0x153f   :  { %v3775_v3 = vsel %vm651_vm2, %v3773_v42, 0.0  ;;  %v3774_v34 = vmul.f32 %v14865_v55, %v3726_v36  ;;  %v15066_v55 = vld [vmem:[#allocation26 + $0x8] sm:$0xff] }
0x1540   :  { %3776 = vadd.xlane.f32.xlu1 %v3775_v3  ;;  %17926 = vst [vmem:[#allocation91_spill] sm:$0xff] %v15066_v55 }
0x1541   :  { %v3778_v16 = vsel %vm651_vm2, %v3774_v34, 0.0 }
0x1542   :  { %3779 = vadd.xlane.f32.xlu0 %v3778_v16 }
0x15c9   :  { %v3777_v7 = vpop.xlane.xlu1 %3776 }
0x15ca   :  { %v3781_v4 = vmul.f32 0.125, %v3777_v7  ;;  %v15001_v7 = vld [vmem:[#allocation26 + $0x70] sm:$0xff] }
0x15cb   :  { %v3780_v50 = vpop.xlane.xlu0 %3779  ;;  %12386 = vmatpush3.xpose.msk.msra.mxu0 %vm651_vm2, %v15001_v7 }
0x15cc   :  { %v3782_v11 = vmul.f32 0.125, %v3780_v50  ;;  %v3791_v51 = vrot.slane %v3781_v4, %v14981_v47  ;;  %12387 = vmatprep.subr.mxu0 %v17908_v44  ;;  %v15006_v4 = vld [vmem:[#allocation26 + $0x68] sm:$0xff]  ;;  %v15011_v50 = vld [vmem:[#allocation26 + $0x60] sm:$0xff] }
0x15ce   :  { %v3795_v45 = vrot.slane %v3782_v11, %v14981_v47  ;;  %v15016_v11 = vld [vmem:[#allocation26 + $0x58] sm:$0xff] }
0x15cf   :  { %12388 = vmatpush3.xpose.msk.msra.mxu0 %vm651_vm2, %v15006_v4 }
0x15d0   :  { %v3797_v5 = vsel %vm3796_vm8, %v3795_v45, %v3791_v51  ;;  %12389 = vmatprep.subr.mxu0 %v17908_v44  ;;  %v15021_v51 = vld [vmem:[#allocation26 + $0x50] sm:$0xff]  ;;  %v15026_v45 = vld [vmem:[#allocation26 + $0x48] sm:$0xff] }
0x15d1   :  { %v3799_v17 = vsel %vm3783_vm9, %v3797_v5, -1e+09  ;;  %v15031_v5 = vld [vmem:[#allocation26 + $0x40] sm:$0xff] }
0x15d2   :  { %v3801_v42 = vsel %vm3800_vm10, %v3799_v17, -inf }
0x15d3   :  { %3802 = vmax.xlane.f32.xlu0 %v3801_v42  ;;  %12390 = vmatpush3.xpose.msk.msra.mxu0 %vm651_vm2, %v15011_v50  ;;  %v15041_v42 = vld [vmem:[#allocation26 + $0x30] sm:$0xff] }
0x15d4   :  { %12391 = vmatprep.subr.mxu0 %v17908_v44  ;;  %17921 = vst [vmem:[#allocation86_spill] sm:$0xff] %v15041_v42 }
0x15d7   :  { %12392 = vmatpush3.xpose.msk.msra.mxu0 %vm651_vm2, %v15016_v11 }
0x15d8   :  { %12393 = vmatprep.subr.mxu0 %v17908_v44 }
0x15db   :  { %12394 = vmatpush3.xpose.msk.msra.mxu0 %vm651_vm2, %v15021_v51 }
0x15dc   :  { %12395 = vmatprep.subr.mxu0 %v17908_v44 }
0x15df   :  { %12396 = vmatpush3.xpose.msk.msra.mxu0 %vm651_vm2, %v15026_v45 }
0x15e0   :  { %12397 = vmatprep.subr.mxu0 %v17908_v44 }
0x15e3   :  { %12398 = vmatpush3.xpose.msk.msra.mxu0 %vm651_vm2, %v15031_v5 }
0x15e4   :  { %12399 = vmatprep.subr.mxu0 %v17908_v44 }
0x165c   :  { %v3803_v36 = vpop.xlane.xlu0 %3802 }
0x165d   :  { %v3804_v3 = vsub.f32 %v3799_v17, %v3803_v36  ;;  %v15036_v17 = vld [vmem:[#allocation26 + $0x38] sm:$0xff]  ;;  %v15046_v36 = vld [vmem:[#allocation26 + $0x28] sm:$0xff] }
0x165e   :  { %17920 = vst [vmem:[#allocation85_spill] sm:$0xff] %v15036_v17  ;;  %12400 = vmatpush3.xpose.msk.msra.mxu0 %vm651_vm2, %v15036_v17  ;;  %17922 = vst [vmem:[#allocation87_spill] sm:$0xff] %v15046_v36 }
0x165f   :  { %v3805_v34 = vmul.f32 1.442695, %v3804_v3  ;;  %12401 = vmatprep.subr.mxu0 %v17908_v44  ;;  %v15051_v3 = vld [vmem:[#allocation26 + $0x20] sm:$0xff] }
0x1660   :  { %17923 = vst [vmem:[#allocation88_spill] sm:$0xff] %v15051_v3 }
0x1661   :  { %13049 = vpow2.f32 %v3805_v34 }
0x1662   :  { %12402 = vmatpush3.xpose.msk.msra.mxu0 %vm651_vm2, %v15041_v42 }
0x1663   :  { %12403 = vmatprep.subr.mxu0 %v17908_v44 }
0x1666   :  { %12404 = vmatpush3.xpose.msk.msra.mxu0 %vm651_vm2, %v15046_v36 }
0x1667   :  { %12405 = vmatprep.subr.mxu0 %v17908_v44 }
0x166a   :  { %12406 = vmatpush3.xpose.msk.msra.mxu0 %vm651_vm2, %v15051_v3 }
0x166b   :  { %12407 = vmatprep.subr.mxu0 %v17908_v44 }
0x166e   :  { %v13050_v16 = vpop.eup %13049 }
0x166f   :  { %v3807_v39 = vsel %vm3800_vm10, %v13050_v16, 0.0 }
0x1670   :  { %3808 = vadd.xlane.f32.xlu1 %v3807_v39  ;;  %v15056_v39 = vld [vmem:[#allocation26 + $0x18] sm:$0xff] }
0x1671   :  { %17924 = vst [vmem:[#allocation89_spill] sm:$0xff] %v15056_v39  ;;  %12408 = vmatpush3.xpose.msk.msra.mxu0 %vm651_vm2, %v15056_v39 }
0x1672   :  { %12409 = vmatprep.subr.mxu0 %v17908_v44 }
0x1675   :  { %12410 = vmatpush3.xpose.msk.msra.mxu0 %vm651_vm2, %v15061_v49 }
0x1676   :  { %12411 = vmatprep.subr.mxu0 %v17908_v44 }
0x1679   :  { %12412 = vmatpush3.xpose.msk.msra.mxu0 %vm651_vm2, %v15066_v55 }
0x167a   :  { %12413 = vmatprep.subr.mxu0 %v17908_v44 }
0x167d   :  { %12414 = vmatpush3.xpose.msk.msra.mxu0 %vm651_vm2, %v15077_v33 }
0x167e   :  { %11611 = vmatprep.subr.msk.mxu0 %vm439_vm1, %v14600_v53 }
0x16f9   :  { %v3809_v34 = vpop.xlane.xlu1 %3808 }
0x16fa   :  { %13051 = vrcp.f32 %v3809_v34 }
0x1707   :  { %v13052_v47 = vpop.eup %13051 }
0x1708   :  { %v3811_v38 = vmul.f32 %v13052_v47, %v13050_v16 }
0x170a   :  { %v3822_v34 = vrot.slane %v3811_v38, %v14074_v40  ;;  %4032 = vst.msk [vmem:[%s17609_s23] sm:$0x3] %vm3800_vm10, %v3811_v38  ;;  %v3815_v43 = vrot.slane %v3811_v38, %v14065_v19 }
0x170c   :  { %3824 = vbcast.lane.b32.xlu1 %v3822_v34, 256  ;;  %3817 = vbcast.lane.b32.xlu0 %v3815_v43, 256 }
0x177e   :  { %v3825_v47 = vpop.permute.xlu1 %3824  ;;  %v3818_v16 = vpop.permute.xlu0 %3817 }
0x177f   :  { %v3871_v40 = vmul.f32 %v14880_v59, %v3825_v47  ;;  %v3870_v52 = vmul.f32 %v14878_v62, %v3818_v16  ;;  %v17962_v16 = vld [vmem:[#allocation68_spill] sm:$0xff] }
0x1781   :  { %v3879_v24 = vsel %vm651_vm2, %v3871_v40, 0.0  ;;  %v3872_v38 = vsel %vm651_vm2, %v3870_v52, 0.0  ;;  %v17929_v40 = vld [vmem:[#allocation67_spill] sm:$0xff]  ;;  %v17954_v52 = vld [vmem:[#allocation58_spill] sm:$0xff] }
0x1782   :  { %v3880_v19 = vrot.slane %v3879_v24, 4  ;;  %v3873_v55 = vrot.slane %v3872_v38, 4 }
0x1784   :  { %v3881_v34 = vadd.f32 %v3880_v19, %v3879_v24  ;;  %v3874_v43 = vadd.f32 %v3873_v55, %v3872_v38  ;;  %v17928_v19 = vld [vmem:[#allocation66_spill] sm:$0xff]  ;;  %v17952_v55 = vld [vmem:[#allocation56_spill] sm:$0xff]  ;;  %v17953_v24 = vld [vmem:[#allocation57_spill] sm:$0xff] }
0x1785   :  { %v17963_v38 = vld [vmem:[#allocation69_spill] sm:$0xff] }
0x1786   :  { %v3882_v49 = vrot.slane %v3881_v34, 2  ;;  %v3875_v39 = vrot.slane %v3874_v43, 2 }
0x1788   :  { %v3883_v33 = vadd.f32 %v3882_v49, %v3881_v34  ;;  %v3876_v3 = vadd.f32 %v3875_v39, %v3874_v43  ;;  %v17956_v49 = vld [vmem:[#allocation60_spill] sm:$0xff]  ;;  %v17961_v39 = vld [vmem:[#allocation65_spill] sm:$0xff] }
0x1789   :  { %v17964_v34 = vld [vmem:[#allocation72_spill] sm:$0xff]  ;;  %v17965_v43 = vld [vmem:[#allocation73_spill] sm:$0xff] }
0x178a   :  { %v3884_v36 = vrot.slane %v3883_v33, 1  ;;  %v3877_v53 = vrot.slane %v3876_v3, 1 }
0x178c   :  { %v3885_v42 = vadd.f32 %v3884_v36, %v3883_v33  ;;  %v3878_v17 = vadd.f32 %v3877_v53, %v3876_v3  ;;  %v17955_v33 = vld [vmem:[#allocation59_spill] sm:$0xff]  ;;  %v17960_v3 = vld [vmem:[#allocation64_spill] sm:$0xff] }
0x178d   :  { %v17959_v36 = vld [vmem:[#allocation63_spill] sm:$0xff] }
0x178e   :  { %v3904_v47 = vsel %vm3796_vm8, %v3885_v42, %v3878_v17  ;;  %v17957_v17 = vld [vmem:[#allocation61_spill] sm:$0xff]  ;;  %v17958_v42 = vld [vmem:[#allocation62_spill] sm:$0xff] }
0x178f   :  { %12416 = vmatmul.mubr.msk.f32.vlgmr.msra.gmra.mxu0 %vm651_vm2, %v3904_v47 }
0x1790   :  { %11612 = vmatpush3.xpose.msk.msra.mxu0 %vm439_vm1, %v14605_v54  ;;  %v17930_v54 = vld [vmem:[#allocation70_spill] sm:$0xff] }
0x1791   :  { %11613 = vmatprep.subr.msk.mxu0 %vm439_vm1, %v14614_v56  ;;  %v17931_v56 = vld [vmem:[#allocation71_spill] sm:$0xff] }
0x1794   :  { %11614 = vmatpush3.xpose.msk.msra.mxu0 %vm439_vm1, %v14618_v57  ;;  %v17932_v57 = vld [vmem:[#allocation74_spill] sm:$0xff] }
0x1795   :  { %11615 = vmatprep.subr.msk.mxu0 %vm439_vm1, %v14630_v18  ;;  %v17933_v18 = vld [vmem:[#allocation75_spill] sm:$0xff] }
0x1798   :  { %11616 = vmatpush3.xpose.msk.msra.mxu0 %vm439_vm1, %v14634_v28  ;;  %v15155_v28 = vld [vmem:[%s17607_s21] ss:$0 sm:$0xff] }
0x1799   :  { %11617 = vmatprep.subr.msk.mxu0 %vm439_vm1, %v14646_v46 }
0x179c   :  { %11618 = vmatpush3.xpose.msk.msra.mxu0 %vm439_vm1, %v14650_v48 }
0x179d   :  { %11619 = vmatprep.subr.msk.mxu0 %vm439_vm1, %v14662_v0 }
0x17a0   :  { %11620 = vmatpush3.xpose.msk.msra.mxu0 %vm439_vm1, %v14666_v2  ;;  %v17935_v2 = vld [vmem:[#allocation39_spill] sm:$0xff] }
0x17a1   :  { %11621 = vmatprep.subr.msk.mxu0 %vm439_vm1, %v14678_v9  ;;  %v17936_v9 = vld [vmem:[#allocation40_spill] sm:$0xff] }
0x17a4   :  { %11622 = vmatpush3.xpose.msk.msra.mxu0 %vm439_vm1, %v14682_v10  ;;  %v17937_v10 = vld [vmem:[#allocation41_spill] sm:$0xff] }
0x17a5   :  { %11623 = vmatprep.subr.msk.mxu0 %vm439_vm1, %v14690_v13  ;;  %v17938_v13 = vld [vmem:[#allocation42_spill] sm:$0xff] }
0x17a8   :  { %11624 = vmatpush3.xpose.msk.msra.mxu0 %vm439_vm1, %v14696_v15  ;;  %v17939_v15 = vld [vmem:[#allocation43_spill] sm:$0xff] }
0x17a9   :  { %11625 = vmatprep.subr.msk.mxu0 %vm439_vm1, %v14702_v22  ;;  %v17940_v22 = vld [vmem:[#allocation44_spill] sm:$0xff] }
0x17ac   :  { %11626 = vmatpush3.xpose.msk.msra.mxu0 %vm439_vm1, %v14714_v14  ;;  %v17941_v14 = vld [vmem:[#allocation45_spill] sm:$0xff] }
0x17ad   :  { %11627 = vmatprep.subr.msk.mxu0 %vm439_vm1, %v14718_v58  ;;  %v17942_v58 = vld [vmem:[#allocation46_spill] sm:$0xff] }
0x17b0   :  { %11628 = vmatpush3.xpose.msk.msra.mxu0 %vm439_vm1, %v14728_v60  ;;  %v17943_v60 = vld [vmem:[#allocation47_spill] sm:$0xff] }
0x17b1   :  { %11629 = vmatprep.subr.msk.mxu0 %vm439_vm1, %v14742_v63  ;;  %v17944_v63 = vld [vmem:[#allocation48_spill] sm:$0xff] }
0x17b4   :  { %11630 = vmatpush3.xpose.msk.msra.mxu0 %vm439_vm1, %v14746_v1  ;;  %v17945_v1 = vld [vmem:[#allocation49_spill] sm:$0xff] }
0x17b5   :  { %11631 = vmatprep.subr.msk.mxu0 %vm439_vm1, %v14758_v21  ;;  %v17946_v21 = vld [vmem:[#allocation50_spill] sm:$0xff] }
0x17b8   :  { %11632 = vmatpush3.xpose.msk.msra.mxu0 %vm439_vm1, %v14762_v23  ;;  %v17947_v23 = vld [vmem:[#allocation51_spill] sm:$0xff] }
0x17b9   :  { %11633 = vmatprep.subr.msk.mxu0 %vm439_vm1, %v14774_v27  ;;  %v17948_v27 = vld [vmem:[#allocation52_spill] sm:$0xff] }
0x17bc   :  { %11634 = vmatpush3.xpose.msk.msra.mxu0 %vm439_vm1, %v14778_v31  ;;  %v17949_v31 = vld [vmem:[#allocation53_spill] sm:$0xff] }
0x17bd   :  { %11635 = vmatprep.subr.msk.mxu0 %vm439_vm1, %v14790_v32  ;;  %v17950_v32 = vld [vmem:[#allocation54_spill] sm:$0xff] }
0x17c0   :  { %11636 = vmatpush3.xpose.msk.msra.mxu0 %vm439_vm1, %v14794_v29  ;;  %v17951_v29 = vld [vmem:[#allocation55_spill] sm:$0xff] }
0x17c1   :  { %11637 = vmatprep.subr.msk.mxu0 %vm439_vm1, %v17928_v19 }
0x17c4   :  { %11638 = vmatpush3.xpose.msk.msra.mxu0 %vm439_vm1, %v17929_v40 }
0x17c5   :  { %11639 = vmatprep.subr.msk.mxu0 %vm439_vm1, %v17930_v54  ;;  %v17975_v54 = vld [vmem:[#allocation79_spill] sm:$0xff] }
0x17c8   :  { %11640 = vmatpush3.xpose.msk.msra.mxu0 %vm439_vm1, %v17931_v56 }
0x17c9   :  { %11641 = vmatprep.subr.msk.mxu0 %vm439_vm1, %v17932_v57 }
0x17cc   :  { %11642 = vmatpush3.xpose.msk.msra.mxu0 %vm439_vm1, %v17933_v18 }
0x17cd   :  { %12452 = vmatprep.subr.mxu0 %v17908_v44 }
0x184f   :  { %v4021_v46 = vpop.f32.mrf.mxu0 }
0x1850   :  { %v15158_v48 = vadd.f32 %v15155_v28, %v4021_v46 }
0x1851   :  { %v12417_v0 = vpop.f32.mrf.mxu0 }
0x1852   :  { %17934 = vst [vmem:[#allocation66_spill] sm:$0xff] %v15158_v48  ;;  %12431 = vmatmul.mubr.f32.vlgmr.msra.gmra.mxu1 %v15158_v48  ;;  %v15550_v48 = vld [vmem:[#allocation19 + $0x48] sm:$0xff] }
0x1853   :  { %11578 = vmatpush3.xpose.msk.msra.mxu1 %vm651_vm2, %v17935_v2  ;;  %11609 = vmatprep.mubr.msk.f32.mxu1 %vm651_vm2, %v14945_v26  ;;  %17999 = vst [vmem:[#allocation48_spill] sm:$0xff] %v15550_v48 }
0x1854   :  { %11579 = vmatprep.subr.msk.mxu1 %vm651_vm2, %v17936_v9 }
0x1857   :  { %11580 = vmatpush3.xpose.msk.msra.mxu1 %vm651_vm2, %v17937_v10 }
0x1858   :  { %11581 = vmatprep.subr.msk.mxu1 %vm651_vm2, %v17938_v13 }
0x185b   :  { %11582 = vmatpush3.xpose.msk.msra.mxu1 %vm651_vm2, %v17939_v15 }
0x185c   :  { %11583 = vmatprep.subr.msk.mxu1 %vm651_vm2, %v17940_v22  ;;  %v17976_v22 = vld [vmem:[#allocation80_spill] sm:$0xff] }
0x185f   :  { %11584 = vmatpush3.xpose.msk.msra.mxu1 %vm651_vm2, %v17941_v14 }
0x1860   :  { %11585 = vmatprep.subr.msk.mxu1 %vm651_vm2, %v17942_v58 }
0x1863   :  { %11586 = vmatpush3.xpose.msk.msra.mxu1 %vm651_vm2, %v17943_v60 }
0x1864   :  { %11587 = vmatprep.subr.msk.mxu1 %vm651_vm2, %v17944_v63 }
0x1867   :  { %11588 = vmatpush3.xpose.msk.msra.mxu1 %vm651_vm2, %v17945_v1 }
0x1868   :  { %11589 = vmatprep.subr.msk.mxu1 %vm651_vm2, %v17946_v21 }
0x186b   :  { %11590 = vmatpush3.xpose.msk.msra.mxu1 %vm651_vm2, %v17947_v23 }
0x186c   :  { %11591 = vmatprep.subr.msk.mxu1 %vm651_vm2, %v17948_v27 }
0x186f   :  { %11592 = vmatpush3.xpose.msk.msra.mxu1 %vm651_vm2, %v17949_v31  ;;  %v17977_v31 = vld [vmem:[#allocation81_spill] sm:$0xff] }
0x1870   :  { %11593 = vmatprep.subr.msk.mxu1 %vm651_vm2, %v17950_v32 }
0x1873   :  { %11594 = vmatpush3.xpose.msk.msra.mxu1 %vm651_vm2, %v17951_v29 }
0x1874   :  { %11595 = vmatprep.subr.msk.mxu1 %vm651_vm2, %v17952_v55  ;;  %v17978_v55 = vld [vmem:[#allocation82_spill] sm:$0xff] }
0x1877   :  { %11596 = vmatpush3.xpose.msk.msra.mxu1 %vm651_vm2, %v17953_v24 }
0x1878   :  { %11597 = vmatprep.subr.msk.mxu1 %vm651_vm2, %v17954_v52 }
0x187b   :  { %11598 = vmatpush3.xpose.msk.msra.mxu1 %vm651_vm2, %v17955_v33 }
0x187c   :  { %11599 = vmatprep.subr.msk.mxu1 %vm651_vm2, %v17956_v49  ;;  %v17979_v49 = vld [vmem:[#allocation37_spill] sm:$0xff] }
0x187f   :  { %11600 = vmatpush3.xpose.msk.msra.mxu1 %vm651_vm2, %v17957_v17 }
0x1880   :  { %11601 = vmatprep.subr.msk.mxu1 %vm651_vm2, %v17958_v42 }
0x1883   :  { %11602 = vmatpush3.xpose.msk.msra.mxu1 %vm651_vm2, %v17959_v36  ;;  %v17980_v36 = vld [vmem:[#allocation76_spill] sm:$0xff] }
0x1884   :  { %11603 = vmatprep.subr.msk.mxu1 %vm651_vm2, %v17960_v3 }
0x1887   :  { %11604 = vmatpush3.xpose.msk.msra.mxu1 %vm651_vm2, %v17961_v39 }
0x1888   :  { %11605 = vmatprep.subr.msk.mxu1 %vm651_vm2, %v17962_v16 }
0x188b   :  { %11606 = vmatpush3.xpose.msk.msra.mxu1 %vm651_vm2, %v17963_v38  ;;  %v17981_v38 = vld [vmem:[#allocation77_spill] sm:$0xff] }
0x188c   :  { %11607 = vmatprep.subr.msk.mxu1 %vm651_vm2, %v17964_v34 }
0x188f   :  { %11608 = vmatpush3.xpose.msk.msra.mxu1 %vm651_vm2, %v17965_v43 }
0x1890   :  { %12433 = vmatprep.subr.mxu1 %v17908_v44 }
0x1892   :  { %11610 = vmatmul.mubr.msk.f32.vlgmr.msra.gmra.mxu1 %vm651_vm2, %v14945_v26 }
0x1893   :  { %12434 = vmatpush3.xpose.msk.msra.mxu1 %vm651_vm2, %v14901_v20  ;;  %12449 = vmatprep.mubr.msk.f32.mxu1 %vm13533_vm7, %v17908_v44 }
0x1894   :  { %12435 = vmatprep.subr.mxu1 %v17908_v44 }
0x1897   :  { %12436 = vmatpush3.xpose.msk.msra.mxu1 %vm651_vm2, %v14906_v30 }
0x1898   :  { %12437 = vmatprep.subr.mxu1 %v17908_v44 }
0x189b   :  { %12438 = vmatpush3.xpose.msk.msra.mxu1 %vm651_vm2, %v14911_v25 }
0x189c   :  { %12439 = vmatprep.subr.mxu1 %v17908_v44 }
0x189f   :  { %12440 = vmatpush3.xpose.msk.msra.mxu1 %vm651_vm2, %v14916_v12  ;;  %v17967_v12 = vld [vmem:[#allocation86_spill] sm:$0xff] }
0x18a0   :  { %12441 = vmatprep.subr.mxu1 %v17908_v44 }
0x18a3   :  { %12442 = vmatpush3.xpose.msk.msra.mxu1 %vm651_vm2, %v14921_v8  ;;  %v17968_v8 = vld [vmem:[#allocation87_spill] sm:$0xff] }
0x18a4   :  { %12443 = vmatprep.subr.mxu1 %v17908_v44 }
0x18a7   :  { %12444 = vmatpush3.xpose.msk.msra.mxu1 %vm651_vm2, %v14926_v35  ;;  %v17969_v35 = vld [vmem:[#allocation88_spill] sm:$0xff] }
0x18a8   :  { %12445 = vmatprep.subr.mxu1 %v17908_v44 }
0x18ab   :  { %12446 = vmatpush3.xpose.msk.msra.mxu1 %vm651_vm2, %v14931_v6  ;;  %v17970_v6 = vld [vmem:[#allocation89_spill] sm:$0xff] }
0x18ac   :  { %12447 = vmatprep.subr.mxu1 %v17908_v44 }
0x18af   :  { %12448 = vmatpush3.xpose.msk.msra.mxu1 %vm651_vm2, %v14936_v61  ;;  %v17971_v61 = vld [vmem:[#allocation90_spill] sm:$0xff] }
0x18b0   :  { %12487 = vmatprep.subr.mxu1 %v17908_v44 }
0x1912   :  { %v4105_v26 = vpop.f32.mrf.mxu1 }
0x1913   :  { %v4106_v20 = vadd.f32 %v14882_v37, %v4105_v26  ;;  %v17966_v37 = vld [vmem:[#allocation85_spill] sm:$0xff] }
0x1914   :  { %v12432_v30 = vpop.f32.mrf.mxu1 }
0x1915   :  { %v4109_v25 = vmax.f32 %v4106_v20, 0.0 }
0x1917   :  { %11643 = vmatprep.mubr.msk.f32.mxu0 %vm439_vm1, %v4109_v25 }
0x1918   :  { %11644 = vmatmul.mubr.msk.f32.vlgmr.msra.gmra.mxu0 %vm439_vm1, %v4109_v25 }
0x1919   :  { %12453 = vmatpush3.xpose.msk.msra.mxu0 %vm651_vm2, %v14996_v41  ;;  %12484 = vmatprep.mubr.msk.f32.mxu0 %vm13533_vm7, %v17908_v44  ;;  %v17972_v41 = vld [vmem:[#allocation91_spill] sm:$0xff] }
0x191a   :  { %12454 = vmatprep.subr.mxu0 %v17908_v44 }
0x191d   :  { %12455 = vmatpush3.xpose.msk.msra.mxu0 %vm651_vm2, %v15001_v7  ;;  %v17973_v7 = vld [vmem:[#allocation92_spill] sm:$0xff] }
0x191e   :  { %12456 = vmatprep.subr.mxu0 %v17908_v44 }
0x1921   :  { %12457 = vmatpush3.xpose.msk.msra.mxu0 %vm651_vm2, %v15006_v4 }
0x1922   :  { %12458 = vmatprep.subr.mxu0 %v17908_v44 }
0x1925   :  { %12459 = vmatpush3.xpose.msk.msra.mxu0 %vm651_vm2, %v15011_v50 }
0x1926   :  { %12460 = vmatprep.subr.mxu0 %v17908_v44 }
0x1929   :  { %12461 = vmatpush3.xpose.msk.msra.mxu0 %vm651_vm2, %v15016_v11 }
0x192a   :  { %12462 = vmatprep.subr.mxu0 %v17908_v44 }
0x192d   :  { %12463 = vmatpush3.xpose.msk.msra.mxu0 %vm651_vm2, %v15021_v51  ;;  %v17974_v51 = vld [vmem:[#allocation78_spill] sm:$0xff] }
0x192e   :  { %12464 = vmatprep.subr.mxu0 %v17908_v44 }
0x1931   :  { %12465 = vmatpush3.xpose.msk.msra.mxu0 %vm651_vm2, %v15026_v45 }
0x1932   :  { %12466 = vmatprep.subr.mxu0 %v17908_v44 }
0x1935   :  { %12467 = vmatpush3.xpose.msk.msra.mxu0 %vm651_vm2, %v15031_v5 }
0x1936   :  { %12468 = vmatprep.subr.mxu0 %v17908_v44 }
0x1939   :  { %12469 = vmatpush3.xpose.msk.msra.mxu0 %vm651_vm2, %v17966_v37  ;;  %v17982_v37 = vld [vmem:[#allocation83_spill] sm:$0xff] }
0x193a   :  { %12470 = vmatprep.subr.mxu0 %v17908_v44 }
0x193d   :  { %12471 = vmatpush3.xpose.msk.msra.mxu0 %vm651_vm2, %v17967_v12 }
0x193e   :  { %12472 = vmatprep.subr.mxu0 %v17908_v44 }
0x1941   :  { %12473 = vmatpush3.xpose.msk.msra.mxu0 %vm651_vm2, %v17968_v8 }
0x1942   :  { %12474 = vmatprep.subr.mxu0 %v17908_v44 }
0x1945   :  { %12475 = vmatpush3.xpose.msk.msra.mxu0 %vm651_vm2, %v17969_v35 }
0x1946   :  { %12476 = vmatprep.subr.mxu0 %v17908_v44 }
0x1949   :  { %12477 = vmatpush3.xpose.msk.msra.mxu0 %vm651_vm2, %v17970_v6  ;;  %v15803_v6 = vld [vmem:[#allocation26 + $0x8] sm:$0xff] }
0x194a   :  { %12478 = vmatprep.subr.mxu0 %v17908_v44  ;;  %18031 = vst [vmem:[#allocation93_spill] sm:$0xff] %v15803_v6 }
0x194d   :  { %12479 = vmatpush3.xpose.msk.msra.mxu0 %vm651_vm2, %v17971_v61 }
0x194e   :  { %12480 = vmatprep.subr.mxu0 %v17908_v44 }
0x1951   :  { %12481 = vmatpush3.xpose.msk.msra.mxu0 %vm651_vm2, %v17972_v41 }
0x1952   :  { %12482 = vmatprep.subr.mxu0 %v17908_v44  ;;  %v4336_v4 = vpop.f32.mrf.mxu1 }
0x1954   :  { %v4338_v19 = vpop.f32.mrf.mxu1 }
0x1955   :  { %12483 = vmatpush3.xpose.msk.msra.mxu0 %vm651_vm2, %v17973_v7 }
0x19d8   :  { %v4506_v50 = vpop.f32.mrf.mxu0 }
0x19d9   :  { %v4507_v11 = vadd.f32 %v4506_v50, %v4336_v4 }
0x19da   :  { %v4508_v47 = vpop.f32.mrf.mxu0 }
0x19db   :  { %v4511_v45 = vadd.f32 %v4507_v11, %v17974_v51  ;;  %v4509_v40 = vadd.f32 %v4508_v47, %v4338_v19  ;;  %v17984_v19 = vld [vmem:[#allocation38_spill] sm:$0xff] }
0x19dd   :  { %v4513_v5 = vsub.f32 0.0, %v4511_v45  ;;  %v4512_v56 = vadd.f32 %v4509_v40, %v17975_v54 }
0x19df   :  { %v4514_v53 = vmul.f32 1.442695, %v4513_v5  ;;  %v4520_v9 = vsub.f32 0.0, %v4512_v56 }
0x19e1   :  { %13053 = vpow2.f32 %v4514_v53  ;;  %v4521_v10 = vmul.f32 1.442695, %v4520_v9  ;;  %v15363_v9 = vld [vmem:[#allocation14] sm:$0xff] }
0x19e2   :  { %13055 = vtanh.f32 %v4512_v56 }
0x19ee   :  { %v13054_v57 = vpop.eup %13053 }
0x19ef   :  { %v4516_v18 = vadd.f32 1.0, %v13054_v57  ;;  %v13056_v46 = vpop.eup %13055  ;;  %v15343_v57 = vld [vmem:[#allocation14 + $0x28] sm:$0xff] }
0x19f1   :  { %13057 = vrcp.f32 %v4516_v18  ;;  %v15347_v18 = vld [vmem:[#allocation14 + $0x20] sm:$0xff] }
0x19f2   :  { %13059 = vpow2.f32 %v4521_v10 }
0x19fe   :  { %v13058_v0 = vpop.eup %13057 }
0x19ff   :  { %v4527_v2 = vmul.f32 %v13058_v0, %v13056_v46  ;;  %v13060_v13 = vpop.eup %13059  ;;  %v4526_v14 = vmul.f32 %v13058_v0, %v17976_v22  ;;  %v15351_v46 = vld [vmem:[#allocation14 + $0x18] sm:$0xff]  ;;  %v15355_v0 = vld [vmem:[#allocation14 + $0x10] sm:$0xff] }
0x1a00   :  { %v4523_v15 = vadd.f32 1.0, %v13060_v13 }
0x1a01   :  { %4529 = vrot.lane.b32.xlu1 %v4527_v2, %s13532_s28  ;;  %v15359_v2 = vld [vmem:[#allocation14 + $0x8] sm:$0xff] }
0x1a02   :  { %13061 = vrcp.f32 %v4523_v15 }
0x1a0f   :  { %v13062_v63 = vpop.eup %13061 }
0x1a73   :  { %v4530_v58 = vpop.permute.xlu1 %4529 }
0x1a74   :  { %v15310_v60 = vadd.f32 %v4530_v58, %v4526_v14 }
0x1a76   :  { %13063 = vtanh.f32 %v15310_v60 }
0x1a83   :  { %v13064_v1 = vpop.eup %13063 }
0x1a84   :  { %v4534_v21 = vmul.f32 %v13064_v1, %v13062_v63 }
0x1a86   :  { %4544 = vrot.lane.b32.xlu0 %v4534_v21, %s13532_s28 }
0x1af8   :  { %v15314_v23 = vpop.permute.xlu0 %4544 }
0x1af9   :  { %12450 = vmatmul.mubr.msk.f32.vlgmr.msra.gmra.mxu1 %vm651_vm2, %v15314_v23 }
0x1afa   :  { %12499 = vmatprep.mubr.msk.f32.mxu1 %vm13533_vm7, %v17908_v44  ;;  %12488 = vmatpush3.xpose.msra.mxu1 %v15343_v57 }
0x1afb   :  { %12489 = vmatprep.subr.mxu1 %v17908_v44 }
0x1afe   :  { %12490 = vmatpush3.xpose.msra.mxu1 %v15347_v18 }
0x1aff   :  { %12491 = vmatprep.subr.mxu1 %v17908_v44 }
0x1b02   :  { %12492 = vmatpush3.xpose.msra.mxu1 %v15351_v46 }
0x1b03   :  { %12493 = vmatprep.subr.mxu1 %v17908_v44 }
0x1b06   :  { %12494 = vmatpush3.xpose.msra.mxu1 %v15355_v0 }
0x1b07   :  { %12495 = vmatprep.subr.mxu1 %v17908_v44 }
0x1b0a   :  { %12496 = vmatpush3.xpose.msra.mxu1 %v15359_v2 }
0x1b0b   :  { %12497 = vmatprep.subr.mxu1 %v17908_v44 }
0x1b0e   :  { %12498 = vmatpush3.xpose.msra.mxu1 %v15363_v9 }
0x1bb9   :  { %v4638_v27 = vpop.f32.mrf.mxu1 }
0x1bba   :  { %v4639_v32 = vadd.f32 %v17977_v31, %v4638_v27 }
0x1bbb   :  { %v12451_v29 = vpop.f32.mrf.mxu1 }
0x1bbc   :  { %v4649_v24 = vrot.slane %v4639_v32, %v17978_v55 }
0x1bbe   :  { %v4650_v52 = vcombine.high %v4649_v24, %v4649_v24  ;;  %v4657_v33 = vrot.slane %v4649_v24, %v17978_v55 }
0x1bc0   :  { %v4668_v17 = vrot.slane %v4657_v33, %v17979_v49  ;;  %v4664_v42 = vrot.slane %v4650_v52, %v17978_v55 }
0x1bc2   :  { %v4675_v3 = vmul.f32 %v4668_v17, %v17980_v36  ;;  %v4672_v39 = vrot.slane %v4664_v42, %v17979_v49 }
0x1bc4   :  { %v4677_v16 = vsel %vm651_vm2, %v4675_v3, 0.0  ;;  %v4676_v34 = vmul.f32 %v4672_v39, %v17981_v38  ;;  %v15372_v39 = vld [vmem:[#allocation19 + $0xf8] sm:$0xff] }
0x1bc5   :  { %4678 = vadd.xlane.f32.xlu1 %v4677_v16  ;;  %11678 = vmatprep.subr.msk.mxu1 %vm651_vm2, %v15372_v39  ;;  %v15376_v16 = vld [vmem:[#allocation17 + $0xf8] sm:$0xff] }
0x1bc6   :  { %v4680_v43 = vsel %vm651_vm2, %v4676_v34, 0.0  ;;  %v15378_v34 = vld [vmem:[#allocation17 + $0x78] sm:$0xff]  ;;  %11712 = vmatprep.subr.msk.mxu0 %vm439_vm1, %v15376_v16 }
0x1bc7   :  { %4681 = vadd.xlane.f32.xlu0 %v4680_v43  ;;  %v15380_v43 = vld [vmem:[#allocation17 + $0xf0] sm:$0xff] }
0x1c4e   :  { %v4679_v26 = vpop.xlane.xlu1 %4678 }
0x1c4f   :  { %v4683_v20 = vmul.f32 0.125, %v4679_v26  ;;  %v15388_v26 = vld [vmem:[#allocation17 + $0x70] sm:$0xff] }
0x1c50   :  { %v4682_v30 = vpop.xlane.xlu0 %4681 }
0x1c51   :  { %v4684_v25 = vmul.f32 0.125, %v4682_v30  ;;  %v4690_v12 = vrot.slane %v4683_v20, %v17982_v37  ;;  %v15390_v20 = vld [vmem:[#allocation17 + $0xe8] sm:$0xff] }
0x1c52   :  { %v15396_v30 = vld [vmem:[#allocation17 + $0x68] sm:$0xff] }
0x1c53   :  { %v4694_v8 = vrot.slane %v4684_v25, %v17982_v37  ;;  %v15398_v25 = vld [vmem:[#allocation17 + $0xe0] sm:$0xff] }
0x1c55   :  { %v4695_v35 = vsel %vm3796_vm8, %v4694_v8, %v4690_v12  ;;  %v15404_v12 = vld [vmem:[#allocation17 + $0x60] sm:$0xff]  ;;  %v15406_v8 = vld [vmem:[#allocation17 + $0xd8] sm:$0xff] }
0x1c56   :  { %v4697_v61 = vsel %vm3783_vm9, %v4695_v35, -1e+09  ;;  %v15412_v35 = vld [vmem:[#allocation17 + $0x58] sm:$0xff] }
0x1c57   :  { %v4698_v41 = vsel %vm3800_vm10, %v4697_v61, -inf }
0x1c58   :  { %4699 = vmax.xlane.f32.xlu0 %v4698_v41  ;;  %v15420_v41 = vld [vmem:[#allocation17 + $0x50] sm:$0xff] }
0x1ce1   :  { %v4700_v7 = vpop.xlane.xlu0 %4699 }
0x1ce2   :  { %v4701_v4 = vsub.f32 %v4697_v61, %v4700_v7  ;;  %v15414_v61 = vld [vmem:[#allocation17 + $0xd0] sm:$0xff]  ;;  %v15422_v7 = vld [vmem:[#allocation17 + $0xc8] sm:$0xff] }
0x1ce4   :  { %v4702_v50 = vmul.f32 1.442695, %v4701_v4  ;;  %v15428_v4 = vld [vmem:[#allocation17 + $0x48] sm:$0xff] }
0x1ce6   :  { %13065 = vpow2.f32 %v4702_v50  ;;  %v15430_v50 = vld [vmem:[#allocation17 + $0xc0] sm:$0xff] }
0x1cf3   :  { %v13066_v11 = vpop.eup %13065 }
0x1cf4   :  { %v4704_v45 = vsel %vm3800_vm10, %v13066_v11, 0.0 }
0x1cf5   :  { %4705 = vadd.xlane.f32.xlu1 %v4704_v45  ;;  %v15438_v45 = vld [vmem:[#allocation17 + $0xb8] sm:$0xff] }
0x1d7e   :  { %v4706_v5 = vpop.xlane.xlu1 %4705 }
0x1d7f   :  { %13067 = vrcp.f32 %v4706_v5  ;;  %v15444_v5 = vld [vmem:[#allocation17 + $0x38] sm:$0xff] }
0x1d8c   :  { %v13068_v53 = vpop.eup %13067 }
0x1d8d   :  { %v4708_v47 = vmul.f32 %v13068_v53, %v13066_v11  ;;  %v15436_v11 = vld [vmem:[#allocation17 + $0x40] sm:$0xff]  ;;  %v15446_v53 = vld [vmem:[#allocation17 + $0xb0] sm:$0xff] }
0x1d8f   :  { %v4719_v40 = vrot.slane %v4708_v47, %v17984_v19  ;;  %10558 = vst.msk [vmem:[%s17609_s23 + $0x2] sm:$0x3] %vm3800_vm10, %v4708_v47  ;;  %v4712_v56 = vrot.slane %v4708_v47, %v17979_v49  ;;  %v15452_v47 = vld [vmem:[#allocation17 + $0x30] sm:$0xff] }
0x1d91   :  { %4721 = vbcast.lane.b32.xlu1 %v4719_v40, 256  ;;  %4714 = vbcast.lane.b32.xlu0 %v4712_v56, 256  ;;  %v15454_v40 = vld [vmem:[#allocation17 + $0xa8] sm:$0xff] }
0x1d92   :  { %v15460_v56 = vld [vmem:[#allocation17 + $0x28] sm:$0xff] }
0x1e03   :  { %v4722_v10 = vpop.permute.xlu1 %4721  ;;  %v4715_v13 = vpop.permute.xlu0 %4714 }
0x1e04   :  { %v4724_v15 = vmul.f32 %v4722_v10, %v14880_v59  ;;  %v4723_v22 = vmul.f32 %v4715_v13, %v14878_v62  ;;  %v15462_v10 = vld [vmem:[#allocation17 + $0xa0] sm:$0xff] }
0x1e05   :  { %v15468_v13 = vld [vmem:[#allocation17 + $0x20] sm:$0xff] }
0x1e06   :  { %v4732_v14 = vsel %vm651_vm2, %v4724_v15, 0.0  ;;  %v4725_v58 = vsel %vm651_vm2, %v4723_v22, 0.0  ;;  %v15470_v15 = vld [vmem:[#allocation17 + $0x98] sm:$0xff] }
0x1e07   :  { %v4733_v63 = vrot.slane %v4732_v14, 4  ;;  %v4726_v1 = vrot.slane %v4725_v58, 4  ;;  %v15476_v22 = vld [vmem:[#allocation17 + $0x18] sm:$0xff] }
0x1e09   :  { %v4734_v21 = vadd.f32 %v4733_v63, %v4732_v14  ;;  %v4727_v27 = vadd.f32 %v4726_v1, %v4725_v58  ;;  %v15478_v14 = vld [vmem:[#allocation17 + $0x90] sm:$0xff]  ;;  %v15486_v63 = vld [vmem:[#allocation17 + $0x88] sm:$0xff] }
0x1e0a   :  { %v15484_v58 = vld [vmem:[#allocation17 + $0x10] sm:$0xff]  ;;  %v15492_v1 = vld [vmem:[#allocation17 + $0x8] sm:$0xff] }
0x1e0b   :  { %v4735_v31 = vrot.slane %v4734_v21, 2  ;;  %v4728_v32 = vrot.slane %v4727_v27, 2  ;;  %17985 = vst [vmem:[#allocation67_spill] sm:$0xff] %v15492_v1 }
0x1e0d   :  { %v4736_v29 = vadd.f32 %v4735_v31, %v4734_v21  ;;  %v4729_v24 = vadd.f32 %v4728_v32, %v4727_v27  ;;  %v15499_v31 = vld [vmem:[#allocation19 + $0x78] sm:$0xff] }
0x1e0e   :  { %17987 = vst [vmem:[#allocation71_spill] sm:$0xff] %v15499_v31 }
0x1e0f   :  { %v4737_v52 = vrot.slane %v4736_v29, 1  ;;  %v4730_v33 = vrot.slane %v4729_v24, 1 }
0x1e11   :  { %v4738_v17 = vadd.f32 %v4737_v52, %v4736_v29  ;;  %v4731_v42 = vadd.f32 %v4730_v33, %v4729_v24  ;;  %v15501_v29 = vld [vmem:[#allocation19 + $0xf0] sm:$0xff]  ;;  %v15518_v52 = vld [vmem:[#allocation19 + $0x68] sm:$0xff]  ;;  %v15520_v33 = vld [vmem:[#allocation19 + $0xe0] sm:$0xff] }
0x1e12   :  { %17988 = vst [vmem:[#allocation74_spill] sm:$0xff] %v15501_v29  ;;  %v15510_v24 = vld [vmem:[#allocation19 + $0x70] sm:$0xff]  ;;  %17991 = vst [vmem:[#allocation40_spill] sm:$0xff] %v15518_v52 }
0x1e13   :  { %v4757_v3 = vsel %vm3796_vm8, %v4738_v17, %v4731_v42  ;;  %17989 = vst [vmem:[#allocation75_spill] sm:$0xff] %v15510_v24  ;;  %17992 = vst [vmem:[#allocation41_spill] sm:$0xff] %v15520_v33  ;;  %v15526_v17 = vld [vmem:[#allocation19 + $0x60] sm:$0xff]  ;;  %v15528_v42 = vld [vmem:[#allocation19 + $0xd8] sm:$0xff] }
0x1e14   :  { %12485 = vmatmul.mubr.msk.f32.vlgmr.msra.gmra.mxu0 %vm651_vm2, %v4757_v3  ;;  %17993 = vst [vmem:[#allocation42_spill] sm:$0xff] %v15526_v17  ;;  %17994 = vst [vmem:[#allocation43_spill] sm:$0xff] %v15528_v42  ;;  %v15534_v3 = vld [vmem:[#allocation19 + $0x58] sm:$0xff] }
0x1e15   :  { %11713 = vmatpush3.xpose.msk.msra.mxu0 %vm439_vm1, %v15378_v34  ;;  %17995 = vst [vmem:[#allocation44_spill] sm:$0xff] %v15534_v3 }
0x1e16   :  { %11714 = vmatprep.subr.msk.mxu0 %vm439_vm1, %v15380_v43 }
0x1e19   :  { %11715 = vmatpush3.xpose.msk.msra.mxu0 %vm439_vm1, %v15388_v26 }
0x1e1a   :  { %11716 = vmatprep.subr.msk.mxu0 %vm439_vm1, %v15390_v20 }
0x1e1d   :  { %11717 = vmatpush3.xpose.msk.msra.mxu0 %vm439_vm1, %v15396_v30 }
0x1e1e   :  { %11718 = vmatprep.subr.msk.mxu0 %vm439_vm1, %v15398_v25 }
0x1e21   :  { %11719 = vmatpush3.xpose.msk.msra.mxu0 %vm439_vm1, %v15404_v12 }
0x1e22   :  { %11720 = vmatprep.subr.msk.mxu0 %vm439_vm1, %v15406_v8 }
0x1e25   :  { %11721 = vmatpush3.xpose.msk.msra.mxu0 %vm439_vm1, %v15412_v35 }
0x1e26   :  { %11722 = vmatprep.subr.msk.mxu0 %vm439_vm1, %v15414_v61 }
0x1e29   :  { %11723 = vmatpush3.xpose.msk.msra.mxu0 %vm439_vm1, %v15420_v41 }
0x1e2a   :  { %11724 = vmatprep.subr.msk.mxu0 %vm439_vm1, %v15422_v7 }
0x1e2d   :  { %11725 = vmatpush3.xpose.msk.msra.mxu0 %vm439_vm1, %v15428_v4 }
0x1e2e   :  { %11726 = vmatprep.subr.msk.mxu0 %vm439_vm1, %v15430_v50 }
0x1e31   :  { %11727 = vmatpush3.xpose.msk.msra.mxu0 %vm439_vm1, %v15436_v11 }
0x1e32   :  { %11728 = vmatprep.subr.msk.mxu0 %vm439_vm1, %v15438_v45 }
0x1e35   :  { %11729 = vmatpush3.xpose.msk.msra.mxu0 %vm439_vm1, %v15444_v5 }
0x1e36   :  { %11730 = vmatprep.subr.msk.mxu0 %vm439_vm1, %v15446_v53 }
0x1e39   :  { %11731 = vmatpush3.xpose.msk.msra.mxu0 %vm439_vm1, %v15452_v47 }
0x1e3a   :  { %11732 = vmatprep.subr.msk.mxu0 %vm439_vm1, %v15454_v40 }
0x1e3d   :  { %11733 = vmatpush3.xpose.msk.msra.mxu0 %vm439_vm1, %v15460_v56 }
0x1e3e   :  { %11734 = vmatprep.subr.msk.mxu0 %vm439_vm1, %v15462_v10 }
0x1e41   :  { %11735 = vmatpush3.xpose.msk.msra.mxu0 %vm439_vm1, %v15468_v13 }
0x1e42   :  { %11736 = vmatprep.subr.msk.mxu0 %vm439_vm1, %v15470_v15 }
0x1e45   :  { %11737 = vmatpush3.xpose.msk.msra.mxu0 %vm439_vm1, %v15476_v22 }
0x1e46   :  { %11738 = vmatprep.subr.msk.mxu0 %vm439_vm1, %v15478_v14 }
0x1e49   :  { %11739 = vmatpush3.xpose.msk.msra.mxu0 %vm439_vm1, %v15484_v58 }
0x1e4a   :  { %11740 = vmatprep.subr.msk.mxu0 %vm439_vm1, %v15486_v63 }
0x1e4d   :  { %11741 = vmatpush3.xpose.msk.msra.mxu0 %vm439_vm1, %v15492_v1 }
0x1ed4   :  { %v4874_v21 = vpop.f32.mrf.mxu0 }
0x1ed5   :  { %v15497_v27 = vadd.f32 %v15155_v28, %v4874_v21  ;;  %v15512_v28 = vld [vmem:[#allocation19 + $0xe8] sm:$0xff]  ;;  %v15536_v21 = vld [vmem:[#allocation19 + $0xd0] sm:$0xff] }
0x1ed6   :  { %v12486_v32 = vpop.f32.mrf.mxu0  ;;  %17990 = vst [vmem:[#allocation39_spill] sm:$0xff] %v15512_v28  ;;  %17996 = vst [vmem:[#allocation45_spill] sm:$0xff] %v15536_v21 }
0x1ed7   :  { %17986 = vst [vmem:[#allocation70_spill] sm:$0xff] %v15497_v27  ;;  %12500 = vmatmul.mubr.f32.vlgmr.msra.gmra.mxu1 %v15497_v27  ;;  %v15542_v32 = vld [vmem:[#allocation19 + $0x50] sm:$0xff]  ;;  %v15544_v27 = vld [vmem:[#allocation19 + $0xc8] sm:$0xff] }
0x1ed8   :  { %11679 = vmatpush3.xpose.msk.msra.mxu1 %vm651_vm2, %v15499_v31  ;;  %11710 = vmatprep.mubr.msk.f32.mxu1 %vm651_vm2, %v15314_v23  ;;  %17997 = vst [vmem:[#allocation46_spill] sm:$0xff] %v15542_v32  ;;  %17998 = vst [vmem:[#allocation47_spill] sm:$0xff] %v15544_v27 }
0x1ed9   :  { %11680 = vmatprep.subr.msk.mxu1 %vm651_vm2, %v15501_v29 }
0x1edc   :  { %11681 = vmatpush3.xpose.msk.msra.mxu1 %vm651_vm2, %v15510_v24 }
0x1edd   :  { %11682 = vmatprep.subr.msk.mxu1 %vm651_vm2, %v15512_v28 }
0x1ee0   :  { %11683 = vmatpush3.xpose.msk.msra.mxu1 %vm651_vm2, %v15518_v52 }
0x1ee1   :  { %11684 = vmatprep.subr.msk.mxu1 %vm651_vm2, %v15520_v33 }
0x1ee4   :  { %11685 = vmatpush3.xpose.msk.msra.mxu1 %vm651_vm2, %v15526_v17 }
0x1ee5   :  { %11686 = vmatprep.subr.msk.mxu1 %vm651_vm2, %v15528_v42  ;;  %v15552_v42 = vld [vmem:[#allocation19 + $0xc0] sm:$0xff] }
0x1ee6   :  { %18000 = vst [vmem:[#allocation49_spill] sm:$0xff] %v15552_v42 }
0x1ee8   :  { %11687 = vmatpush3.xpose.msk.msra.mxu1 %vm651_vm2, %v15534_v3  ;;  %v15560_v3 = vld [vmem:[#allocation19 + $0xb8] sm:$0xff] }
0x1ee9   :  { %11688 = vmatprep.subr.msk.mxu1 %vm651_vm2, %v15536_v21  ;;  %v15558_v21 = vld [vmem:[#allocation19 + $0x40] sm:$0xff]  ;;  %18002 = vst [vmem:[#allocation51_spill] sm:$0xff] %v15560_v3 }
0x1eea   :  { %18001 = vst [vmem:[#allocation50_spill] sm:$0xff] %v15558_v21 }
0x1eec   :  { %11689 = vmatpush3.xpose.msk.msra.mxu1 %vm651_vm2, %v15542_v32  ;;  %v15568_v32 = vld [vmem:[#allocation19 + $0xb0] sm:$0xff] }
0x1eed   :  { %11690 = vmatprep.subr.msk.mxu1 %vm651_vm2, %v15544_v27  ;;  %v15566_v27 = vld [vmem:[#allocation19 + $0x38] sm:$0xff]  ;;  %18004 = vst [vmem:[#allocation53_spill] sm:$0xff] %v15568_v32 }
0x1eee   :  { %18003 = vst [vmem:[#allocation52_spill] sm:$0xff] %v15566_v27 }
0x1ef0   :  { %11691 = vmatpush3.xpose.msk.msra.mxu1 %vm651_vm2, %v15550_v48  ;;  %v15576_v48 = vld [vmem:[#allocation19 + $0xa8] sm:$0xff] }
0x1ef1   :  { %11692 = vmatprep.subr.msk.mxu1 %vm651_vm2, %v15552_v42  ;;  %v15574_v42 = vld [vmem:[#allocation19 + $0x30] sm:$0xff]  ;;  %18006 = vst [vmem:[#allocation55_spill] sm:$0xff] %v15576_v48 }
0x1ef2   :  { %18005 = vst [vmem:[#allocation54_spill] sm:$0xff] %v15574_v42 }
0x1ef4   :  { %11693 = vmatpush3.xpose.msk.msra.mxu1 %vm651_vm2, %v15558_v21  ;;  %v15584_v21 = vld [vmem:[#allocation19 + $0xa0] sm:$0xff] }
0x1ef5   :  { %11694 = vmatprep.subr.msk.mxu1 %vm651_vm2, %v15560_v3  ;;  %v15582_v3 = vld [vmem:[#allocation19 + $0x28] sm:$0xff]  ;;  %18008 = vst [vmem:[#allocation57_spill] sm:$0xff] %v15584_v21 }
0x1ef6   :  { %18007 = vst [vmem:[#allocation56_spill] sm:$0xff] %v15582_v3 }
0x1ef8   :  { %11695 = vmatpush3.xpose.msk.msra.mxu1 %vm651_vm2, %v15566_v27  ;;  %v15592_v27 = vld [vmem:[#allocation19 + $0x98] sm:$0xff] }
0x1ef9   :  { %11696 = vmatprep.subr.msk.mxu1 %vm651_vm2, %v15568_v32  ;;  %v15590_v32 = vld [vmem:[#allocation19 + $0x20] sm:$0xff]  ;;  %18010 = vst [vmem:[#allocation59_spill] sm:$0xff] %v15592_v27 }
0x1efa   :  { %18009 = vst [vmem:[#allocation58_spill] sm:$0xff] %v15590_v32 }
0x1efc   :  { %11697 = vmatpush3.xpose.msk.msra.mxu1 %vm651_vm2, %v15574_v42  ;;  %v15600_v42 = vld [vmem:[#allocation19 + $0x90] sm:$0xff] }
0x1efd   :  { %11698 = vmatprep.subr.msk.mxu1 %vm651_vm2, %v15576_v48  ;;  %v15598_v48 = vld [vmem:[#allocation19 + $0x18] sm:$0xff]  ;;  %18012 = vst [vmem:[#allocation61_spill] sm:$0xff] %v15600_v42 }
0x1efe   :  { %18011 = vst [vmem:[#allocation60_spill] sm:$0xff] %v15598_v48 }
0x1f00   :  { %11699 = vmatpush3.xpose.msk.msra.mxu1 %vm651_vm2, %v15582_v3  ;;  %v15608_v3 = vld [vmem:[#allocation19 + $0x88] sm:$0xff] }
0x1f01   :  { %11700 = vmatprep.subr.msk.mxu1 %vm651_vm2, %v15584_v21  ;;  %v15606_v21 = vld [vmem:[#allocation19 + $0x10] sm:$0xff]  ;;  %18014 = vst [vmem:[#allocation63_spill] sm:$0xff] %v15608_v3 }
0x1f02   :  { %18013 = vst [vmem:[#allocation62_spill] sm:$0xff] %v15606_v21 }
0x1f04   :  { %11701 = vmatpush3.xpose.msk.msra.mxu1 %vm651_vm2, %v15590_v32  ;;  %v15616_v32 = vld [vmem:[#allocation19 + $0x80] sm:$0xff] }
0x1f05   :  { %11702 = vmatprep.subr.msk.mxu1 %vm651_vm2, %v15592_v27  ;;  %v15614_v27 = vld [vmem:[#allocation19 + $0x8] sm:$0xff]  ;;  %18016 = vst [vmem:[#allocation65_spill] sm:$0xff] %v15616_v32 }
0x1f06   :  { %18015 = vst [vmem:[#allocation64_spill] sm:$0xff] %v15614_v27 }
0x1f08   :  { %11703 = vmatpush3.xpose.msk.msra.mxu1 %vm651_vm2, %v15598_v48 }
0x1f09   :  { %11704 = vmatprep.subr.msk.mxu1 %vm651_vm2, %v15600_v42  ;;  %v15622_v42 = vld [vmem:[#allocation19] sm:$0xff] }
0x1f0a   :  { %18017 = vst [vmem:[#allocation68_spill] sm:$0xff] %v15622_v42 }
0x1f0c   :  { %11705 = vmatpush3.xpose.msk.msra.mxu1 %vm651_vm2, %v15606_v21 }
0x1f0d   :  { %11706 = vmatprep.subr.msk.mxu1 %vm651_vm2, %v15608_v3  ;;  %v15631_v3 = vld [vmem:[#allocation17 + $0x80] sm:$0xff] }
0x1f0e   :  { %18018 = vst [vmem:[#allocation69_spill] sm:$0xff] %v15631_v3  ;;  %11742 = vmatprep.subr.msk.mxu0 %vm439_vm1, %v15631_v3 }
0x1f10   :  { %11707 = vmatpush3.xpose.msk.msra.mxu1 %vm651_vm2, %v15614_v27  ;;  %v15635_v27 = vld [vmem:[#allocation17] sm:$0xff] }
0x1f11   :  { %11708 = vmatprep.subr.msk.mxu1 %vm651_vm2, %v15616_v32  ;;  %18019 = vst [vmem:[#allocation72_spill] sm:$0xff] %v15635_v27  ;;  %11743 = vmatpush3.xpose.msk.msra.mxu0 %vm439_vm1, %v15635_v27  ;;  %v15640_v32 = vld [vmem:[#allocation16] ss:$0 sm:$0xff] }
0x1f12   :  { %12521 = vmatprep.subr.mxu0 %v17908_v44  ;;  %18020 = vst [vmem:[#allocation73_spill] sm:$0xff] %v15640_v32 }
0x1f14   :  { %11709 = vmatpush3.xpose.msk.msra.mxu1 %vm651_vm2, %v15622_v42 }
0x1f15   :  { %12502 = vmatprep.subr.mxu1 %v17908_v44 }
0x1f17   :  { %11711 = vmatmul.mubr.msk.f32.vlgmr.msra.gmra.mxu1 %vm651_vm2, %v15314_v23 }
0x1f18   :  { %12518 = vmatprep.mubr.msk.f32.mxu1 %vm13533_vm7, %v17908_v44 }
0x1f97   :  { %v4959_v42 = vpop.f32.mrf.mxu1 }
0x1f98   :  { %v4960_v23 = vadd.f32 %v15640_v32, %v4959_v42 }
0x1f99   :  { %v12501_v21 = vpop.f32.mrf.mxu1 }
0x1f9a   :  { %v4963_v48 = vmax.f32 %v4960_v23, 0.0 }
0x1f9c   :  { %11744 = vmatprep.mubr.msk.f32.mxu0 %vm439_vm1, %v4963_v48 }
0x1f9d   :  { %11745 = vmatmul.mubr.msk.f32.vlgmr.msra.gmra.mxu0 %vm439_vm1, %v4963_v48 }
0x1f9e   :  { %12553 = vmatprep.mubr.msk.f32.mxu0 %vm13533_vm7, %v17908_v44 }
0x1fd7   :  { %v5190_v17 = vpop.f32.mrf.mxu1 }
0x1fd9   :  { %v5192_v27 = vpop.f32.mrf.mxu1 }
0x205d   :  { %v5360_v33 = vpop.f32.mrf.mxu0 }
0x205e   :  { %v5361_v52 = vadd.f32 %v5360_v33, %v5190_v17  ;;  %v15650_v33 = vld [vmem:[#allocation20 + $0x38] sm:$0xff] }
0x205f   :  { %v5362_v31 = vpop.f32.mrf.mxu0  ;;  %12503 = vmatpush3.xpose.msk.msra.mxu1 %vm651_vm2, %v15650_v33 }
0x2060   :  { %v5365_v28 = vadd.f32 %v5361_v52, %v17974_v51  ;;  %v5363_v42 = vadd.f32 %v5362_v31, %v5192_v27  ;;  %12504 = vmatprep.subr.mxu1 %v17908_v44  ;;  %v15660_v27 = vld [vmem:[#allocation20 + $0x28] sm:$0xff]  ;;  %v15670_v31 = vld [vmem:[#allocation20 + $0x18] sm:$0xff]  ;;  %v15685_v52 = vld [vmem:[#allocation20] sm:$0xff] }
0x2061   :  { %18021 = vst [vmem:[#allocation85_spill] sm:$0xff] %v15670_v31  ;;  %18024 = vst [vmem:[#allocation88_spill] sm:$0xff] %v15685_v52 }
0x2062   :  { %v5367_v24 = vsub.f32 0.0, %v5365_v28  ;;  %v5366_v21 = vadd.f32 %v5363_v42, %v17975_v54  ;;  %v15680_v28 = vld [vmem:[#allocation20 + $0x8] sm:$0xff] }
0x2063   :  { %18023 = vst [vmem:[#allocation87_spill] sm:$0xff] %v15680_v28 }
0x2064   :  { %v5368_v29 = vmul.f32 1.442695, %v5367_v24  ;;  %v15675_v24 = vld [vmem:[#allocation20 + $0x10] sm:$0xff]  ;;  %v5374_v17 = vsub.f32 0.0, %v5366_v21 }
0x2065   :  { %18022 = vst [vmem:[#allocation86_spill] sm:$0xff] %v15675_v24 }
0x2066   :  { %13069 = vpow2.f32 %v5368_v29  ;;  %v15655_v29 = vld [vmem:[#allocation20 + $0x30] sm:$0xff] }
0x2067   :  { %13071 = vtanh.f32 %v5366_v21  ;;  %12505 = vmatpush3.xpose.msk.msra.mxu1 %vm651_vm2, %v15655_v29 }
0x2068   :  { %12506 = vmatprep.subr.mxu1 %v17908_v44 }
0x206b   :  { %12507 = vmatpush3.xpose.msk.msra.mxu1 %vm651_vm2, %v15660_v27 }
0x206c   :  { %12508 = vmatprep.subr.mxu1 %v17908_v44 }
0x2073   :  { %v13070_v23 = vpop.eup %13069 }
0x2074   :  { %v5370_v32 = vadd.f32 1.0, %v13070_v23  ;;  %v13072_v48 = vpop.eup %13071 }
0x2076   :  { %13073 = vrcp.f32 %v5370_v32  ;;  %v5375_v32 = vmul.f32 1.442695, %v5374_v17 }
0x2078   :  { %13075 = vpow2.f32 %v5375_v32 }
0x2083   :  { %v13074_v3 = vpop.eup %13073 }
0x2084   :  { %v5381_v1 = vmul.f32 %v13074_v3, %v13072_v48  ;;  %v5380_v48 = vmul.f32 %v13074_v3, %v15310_v60  ;;  %v15714_v60 = vld [vmem:[#allocation22] ss:$0 sm:$0xff] }
0x2085   :  { %v13076_v42 = vpop.eup %13075  ;;  %18025 = vst [vmem:[#allocation89_spill] sm:$0xff] %v15714_v60 }
0x2086   :  { %5383 = vrot.lane.b32.xlu1 %v5381_v1, %s13532_s28  ;;  %v15665_v1 = vld [vmem:[#allocation20 + $0x20] sm:$0xff]  ;;  %v5377_v23 = vadd.f32 1.0, %v13076_v42 }
0x2087   :  { %12509 = vmatpush3.xpose.msk.msra.mxu1 %vm651_vm2, %v15665_v1 }
0x2088   :  { %12510 = vmatprep.subr.mxu1 %v17908_v44  ;;  %13077 = vrcp.f32 %v5377_v23 }
0x208b   :  { %12511 = vmatpush3.xpose.msk.msra.mxu1 %vm651_vm2, %v15670_v31 }
0x208c   :  { %12512 = vmatprep.subr.mxu1 %v17908_v44 }
0x208f   :  { %12513 = vmatpush3.xpose.msk.msra.mxu1 %vm651_vm2, %v15675_v24 }
0x2090   :  { %12514 = vmatprep.subr.mxu1 %v17908_v44 }
0x2093   :  { %12515 = vmatpush3.xpose.msk.msra.mxu1 %vm651_vm2, %v15680_v28 }
0x2094   :  { %12516 = vmatprep.subr.mxu1 %v17908_v44 }
0x2095   :  { %v13078_v28 = vpop.eup %13077 }
0x2097   :  { %12517 = vmatpush3.xpose.msk.msra.mxu1 %vm651_vm2, %v15685_v52 }
0x2098   :  { %12556 = vmatprep.subr.mxu1 %v17908_v44 }
0x20f8   :  { %v5384_v54 = vpop.permute.xlu1 %5383 }
0x20f9   :  { %v15691_v51 = vadd.f32 %v5384_v54, %v5380_v48 }
0x20fb   :  { %13079 = vtanh.f32 %v15691_v51 }
0x2108   :  { %v13080_v24 = vpop.eup %13079 }
0x2109   :  { %v5388_v31 = vmul.f32 %v13080_v24, %v13078_v28 }
0x210b   :  { %5398 = vrot.lane.b32.xlu0 %v5388_v31, %s13532_s28 }
0x217d   :  { %v15695_v52 = vpop.permute.xlu0 %5398 }
0x217e   :  { %12519 = vmatmul.mubr.msk.f32.vlgmr.msra.gmra.mxu1 %vm651_vm2, %v15695_v52 }
0x217f   :  { %12557 = vmatpush3.xpose.msra.mxu1 %v15343_v57  ;;  %12568 = vmatprep.mubr.msk.f32.mxu1 %vm13533_vm7, %v17908_v44 }
0x2180   :  { %12558 = vmatprep.subr.mxu1 %v17908_v44 }
0x2183   :  { %12559 = vmatpush3.xpose.msra.mxu1 %v15347_v18 }
0x2184   :  { %12560 = vmatprep.subr.mxu1 %v17908_v44 }
0x2187   :  { %12561 = vmatpush3.xpose.msra.mxu1 %v15351_v46 }
0x2188   :  { %12562 = vmatprep.subr.mxu1 %v17908_v44 }
0x218b   :  { %12563 = vmatpush3.xpose.msra.mxu1 %v15355_v0 }
0x218c   :  { %12564 = vmatprep.subr.mxu1 %v17908_v44 }
0x218f   :  { %12565 = vmatpush3.xpose.msra.mxu1 %v15359_v2 }
0x2190   :  { %12566 = vmatprep.subr.mxu1 %v17908_v44 }
0x2193   :  { %12567 = vmatpush3.xpose.msra.mxu1 %v15363_v9 }
0x2194   :  { %11779 = vmatprep.subr.msk.mxu1 %vm651_vm2, %v15372_v39 }
0x223e   :  { %v5492_v54 = vpop.f32.mrf.mxu1 }
0x223f   :  { %v5493_v57 = vadd.f32 %v15714_v60, %v5492_v54 }
0x2240   :  { %v12520_v18 = vpop.f32.mrf.mxu1 }
0x2241   :  { %v5503_v46 = vrot.slane %v5493_v57, %v17978_v55 }
0x2243   :  { %v5504_v0 = vcombine.high %v5503_v46, %v5503_v46  ;;  %v5511_v3 = vrot.slane %v5503_v46, %v17978_v55 }
0x2245   :  { %v5522_v2 = vrot.slane %v5511_v3, %v17979_v49  ;;  %v5518_v21 = vrot.slane %v5504_v0, %v17978_v55 }
0x2247   :  { %v5529_v9 = vmul.f32 %v5522_v2, %v17980_v36  ;;  %v5526_v31 = vrot.slane %v5518_v21, %v17979_v49 }
0x2249   :  { %v5531_v39 = vsel %vm651_vm2, %v5529_v9, 0.0  ;;  %v5530_v24 = vmul.f32 %v5526_v31, %v17981_v38  ;;  %v15733_v31 = vld [vmem:[#allocation26 + $0x78] sm:$0xff]  ;;  %v15814_v38 = vld [vmem:[#allocation26] sm:$0xff] }
0x224a   :  { %5532 = vadd.xlane.f32.xlu1 %v5531_v39  ;;  %12522 = vmatpush3.xpose.msk.msra.mxu0 %vm651_vm2, %v15733_v31  ;;  %v15738_v39 = vld [vmem:[#allocation26 + $0x70] sm:$0xff]  ;;  %18032 = vst [vmem:[#allocation94_spill] sm:$0xff] %v15814_v38 }
0x224b   :  { %v5534_v28 = vsel %vm651_vm2, %v5530_v24, 0.0  ;;  %12523 = vmatprep.subr.mxu0 %v17908_v44  ;;  %v15743_v24 = vld [vmem:[#allocation26 + $0x68] sm:$0xff] }
0x224c   :  { %5535 = vadd.xlane.f32.xlu0 %v5534_v28  ;;  %v15748_v28 = vld [vmem:[#allocation26 + $0x60] sm:$0xff] }
0x224e   :  { %12524 = vmatpush3.xpose.msk.msra.mxu0 %vm651_vm2, %v15738_v39 }
0x224f   :  { %12525 = vmatprep.subr.mxu0 %v17908_v44 }
0x2252   :  { %12526 = vmatpush3.xpose.msk.msra.mxu0 %vm651_vm2, %v15743_v24 }
0x2253   :  { %12527 = vmatprep.subr.mxu0 %v17908_v44 }
0x2256   :  { %12528 = vmatpush3.xpose.msk.msra.mxu0 %vm651_vm2, %v15748_v28 }
0x2257   :  { %12529 = vmatprep.subr.mxu0 %v17908_v44 }
0x22d3   :  { %v5533_v17 = vpop.xlane.xlu1 %5532 }
0x22d4   :  { %v5537_v32 = vmul.f32 0.125, %v5533_v17  ;;  %v15753_v17 = vld [vmem:[#allocation26 + $0x58] sm:$0xff] }
0x22d5   :  { %v5536_v42 = vpop.xlane.xlu0 %5535  ;;  %12530 = vmatpush3.xpose.msk.msra.mxu0 %vm651_vm2, %v15753_v17 }
0x22d6   :  { %v5538_v23 = vmul.f32 0.125, %v5536_v42  ;;  %v5544_v48 = vrot.slane %v5537_v32, %v17982_v37  ;;  %12531 = vmatprep.subr.mxu0 %v17908_v44  ;;  %v15758_v32 = vld [vmem:[#allocation26 + $0x50] sm:$0xff]  ;;  %v15763_v42 = vld [vmem:[#allocation26 + $0x48] sm:$0xff] }
0x22d8   :  { %v5548_v54 = vrot.slane %v5538_v23, %v17982_v37  ;;  %v15768_v23 = vld [vmem:[#allocation26 + $0x40] sm:$0xff] }
0x22d9   :  { %12532 = vmatpush3.xpose.msk.msra.mxu0 %vm651_vm2, %v15758_v32 }
0x22da   :  { %v5549_v57 = vsel %vm3796_vm8, %v5548_v54, %v5544_v48  ;;  %12533 = vmatprep.subr.mxu0 %v17908_v44  ;;  %v15773_v48 = vld [vmem:[#allocation26 + $0x38] sm:$0xff]  ;;  %v15778_v54 = vld [vmem:[#allocation26 + $0x30] sm:$0xff] }
0x22db   :  { %v5551_v18 = vsel %vm3783_vm9, %v5549_v57, -1e+09  ;;  %18026 = vst [vmem:[#allocation90_spill] sm:$0xff] %v15778_v54  ;;  %v15783_v57 = vld [vmem:[#allocation26 + $0x28] sm:$0xff] }
0x22dc   :  { %v5552_v46 = vsel %vm3800_vm10, %v5551_v18, -inf  ;;  %18027 = vst [vmem:[#allocation91_spill] sm:$0xff] %v15783_v57 }
0x22dd   :  { %5553 = vmax.xlane.f32.xlu0 %v5552_v46  ;;  %12534 = vmatpush3.xpose.msk.msra.mxu0 %vm651_vm2, %v15763_v42 }
0x22de   :  { %12535 = vmatprep.subr.mxu0 %v17908_v44 }
0x22e1   :  { %12536 = vmatpush3.xpose.msk.msra.mxu0 %vm651_vm2, %v15768_v23 }
0x22e2   :  { %12537 = vmatprep.subr.mxu0 %v17908_v44 }
0x22e5   :  { %12538 = vmatpush3.xpose.msk.msra.mxu0 %vm651_vm2, %v15773_v48 }
0x22e6   :  { %12539 = vmatprep.subr.mxu0 %v17908_v44 }
0x22e9   :  { %12540 = vmatpush3.xpose.msk.msra.mxu0 %vm651_vm2, %v15778_v54 }
0x22ea   :  { %12541 = vmatprep.subr.mxu0 %v17908_v44 }
0x22ed   :  { %12542 = vmatpush3.xpose.msk.msra.mxu0 %vm651_vm2, %v15783_v57 }
0x22ee   :  { %12543 = vmatprep.subr.mxu0 %v17908_v44 }
0x2366   :  { %v5554_v0 = vpop.xlane.xlu0 %5553 }
0x2367   :  { %v5555_v3 = vsub.f32 %v5551_v18, %v5554_v0  ;;  %v15788_v18 = vld [vmem:[#allocation26 + $0x20] sm:$0xff]  ;;  %v15793_v0 = vld [vmem:[#allocation26 + $0x18] sm:$0xff] }
0x2368   :  { %18028 = vst [vmem:[#allocation92_spill] sm:$0xff] %v15788_v18  ;;  %12544 = vmatpush3.xpose.msk.msra.mxu0 %vm651_vm2, %v15788_v18  ;;  %18029 = vst [vmem:[#allocation80_spill] sm:$0xff] %v15793_v0 }
0x2369   :  { %v5556_v2 = vmul.f32 1.442695, %v5555_v3  ;;  %12545 = vmatprep.subr.mxu0 %v17908_v44  ;;  %v15798_v3 = vld [vmem:[#allocation26 + $0x10] sm:$0xff] }
0x236a   :  { %18030 = vst [vmem:[#allocation81_spill] sm:$0xff] %v15798_v3 }
0x236b   :  { %13081 = vpow2.f32 %v5556_v2 }
0x236c   :  { %12546 = vmatpush3.xpose.msk.msra.mxu0 %vm651_vm2, %v15793_v0 }
0x236d   :  { %12547 = vmatprep.subr.mxu0 %v17908_v44 }
0x2370   :  { %12548 = vmatpush3.xpose.msk.msra.mxu0 %vm651_vm2, %v15798_v3 }
0x2371   :  { %12549 = vmatprep.subr.mxu0 %v17908_v44 }
0x2374   :  { %12550 = vmatpush3.xpose.msk.msra.mxu0 %vm651_vm2, %v15803_v6 }
0x2375   :  { %12551 = vmatprep.subr.mxu0 %v17908_v44 }
0x2378   :  { %v13082_v21 = vpop.eup %13081  ;;  %12552 = vmatpush3.xpose.msk.msra.mxu0 %vm651_vm2, %v15814_v38 }
0x2379   :  { %v5558_v9 = vsel %vm3800_vm10, %v13082_v21, 0.0  ;;  %11813 = vmatprep.subr.msk.mxu0 %vm439_vm1, %v15376_v16 }
0x237a   :  { %5559 = vadd.xlane.f32.xlu1 %v5558_v9 }
0x2403   :  { %v5560_v46 = vpop.xlane.xlu1 %5559 }
0x2404   :  { %13083 = vrcp.f32 %v5560_v46 }
0x2411   :  { %v13084_v2 = vpop.eup %13083 }
0x2412   :  { %v5562_v9 = vmul.f32 %v13084_v2, %v13082_v21 }
0x2414   :  { %v5573_v46 = vrot.slane %v5562_v9, %v17984_v19  ;;  %10652 = vst.msk [vmem:[%s17609_s23 + $0x4] sm:$0x3] %vm3800_vm10, %v5562_v9  ;;  %v5566_v37 = vrot.slane %v5562_v9, %v17979_v49 }
0x2416   :  { %5575 = vbcast.lane.b32.xlu1 %v5573_v46, 256  ;;  %5568 = vbcast.lane.b32.xlu0 %v5566_v37, 256 }
0x2488   :  { %v5576_v21 = vpop.permute.xlu1 %5575  ;;  %v5569_v2 = vpop.permute.xlu0 %5568 }
0x2489   :  { %v5578_v19 = vmul.f32 %v5576_v21, %v14880_v59  ;;  %v5577_v36 = vmul.f32 %v5569_v2, %v14878_v62 }
0x248b   :  { %v5586_v9 = vsel %vm651_vm2, %v5578_v19, 0.0  ;;  %v5579_v49 = vsel %vm651_vm2, %v5577_v36, 0.0  ;;  %v18035_v36 = vld [vmem:[#allocation72_spill] sm:$0xff] }
0x248c   :  { %v5587_v46 = vrot.slane %v5586_v9, 4  ;;  %v5580_v37 = vrot.slane %v5579_v49, 4 }
0x248e   :  { %v5588_v55 = vadd.f32 %v5587_v46, %v5586_v9  ;;  %v5581_v60 = vadd.f32 %v5580_v37, %v5579_v49  ;;  %v18034_v49 = vld [vmem:[#allocation69_spill] sm:$0xff] }
0x2490   :  { %v5589_v6 = vrot.slane %v5588_v55, 2  ;;  %v5582_v3 = vrot.slane %v5581_v60, 2 }
0x2492   :  { %v5590_v38 = vadd.f32 %v5589_v6, %v5588_v55  ;;  %v5583_v0 = vadd.f32 %v5582_v3, %v5581_v60  ;;  %v18033_v55 = vld [vmem:[#allocation67_spill] sm:$0xff]  ;;  %v15892_v6 = vld [vmem:[%s17607_s21] ss:$0 sm:$0xff] }
0x2493   :  { %v18064_v60 = vld [vmem:[#allocation63_spill] sm:$0xff] }
0x2494   :  { %v5591_v18 = vrot.slane %v5590_v38, 1  ;;  %v5584_v16 = vrot.slane %v5583_v0, 1 }
0x2496   :  { %v5592_v57 = vadd.f32 %v5591_v18, %v5590_v38  ;;  %v5585_v54 = vadd.f32 %v5584_v16, %v5583_v0  ;;  %v18067_v18 = vld [vmem:[#allocation68_spill] sm:$0xff]  ;;  %v18072_v0 = vld [vmem:[#allocation73_spill] sm:$0xff] }
0x2498   :  { %v5611_v21 = vsel %vm3796_vm8, %v5592_v57, %v5585_v54  ;;  %v18065_v54 = vld [vmem:[#allocation64_spill] sm:$0xff]  ;;  %v18066_v57 = vld [vmem:[#allocation65_spill] sm:$0xff] }
0x2499   :  { %12554 = vmatmul.mubr.msk.f32.vlgmr.msra.gmra.mxu0 %vm651_vm2, %v5611_v21  ;;  %v18073_v21 = vld [vmem:[#allocation78_spill] sm:$0xff] }
0x249a   :  { %11814 = vmatpush3.xpose.msk.msra.mxu0 %vm439_vm1, %v15378_v34 }
0x249b   :  { %11815 = vmatprep.subr.msk.mxu0 %vm439_vm1, %v15380_v43  ;;  %v18037_v43 = vld [vmem:[#allocation71_spill] sm:$0xff] }
0x249e   :  { %11816 = vmatpush3.xpose.msk.msra.mxu0 %vm439_vm1, %v15388_v26  ;;  %v18038_v26 = vld [vmem:[#allocation74_spill] sm:$0xff] }
0x249f   :  { %11817 = vmatprep.subr.msk.mxu0 %vm439_vm1, %v15390_v20  ;;  %v18039_v20 = vld [vmem:[#allocation75_spill] sm:$0xff] }
0x24a2   :  { %11818 = vmatpush3.xpose.msk.msra.mxu0 %vm439_vm1, %v15396_v30  ;;  %v18040_v30 = vld [vmem:[#allocation39_spill] sm:$0xff] }
0x24a3   :  { %11819 = vmatprep.subr.msk.mxu0 %vm439_vm1, %v15398_v25  ;;  %v18041_v25 = vld [vmem:[#allocation40_spill] sm:$0xff] }
0x24a6   :  { %11820 = vmatpush3.xpose.msk.msra.mxu0 %vm439_vm1, %v15404_v12  ;;  %v18042_v12 = vld [vmem:[#allocation41_spill] sm:$0xff] }
0x24a7   :  { %11821 = vmatprep.subr.msk.mxu0 %vm439_vm1, %v15406_v8  ;;  %v18043_v8 = vld [vmem:[#allocation42_spill] sm:$0xff] }
0x24aa   :  { %11822 = vmatpush3.xpose.msk.msra.mxu0 %vm439_vm1, %v15412_v35  ;;  %v18044_v35 = vld [vmem:[#allocation43_spill] sm:$0xff] }
0x24ab   :  { %11823 = vmatprep.subr.msk.mxu0 %vm439_vm1, %v15414_v61  ;;  %v18045_v61 = vld [vmem:[#allocation44_spill] sm:$0xff] }
0x24ae   :  { %11824 = vmatpush3.xpose.msk.msra.mxu0 %vm439_vm1, %v15420_v41  ;;  %v18046_v41 = vld [vmem:[#allocation45_spill] sm:$0xff] }
0x24af   :  { %11825 = vmatprep.subr.msk.mxu0 %vm439_vm1, %v15422_v7  ;;  %v18047_v7 = vld [vmem:[#allocation46_spill] sm:$0xff] }
0x24b2   :  { %11826 = vmatpush3.xpose.msk.msra.mxu0 %vm439_vm1, %v15428_v4  ;;  %v18048_v4 = vld [vmem:[#allocation47_spill] sm:$0xff] }
0x24b3   :  { %11827 = vmatprep.subr.msk.mxu0 %vm439_vm1, %v15430_v50  ;;  %v18049_v50 = vld [vmem:[#allocation48_spill] sm:$0xff] }
0x24b6   :  { %11828 = vmatpush3.xpose.msk.msra.mxu0 %vm439_vm1, %v15436_v11  ;;  %v18050_v11 = vld [vmem:[#allocation49_spill] sm:$0xff] }
0x24b7   :  { %11829 = vmatprep.subr.msk.mxu0 %vm439_vm1, %v15438_v45  ;;  %v18051_v45 = vld [vmem:[#allocation50_spill] sm:$0xff] }
0x24ba   :  { %11830 = vmatpush3.xpose.msk.msra.mxu0 %vm439_vm1, %v15444_v5  ;;  %v18052_v5 = vld [vmem:[#allocation51_spill] sm:$0xff] }
0x24bb   :  { %11831 = vmatprep.subr.msk.mxu0 %vm439_vm1, %v15446_v53  ;;  %v18053_v53 = vld [vmem:[#allocation52_spill] sm:$0xff] }
0x24be   :  { %11832 = vmatpush3.xpose.msk.msra.mxu0 %vm439_vm1, %v15452_v47  ;;  %v18054_v47 = vld [vmem:[#allocation53_spill] sm:$0xff] }
0x24bf   :  { %11833 = vmatprep.subr.msk.mxu0 %vm439_vm1, %v15454_v40  ;;  %v18055_v40 = vld [vmem:[#allocation54_spill] sm:$0xff] }
0x24c2   :  { %11834 = vmatpush3.xpose.msk.msra.mxu0 %vm439_vm1, %v15460_v56  ;;  %v18056_v56 = vld [vmem:[#allocation55_spill] sm:$0xff] }
0x24c3   :  { %11835 = vmatprep.subr.msk.mxu0 %vm439_vm1, %v15462_v10  ;;  %v18057_v10 = vld [vmem:[#allocation56_spill] sm:$0xff] }
0x24c6   :  { %11836 = vmatpush3.xpose.msk.msra.mxu0 %vm439_vm1, %v15468_v13  ;;  %v18058_v13 = vld [vmem:[#allocation57_spill] sm:$0xff] }
0x24c7   :  { %11837 = vmatprep.subr.msk.mxu0 %vm439_vm1, %v15470_v15  ;;  %v18059_v15 = vld [vmem:[#allocation58_spill] sm:$0xff] }
0x24ca   :  { %11838 = vmatpush3.xpose.msk.msra.mxu0 %vm439_vm1, %v15476_v22  ;;  %v18060_v22 = vld [vmem:[#allocation59_spill] sm:$0xff] }
0x24cb   :  { %11839 = vmatprep.subr.msk.mxu0 %vm439_vm1, %v15478_v14  ;;  %v18061_v14 = vld [vmem:[#allocation60_spill] sm:$0xff] }
0x24ce   :  { %11840 = vmatpush3.xpose.msk.msra.mxu0 %vm439_vm1, %v15484_v58  ;;  %v18062_v58 = vld [vmem:[#allocation61_spill] sm:$0xff] }
0x24cf   :  { %11841 = vmatprep.subr.msk.mxu0 %vm439_vm1, %v15486_v63  ;;  %v18063_v63 = vld [vmem:[#allocation62_spill] sm:$0xff] }
0x24d2   :  { %11842 = vmatpush3.xpose.msk.msra.mxu0 %vm439_vm1, %v18033_v55 }
0x24d3   :  { %11843 = vmatprep.subr.msk.mxu0 %vm439_vm1, %v18034_v49 }
0x24d6   :  { %11844 = vmatpush3.xpose.msk.msra.mxu0 %vm439_vm1, %v18035_v36 }
0x24d7   :  { %12625 = vmatprep.subr.mxu0 %v17908_v44 }
0x2559   :  { %v5728_v38 = vpop.f32.mrf.mxu0 }
0x255a   :  { %v15895_v19 = vadd.f32 %v15892_v6, %v5728_v38 }
0x255b   :  { %v12555_v34 = vpop.f32.mrf.mxu0 }
0x255c   :  { %18036 = vst [vmem:[#allocation67_spill] sm:$0xff] %v15895_v19  ;;  %12569 = vmatmul.mubr.f32.vlgmr.msra.gmra.mxu1 %v15895_v19  ;;  %v16287_v19 = vld [vmem:[#allocation19 + $0x48] sm:$0xff] }
0x255d   :  { %11780 = vmatpush3.xpose.msk.msra.mxu1 %vm651_vm2, %v18037_v43  ;;  %11811 = vmatprep.mubr.msk.f32.mxu1 %vm651_vm2, %v15695_v52  ;;  %18099 = vst [vmem:[#allocation43_spill] sm:$0xff] %v16287_v19 }
0x255e   :  { %11781 = vmatprep.subr.msk.mxu1 %vm651_vm2, %v18038_v26  ;;  %v18074_v26 = vld [vmem:[#allocation79_spill] sm:$0xff] }
0x2561   :  { %11782 = vmatpush3.xpose.msk.msra.mxu1 %vm651_vm2, %v18039_v20 }
0x2562   :  { %11783 = vmatprep.subr.msk.mxu1 %vm651_vm2, %v18040_v30 }
0x2565   :  { %11784 = vmatpush3.xpose.msk.msra.mxu1 %vm651_vm2, %v18041_v25 }
0x2566   :  { %11785 = vmatprep.subr.msk.mxu1 %vm651_vm2, %v18042_v12 }
0x2569   :  { %11786 = vmatpush3.xpose.msk.msra.mxu1 %vm651_vm2, %v18043_v8 }
0x256a   :  { %11787 = vmatprep.subr.msk.mxu1 %vm651_vm2, %v18044_v35 }
0x256d   :  { %11788 = vmatpush3.xpose.msk.msra.mxu1 %vm651_vm2, %v18045_v61 }
0x256e   :  { %11789 = vmatprep.subr.msk.mxu1 %vm651_vm2, %v18046_v41 }
0x2571   :  { %11790 = vmatpush3.xpose.msk.msra.mxu1 %vm651_vm2, %v18047_v7 }
0x2572   :  { %11791 = vmatprep.subr.msk.mxu1 %vm651_vm2, %v18048_v4 }
0x2575   :  { %11792 = vmatpush3.xpose.msk.msra.mxu1 %vm651_vm2, %v18049_v50 }
0x2576   :  { %11793 = vmatprep.subr.msk.mxu1 %vm651_vm2, %v18050_v11 }
0x2579   :  { %11794 = vmatpush3.xpose.msk.msra.mxu1 %vm651_vm2, %v18051_v45 }
0x257a   :  { %11795 = vmatprep.subr.msk.mxu1 %vm651_vm2, %v18052_v5 }
0x257d   :  { %11796 = vmatpush3.xpose.msk.msra.mxu1 %vm651_vm2, %v18053_v53 }
0x257e   :  { %11797 = vmatprep.subr.msk.mxu1 %vm651_vm2, %v18054_v47 }
0x2581   :  { %11798 = vmatpush3.xpose.msk.msra.mxu1 %vm651_vm2, %v18055_v40 }
0x2582   :  { %11799 = vmatprep.subr.msk.mxu1 %vm651_vm2, %v18056_v56 }
0x2585   :  { %11800 = vmatpush3.xpose.msk.msra.mxu1 %vm651_vm2, %v18057_v10  ;;  %v18083_v10 = vld [vmem:[#allocation82_spill] sm:$0xff] }
0x2586   :  { %11801 = vmatprep.subr.msk.mxu1 %vm651_vm2, %v18058_v13 }
0x2589   :  { %11802 = vmatpush3.xpose.msk.msra.mxu1 %vm651_vm2, %v18059_v15 }
0x258a   :  { %11803 = vmatprep.subr.msk.mxu1 %vm651_vm2, %v18060_v22 }
0x258d   :  { %11804 = vmatpush3.xpose.msk.msra.mxu1 %vm651_vm2, %v18061_v14  ;;  %v18084_v14 = vld [vmem:[#allocation37_spill] sm:$0xff] }
0x258e   :  { %11805 = vmatprep.subr.msk.mxu1 %vm651_vm2, %v18062_v58 }
0x2591   :  { %11806 = vmatpush3.xpose.msk.msra.mxu1 %vm651_vm2, %v18063_v63 }
0x2592   :  { %11807 = vmatprep.subr.msk.mxu1 %vm651_vm2, %v18064_v60  ;;  %v18085_v60 = vld [vmem:[#allocation76_spill] sm:$0xff] }
0x2595   :  { %11808 = vmatpush3.xpose.msk.msra.mxu1 %vm651_vm2, %v18065_v54 }
0x2596   :  { %11809 = vmatprep.subr.msk.mxu1 %vm651_vm2, %v18066_v57 }
0x2599   :  { %11810 = vmatpush3.xpose.msk.msra.mxu1 %vm651_vm2, %v18067_v18 }
0x259a   :  { %12571 = vmatprep.subr.mxu1 %v17908_v44 }
0x259c   :  { %11812 = vmatmul.mubr.msk.f32.vlgmr.msra.gmra.mxu1 %vm651_vm2, %v15695_v52  ;;  %v18069_v52 = vld [vmem:[#allocation86_spill] sm:$0xff] }
0x259d   :  { %12572 = vmatpush3.xpose.msk.msra.mxu1 %vm651_vm2, %v15650_v33  ;;  %12587 = vmatprep.mubr.msk.f32.mxu1 %vm13533_vm7, %v17908_v44  ;;  %v18068_v33 = vld [vmem:[#allocation85_spill] sm:$0xff] }
0x259e   :  { %12573 = vmatprep.subr.mxu1 %v17908_v44 }
0x25a1   :  { %12574 = vmatpush3.xpose.msk.msra.mxu1 %vm651_vm2, %v15655_v29  ;;  %v18070_v29 = vld [vmem:[#allocation87_spill] sm:$0xff] }
0x25a2   :  { %12575 = vmatprep.subr.mxu1 %v17908_v44 }
0x25a5   :  { %12576 = vmatpush3.xpose.msk.msra.mxu1 %vm651_vm2, %v15660_v27  ;;  %v18071_v27 = vld [vmem:[#allocation88_spill] sm:$0xff] }
0x25a6   :  { %12577 = vmatprep.subr.mxu1 %v17908_v44 }
0x25a9   :  { %12578 = vmatpush3.xpose.msk.msra.mxu1 %vm651_vm2, %v15665_v1 }
0x25aa   :  { %12579 = vmatprep.subr.mxu1 %v17908_v44 }
0x25ad   :  { %12580 = vmatpush3.xpose.msk.msra.mxu1 %vm651_vm2, %v18068_v33  ;;  %v18086_v33 = vld [vmem:[#allocation77_spill] sm:$0xff] }
0x25ae   :  { %12581 = vmatprep.subr.mxu1 %v17908_v44 }
0x25b1   :  { %12582 = vmatpush3.xpose.msk.msra.mxu1 %vm651_vm2, %v18069_v52 }
0x25b2   :  { %12583 = vmatprep.subr.mxu1 %v17908_v44 }
0x25b5   :  { %12584 = vmatpush3.xpose.msk.msra.mxu1 %vm651_vm2, %v18070_v29 }
0x25b6   :  { %12585 = vmatprep.subr.mxu1 %v17908_v44 }
0x25b9   :  { %12586 = vmatpush3.xpose.msk.msra.mxu1 %vm651_vm2, %v18071_v27 }
0x25ba   :  { %12590 = vmatprep.subr.mxu1 %v17908_v44 }
0x261c   :  { %v5813_v1 = vpop.f32.mrf.mxu1 }
0x261d   :  { %v5814_v3 = vadd.f32 %v18072_v0, %v5813_v1 }
0x261e   :  { %v12570_v2 = vpop.f32.mrf.mxu1 }
0x261f   :  { %v5817_v9 = vmax.f32 %v5814_v3, 0.0  ;;  %v18087_v2 = vld [vmem:[#allocation83_spill] sm:$0xff] }
0x2621   :  { %11845 = vmatprep.mubr.msk.f32.mxu0 %vm439_vm1, %v5817_v9 }
0x2622   :  { %11846 = vmatmul.mubr.msk.f32.vlgmr.msra.gmra.mxu0 %vm439_vm1, %v5817_v9 }
0x2623   :  { %12637 = vmatprep.mubr.msk.f32.mxu0 %vm13533_vm7, %v17908_v44 }
0x265c   :  { %v6044_v46 = vpop.f32.mrf.mxu1 }
0x265e   :  { %v6046_v34 = vpop.f32.mrf.mxu1 }
0x26e2   :  { %v6214_v37 = vpop.f32.mrf.mxu0 }
0x26e3   :  { %v6215_v16 = vadd.f32 %v6214_v37, %v6044_v46 }
0x26e4   :  { %v6216_v38 = vpop.f32.mrf.mxu0 }
0x26e5   :  { %v6219_v55 = vadd.f32 %v6215_v16, %v18073_v21  ;;  %v6217_v43 = vadd.f32 %v6216_v38, %v6046_v34 }
0x26e7   :  { %v6221_v49 = vsub.f32 0.0, %v6219_v55  ;;  %v6220_v20 = vadd.f32 %v6217_v43, %v18074_v26 }
0x26e9   :  { %v6222_v36 = vmul.f32 1.442695, %v6221_v49  ;;  %v6228_v61 = vsub.f32 0.0, %v6220_v20 }
0x26eb   :  { %13085 = vpow2.f32 %v6222_v36  ;;  %v6229_v41 = vmul.f32 1.442695, %v6228_v61 }
0x26ec   :  { %13087 = vtanh.f32 %v6220_v20 }
0x26f8   :  { %v13086_v30 = vpop.eup %13085 }
0x26f9   :  { %v6224_v25 = vadd.f32 1.0, %v13086_v30  ;;  %v13088_v12 = vpop.eup %13087 }
0x26fb   :  { %13089 = vrcp.f32 %v6224_v25 }
0x26fc   :  { %13091 = vpow2.f32 %v6229_v41  ;;  %v16080_v41 = vld [vmem:[#allocation14 + $0x28] sm:$0xff] }
0x26fd   :  { %12626 = vmatpush3.xpose.msra.mxu0 %v16080_v41 }
0x26fe   :  { %12627 = vmatprep.subr.mxu0 %v17908_v44 }
0x2708   :  { %v13090_v8 = vpop.eup %13089 }
0x2709   :  { %v6235_v35 = vmul.f32 %v13090_v8, %v13088_v12  ;;  %v13092_v7 = vpop.eup %13091  ;;  %v6234_v50 = vmul.f32 %v13090_v8, %v15691_v51  ;;  %v18075_v51 = vld [vmem:[#allocation90_spill] sm:$0xff] }
0x270a   :  { %v6231_v4 = vadd.f32 1.0, %v13092_v7  ;;  %v18089_v8 = vld [vmem:[#allocation38_spill] sm:$0xff] }
0x270b   :  { %6237 = vrot.lane.b32.xlu1 %v6235_v35, %s13532_s28  ;;  %v16084_v7 = vld [vmem:[#allocation14 + $0x20] sm:$0xff] }
0x270c   :  { %13093 = vrcp.f32 %v6231_v4  ;;  %12628 = vmatpush3.xpose.msra.mxu0 %v16084_v7  ;;  %v16088_v4 = vld [vmem:[#allocation14 + $0x18] sm:$0xff] }
0x270d   :  { %12629 = vmatprep.subr.mxu0 %v17908_v44 }
0x2710   :  { %12630 = vmatpush3.xpose.msra.mxu0 %v16088_v4 }
0x2711   :  { %12631 = vmatprep.subr.mxu0 %v17908_v44 }
0x2719   :  { %v13094_v5 = vpop.eup %13093 }
0x277d   :  { %v6238_v11 = vpop.permute.xlu1 %6237 }
0x277e   :  { %v16000_v45 = vadd.f32 %v6238_v11, %v6234_v50  ;;  %v16092_v50 = vld [vmem:[#allocation14 + $0x10] sm:$0xff]  ;;  %v16096_v11 = vld [vmem:[#allocation14 + $0x8] sm:$0xff] }
0x277f   :  { %12632 = vmatpush3.xpose.msra.mxu0 %v16092_v50 }
0x2780   :  { %13095 = vtanh.f32 %v16000_v45  ;;  %12633 = vmatprep.subr.mxu0 %v17908_v44 }
0x2783   :  { %12634 = vmatpush3.xpose.msra.mxu0 %v16096_v11 }
0x2784   :  { %12635 = vmatprep.subr.mxu0 %v17908_v44 }
0x278d   :  { %v13096_v53 = vpop.eup %13095 }
0x278e   :  { %v6242_v47 = vmul.f32 %v13096_v53, %v13094_v5  ;;  %v16100_v5 = vld [vmem:[#allocation14] sm:$0xff] }
0x278f   :  { %12636 = vmatpush3.xpose.msra.mxu0 %v16100_v5 }
0x2790   :  { %6252 = vrot.lane.b32.xlu0 %v6242_v47, %s13532_s28 }
0x2802   :  { %v16004_v40 = vpop.permute.xlu0 %6252 }
0x2803   :  { %12588 = vmatmul.mubr.msk.f32.vlgmr.msra.gmra.mxu1 %vm651_vm2, %v16004_v40 }
0x2804   :  { %12591 = vmatpush3.xpose.msk.msra.mxu1 %vm651_vm2, %v15733_v31  ;;  %12622 = vmatprep.mubr.msk.f32.mxu1 %vm13533_vm7, %v17908_v44  ;;  %v18076_v31 = vld [vmem:[#allocation91_spill] sm:$0xff] }
0x2805   :  { %12592 = vmatprep.subr.mxu1 %v17908_v44 }
0x2808   :  { %12593 = vmatpush3.xpose.msk.msra.mxu1 %vm651_vm2, %v15738_v39  ;;  %v18077_v39 = vld [vmem:[#allocation92_spill] sm:$0xff] }
0x2809   :  { %12594 = vmatprep.subr.mxu1 %v17908_v44 }
0x280c   :  { %12595 = vmatpush3.xpose.msk.msra.mxu1 %vm651_vm2, %v15743_v24  ;;  %v18078_v24 = vld [vmem:[#allocation80_spill] sm:$0xff] }
0x280d   :  { %12596 = vmatprep.subr.mxu1 %v17908_v44 }
0x2810   :  { %12597 = vmatpush3.xpose.msk.msra.mxu1 %vm651_vm2, %v15748_v28  ;;  %v18079_v28 = vld [vmem:[#allocation81_spill] sm:$0xff] }
0x2811   :  { %12598 = vmatprep.subr.mxu1 %v17908_v44 }
0x2814   :  { %12599 = vmatpush3.xpose.msk.msra.mxu1 %vm651_vm2, %v15753_v17  ;;  %v18080_v17 = vld [vmem:[#allocation93_spill] sm:$0xff] }
0x2815   :  { %12600 = vmatprep.subr.mxu1 %v17908_v44 }
0x2818   :  { %12601 = vmatpush3.xpose.msk.msra.mxu1 %vm651_vm2, %v15758_v32  ;;  %v18081_v32 = vld [vmem:[#allocation94_spill] sm:$0xff] }
0x2819   :  { %12602 = vmatprep.subr.mxu1 %v17908_v44 }
0x281c   :  { %12603 = vmatpush3.xpose.msk.msra.mxu1 %vm651_vm2, %v15763_v42 }
0x281d   :  { %12604 = vmatprep.subr.mxu1 %v17908_v44 }
0x2820   :  { %12605 = vmatpush3.xpose.msk.msra.mxu1 %vm651_vm2, %v15768_v23  ;;  %v18082_v23 = vld [vmem:[#allocation89_spill] sm:$0xff] }
0x2821   :  { %12606 = vmatprep.subr.mxu1 %v17908_v44 }
0x2824   :  { %12607 = vmatpush3.xpose.msk.msra.mxu1 %vm651_vm2, %v15773_v48 }
0x2825   :  { %12608 = vmatprep.subr.mxu1 %v17908_v44 }
0x2828   :  { %12609 = vmatpush3.xpose.msk.msra.mxu1 %vm651_vm2, %v18075_v51 }
0x2829   :  { %12610 = vmatprep.subr.mxu1 %v17908_v44 }
0x282c   :  { %12611 = vmatpush3.xpose.msk.msra.mxu1 %vm651_vm2, %v18076_v31 }
0x282d   :  { %12612 = vmatprep.subr.mxu1 %v17908_v44 }
0x2830   :  { %12613 = vmatpush3.xpose.msk.msra.mxu1 %vm651_vm2, %v18077_v39 }
0x2831   :  { %12614 = vmatprep.subr.mxu1 %v17908_v44 }
0x2834   :  { %12615 = vmatpush3.xpose.msk.msra.mxu1 %vm651_vm2, %v18078_v24 }
0x2835   :  { %12616 = vmatprep.subr.mxu1 %v17908_v44 }
0x2838   :  { %12617 = vmatpush3.xpose.msk.msra.mxu1 %vm651_vm2, %v18079_v28 }
0x2839   :  { %12618 = vmatprep.subr.mxu1 %v17908_v44 }
0x283c   :  { %12619 = vmatpush3.xpose.msk.msra.mxu1 %vm651_vm2, %v18080_v17 }
0x283d   :  { %12620 = vmatprep.subr.mxu1 %v17908_v44 }
0x2840   :  { %12621 = vmatpush3.xpose.msk.msra.mxu1 %vm651_vm2, %v18081_v32 }
0x28c3   :  { %v6346_v42 = vpop.f32.mrf.mxu1 }
0x28c4   :  { %v6347_v48 = vadd.f32 %v18082_v23, %v6346_v42 }
0x28c5   :  { %v12589_v56 = vpop.f32.mrf.mxu1 }
0x28c6   :  { %v6357_v13 = vrot.slane %v6347_v48, %v18083_v10 }
0x28c8   :  { %v6358_v15 = vcombine.high %v6357_v13, %v6357_v13  ;;  %v6365_v22 = vrot.slane %v6357_v13, %v18083_v10 }
0x28ca   :  { %v6376_v58 = vrot.slane %v6365_v22, %v18084_v14  ;;  %v6372_v63 = vrot.slane %v6358_v15, %v18083_v10 }
0x28cc   :  { %v6383_v54 = vmul.f32 %v6376_v58, %v18085_v60  ;;  %v6380_v57 = vrot.slane %v6372_v63, %v18084_v14 }
0x28ce   :  { %v6385_v18 = vsel %vm651_vm2, %v6383_v54, 0.0  ;;  %v6384_v52 = vmul.f32 %v6380_v57, %v18086_v33  ;;  %v16109_v57 = vld [vmem:[#allocation19 + $0xf8] sm:$0xff] }
0x28cf   :  { %6386 = vadd.xlane.f32.xlu1 %v6385_v18  ;;  %11880 = vmatprep.subr.msk.mxu0 %vm651_vm2, %v16109_v57  ;;  %v16113_v18 = vld [vmem:[#allocation17 + $0xf8] sm:$0xff] }
0x28d0   :  { %v6388_v29 = vsel %vm651_vm2, %v6384_v52, 0.0  ;;  %v16115_v52 = vld [vmem:[#allocation17 + $0x78] sm:$0xff]  ;;  %11914 = vmatprep.subr.msk.mxu1 %vm439_vm1, %v16113_v18 }
0x28d1   :  { %6389 = vadd.xlane.f32.xlu0 %v6388_v29  ;;  %v16117_v29 = vld [vmem:[#allocation17 + $0xf0] sm:$0xff] }
0x2958   :  { %v6387_v27 = vpop.xlane.xlu1 %6386 }
0x2959   :  { %v6391_v1 = vmul.f32 0.125, %v6387_v27  ;;  %v16125_v27 = vld [vmem:[#allocation17 + $0x70] sm:$0xff] }
0x295a   :  { %v6390_v0 = vpop.xlane.xlu0 %6389 }
0x295b   :  { %v6392_v3 = vmul.f32 0.125, %v6390_v0  ;;  %v6398_v9 = vrot.slane %v6391_v1, %v18087_v2  ;;  %v16127_v1 = vld [vmem:[#allocation17 + $0xe8] sm:$0xff] }
0x295c   :  { %v16133_v0 = vld [vmem:[#allocation17 + $0x68] sm:$0xff] }
0x295d   :  { %v6402_v46 = vrot.slane %v6392_v3, %v18087_v2  ;;  %v16135_v3 = vld [vmem:[#allocation17 + $0xe0] sm:$0xff] }
0x295f   :  { %v6403_v37 = vsel %vm3796_vm8, %v6402_v46, %v6398_v9  ;;  %v16141_v9 = vld [vmem:[#allocation17 + $0x60] sm:$0xff]  ;;  %v16143_v46 = vld [vmem:[#allocation17 + $0xd8] sm:$0xff] }
0x2960   :  { %v6405_v55 = vsel %vm3783_vm9, %v6403_v37, -1e+09  ;;  %v16149_v37 = vld [vmem:[#allocation17 + $0x58] sm:$0xff] }
0x2961   :  { %v6406_v49 = vsel %vm3800_vm10, %v6405_v55, -inf }
0x2962   :  { %6407 = vmax.xlane.f32.xlu0 %v6406_v49  ;;  %v16157_v49 = vld [vmem:[#allocation17 + $0x50] sm:$0xff] }
0x29eb   :  { %v6408_v36 = vpop.xlane.xlu0 %6407 }
0x29ec   :  { %v6409_v38 = vsub.f32 %v6405_v55, %v6408_v36  ;;  %v16151_v55 = vld [vmem:[#allocation17 + $0xd0] sm:$0xff]  ;;  %v16159_v36 = vld [vmem:[#allocation17 + $0xc8] sm:$0xff] }
0x29ee   :  { %v6410_v34 = vmul.f32 1.442695, %v6409_v38  ;;  %v16165_v38 = vld [vmem:[#allocation17 + $0x48] sm:$0xff] }
0x29f0   :  { %13097 = vpow2.f32 %v6410_v34  ;;  %v16167_v34 = vld [vmem:[#allocation17 + $0xc0] sm:$0xff] }
0x29fd   :  { %v13098_v43 = vpop.eup %13097 }
0x29fe   :  { %v6412_v20 = vsel %vm3800_vm10, %v13098_v43, 0.0 }
0x29ff   :  { %6413 = vadd.xlane.f32.xlu1 %v6412_v20  ;;  %v16175_v20 = vld [vmem:[#allocation17 + $0xb8] sm:$0xff] }
0x2a88   :  { %v6414_v30 = vpop.xlane.xlu1 %6413 }
0x2a89   :  { %13099 = vrcp.f32 %v6414_v30  ;;  %v16181_v30 = vld [vmem:[#allocation17 + $0x38] sm:$0xff] }
0x2a96   :  { %v13100_v25 = vpop.eup %13099 }
0x2a97   :  { %v6416_v12 = vmul.f32 %v13100_v25, %v13098_v43  ;;  %v16173_v43 = vld [vmem:[#allocation17 + $0x40] sm:$0xff]  ;;  %v16183_v25 = vld [vmem:[#allocation17 + $0xb0] sm:$0xff] }
0x2a99   :  { %v6427_v35 = vrot.slane %v6416_v12, %v18089_v8  ;;  %10746 = vst.msk [vmem:[%s17609_s23 + $0x6] sm:$0x3] %vm3800_vm10, %v6416_v12  ;;  %v6420_v61 = vrot.slane %v6416_v12, %v18084_v14  ;;  %v16189_v12 = vld [vmem:[#allocation17 + $0x30] sm:$0xff] }
0x2a9b   :  { %6429 = vbcast.lane.b32.xlu1 %v6427_v35, 256  ;;  %6422 = vbcast.lane.b32.xlu0 %v6420_v61, 256  ;;  %v16191_v35 = vld [vmem:[#allocation17 + $0xa8] sm:$0xff] }
0x2a9c   :  { %v16197_v61 = vld [vmem:[#allocation17 + $0x28] sm:$0xff] }
0x2b0d   :  { %v6430_v53 = vpop.permute.xlu1 %6429  ;;  %v6423_v47 = vpop.permute.xlu0 %6422 }
0x2b0e   :  { %v6432_v51 = vmul.f32 %v6430_v53, %v14880_v59  ;;  %v6431_v31 = vmul.f32 %v6423_v47, %v14878_v62  ;;  %v16199_v53 = vld [vmem:[#allocation17 + $0xa0] sm:$0xff] }
0x2b0f   :  { %v16205_v47 = vld [vmem:[#allocation17 + $0x20] sm:$0xff] }
0x2b10   :  { %v6440_v39 = vsel %vm651_vm2, %v6432_v51, 0.0  ;;  %v6433_v24 = vsel %vm651_vm2, %v6431_v31, 0.0  ;;  %v16207_v51 = vld [vmem:[#allocation17 + $0x98] sm:$0xff] }
0x2b11   :  { %v6441_v28 = vrot.slane %v6440_v39, 4  ;;  %v6434_v17 = vrot.slane %v6433_v24, 4  ;;  %v16213_v31 = vld [vmem:[#allocation17 + $0x18] sm:$0xff] }
0x2b13   :  { %v6442_v32 = vadd.f32 %v6441_v28, %v6440_v39  ;;  %v6435_v42 = vadd.f32 %v6434_v17, %v6433_v24  ;;  %v16215_v39 = vld [vmem:[#allocation17 + $0x90] sm:$0xff]  ;;  %v16223_v28 = vld [vmem:[#allocation17 + $0x88] sm:$0xff] }
0x2b14   :  { %v16221_v24 = vld [vmem:[#allocation17 + $0x10] sm:$0xff]  ;;  %v16229_v17 = vld [vmem:[#allocation17 + $0x8] sm:$0xff] }
0x2b15   :  { %v6443_v23 = vrot.slane %v6442_v32, 2  ;;  %v6436_v48 = vrot.slane %v6435_v42, 2 }
0x2b17   :  { %v6444_v56 = vadd.f32 %v6443_v23, %v6442_v32  ;;  %v6437_v13 = vadd.f32 %v6436_v48, %v6435_v42  ;;  %v16236_v23 = vld [vmem:[#allocation19 + $0x78] sm:$0xff] }
0x2b19   :  { %v6445_v15 = vrot.slane %v6444_v56, 1  ;;  %v6438_v22 = vrot.slane %v6437_v13, 1 }
0x2b1b   :  { %v6446_v58 = vadd.f32 %v6445_v15, %v6444_v56  ;;  %v6439_v63 = vadd.f32 %v6438_v22, %v6437_v13  ;;  %v16238_v56 = vld [vmem:[#allocation19 + $0xf0] sm:$0xff]  ;;  %v16255_v15 = vld [vmem:[#allocation19 + $0x68] sm:$0xff]  ;;  %v16257_v22 = vld [vmem:[#allocation19 + $0xe0] sm:$0xff] }
0x2b1c   :  { %v16247_v13 = vld [vmem:[#allocation19 + $0x70] sm:$0xff]  ;;  %18091 = vst [vmem:[#allocation72_spill] sm:$0xff] %v16255_v15  ;;  %18092 = vst [vmem:[#allocation71_spill] sm:$0xff] %v16257_v22 }
0x2b1d   :  { %v6465_v54 = vsel %vm3796_vm8, %v6446_v58, %v6439_v63  ;;  %v16263_v58 = vld [vmem:[#allocation19 + $0x60] sm:$0xff]  ;;  %v16265_v63 = vld [vmem:[#allocation19 + $0xd8] sm:$0xff] }
0x2b1e   :  { %12623 = vmatmul.mubr.msk.f32.vlgmr.msra.gmra.mxu1 %vm651_vm2, %v6465_v54  ;;  %18093 = vst [vmem:[#allocation74_spill] sm:$0xff] %v16263_v58  ;;  %18094 = vst [vmem:[#allocation75_spill] sm:$0xff] %v16265_v63  ;;  %v16271_v54 = vld [vmem:[#allocation19 + $0x58] sm:$0xff] }
0x2b1f   :  { %11915 = vmatpush3.xpose.msk.msra.mxu1 %vm439_vm1, %v16115_v52  ;;  %18095 = vst [vmem:[#allocation39_spill] sm:$0xff] %v16271_v54 }
0x2b20   :  { %11916 = vmatprep.subr.msk.mxu1 %vm439_vm1, %v16117_v29 }
0x2b23   :  { %11917 = vmatpush3.xpose.msk.msra.mxu1 %vm439_vm1, %v16125_v27 }
0x2b24   :  { %11918 = vmatprep.subr.msk.mxu1 %vm439_vm1, %v16127_v1 }
0x2b27   :  { %11919 = vmatpush3.xpose.msk.msra.mxu1 %vm439_vm1, %v16133_v0 }
0x2b28   :  { %11920 = vmatprep.subr.msk.mxu1 %vm439_vm1, %v16135_v3 }
0x2b2b   :  { %11921 = vmatpush3.xpose.msk.msra.mxu1 %vm439_vm1, %v16141_v9 }
0x2b2c   :  { %11922 = vmatprep.subr.msk.mxu1 %vm439_vm1, %v16143_v46 }
0x2b2f   :  { %11923 = vmatpush3.xpose.msk.msra.mxu1 %vm439_vm1, %v16149_v37 }
0x2b30   :  { %11924 = vmatprep.subr.msk.mxu1 %vm439_vm1, %v16151_v55 }
0x2b33   :  { %11925 = vmatpush3.xpose.msk.msra.mxu1 %vm439_vm1, %v16157_v49 }
0x2b34   :  { %11926 = vmatprep.subr.msk.mxu1 %vm439_vm1, %v16159_v36 }
0x2b37   :  { %11927 = vmatpush3.xpose.msk.msra.mxu1 %vm439_vm1, %v16165_v38 }
0x2b38   :  { %11928 = vmatprep.subr.msk.mxu1 %vm439_vm1, %v16167_v34 }
0x2b3b   :  { %11929 = vmatpush3.xpose.msk.msra.mxu1 %vm439_vm1, %v16173_v43 }
0x2b3c   :  { %11930 = vmatprep.subr.msk.mxu1 %vm439_vm1, %v16175_v20 }
0x2b3f   :  { %11931 = vmatpush3.xpose.msk.msra.mxu1 %vm439_vm1, %v16181_v30 }
0x2b40   :  { %11932 = vmatprep.subr.msk.mxu1 %vm439_vm1, %v16183_v25 }
0x2b43   :  { %11933 = vmatpush3.xpose.msk.msra.mxu1 %vm439_vm1, %v16189_v12 }
0x2b44   :  { %11934 = vmatprep.subr.msk.mxu1 %vm439_vm1, %v16191_v35 }
0x2b47   :  { %11935 = vmatpush3.xpose.msk.msra.mxu1 %vm439_vm1, %v16197_v61 }
0x2b48   :  { %11936 = vmatprep.subr.msk.mxu1 %vm439_vm1, %v16199_v53 }
0x2b4b   :  { %11937 = vmatpush3.xpose.msk.msra.mxu1 %vm439_vm1, %v16205_v47 }
0x2b4c   :  { %11938 = vmatprep.subr.msk.mxu1 %vm439_vm1, %v16207_v51 }
0x2b4f   :  { %11939 = vmatpush3.xpose.msk.msra.mxu1 %vm439_vm1, %v16213_v31 }
0x2b50   :  { %11940 = vmatprep.subr.msk.mxu1 %vm439_vm1, %v16215_v39 }
0x2b53   :  { %11941 = vmatpush3.xpose.msk.msra.mxu1 %vm439_vm1, %v16221_v24 }
0x2b54   :  { %11942 = vmatprep.subr.msk.mxu1 %vm439_vm1, %v16223_v28 }
0x2b57   :  { %11943 = vmatpush3.xpose.msk.msra.mxu1 %vm439_vm1, %v16229_v17 }
0x2bde   :  { %v6582_v32 = vpop.f32.mrf.mxu1 }
0x2bdf   :  { %v16234_v42 = vadd.f32 %v15892_v6, %v6582_v32  ;;  %v16249_v6 = vld [vmem:[#allocation19 + $0xe8] sm:$0xff]  ;;  %v16273_v32 = vld [vmem:[#allocation19 + $0xd0] sm:$0xff] }
0x2be0   :  { %v12624_v48 = vpop.f32.mrf.mxu1  ;;  %18096 = vst [vmem:[#allocation40_spill] sm:$0xff] %v16273_v32 }
0x2be1   :  { %18090 = vst [vmem:[#allocation69_spill] sm:$0xff] %v16234_v42  ;;  %12638 = vmatmul.mubr.f32.vlgmr.msra.gmra.mxu0 %v16234_v42  ;;  %v16279_v48 = vld [vmem:[#allocation19 + $0x50] sm:$0xff]  ;;  %v16281_v42 = vld [vmem:[#allocation19 + $0xc8] sm:$0xff] }
0x2be2   :  { %11881 = vmatpush3.xpose.msk.msra.mxu0 %vm651_vm2, %v16236_v23  ;;  %11912 = vmatprep.mubr.msk.f32.mxu0 %vm651_vm2, %v16004_v40  ;;  %18097 = vst [vmem:[#allocation41_spill] sm:$0xff] %v16279_v48  ;;  %18098 = vst [vmem:[#allocation42_spill] sm:$0xff] %v16281_v42 }
0x2be3   :  { %11882 = vmatprep.subr.msk.mxu0 %vm651_vm2, %v16238_v56 }
0x2be6   :  { %11883 = vmatpush3.xpose.msk.msra.mxu0 %vm651_vm2, %v16247_v13 }
0x2be7   :  { %11884 = vmatprep.subr.msk.mxu0 %vm651_vm2, %v16249_v6 }
0x2bea   :  { %11885 = vmatpush3.xpose.msk.msra.mxu0 %vm651_vm2, %v16255_v15 }
0x2beb   :  { %11886 = vmatprep.subr.msk.mxu0 %vm651_vm2, %v16257_v22 }
0x2bee   :  { %11887 = vmatpush3.xpose.msk.msra.mxu0 %vm651_vm2, %v16263_v58 }
0x2bef   :  { %11888 = vmatprep.subr.msk.mxu0 %vm651_vm2, %v16265_v63  ;;  %v16289_v63 = vld [vmem:[#allocation19 + $0xc0] sm:$0xff] }
0x2bf0   :  { %18100 = vst [vmem:[#allocation44_spill] sm:$0xff] %v16289_v63 }
0x2bf2   :  { %11889 = vmatpush3.xpose.msk.msra.mxu0 %vm651_vm2, %v16271_v54  ;;  %v16297_v54 = vld [vmem:[#allocation19 + $0xb8] sm:$0xff] }
0x2bf3   :  { %11890 = vmatprep.subr.msk.mxu0 %vm651_vm2, %v16273_v32  ;;  %v16295_v32 = vld [vmem:[#allocation19 + $0x40] sm:$0xff]  ;;  %18102 = vst [vmem:[#allocation46_spill] sm:$0xff] %v16297_v54 }
0x2bf4   :  { %18101 = vst [vmem:[#allocation45_spill] sm:$0xff] %v16295_v32 }
0x2bf6   :  { %11891 = vmatpush3.xpose.msk.msra.mxu0 %vm651_vm2, %v16279_v48  ;;  %v16305_v48 = vld [vmem:[#allocation19 + $0xb0] sm:$0xff] }
0x2bf7   :  { %11892 = vmatprep.subr.msk.mxu0 %vm651_vm2, %v16281_v42  ;;  %v16303_v42 = vld [vmem:[#allocation19 + $0x38] sm:$0xff]  ;;  %18104 = vst [vmem:[#allocation48_spill] sm:$0xff] %v16305_v48 }
0x2bf8   :  { %18103 = vst [vmem:[#allocation47_spill] sm:$0xff] %v16303_v42 }
0x2bfa   :  { %11893 = vmatpush3.xpose.msk.msra.mxu0 %vm651_vm2, %v16287_v19  ;;  %v16313_v19 = vld [vmem:[#allocation19 + $0xa8] sm:$0xff] }
0x2bfb   :  { %11894 = vmatprep.subr.msk.mxu0 %vm651_vm2, %v16289_v63  ;;  %v16311_v63 = vld [vmem:[#allocation19 + $0x30] sm:$0xff]  ;;  %18106 = vst [vmem:[#allocation50_spill] sm:$0xff] %v16313_v19 }
0x2bfc   :  { %18105 = vst [vmem:[#allocation49_spill] sm:$0xff] %v16311_v63 }
0x2bfe   :  { %11895 = vmatpush3.xpose.msk.msra.mxu0 %vm651_vm2, %v16295_v32  ;;  %v16321_v32 = vld [vmem:[#allocation19 + $0xa0] sm:$0xff] }
0x2bff   :  { %11896 = vmatprep.subr.msk.mxu0 %vm651_vm2, %v16297_v54  ;;  %v16319_v54 = vld [vmem:[#allocation19 + $0x28] sm:$0xff]  ;;  %18108 = vst [vmem:[#allocation52_spill] sm:$0xff] %v16321_v32 }
0x2c00   :  { %18107 = vst [vmem:[#allocation51_spill] sm:$0xff] %v16319_v54 }
0x2c02   :  { %11897 = vmatpush3.xpose.msk.msra.mxu0 %vm651_vm2, %v16303_v42  ;;  %v16329_v42 = vld [vmem:[#allocation19 + $0x98] sm:$0xff] }
0x2c03   :  { %11898 = vmatprep.subr.msk.mxu0 %vm651_vm2, %v16305_v48  ;;  %v16327_v48 = vld [vmem:[#allocation19 + $0x20] sm:$0xff]  ;;  %18110 = vst [vmem:[#allocation54_spill] sm:$0xff] %v16329_v42 }
0x2c04   :  { %18109 = vst [vmem:[#allocation53_spill] sm:$0xff] %v16327_v48 }
0x2c06   :  { %11899 = vmatpush3.xpose.msk.msra.mxu0 %vm651_vm2, %v16311_v63  ;;  %v16337_v63 = vld [vmem:[#allocation19 + $0x90] sm:$0xff] }
0x2c07   :  { %11900 = vmatprep.subr.msk.mxu0 %vm651_vm2, %v16313_v19  ;;  %v16335_v19 = vld [vmem:[#allocation19 + $0x18] sm:$0xff]  ;;  %18112 = vst [vmem:[#allocation56_spill] sm:$0xff] %v16337_v63 }
0x2c08   :  { %18111 = vst [vmem:[#allocation55_spill] sm:$0xff] %v16335_v19 }
0x2c0a   :  { %11901 = vmatpush3.xpose.msk.msra.mxu0 %vm651_vm2, %v16319_v54  ;;  %v16345_v54 = vld [vmem:[#allocation19 + $0x88] sm:$0xff] }
0x2c0b   :  { %11902 = vmatprep.subr.msk.mxu0 %vm651_vm2, %v16321_v32  ;;  %v16343_v32 = vld [vmem:[#allocation19 + $0x10] sm:$0xff]  ;;  %18114 = vst [vmem:[#allocation58_spill] sm:$0xff] %v16345_v54 }
0x2c0c   :  { %18113 = vst [vmem:[#allocation57_spill] sm:$0xff] %v16343_v32 }
0x2c0e   :  { %11903 = vmatpush3.xpose.msk.msra.mxu0 %vm651_vm2, %v16327_v48  ;;  %v16353_v48 = vld [vmem:[#allocation19 + $0x80] sm:$0xff] }
0x2c0f   :  { %11904 = vmatprep.subr.msk.mxu0 %vm651_vm2, %v16329_v42  ;;  %v16351_v42 = vld [vmem:[#allocation19 + $0x8] sm:$0xff]  ;;  %18116 = vst [vmem:[#allocation60_spill] sm:$0xff] %v16353_v48 }
0x2c10   :  { %18115 = vst [vmem:[#allocation59_spill] sm:$0xff] %v16351_v42 }
0x2c12   :  { %11905 = vmatpush3.xpose.msk.msra.mxu0 %vm651_vm2, %v16335_v19 }
0x2c13   :  { %11906 = vmatprep.subr.msk.mxu0 %vm651_vm2, %v16337_v63  ;;  %v16359_v63 = vld [vmem:[#allocation19] sm:$0xff] }
0x2c14   :  { %18117 = vst [vmem:[#allocation61_spill] sm:$0xff] %v16359_v63 }
0x2c16   :  { %11907 = vmatpush3.xpose.msk.msra.mxu0 %vm651_vm2, %v16343_v32 }
0x2c17   :  { %11908 = vmatprep.subr.msk.mxu0 %vm651_vm2, %v16345_v54  ;;  %v16368_v54 = vld [vmem:[#allocation17 + $0x80] sm:$0xff] }
0x2c18   :  { %11944 = vmatprep.subr.msk.mxu1 %vm439_vm1, %v16368_v54 }
0x2c1a   :  { %11909 = vmatpush3.xpose.msk.msra.mxu0 %vm651_vm2, %v16351_v42  ;;  %v16372_v42 = vld [vmem:[#allocation17] sm:$0xff] }
0x2c1b   :  { %11910 = vmatprep.subr.msk.mxu0 %vm651_vm2, %v16353_v48  ;;  %11945 = vmatpush3.xpose.msk.msra.mxu1 %vm439_vm1, %v16372_v42  ;;  %v16377_v48 = vld [vmem:[#allocation16] ss:$0 sm:$0xff] }
0x2c1c   :  { %12694 = vmatprep.subr.mxu1 %v17908_v44  ;;  %18118 = vst [vmem:[#allocation62_spill] sm:$0xff] %v16377_v48 }
0x2c1e   :  { %11911 = vmatpush3.xpose.msk.msra.mxu0 %vm651_vm2, %v16359_v63 }
0x2c1f   :  { %12640 = vmatprep.subr.mxu0 %v17908_v44 }
0x2c21   :  { %11913 = vmatmul.mubr.msk.f32.vlgmr.msra.gmra.mxu0 %vm651_vm2, %v16004_v40 }
0x2c22   :  { %12656 = vmatprep.mubr.msk.f32.mxu0 %vm13533_vm7, %v17908_v44 }
0x2ca1   :  { %v6667_v63 = vpop.f32.mrf.mxu0 }
0x2ca2   :  { %v6668_v40 = vadd.f32 %v16377_v48, %v6667_v63 }
0x2ca3   :  { %v12639_v32 = vpop.f32.mrf.mxu0 }
0x2ca4   :  { %v6671_v19 = vmax.f32 %v6668_v40, 0.0 }
0x2ca6   :  { %11946 = vmatprep.mubr.msk.f32.mxu1 %vm439_vm1, %v6671_v19 }
0x2ca7   :  { %11947 = vmatmul.mubr.msk.f32.vlgmr.msra.gmra.mxu1 %vm439_vm1, %v6671_v19 }
0x2ca8   :  { %12695 = vmatpush3.xpose.msra.mxu1 %v16080_v41  ;;  %12706 = vmatprep.mubr.msk.f32.mxu1 %vm13533_vm7, %v17908_v44 }
0x2ca9   :  { %12696 = vmatprep.subr.mxu1 %v17908_v44 }
0x2cac   :  { %12697 = vmatpush3.xpose.msra.mxu1 %v16084_v7 }
0x2cad   :  { %12698 = vmatprep.subr.mxu1 %v17908_v44 }
0x2cb0   :  { %12699 = vmatpush3.xpose.msra.mxu1 %v16088_v4 }
0x2cb1   :  { %12700 = vmatprep.subr.mxu1 %v17908_v44 }
0x2cb4   :  { %12701 = vmatpush3.xpose.msra.mxu1 %v16092_v50 }
0x2cb5   :  { %12702 = vmatprep.subr.mxu1 %v17908_v44 }
0x2cb8   :  { %12703 = vmatpush3.xpose.msra.mxu1 %v16096_v11 }
0x2cb9   :  { %12704 = vmatprep.subr.mxu1 %v17908_v44 }
0x2cbc   :  { %12705 = vmatpush3.xpose.msra.mxu1 %v16100_v5 }
0x2cbd   :  { %11981 = vmatprep.subr.msk.mxu1 %vm651_vm2, %v16109_v57 }
0x2ce1   :  { %v6898_v19 = vpop.f32.mrf.mxu0 }
0x2ce3   :  { %v6900_v40 = vpop.f32.mrf.mxu0 }
0x2d67   :  { %v7068_v41 = vpop.f32.mrf.mxu1 }
0x2d68   :  { %v7069_v7 = vadd.f32 %v7068_v41, %v6898_v19  ;;  %v16400_v19 = vld [vmem:[#allocation20 + $0x38] sm:$0xff]  ;;  %v16405_v41 = vld [vmem:[#allocation20 + $0x30] sm:$0xff] }
0x2d69   :  { %v7070_v50 = vpop.f32.mrf.mxu1  ;;  %12641 = vmatpush3.xpose.msk.msra.mxu0 %vm651_vm2, %v16400_v19 }
0x2d6a   :  { %v7073_v4 = vadd.f32 %v7069_v7, %v18073_v21  ;;  %v7071_v48 = vadd.f32 %v7070_v50, %v6900_v40  ;;  %12642 = vmatprep.subr.mxu0 %v17908_v44  ;;  %v16425_v7 = vld [vmem:[#allocation20 + $0x10] sm:$0xff] }
0x2d6b   :  { %18120 = vst [vmem:[#allocation64_spill] sm:$0xff] %v16425_v7 }
0x2d6c   :  { %v7075_v63 = vsub.f32 0.0, %v7073_v4  ;;  %v7074_v11 = vadd.f32 %v7071_v48, %v18074_v26  ;;  %v16420_v48 = vld [vmem:[#allocation20 + $0x18] sm:$0xff]  ;;  %v16430_v4 = vld [vmem:[#allocation20 + $0x8] sm:$0xff] }
0x2d6d   :  { %12643 = vmatpush3.xpose.msk.msra.mxu0 %vm651_vm2, %v16405_v41  ;;  %18119 = vst [vmem:[#allocation63_spill] sm:$0xff] %v16420_v48  ;;  %18121 = vst [vmem:[#allocation65_spill] sm:$0xff] %v16430_v4 }
0x2d6e   :  { %v7076_v32 = vmul.f32 1.442695, %v7075_v63  ;;  %12644 = vmatprep.subr.mxu0 %v17908_v44  ;;  %v16435_v63 = vld [vmem:[#allocation20] sm:$0xff] }
0x2d6f   :  { %18122 = vst [vmem:[#allocation68_spill] sm:$0xff] %v16435_v63 }
0x2d70   :  { %13101 = vpow2.f32 %v7076_v32  ;;  %v7082_v32 = vsub.f32 0.0, %v7074_v11 }
0x2d71   :  { %13103 = vtanh.f32 %v7074_v11 }
0x2d72   :  { %v7083_v50 = vmul.f32 1.442695, %v7082_v32 }
0x2d7d   :  { %v13102_v58 = vpop.eup %13101 }
0x2d7e   :  { %v7078_v22 = vadd.f32 1.0, %v13102_v58  ;;  %v13104_v5 = vpop.eup %13103  ;;  %v16415_v58 = vld [vmem:[#allocation20 + $0x20] sm:$0xff] }
0x2d80   :  { %13105 = vrcp.f32 %v7078_v22  ;;  %v16410_v22 = vld [vmem:[#allocation20 + $0x28] sm:$0xff] }
0x2d81   :  { %12645 = vmatpush3.xpose.msk.msra.mxu0 %vm651_vm2, %v16410_v22  ;;  %13107 = vpow2.f32 %v7083_v50 }
0x2d82   :  { %12646 = vmatprep.subr.mxu0 %v17908_v44 }
0x2d85   :  { %12647 = vmatpush3.xpose.msk.msra.mxu0 %vm651_vm2, %v16415_v58 }
0x2d86   :  { %12648 = vmatprep.subr.mxu0 %v17908_v44 }
0x2d89   :  { %12649 = vmatpush3.xpose.msk.msra.mxu0 %vm651_vm2, %v16420_v48 }
0x2d8a   :  { %12650 = vmatprep.subr.mxu0 %v17908_v44 }
0x2d8d   :  { %v13106_v15 = vpop.eup %13105  ;;  %12651 = vmatpush3.xpose.msk.msra.mxu0 %vm651_vm2, %v16425_v7 }
0x2d8e   :  { %v7089_v57 = vmul.f32 %v13106_v15, %v13104_v5  ;;  %12652 = vmatprep.subr.mxu0 %v17908_v44  ;;  %v13108_v40 = vpop.eup %13107 }
0x2d8f   :  { %v7085_v5 = vadd.f32 1.0, %v13108_v40 }
0x2d90   :  { %7091 = vrot.lane.b32.xlu1 %v7089_v57, %s13532_s28  ;;  %v7088_v57 = vmul.f32 %v13106_v15, %v16000_v45  ;;  %v16451_v15 = vld [vmem:[#allocation22] ss:$0 sm:$0xff] }
0x2d91   :  { %12653 = vmatpush3.xpose.msk.msra.mxu0 %vm651_vm2, %v16430_v4  ;;  %13109 = vrcp.f32 %v7085_v5  ;;  %18124 = vst [vmem:[#allocation86_spill] sm:$0xff] %v16451_v15 }
0x2d92   :  { %12654 = vmatprep.subr.mxu0 %v17908_v44 }
0x2d95   :  { %12655 = vmatpush3.xpose.msk.msra.mxu0 %vm651_vm2, %v16435_v63 }
0x2d96   :  { %12659 = vmatprep.subr.mxu0 %v17908_v44 }
0x2d9e   :  { %v13110_v4 = vpop.eup %13109 }
0x2e02   :  { %v7092_v26 = vpop.permute.xlu1 %7091 }
0x2e03   :  { %v16441_v21 = vadd.f32 %v7092_v26, %v7088_v57 }
0x2e05   :  { %18123 = vst [vmem:[#allocation85_spill] sm:$0xff] %v16441_v21  ;;  %13111 = vtanh.f32 %v16441_v21 }
0x2e12   :  { %v13112_v7 = vpop.eup %13111 }
0x2e13   :  { %v7096_v48 = vmul.f32 %v13112_v7, %v13110_v4 }
0x2e15   :  { %7106 = vrot.lane.b32.xlu0 %v7096_v48, %s13532_s28 }
0x2e87   :  { %v16445_v63 = vpop.permute.xlu0 %7106 }
0x2e88   :  { %12657 = vmatmul.mubr.msk.f32.vlgmr.msra.gmra.mxu0 %vm651_vm2, %v16445_v63 }
0x2e89   :  { %12691 = vmatprep.mubr.msk.f32.mxu0 %vm13533_vm7, %v17908_v44 }
0x2f48   :  { %v7200_v45 = vpop.f32.mrf.mxu0 }
0x2f49   :  { %v7201_v26 = vadd.f32 %v16451_v15, %v7200_v45 }
0x2f4a   :  { %v12658_v11 = vpop.f32.mrf.mxu0 }
0x2f4b   :  { %v7211_v32 = vrot.slane %v7201_v26, %v18083_v10 }
0x2f4d   :  { %v7212_v50 = vcombine.high %v7211_v32, %v7211_v32  ;;  %v7219_v7 = vrot.slane %v7211_v32, %v18083_v10 }
0x2f4f   :  { %v7230_v48 = vrot.slane %v7219_v7, %v18084_v14  ;;  %v7226_v4 = vrot.slane %v7212_v50, %v18083_v10 }
0x2f51   :  { %v7237_v40 = vmul.f32 %v7230_v48, %v18085_v60  ;;  %v7234_v5 = vrot.slane %v7226_v4, %v18084_v14 }
0x2f53   :  { %v7239_v57 = vsel %vm651_vm2, %v7237_v40, 0.0  ;;  %v7238_v21 = vmul.f32 %v7234_v5, %v18086_v33  ;;  %v16535_v33 = vld [vmem:[#allocation26 + $0x10] sm:$0xff] }
0x2f54   :  { %7240 = vadd.xlane.f32.xlu1 %v7239_v57  ;;  %18135 = vst [vmem:[#allocation89_spill] sm:$0xff] %v16535_v33 }
0x2f55   :  { %v7242_v45 = vsel %vm651_vm2, %v7238_v21, 0.0 }
0x2f56   :  { %7243 = vadd.xlane.f32.xlu0 %v7242_v45 }
0x2fdd   :  { %v7241_v26 = vpop.xlane.xlu1 %7240 }
0x2fde   :  { %v7245_v11 = vmul.f32 0.125, %v7241_v26 }
0x2fdf   :  { %v7244_v15 = vpop.xlane.xlu0 %7243 }
0x2fe0   :  { %v7246_v32 = vmul.f32 0.125, %v7244_v15  ;;  %v7252_v7 = vrot.slane %v7245_v11, %v18087_v2  ;;  %v16470_v15 = vld [vmem:[#allocation26 + $0x78] sm:$0xff]  ;;  %v16475_v11 = vld [vmem:[#allocation26 + $0x70] sm:$0xff] }
0x2fe1   :  { %12660 = vmatpush3.xpose.msk.msra.mxu0 %vm651_vm2, %v16470_v15 }
0x2fe2   :  { %v7256_v50 = vrot.slane %v7246_v32, %v18087_v2  ;;  %12661 = vmatprep.subr.mxu0 %v17908_v44  ;;  %v16480_v32 = vld [vmem:[#allocation26 + $0x68] sm:$0xff]  ;;  %v16530_v2 = vld [vmem:[#allocation26 + $0x18] sm:$0xff] }
0x2fe3   :  { %18134 = vst [vmem:[#allocation94_spill] sm:$0xff] %v16530_v2 }
0x2fe4   :  { %v7257_v48 = vsel %vm3796_vm8, %v7256_v50, %v7252_v7  ;;  %v16485_v7 = vld [vmem:[#allocation26 + $0x60] sm:$0xff]  ;;  %v16490_v50 = vld [vmem:[#allocation26 + $0x58] sm:$0xff] }
0x2fe5   :  { %v7259_v4 = vsel %vm3783_vm9, %v7257_v48, -1e+09  ;;  %12662 = vmatpush3.xpose.msk.msra.mxu0 %vm651_vm2, %v16475_v11  ;;  %18125 = vst [vmem:[#allocation87_spill] sm:$0xff] %v16485_v7  ;;  %18126 = vst [vmem:[#allocation88_spill] sm:$0xff] %v16490_v50  ;;  %v16495_v48 = vld [vmem:[#allocation26 + $0x50] sm:$0xff] }
0x2fe6   :  { %v7260_v40 = vsel %vm3800_vm10, %v7259_v4, -inf  ;;  %12663 = vmatprep.subr.mxu0 %v17908_v44  ;;  %18127 = vst [vmem:[#allocation73_spill] sm:$0xff] %v16495_v48 }
0x2fe7   :  { %7261 = vmax.xlane.f32.xlu0 %v7260_v40  ;;  %v16505_v40 = vld [vmem:[#allocation26 + $0x40] sm:$0xff] }
0x2fe8   :  { %18129 = vst [vmem:[#allocation91_spill] sm:$0xff] %v16505_v40 }
0x2fe9   :  { %12664 = vmatpush3.xpose.msk.msra.mxu0 %vm651_vm2, %v16480_v32 }
0x2fea   :  { %12665 = vmatprep.subr.mxu0 %v17908_v44 }
0x2fed   :  { %12666 = vmatpush3.xpose.msk.msra.mxu0 %vm651_vm2, %v16485_v7 }
0x2fee   :  { %12667 = vmatprep.subr.mxu0 %v17908_v44 }
0x2ff1   :  { %12668 = vmatpush3.xpose.msk.msra.mxu0 %vm651_vm2, %v16490_v50 }
0x2ff2   :  { %12669 = vmatprep.subr.mxu0 %v17908_v44 }
0x2ff5   :  { %12670 = vmatpush3.xpose.msk.msra.mxu0 %vm651_vm2, %v16495_v48 }
0x2ff6   :  { %12671 = vmatprep.subr.mxu0 %v17908_v44 }
0x3070   :  { %v7262_v5 = vpop.xlane.xlu0 %7261 }
0x3071   :  { %v7263_v57 = vsub.f32 %v7259_v4, %v7262_v5  ;;  %v16500_v4 = vld [vmem:[#allocation26 + $0x48] sm:$0xff]  ;;  %v16510_v5 = vld [vmem:[#allocation26 + $0x38] sm:$0xff] }
0x3072   :  { %18128 = vst [vmem:[#allocation90_spill] sm:$0xff] %v16500_v4  ;;  %12672 = vmatpush3.xpose.msk.msra.mxu0 %vm651_vm2, %v16500_v4  ;;  %18130 = vst [vmem:[#allocation92_spill] sm:$0xff] %v16510_v5 }
0x3073   :  { %v7264_v21 = vmul.f32 1.442695, %v7263_v57  ;;  %12673 = vmatprep.subr.mxu0 %v17908_v44  ;;  %v16515_v57 = vld [vmem:[#allocation26 + $0x30] sm:$0xff] }
0x3074   :  { %18131 = vst [vmem:[#allocation80_spill] sm:$0xff] %v16515_v57 }
0x3075   :  { %13113 = vpow2.f32 %v7264_v21  ;;  %v16520_v21 = vld [vmem:[#allocation26 + $0x28] sm:$0xff] }
0x3076   :  { %12674 = vmatpush3.xpose.msk.msra.mxu0 %vm651_vm2, %v16505_v40  ;;  %18132 = vst [vmem:[#allocation81_spill] sm:$0xff] %v16520_v21 }
0x3077   :  { %12675 = vmatprep.subr.mxu0 %v17908_v44 }
0x307a   :  { %12676 = vmatpush3.xpose.msk.msra.mxu0 %vm651_vm2, %v16510_v5 }
0x307b   :  { %12677 = vmatprep.subr.mxu0 %v17908_v44 }
0x307e   :  { %12678 = vmatpush3.xpose.msk.msra.mxu0 %vm651_vm2, %v16515_v57 }
0x307f   :  { %12679 = vmatprep.subr.mxu0 %v17908_v44 }
0x3082   :  { %v13114_v45 = vpop.eup %13113  ;;  %12680 = vmatpush3.xpose.msk.msra.mxu0 %vm651_vm2, %v16520_v21 }
0x3083   :  { %v7266_v26 = vsel %vm3800_vm10, %v13114_v45, 0.0  ;;  %12681 = vmatprep.subr.mxu0 %v17908_v44 }
0x3084   :  { %7267 = vadd.xlane.f32.xlu1 %v7266_v26  ;;  %v16525_v26 = vld [vmem:[#allocation26 + $0x20] sm:$0xff] }
0x3085   :  { %18133 = vst [vmem:[#allocation93_spill] sm:$0xff] %v16525_v26 }
0x3086   :  { %12682 = vmatpush3.xpose.msk.msra.mxu0 %vm651_vm2, %v16525_v26  ;;  %v16540_v26 = vld [vmem:[#allocation26 + $0x8] sm:$0xff] }
0x3087   :  { %12683 = vmatprep.subr.mxu0 %v17908_v44  ;;  %18136 = vst [vmem:[#allocation95_spill] sm:$0xff] %v16540_v26 }
0x308a   :  { %12684 = vmatpush3.xpose.msk.msra.mxu0 %vm651_vm2, %v16530_v2 }
0x308b   :  { %12685 = vmatprep.subr.mxu0 %v17908_v44 }
0x308e   :  { %12686 = vmatpush3.xpose.msk.msra.mxu0 %vm651_vm2, %v16535_v33  ;;  %v16551_v33 = vld [vmem:[#allocation26] sm:$0xff] }
0x308f   :  { %12687 = vmatprep.subr.mxu0 %v17908_v44  ;;  %18137 = vst [vmem:[#allocation96_spill] sm:$0xff] %v16551_v33 }
0x3092   :  { %12688 = vmatpush3.xpose.msk.msra.mxu0 %vm651_vm2, %v16540_v26 }
0x3093   :  { %12689 = vmatprep.subr.mxu0 %v17908_v44 }
0x3096   :  { %12690 = vmatpush3.xpose.msk.msra.mxu0 %vm651_vm2, %v16551_v33 }
0x3097   :  { %12015 = vmatprep.subr.msk.mxu0 %vm439_vm1, %v16113_v18 }
0x310d   :  { %v7268_v16 = vpop.xlane.xlu1 %7267 }
0x310e   :  { %13115 = vrcp.f32 %v7268_v16 }
0x311b   :  { %v13116_v60 = vpop.eup %13115 }
0x311c   :  { %v7270_v10 = vmul.f32 %v13116_v60, %v13114_v45 }
0x311e   :  { %v7281_v16 = vrot.slane %v7270_v10, %v18089_v8  ;;  %10840 = vst.msk [vmem:[%s17609_s23 + $0x8] sm:$0x3] %vm3800_vm10, %v7270_v10  ;;  %v7274_v2 = vrot.slane %v7270_v10, %v18084_v14 }
0x3120   :  { %7283 = vbcast.lane.b32.xlu1 %v7281_v16, 256  ;;  %7276 = vbcast.lane.b32.xlu0 %v7274_v2, 256 }
0x3192   :  { %v7284_v60 = vpop.permute.xlu1 %7283  ;;  %v7277_v45 = vpop.permute.xlu0 %7276 }
0x3193   :  { %v7286_v8 = vmul.f32 %v7284_v60, %v14880_v59  ;;  %v7285_v26 = vmul.f32 %v7277_v45, %v14878_v62 }
0x3195   :  { %v7294_v10 = vsel %vm651_vm2, %v7286_v8, 0.0  ;;  %v7287_v14 = vsel %vm651_vm2, %v7285_v26, 0.0 }
0x3196   :  { %v7295_v16 = vrot.slane %v7294_v10, 4  ;;  %v7288_v2 = vrot.slane %v7287_v14, 4 }
0x3198   :  { %v7296_v21 = vadd.f32 %v7295_v16, %v7294_v10  ;;  %v7289_v57 = vadd.f32 %v7288_v2, %v7287_v14 }
0x319a   :  { %v7297_v5 = vrot.slane %v7296_v21, 2  ;;  %v7290_v40 = vrot.slane %v7289_v57, 2 }
0x319c   :  { %v7298_v33 = vadd.f32 %v7297_v5, %v7296_v21  ;;  %v7291_v4 = vadd.f32 %v7290_v40, %v7289_v57  ;;  %v18172_v21 = vld [vmem:[#allocation79_spill] sm:$0xff] }
0x319e   :  { %v7299_v48 = vrot.slane %v7298_v33, 1  ;;  %v7292_v18 = vrot.slane %v7291_v4, 1 }
0x31a0   :  { %v7300_v50 = vadd.f32 %v7299_v48, %v7298_v33  ;;  %v7293_v7 = vadd.f32 %v7292_v18, %v7291_v4  ;;  %v16629_v33 = vld [vmem:[%s17607_s21] ss:$0 sm:$0xff] }
0x31a2   :  { %v7319_v60 = vsel %vm3796_vm8, %v7300_v50, %v7293_v7  ;;  %v18171_v7 = vld [vmem:[#allocation78_spill] sm:$0xff] }
0x31a3   :  { %12692 = vmatmul.mubr.msk.f32.vlgmr.msra.gmra.mxu0 %vm651_vm2, %v7319_v60 }
0x31a4   :  { %12016 = vmatpush3.xpose.msk.msra.mxu0 %vm439_vm1, %v16115_v52 }
0x31a5   :  { %12017 = vmatprep.subr.msk.mxu0 %vm439_vm1, %v16117_v29  ;;  %v18139_v29 = vld [vmem:[#allocation72_spill] sm:$0xff] }
0x31a8   :  { %12018 = vmatpush3.xpose.msk.msra.mxu0 %vm439_vm1, %v16125_v27  ;;  %v18140_v27 = vld [vmem:[#allocation71_spill] sm:$0xff] }
0x31a9   :  { %12019 = vmatprep.subr.msk.mxu0 %vm439_vm1, %v16127_v1  ;;  %v18141_v1 = vld [vmem:[#allocation74_spill] sm:$0xff] }
0x31ac   :  { %12020 = vmatpush3.xpose.msk.msra.mxu0 %vm439_vm1, %v16133_v0  ;;  %v18142_v0 = vld [vmem:[#allocation75_spill] sm:$0xff] }
0x31ad   :  { %12021 = vmatprep.subr.msk.mxu0 %vm439_vm1, %v16135_v3  ;;  %v18143_v3 = vld [vmem:[#allocation39_spill] sm:$0xff] }
0x31b0   :  { %12022 = vmatpush3.xpose.msk.msra.mxu0 %vm439_vm1, %v16141_v9  ;;  %v18144_v9 = vld [vmem:[#allocation40_spill] sm:$0xff] }
0x31b1   :  { %12023 = vmatprep.subr.msk.mxu0 %vm439_vm1, %v16143_v46  ;;  %v18145_v46 = vld [vmem:[#allocation41_spill] sm:$0xff] }
0x31b4   :  { %12024 = vmatpush3.xpose.msk.msra.mxu0 %vm439_vm1, %v16149_v37  ;;  %v18146_v37 = vld [vmem:[#allocation42_spill] sm:$0xff] }
0x31b5   :  { %12025 = vmatprep.subr.msk.mxu0 %vm439_vm1, %v16151_v55  ;;  %v18147_v55 = vld [vmem:[#allocation43_spill] sm:$0xff] }
0x31b8   :  { %12026 = vmatpush3.xpose.msk.msra.mxu0 %vm439_vm1, %v16157_v49  ;;  %v18148_v49 = vld [vmem:[#allocation44_spill] sm:$0xff] }
0x31b9   :  { %12027 = vmatprep.subr.msk.mxu0 %vm439_vm1, %v16159_v36  ;;  %v18149_v36 = vld [vmem:[#allocation45_spill] sm:$0xff] }
0x31bc   :  { %12028 = vmatpush3.xpose.msk.msra.mxu0 %vm439_vm1, %v16165_v38  ;;  %v18150_v38 = vld [vmem:[#allocation46_spill] sm:$0xff] }
0x31bd   :  { %12029 = vmatprep.subr.msk.mxu0 %vm439_vm1, %v16167_v34  ;;  %v18151_v34 = vld [vmem:[#allocation47_spill] sm:$0xff] }
0x31c0   :  { %12030 = vmatpush3.xpose.msk.msra.mxu0 %vm439_vm1, %v16173_v43  ;;  %v18152_v43 = vld [vmem:[#allocation48_spill] sm:$0xff] }
0x31c1   :  { %12031 = vmatprep.subr.msk.mxu0 %vm439_vm1, %v16175_v20  ;;  %v18153_v20 = vld [vmem:[#allocation49_spill] sm:$0xff] }
0x31c4   :  { %12032 = vmatpush3.xpose.msk.msra.mxu0 %vm439_vm1, %v16181_v30  ;;  %v18154_v30 = vld [vmem:[#allocation50_spill] sm:$0xff] }
0x31c5   :  { %12033 = vmatprep.subr.msk.mxu0 %vm439_vm1, %v16183_v25  ;;  %v18155_v25 = vld [vmem:[#allocation51_spill] sm:$0xff] }
0x31c8   :  { %12034 = vmatpush3.xpose.msk.msra.mxu0 %vm439_vm1, %v16189_v12  ;;  %v18156_v12 = vld [vmem:[#allocation52_spill] sm:$0xff] }
0x31c9   :  { %12035 = vmatprep.subr.msk.mxu0 %vm439_vm1, %v16191_v35  ;;  %v18157_v35 = vld [vmem:[#allocation53_spill] sm:$0xff] }
0x31cc   :  { %12036 = vmatpush3.xpose.msk.msra.mxu0 %vm439_vm1, %v16197_v61  ;;  %v18158_v61 = vld [vmem:[#allocation54_spill] sm:$0xff] }
0x31cd   :  { %12037 = vmatprep.subr.msk.mxu0 %vm439_vm1, %v16199_v53  ;;  %v18159_v53 = vld [vmem:[#allocation55_spill] sm:$0xff] }
0x31d0   :  { %12038 = vmatpush3.xpose.msk.msra.mxu0 %vm439_vm1, %v16205_v47  ;;  %v18160_v47 = vld [vmem:[#allocation56_spill] sm:$0xff] }
0x31d1   :  { %12039 = vmatprep.subr.msk.mxu0 %vm439_vm1, %v16207_v51  ;;  %v18161_v51 = vld [vmem:[#allocation57_spill] sm:$0xff] }
0x31d4   :  { %12040 = vmatpush3.xpose.msk.msra.mxu0 %vm439_vm1, %v16213_v31  ;;  %v18162_v31 = vld [vmem:[#allocation58_spill] sm:$0xff] }
0x31d5   :  { %12041 = vmatprep.subr.msk.mxu0 %vm439_vm1, %v16215_v39  ;;  %v18163_v39 = vld [vmem:[#allocation59_spill] sm:$0xff] }
0x31d8   :  { %12042 = vmatpush3.xpose.msk.msra.mxu0 %vm439_vm1, %v16221_v24  ;;  %v18164_v24 = vld [vmem:[#allocation60_spill] sm:$0xff] }
0x31d9   :  { %12043 = vmatprep.subr.msk.mxu0 %vm439_vm1, %v16223_v28  ;;  %v18165_v28 = vld [vmem:[#allocation61_spill] sm:$0xff] }
0x31dc   :  { %12044 = vmatpush3.xpose.msk.msra.mxu0 %vm439_vm1, %v16229_v17  ;;  %v18166_v17 = vld [vmem:[#allocation63_spill] sm:$0xff] }
0x31dd   :  { %12045 = vmatprep.subr.msk.mxu0 %vm439_vm1, %v16368_v54 }
0x31e0   :  { %12046 = vmatpush3.xpose.msk.msra.mxu0 %vm439_vm1, %v16372_v42  ;;  %v18167_v42 = vld [vmem:[#allocation64_spill] sm:$0xff] }
0x31e1   :  { %12763 = vmatprep.subr.mxu0 %v17908_v44 }
0x3263   :  { %v7436_v14 = vpop.f32.mrf.mxu0 }
0x3264   :  { %v16632_v8 = vadd.f32 %v16629_v33, %v7436_v14 }
0x3265   :  { %v12693_v52 = vpop.f32.mrf.mxu0 }
0x3266   :  { %18138 = vst [vmem:[#allocation97_spill] sm:$0xff] %v16632_v8  ;;  %12707 = vmatmul.mubr.f32.vlgmr.msra.gmra.mxu1 %v16632_v8  ;;  %v17024_v8 = vld [vmem:[#allocation19 + $0x48] sm:$0xff] }
0x3267   :  { %11982 = vmatpush3.xpose.msk.msra.mxu1 %vm651_vm2, %v16236_v23  ;;  %12013 = vmatprep.mubr.msk.f32.mxu1 %vm651_vm2, %v16445_v63  ;;  %v18168_v23 = vld [vmem:[#allocation65_spill] sm:$0xff]  ;;  %18204 = vst [vmem:[#allocation44_spill] sm:$0xff] %v17024_v8 }
0x3268   :  { %11983 = vmatprep.subr.msk.mxu1 %vm651_vm2, %v16238_v56  ;;  %v18169_v56 = vld [vmem:[#allocation68_spill] sm:$0xff] }
0x326b   :  { %11984 = vmatpush3.xpose.msk.msra.mxu1 %vm651_vm2, %v16247_v13 }
0x326c   :  { %11985 = vmatprep.subr.msk.mxu1 %vm651_vm2, %v16249_v6  ;;  %v18170_v6 = vld [vmem:[#allocation62_spill] sm:$0xff] }
0x326f   :  { %11986 = vmatpush3.xpose.msk.msra.mxu1 %vm651_vm2, %v18139_v29 }
0x3270   :  { %11987 = vmatprep.subr.msk.mxu1 %vm651_vm2, %v18140_v27  ;;  %v18173_v27 = vld [vmem:[#allocation85_spill] sm:$0xff] }
0x3273   :  { %11988 = vmatpush3.xpose.msk.msra.mxu1 %vm651_vm2, %v18141_v1 }
0x3274   :  { %11989 = vmatprep.subr.msk.mxu1 %vm651_vm2, %v18142_v0 }
0x3277   :  { %11990 = vmatpush3.xpose.msk.msra.mxu1 %vm651_vm2, %v18143_v3 }
0x3278   :  { %11991 = vmatprep.subr.msk.mxu1 %vm651_vm2, %v18144_v9 }
0x327b   :  { %11992 = vmatpush3.xpose.msk.msra.mxu1 %vm651_vm2, %v18145_v46 }
0x327c   :  { %11993 = vmatprep.subr.msk.mxu1 %vm651_vm2, %v18146_v37 }
0x327f   :  { %11994 = vmatpush3.xpose.msk.msra.mxu1 %vm651_vm2, %v18147_v55 }
0x3280   :  { %11995 = vmatprep.subr.msk.mxu1 %vm651_vm2, %v18148_v49  ;;  %v18174_v49 = vld [vmem:[#allocation87_spill] sm:$0xff] }
0x3283   :  { %11996 = vmatpush3.xpose.msk.msra.mxu1 %vm651_vm2, %v18149_v36  ;;  %v18176_v36 = vld [vmem:[#allocation73_spill] sm:$0xff] }
0x3284   :  { %11997 = vmatprep.subr.msk.mxu1 %vm651_vm2, %v18150_v38  ;;  %v18179_v38 = vld [vmem:[#allocation92_spill] sm:$0xff] }
0x3287   :  { %11998 = vmatpush3.xpose.msk.msra.mxu1 %vm651_vm2, %v18151_v34  ;;  %v18180_v34 = vld [vmem:[#allocation80_spill] sm:$0xff] }
0x3288   :  { %11999 = vmatprep.subr.msk.mxu1 %vm651_vm2, %v18152_v43  ;;  %v18181_v43 = vld [vmem:[#allocation81_spill] sm:$0xff] }
0x328b   :  { %12000 = vmatpush3.xpose.msk.msra.mxu1 %vm651_vm2, %v18153_v20  ;;  %v18182_v20 = vld [vmem:[#allocation93_spill] sm:$0xff] }
0x328c   :  { %12001 = vmatprep.subr.msk.mxu1 %vm651_vm2, %v18154_v30  ;;  %v18183_v30 = vld [vmem:[#allocation94_spill] sm:$0xff] }
0x328f   :  { %12002 = vmatpush3.xpose.msk.msra.mxu1 %vm651_vm2, %v18155_v25  ;;  %v18184_v25 = vld [vmem:[#allocation89_spill] sm:$0xff] }
0x3290   :  { %12003 = vmatprep.subr.msk.mxu1 %vm651_vm2, %v18156_v12  ;;  %v18185_v12 = vld [vmem:[#allocation95_spill] sm:$0xff] }
0x3293   :  { %12004 = vmatpush3.xpose.msk.msra.mxu1 %vm651_vm2, %v18157_v35  ;;  %v18186_v35 = vld [vmem:[#allocation96_spill] sm:$0xff] }
0x3294   :  { %12005 = vmatprep.subr.msk.mxu1 %vm651_vm2, %v18158_v61 }
0x3297   :  { %12006 = vmatpush3.xpose.msk.msra.mxu1 %vm651_vm2, %v18159_v53  ;;  %v18187_v53 = vld [vmem:[#allocation86_spill] sm:$0xff] }
0x3298   :  { %12007 = vmatprep.subr.msk.mxu1 %vm651_vm2, %v18160_v47 }
0x329b   :  { %12008 = vmatpush3.xpose.msk.msra.mxu1 %vm651_vm2, %v18161_v51 }
0x329c   :  { %12009 = vmatprep.subr.msk.mxu1 %vm651_vm2, %v18162_v31  ;;  %v18188_v31 = vld [vmem:[#allocation82_spill] sm:$0xff] }
0x329f   :  { %12010 = vmatpush3.xpose.msk.msra.mxu1 %vm651_vm2, %v18163_v39 }
0x32a0   :  { %12011 = vmatprep.subr.msk.mxu1 %vm651_vm2, %v18164_v24 }
0x32a3   :  { %12012 = vmatpush3.xpose.msk.msra.mxu1 %vm651_vm2, %v18165_v28 }
0x32a4   :  { %12709 = vmatprep.subr.mxu1 %v17908_v44 }
0x32a6   :  { %12014 = vmatmul.mubr.msk.f32.vlgmr.msra.gmra.mxu1 %vm651_vm2, %v16445_v63 }
0x32a7   :  { %12710 = vmatpush3.xpose.msk.msra.mxu1 %vm651_vm2, %v16400_v19  ;;  %12725 = vmatprep.mubr.msk.f32.mxu1 %vm13533_vm7, %v17908_v44 }
0x32a8   :  { %12711 = vmatprep.subr.mxu1 %v17908_v44 }
0x32ab   :  { %12712 = vmatpush3.xpose.msk.msra.mxu1 %vm651_vm2, %v16405_v41 }
0x32ac   :  { %12713 = vmatprep.subr.mxu1 %v17908_v44 }
0x32af   :  { %12714 = vmatpush3.xpose.msk.msra.mxu1 %vm651_vm2, %v16410_v22 }
0x32b0   :  { %12715 = vmatprep.subr.mxu1 %v17908_v44 }
0x32b3   :  { %12716 = vmatpush3.xpose.msk.msra.mxu1 %vm651_vm2, %v16415_v58 }
0x32b4   :  { %12717 = vmatprep.subr.mxu1 %v17908_v44 }
0x32b7   :  { %12718 = vmatpush3.xpose.msk.msra.mxu1 %vm651_vm2, %v18166_v17  ;;  %v18189_v17 = vld [vmem:[#allocation37_spill] sm:$0xff] }
0x32b8   :  { %12719 = vmatprep.subr.mxu1 %v17908_v44 }
0x32bb   :  { %12720 = vmatpush3.xpose.msk.msra.mxu1 %vm651_vm2, %v18167_v42 }
0x32bc   :  { %12721 = vmatprep.subr.mxu1 %v17908_v44 }
0x32bf   :  { %12722 = vmatpush3.xpose.msk.msra.mxu1 %vm651_vm2, %v18168_v23 }
0x32c0   :  { %12723 = vmatprep.subr.mxu1 %v17908_v44 }
0x32c3   :  { %12724 = vmatpush3.xpose.msk.msra.mxu1 %vm651_vm2, %v18169_v56  ;;  %v18190_v56 = vld [vmem:[#allocation76_spill] sm:$0xff] }
0x32c4   :  { %12728 = vmatprep.subr.mxu1 %v17908_v44 }
0x3326   :  { %v7521_v13 = vpop.f32.mrf.mxu1 }
0x3327   :  { %v7522_v54 = vadd.f32 %v18170_v6, %v7521_v13 }
0x3328   :  { %v12708_v19 = vpop.f32.mrf.mxu1 }
0x3329   :  { %v7525_v41 = vmax.f32 %v7522_v54, 0.0  ;;  %v18191_v19 = vld [vmem:[#allocation77_spill] sm:$0xff] }
0x332b   :  { %12047 = vmatprep.mubr.msk.f32.mxu0 %vm439_vm1, %v7525_v41 }
0x332c   :  { %12048 = vmatmul.mubr.msk.f32.vlgmr.msra.gmra.mxu0 %vm439_vm1, %v7525_v41 }
0x332d   :  { %12775 = vmatprep.mubr.msk.f32.mxu0 %vm13533_vm7, %v17908_v44 }
0x3366   :  { %v7752_v22 = vpop.f32.mrf.mxu1 }
0x3368   :  { %v7754_v5 = vpop.f32.mrf.mxu1 }
0x33ec   :  { %v7922_v58 = vpop.f32.mrf.mxu0 }
0x33ed   :  { %v7923_v63 = vadd.f32 %v7922_v58, %v7752_v22 }
0x33ee   :  { %v7924_v40 = vpop.f32.mrf.mxu0 }
0x33ef   :  { %v7927_v50 = vadd.f32 %v7923_v63, %v18171_v7  ;;  %v7925_v57 = vadd.f32 %v7924_v40, %v7754_v5 }
0x33f1   :  { %v7929_v48 = vsub.f32 0.0, %v7927_v50  ;;  %v7928_v26 = vadd.f32 %v7925_v57, %v18172_v21 }
0x33f3   :  { %v7930_v4 = vmul.f32 1.442695, %v7929_v48  ;;  %v7936_v60 = vsub.f32 0.0, %v7928_v26 }
0x33f5   :  { %13117 = vpow2.f32 %v7930_v4  ;;  %v7937_v14 = vmul.f32 1.442695, %v7936_v60  ;;  %v18192_v4 = vld [vmem:[#allocation83_spill] sm:$0xff] }
0x33f6   :  { %13119 = vtanh.f32 %v7928_v26 }
0x3402   :  { %v13118_v45 = vpop.eup %13117 }
0x3403   :  { %v7932_v10 = vadd.f32 1.0, %v13118_v45  ;;  %v13120_v16 = vpop.eup %13119 }
0x3405   :  { %13121 = vrcp.f32 %v7932_v10 }
0x3406   :  { %13123 = vpow2.f32 %v7937_v14 }
0x3412   :  { %v13122_v2 = vpop.eup %13121 }
0x3413   :  { %v7943_v18 = vmul.f32 %v13122_v2, %v13120_v16  ;;  %v13124_v52 = vpop.eup %13123  ;;  %v7942_v1 = vmul.f32 %v13122_v2, %v18173_v27 }
0x3414   :  { %v7939_v29 = vadd.f32 1.0, %v13124_v52 }
0x3415   :  { %7945 = vrot.lane.b32.xlu1 %v7943_v18, %s13532_s28 }
0x3416   :  { %13125 = vrcp.f32 %v7939_v29 }
0x3423   :  { %v13126_v9 = vpop.eup %13125 }
0x3487   :  { %v7946_v0 = vpop.permute.xlu1 %7945 }
0x3488   :  { %v16737_v3 = vadd.f32 %v7946_v0, %v7942_v1  ;;  %v18194_v1 = vld [vmem:[#allocation38_spill] sm:$0xff] }
0x348a   :  { %13127 = vtanh.f32 %v16737_v3 }
0x3497   :  { %v13128_v46 = vpop.eup %13127 }
0x3498   :  { %v7950_v37 = vmul.f32 %v13128_v46, %v13126_v9  ;;  %v16817_v46 = vld [vmem:[#allocation14 + $0x28] sm:$0xff] }
0x3499   :  { %12764 = vmatpush3.xpose.msra.mxu0 %v16817_v46 }
0x349a   :  { %7960 = vrot.lane.b32.xlu0 %v7950_v37, %s13532_s28  ;;  %12765 = vmatprep.subr.mxu0 %v17908_v44  ;;  %v16821_v37 = vld [vmem:[#allocation14 + $0x20] sm:$0xff] }
0x349d   :  { %12766 = vmatpush3.xpose.msra.mxu0 %v16821_v37 }
0x349e   :  { %12767 = vmatprep.subr.mxu0 %v17908_v44 }
0x350c   :  { %v16741_v55 = vpop.permute.xlu0 %7960 }
0x350d   :  { %12726 = vmatmul.mubr.msk.f32.vlgmr.msra.gmra.mxu1 %vm651_vm2, %v16741_v55 }
0x350e   :  { %12729 = vmatpush3.xpose.msk.msra.mxu1 %vm651_vm2, %v16470_v15  ;;  %12760 = vmatprep.mubr.msk.f32.mxu1 %vm13533_vm7, %v17908_v44  ;;  %v18175_v15 = vld [vmem:[#allocation88_spill] sm:$0xff] }
0x350f   :  { %12730 = vmatprep.subr.mxu1 %v17908_v44 }
0x3512   :  { %12731 = vmatpush3.xpose.msk.msra.mxu1 %vm651_vm2, %v16475_v11  ;;  %v18177_v11 = vld [vmem:[#allocation90_spill] sm:$0xff] }
0x3513   :  { %12732 = vmatprep.subr.mxu1 %v17908_v44 }
0x3516   :  { %12733 = vmatpush3.xpose.msk.msra.mxu1 %vm651_vm2, %v16480_v32  ;;  %v18178_v32 = vld [vmem:[#allocation91_spill] sm:$0xff] }
0x3517   :  { %12734 = vmatprep.subr.mxu1 %v17908_v44 }
0x351a   :  { %12735 = vmatpush3.xpose.msk.msra.mxu1 %vm651_vm2, %v18174_v49  ;;  %v16825_v49 = vld [vmem:[#allocation14 + $0x18] sm:$0xff] }
0x351b   :  { %12736 = vmatprep.subr.mxu1 %v17908_v44  ;;  %12768 = vmatpush3.xpose.msra.mxu0 %v16825_v49 }
0x351c   :  { %12769 = vmatprep.subr.mxu0 %v17908_v44 }
0x351e   :  { %12737 = vmatpush3.xpose.msk.msra.mxu1 %vm651_vm2, %v18175_v15  ;;  %v16829_v15 = vld [vmem:[#allocation14 + $0x10] sm:$0xff] }
0x351f   :  { %12738 = vmatprep.subr.mxu1 %v17908_v44  ;;  %12770 = vmatpush3.xpose.msra.mxu0 %v16829_v15 }
0x3520   :  { %12771 = vmatprep.subr.mxu0 %v17908_v44 }
0x3522   :  { %12739 = vmatpush3.xpose.msk.msra.mxu1 %vm651_vm2, %v18176_v36  ;;  %v16833_v36 = vld [vmem:[#allocation14 + $0x8] sm:$0xff] }
0x3523   :  { %12740 = vmatprep.subr.mxu1 %v17908_v44  ;;  %12772 = vmatpush3.xpose.msra.mxu0 %v16833_v36 }
0x3524   :  { %12773 = vmatprep.subr.mxu0 %v17908_v44 }
0x3526   :  { %12741 = vmatpush3.xpose.msk.msra.mxu1 %vm651_vm2, %v18177_v11  ;;  %v16837_v11 = vld [vmem:[#allocation14] sm:$0xff] }
0x3527   :  { %12742 = vmatprep.subr.mxu1 %v17908_v44  ;;  %12774 = vmatpush3.xpose.msra.mxu0 %v16837_v11 }
0x352a   :  { %12743 = vmatpush3.xpose.msk.msra.mxu1 %vm651_vm2, %v18178_v32 }
0x352b   :  { %12744 = vmatprep.subr.mxu1 %v17908_v44 }
0x352e   :  { %12745 = vmatpush3.xpose.msk.msra.mxu1 %vm651_vm2, %v18179_v38 }
0x352f   :  { %12746 = vmatprep.subr.mxu1 %v17908_v44 }
0x3532   :  { %12747 = vmatpush3.xpose.msk.msra.mxu1 %vm651_vm2, %v18180_v34 }
0x3533   :  { %12748 = vmatprep.subr.mxu1 %v17908_v44 }
0x3536   :  { %12749 = vmatpush3.xpose.msk.msra.mxu1 %vm651_vm2, %v18181_v43 }
0x3537   :  { %12750 = vmatprep.subr.mxu1 %v17908_v44 }
0x353a   :  { %12751 = vmatpush3.xpose.msk.msra.mxu1 %vm651_vm2, %v18182_v20 }
0x353b   :  { %12752 = vmatprep.subr.mxu1 %v17908_v44 }
0x353e   :  { %12753 = vmatpush3.xpose.msk.msra.mxu1 %vm651_vm2, %v18183_v30 }
0x353f   :  { %12754 = vmatprep.subr.mxu1 %v17908_v44 }
0x3542   :  { %12755 = vmatpush3.xpose.msk.msra.mxu1 %vm651_vm2, %v18184_v25 }
0x3543   :  { %12756 = vmatprep.subr.mxu1 %v17908_v44 }
0x3546   :  { %12757 = vmatpush3.xpose.msk.msra.mxu1 %vm651_vm2, %v18185_v12 }
0x3547   :  { %12758 = vmatprep.subr.mxu1 %v17908_v44 }
0x354a   :  { %12759 = vmatpush3.xpose.msk.msra.mxu1 %vm651_vm2, %v18186_v35 }
0x35cd   :  { %v8054_v61 = vpop.f32.mrf.mxu1 }
0x35ce   :  { %v8055_v47 = vadd.f32 %v18187_v53, %v8054_v61 }
0x35cf   :  { %v12727_v51 = vpop.f32.mrf.mxu1 }
0x35d0   :  { %v8065_v39 = vrot.slane %v8055_v47, %v18188_v31 }
0x35d2   :  { %v8066_v24 = vcombine.high %v8065_v39, %v8065_v39  ;;  %v8073_v28 = vrot.slane %v8065_v39, %v18188_v31 }
0x35d4   :  { %v8084_v42 = vrot.slane %v8073_v28, %v18189_v17  ;;  %v8080_v23 = vrot.slane %v8066_v24, %v18188_v31 }
0x35d6   :  { %v8091_v13 = vmul.f32 %v8084_v42, %v18190_v56  ;;  %v8088_v6 = vrot.slane %v8080_v23, %v18189_v17 }
0x35d8   :  { %v8093_v54 = vsel %vm651_vm2, %v8091_v13, 0.0  ;;  %v8092_v41 = vmul.f32 %v8088_v6, %v18191_v19  ;;  %v16846_v6 = vld [vmem:[#allocation19 + $0xf8] sm:$0xff] }
0x35d9   :  { %8094 = vadd.xlane.f32.xlu1 %v8093_v54  ;;  %12082 = vmatprep.subr.msk.mxu0 %vm651_vm2, %v16846_v6  ;;  %v16850_v54 = vld [vmem:[#allocation17 + $0xf8] sm:$0xff] }
0x35da   :  { %v8096_v22 = vsel %vm651_vm2, %v8092_v41, 0.0  ;;  %v16852_v41 = vld [vmem:[#allocation17 + $0x78] sm:$0xff]  ;;  %12116 = vmatprep.subr.msk.mxu1 %vm439_vm1, %v16850_v54 }
0x35db   :  { %8097 = vadd.xlane.f32.xlu0 %v8096_v22  ;;  %v16854_v22 = vld [vmem:[#allocation17 + $0xf0] sm:$0xff] }
0x3662   :  { %v8095_v58 = vpop.xlane.xlu1 %8094 }
0x3663   :  { %v8099_v63 = vmul.f32 0.125, %v8095_v58  ;;  %v16862_v58 = vld [vmem:[#allocation17 + $0x70] sm:$0xff] }
0x3664   :  { %v8098_v50 = vpop.xlane.xlu0 %8097 }
0x3665   :  { %v8100_v48 = vmul.f32 0.125, %v8098_v50  ;;  %v8106_v40 = vrot.slane %v8099_v63, %v18192_v4  ;;  %v16864_v63 = vld [vmem:[#allocation17 + $0xe8] sm:$0xff] }
0x3666   :  { %v16870_v50 = vld [vmem:[#allocation17 + $0x68] sm:$0xff] }
0x3667   :  { %v8110_v5 = vrot.slane %v8100_v48, %v18192_v4  ;;  %v16872_v48 = vld [vmem:[#allocation17 + $0xe0] sm:$0xff] }
0x3669   :  { %v8111_v57 = vsel %vm3796_vm8, %v8110_v5, %v8106_v40  ;;  %v16878_v40 = vld [vmem:[#allocation17 + $0x60] sm:$0xff]  ;;  %v16880_v5 = vld [vmem:[#allocation17 + $0xd8] sm:$0xff] }
0x366a   :  { %v8113_v45 = vsel %vm3783_vm9, %v8111_v57, -1e+09  ;;  %v16886_v57 = vld [vmem:[#allocation17 + $0x58] sm:$0xff] }
0x366b   :  { %v8114_v10 = vsel %vm3800_vm10, %v8113_v45, -inf }
0x366c   :  { %8115 = vmax.xlane.f32.xlu0 %v8114_v10  ;;  %v16894_v10 = vld [vmem:[#allocation17 + $0x50] sm:$0xff] }
0x36f5   :  { %v8116_v16 = vpop.xlane.xlu0 %8115 }
0x36f6   :  { %v8117_v2 = vsub.f32 %v8113_v45, %v8116_v16  ;;  %v16888_v45 = vld [vmem:[#allocation17 + $0xd0] sm:$0xff]  ;;  %v16896_v16 = vld [vmem:[#allocation17 + $0xc8] sm:$0xff] }
0x36f8   :  { %v8118_v18 = vmul.f32 1.442695, %v8117_v2  ;;  %v16902_v2 = vld [vmem:[#allocation17 + $0x48] sm:$0xff] }
0x36fa   :  { %13129 = vpow2.f32 %v8118_v18  ;;  %v16904_v18 = vld [vmem:[#allocation17 + $0xc0] sm:$0xff] }
0x3707   :  { %v13130_v60 = vpop.eup %13129 }
0x3708   :  { %v8120_v14 = vsel %vm3800_vm10, %v13130_v60, 0.0 }
0x3709   :  { %8121 = vadd.xlane.f32.xlu1 %v8120_v14  ;;  %v16912_v14 = vld [vmem:[#allocation17 + $0xb8] sm:$0xff] }
0x3792   :  { %v8122_v52 = vpop.xlane.xlu1 %8121 }
0x3793   :  { %13131 = vrcp.f32 %v8122_v52  ;;  %v16918_v52 = vld [vmem:[#allocation17 + $0x38] sm:$0xff] }
0x37a0   :  { %v13132_v29 = vpop.eup %13131 }
0x37a1   :  { %v8124_v27 = vmul.f32 %v13132_v29, %v13130_v60  ;;  %v16910_v60 = vld [vmem:[#allocation17 + $0x40] sm:$0xff]  ;;  %v16920_v29 = vld [vmem:[#allocation17 + $0xb0] sm:$0xff] }
0x37a3   :  { %v8135_v0 = vrot.slane %v8124_v27, %v18194_v1  ;;  %10934 = vst.msk [vmem:[%s17609_s23 + $0xa] sm:$0x3] %vm3800_vm10, %v8124_v27  ;;  %v8128_v9 = vrot.slane %v8124_v27, %v18189_v17  ;;  %v16926_v27 = vld [vmem:[#allocation17 + $0x30] sm:$0xff] }
0x37a5   :  { %8137 = vbcast.lane.b32.xlu1 %v8135_v0, 256  ;;  %8130 = vbcast.lane.b32.xlu0 %v8128_v9, 256  ;;  %v16928_v0 = vld [vmem:[#allocation17 + $0xa8] sm:$0xff] }
0x37a6   :  { %v16934_v9 = vld [vmem:[#allocation17 + $0x28] sm:$0xff] }
0x3817   :  { %v8138_v32 = vpop.permute.xlu1 %8137  ;;  %v8131_v38 = vpop.permute.xlu0 %8130 }
0x3818   :  { %v8140_v34 = vmul.f32 %v8138_v32, %v14880_v59  ;;  %v8139_v43 = vmul.f32 %v8131_v38, %v14878_v62  ;;  %v16936_v32 = vld [vmem:[#allocation17 + $0xa0] sm:$0xff] }
0x3819   :  { %v16942_v38 = vld [vmem:[#allocation17 + $0x20] sm:$0xff] }
0x381a   :  { %v8148_v20 = vsel %vm651_vm2, %v8140_v34, 0.0  ;;  %v8141_v30 = vsel %vm651_vm2, %v8139_v43, 0.0  ;;  %v16944_v34 = vld [vmem:[#allocation17 + $0x98] sm:$0xff] }
0x381b   :  { %v8149_v25 = vrot.slane %v8148_v20, 4  ;;  %v8142_v12 = vrot.slane %v8141_v30, 4  ;;  %v16950_v43 = vld [vmem:[#allocation17 + $0x18] sm:$0xff] }
0x381d   :  { %v8150_v35 = vadd.f32 %v8149_v25, %v8148_v20  ;;  %v8143_v61 = vadd.f32 %v8142_v12, %v8141_v30  ;;  %v16952_v20 = vld [vmem:[#allocation17 + $0x90] sm:$0xff]  ;;  %v16960_v25 = vld [vmem:[#allocation17 + $0x88] sm:$0xff] }
0x381e   :  { %v16958_v30 = vld [vmem:[#allocation17 + $0x10] sm:$0xff]  ;;  %v16966_v12 = vld [vmem:[#allocation17 + $0x8] sm:$0xff] }
0x381f   :  { %v8151_v53 = vrot.slane %v8150_v35, 2  ;;  %v8144_v47 = vrot.slane %v8143_v61, 2 }
0x3821   :  { %v8152_v51 = vadd.f32 %v8151_v53, %v8150_v35  ;;  %v8145_v39 = vadd.f32 %v8144_v47, %v8143_v61  ;;  %v16973_v53 = vld [vmem:[#allocation19 + $0x78] sm:$0xff] }
0x3823   :  { %v8153_v24 = vrot.slane %v8152_v51, 1  ;;  %v8146_v28 = vrot.slane %v8145_v39, 1 }
0x3825   :  { %v8154_v42 = vadd.f32 %v8153_v24, %v8152_v51  ;;  %v8147_v23 = vadd.f32 %v8146_v28, %v8145_v39  ;;  %v16975_v51 = vld [vmem:[#allocation19 + $0xf0] sm:$0xff]  ;;  %v16992_v24 = vld [vmem:[#allocation19 + $0x68] sm:$0xff]  ;;  %v16994_v28 = vld [vmem:[#allocation19 + $0xe0] sm:$0xff] }
0x3826   :  { %v16984_v39 = vld [vmem:[#allocation19 + $0x70] sm:$0xff]  ;;  %18196 = vst [vmem:[#allocation71_spill] sm:$0xff] %v16992_v24  ;;  %18197 = vst [vmem:[#allocation74_spill] sm:$0xff] %v16994_v28 }
0x3827   :  { %v8173_v13 = vsel %vm3796_vm8, %v8154_v42, %v8147_v23  ;;  %v17000_v42 = vld [vmem:[#allocation19 + $0x60] sm:$0xff]  ;;  %v17002_v23 = vld [vmem:[#allocation19 + $0xd8] sm:$0xff] }
0x3828   :  { %12761 = vmatmul.mubr.msk.f32.vlgmr.msra.gmra.mxu1 %vm651_vm2, %v8173_v13  ;;  %18198 = vst [vmem:[#allocation75_spill] sm:$0xff] %v17000_v42  ;;  %18199 = vst [vmem:[#allocation39_spill] sm:$0xff] %v17002_v23  ;;  %v17008_v13 = vld [vmem:[#allocation19 + $0x58] sm:$0xff] }
0x3829   :  { %12117 = vmatpush3.xpose.msk.msra.mxu1 %vm439_vm1, %v16852_v41  ;;  %18200 = vst [vmem:[#allocation40_spill] sm:$0xff] %v17008_v13 }
0x382a   :  { %12118 = vmatprep.subr.msk.mxu1 %vm439_vm1, %v16854_v22 }
0x382d   :  { %12119 = vmatpush3.xpose.msk.msra.mxu1 %vm439_vm1, %v16862_v58 }
0x382e   :  { %12120 = vmatprep.subr.msk.mxu1 %vm439_vm1, %v16864_v63 }
0x3831   :  { %12121 = vmatpush3.xpose.msk.msra.mxu1 %vm439_vm1, %v16870_v50 }
0x3832   :  { %12122 = vmatprep.subr.msk.mxu1 %vm439_vm1, %v16872_v48 }
0x3835   :  { %12123 = vmatpush3.xpose.msk.msra.mxu1 %vm439_vm1, %v16878_v40 }
0x3836   :  { %12124 = vmatprep.subr.msk.mxu1 %vm439_vm1, %v16880_v5 }
0x3839   :  { %12125 = vmatpush3.xpose.msk.msra.mxu1 %vm439_vm1, %v16886_v57 }
0x383a   :  { %12126 = vmatprep.subr.msk.mxu1 %vm439_vm1, %v16888_v45 }
0x383d   :  { %12127 = vmatpush3.xpose.msk.msra.mxu1 %vm439_vm1, %v16894_v10 }
0x383e   :  { %12128 = vmatprep.subr.msk.mxu1 %vm439_vm1, %v16896_v16 }
0x3841   :  { %12129 = vmatpush3.xpose.msk.msra.mxu1 %vm439_vm1, %v16902_v2 }
0x3842   :  { %12130 = vmatprep.subr.msk.mxu1 %vm439_vm1, %v16904_v18 }
0x3845   :  { %12131 = vmatpush3.xpose.msk.msra.mxu1 %vm439_vm1, %v16910_v60 }
0x3846   :  { %12132 = vmatprep.subr.msk.mxu1 %vm439_vm1, %v16912_v14 }
0x3849   :  { %12133 = vmatpush3.xpose.msk.msra.mxu1 %vm439_vm1, %v16918_v52 }
0x384a   :  { %12134 = vmatprep.subr.msk.mxu1 %vm439_vm1, %v16920_v29 }
0x384d   :  { %12135 = vmatpush3.xpose.msk.msra.mxu1 %vm439_vm1, %v16926_v27 }
0x384e   :  { %12136 = vmatprep.subr.msk.mxu1 %vm439_vm1, %v16928_v0 }
0x3851   :  { %12137 = vmatpush3.xpose.msk.msra.mxu1 %vm439_vm1, %v16934_v9 }
0x3852   :  { %12138 = vmatprep.subr.msk.mxu1 %vm439_vm1, %v16936_v32 }
0x3855   :  { %12139 = vmatpush3.xpose.msk.msra.mxu1 %vm439_vm1, %v16942_v38 }
0x3856   :  { %12140 = vmatprep.subr.msk.mxu1 %vm439_vm1, %v16944_v34 }
0x3859   :  { %12141 = vmatpush3.xpose.msk.msra.mxu1 %vm439_vm1, %v16950_v43 }
0x385a   :  { %12142 = vmatprep.subr.msk.mxu1 %vm439_vm1, %v16952_v20 }
0x385d   :  { %12143 = vmatpush3.xpose.msk.msra.mxu1 %vm439_vm1, %v16958_v30 }
0x385e   :  { %12144 = vmatprep.subr.msk.mxu1 %vm439_vm1, %v16960_v25 }
0x3861   :  { %12145 = vmatpush3.xpose.msk.msra.mxu1 %vm439_vm1, %v16966_v12 }
0x38e8   :  { %v8290_v35 = vpop.f32.mrf.mxu1 }
0x38e9   :  { %v16971_v61 = vadd.f32 %v16629_v33, %v8290_v35  ;;  %v16986_v33 = vld [vmem:[#allocation19 + $0xe8] sm:$0xff]  ;;  %v17010_v35 = vld [vmem:[#allocation19 + $0xd0] sm:$0xff] }
0x38ea   :  { %v12762_v47 = vpop.f32.mrf.mxu1  ;;  %18201 = vst [vmem:[#allocation41_spill] sm:$0xff] %v17010_v35 }
0x38eb   :  { %18195 = vst [vmem:[#allocation72_spill] sm:$0xff] %v16971_v61  ;;  %12776 = vmatmul.mubr.f32.vlgmr.msra.gmra.mxu0 %v16971_v61  ;;  %v17016_v47 = vld [vmem:[#allocation19 + $0x50] sm:$0xff]  ;;  %v17018_v61 = vld [vmem:[#allocation19 + $0xc8] sm:$0xff] }
0x38ec   :  { %12083 = vmatpush3.xpose.msk.msra.mxu0 %vm651_vm2, %v16973_v53  ;;  %12114 = vmatprep.mubr.msk.f32.mxu0 %vm651_vm2, %v16741_v55  ;;  %18202 = vst [vmem:[#allocation42_spill] sm:$0xff] %v17016_v47  ;;  %18203 = vst [vmem:[#allocation43_spill] sm:$0xff] %v17018_v61 }
0x38ed   :  { %12084 = vmatprep.subr.msk.mxu0 %vm651_vm2, %v16975_v51 }
0x38f0   :  { %12085 = vmatpush3.xpose.msk.msra.mxu0 %vm651_vm2, %v16984_v39 }
0x38f1   :  { %12086 = vmatprep.subr.msk.mxu0 %vm651_vm2, %v16986_v33 }
0x38f4   :  { %12087 = vmatpush3.xpose.msk.msra.mxu0 %vm651_vm2, %v16992_v24 }
0x38f5   :  { %12088 = vmatprep.subr.msk.mxu0 %vm651_vm2, %v16994_v28 }
0x38f8   :  { %12089 = vmatpush3.xpose.msk.msra.mxu0 %vm651_vm2, %v17000_v42 }
0x38f9   :  { %12090 = vmatprep.subr.msk.mxu0 %vm651_vm2, %v17002_v23  ;;  %v17026_v23 = vld [vmem:[#allocation19 + $0xc0] sm:$0xff] }
0x38fa   :  { %18205 = vst [vmem:[#allocation45_spill] sm:$0xff] %v17026_v23 }
0x38fc   :  { %12091 = vmatpush3.xpose.msk.msra.mxu0 %vm651_vm2, %v17008_v13  ;;  %v17034_v13 = vld [vmem:[#allocation19 + $0xb8] sm:$0xff] }
0x38fd   :  { %12092 = vmatprep.subr.msk.mxu0 %vm651_vm2, %v17010_v35  ;;  %v17032_v35 = vld [vmem:[#allocation19 + $0x40] sm:$0xff]  ;;  %18207 = vst [vmem:[#allocation47_spill] sm:$0xff] %v17034_v13 }
0x38fe   :  { %18206 = vst [vmem:[#allocation46_spill] sm:$0xff] %v17032_v35 }
0x3900   :  { %12093 = vmatpush3.xpose.msk.msra.mxu0 %vm651_vm2, %v17016_v47  ;;  %v17042_v47 = vld [vmem:[#allocation19 + $0xb0] sm:$0xff] }
0x3901   :  { %12094 = vmatprep.subr.msk.mxu0 %vm651_vm2, %v17018_v61  ;;  %v17040_v61 = vld [vmem:[#allocation19 + $0x38] sm:$0xff]  ;;  %18209 = vst [vmem:[#allocation49_spill] sm:$0xff] %v17042_v47 }
0x3902   :  { %18208 = vst [vmem:[#allocation48_spill] sm:$0xff] %v17040_v61 }
0x3904   :  { %12095 = vmatpush3.xpose.msk.msra.mxu0 %vm651_vm2, %v17024_v8  ;;  %v17050_v8 = vld [vmem:[#allocation19 + $0xa8] sm:$0xff] }
0x3905   :  { %12096 = vmatprep.subr.msk.mxu0 %vm651_vm2, %v17026_v23  ;;  %v17048_v23 = vld [vmem:[#allocation19 + $0x30] sm:$0xff]  ;;  %18211 = vst [vmem:[#allocation51_spill] sm:$0xff] %v17050_v8 }
0x3906   :  { %18210 = vst [vmem:[#allocation50_spill] sm:$0xff] %v17048_v23 }
0x3908   :  { %12097 = vmatpush3.xpose.msk.msra.mxu0 %vm651_vm2, %v17032_v35  ;;  %v17058_v35 = vld [vmem:[#allocation19 + $0xa0] sm:$0xff] }
0x3909   :  { %12098 = vmatprep.subr.msk.mxu0 %vm651_vm2, %v17034_v13  ;;  %v17056_v13 = vld [vmem:[#allocation19 + $0x28] sm:$0xff]  ;;  %18213 = vst [vmem:[#allocation53_spill] sm:$0xff] %v17058_v35 }
0x390a   :  { %18212 = vst [vmem:[#allocation52_spill] sm:$0xff] %v17056_v13 }
0x390c   :  { %12099 = vmatpush3.xpose.msk.msra.mxu0 %vm651_vm2, %v17040_v61  ;;  %v17066_v61 = vld [vmem:[#allocation19 + $0x98] sm:$0xff] }
0x390d   :  { %12100 = vmatprep.subr.msk.mxu0 %vm651_vm2, %v17042_v47  ;;  %v17064_v47 = vld [vmem:[#allocation19 + $0x20] sm:$0xff]  ;;  %18215 = vst [vmem:[#allocation55_spill] sm:$0xff] %v17066_v61 }
0x390e   :  { %18214 = vst [vmem:[#allocation54_spill] sm:$0xff] %v17064_v47 }
0x3910   :  { %12101 = vmatpush3.xpose.msk.msra.mxu0 %vm651_vm2, %v17048_v23  ;;  %v17074_v23 = vld [vmem:[#allocation19 + $0x90] sm:$0xff] }
0x3911   :  { %12102 = vmatprep.subr.msk.mxu0 %vm651_vm2, %v17050_v8  ;;  %v17072_v8 = vld [vmem:[#allocation19 + $0x18] sm:$0xff]  ;;  %18217 = vst [vmem:[#allocation57_spill] sm:$0xff] %v17074_v23 }
0x3912   :  { %18216 = vst [vmem:[#allocation56_spill] sm:$0xff] %v17072_v8 }
0x3914   :  { %12103 = vmatpush3.xpose.msk.msra.mxu0 %vm651_vm2, %v17056_v13  ;;  %v17082_v13 = vld [vmem:[#allocation19 + $0x88] sm:$0xff] }
0x3915   :  { %12104 = vmatprep.subr.msk.mxu0 %vm651_vm2, %v17058_v35  ;;  %v17080_v35 = vld [vmem:[#allocation19 + $0x10] sm:$0xff]  ;;  %18219 = vst [vmem:[#allocation59_spill] sm:$0xff] %v17082_v13 }
0x3916   :  { %18218 = vst [vmem:[#allocation58_spill] sm:$0xff] %v17080_v35 }
0x3918   :  { %12105 = vmatpush3.xpose.msk.msra.mxu0 %vm651_vm2, %v17064_v47  ;;  %v17090_v47 = vld [vmem:[#allocation19 + $0x80] sm:$0xff] }
0x3919   :  { %12106 = vmatprep.subr.msk.mxu0 %vm651_vm2, %v17066_v61  ;;  %v17088_v61 = vld [vmem:[#allocation19 + $0x8] sm:$0xff]  ;;  %18221 = vst [vmem:[#allocation61_spill] sm:$0xff] %v17090_v47 }
0x391a   :  { %18220 = vst [vmem:[#allocation60_spill] sm:$0xff] %v17088_v61 }
0x391c   :  { %12107 = vmatpush3.xpose.msk.msra.mxu0 %vm651_vm2, %v17072_v8 }
0x391d   :  { %12108 = vmatprep.subr.msk.mxu0 %vm651_vm2, %v17074_v23  ;;  %v17096_v23 = vld [vmem:[#allocation19] sm:$0xff] }
0x391e   :  { %18222 = vst [vmem:[#allocation63_spill] sm:$0xff] %v17096_v23 }
0x3920   :  { %12109 = vmatpush3.xpose.msk.msra.mxu0 %vm651_vm2, %v17080_v35 }
0x3921   :  { %12110 = vmatprep.subr.msk.mxu0 %vm651_vm2, %v17082_v13  ;;  %v17105_v13 = vld [vmem:[#allocation17 + $0x80] sm:$0xff] }
0x3922   :  { %12146 = vmatprep.subr.msk.mxu1 %vm439_vm1, %v17105_v13 }
0x3924   :  { %12111 = vmatpush3.xpose.msk.msra.mxu0 %vm651_vm2, %v17088_v61  ;;  %v17109_v61 = vld [vmem:[#allocation17] sm:$0xff] }
0x3925   :  { %12112 = vmatprep.subr.msk.mxu0 %vm651_vm2, %v17090_v47  ;;  %12147 = vmatpush3.xpose.msk.msra.mxu1 %vm439_vm1, %v17109_v61  ;;  %v17114_v47 = vld [vmem:[#allocation16] ss:$0 sm:$0xff] }
0x3926   :  { %12832 = vmatprep.subr.mxu1 %v17908_v44  ;;  %18223 = vst [vmem:[#allocation64_spill] sm:$0xff] %v17114_v47 }
0x3928   :  { %12113 = vmatpush3.xpose.msk.msra.mxu0 %vm651_vm2, %v17096_v23 }
0x3929   :  { %12778 = vmatprep.subr.mxu0 %v17908_v44 }
0x392b   :  { %12115 = vmatmul.mubr.msk.f32.vlgmr.msra.gmra.mxu0 %vm651_vm2, %v16741_v55 }
0x392c   :  { %12794 = vmatprep.mubr.msk.f32.mxu0 %vm13533_vm7, %v17908_v44 }
0x39ab   :  { %v8375_v23 = vpop.f32.mrf.mxu0 }
0x39ac   :  { %v8376_v55 = vadd.f32 %v17114_v47, %v8375_v23 }
0x39ad   :  { %v12777_v35 = vpop.f32.mrf.mxu0 }
0x39ae   :  { %v8379_v8 = vmax.f32 %v8376_v55, 0.0 }
0x39b0   :  { %12148 = vmatprep.mubr.msk.f32.mxu1 %vm439_vm1, %v8379_v8 }
0x39b1   :  { %12149 = vmatmul.mubr.msk.f32.vlgmr.msra.gmra.mxu1 %vm439_vm1, %v8379_v8 }
0x39b2   :  { %12833 = vmatpush3.xpose.msra.mxu1 %v16817_v46  ;;  %12844 = vmatprep.mubr.msk.f32.mxu1 %vm13533_vm7, %v17908_v44 }
0x39b3   :  { %12834 = vmatprep.subr.mxu1 %v17908_v44 }
0x39b6   :  { %12835 = vmatpush3.xpose.msra.mxu1 %v16821_v37 }
0x39b7   :  { %12836 = vmatprep.subr.mxu1 %v17908_v44 }
0x39ba   :  { %12837 = vmatpush3.xpose.msra.mxu1 %v16825_v49 }
0x39bb   :  { %12838 = vmatprep.subr.mxu1 %v17908_v44 }
0x39be   :  { %12839 = vmatpush3.xpose.msra.mxu1 %v16829_v15 }
0x39bf   :  { %12840 = vmatprep.subr.mxu1 %v17908_v44 }
0x39c2   :  { %12841 = vmatpush3.xpose.msra.mxu1 %v16833_v36 }
0x39c3   :  { %12842 = vmatprep.subr.mxu1 %v17908_v44 }
0x39c6   :  { %12843 = vmatpush3.xpose.msra.mxu1 %v16837_v11 }
0x39c7   :  { %12183 = vmatprep.subr.msk.mxu1 %vm651_vm2, %v16846_v6 }
0x39eb   :  { %v8606_v8 = vpop.f32.mrf.mxu0 }
0x39ed   :  { %v8608_v55 = vpop.f32.mrf.mxu0 }
0x3a71   :  { %v8776_v46 = vpop.f32.mrf.mxu1 }
0x3a72   :  { %v8777_v37 = vadd.f32 %v8776_v46, %v8606_v8  ;;  %v17137_v8 = vld [vmem:[#allocation20 + $0x38] sm:$0xff]  ;;  %v17142_v46 = vld [vmem:[#allocation20 + $0x30] sm:$0xff] }
0x3a73   :  { %v8778_v15 = vpop.f32.mrf.mxu1  ;;  %12779 = vmatpush3.xpose.msk.msra.mxu0 %vm651_vm2, %v17137_v8 }
0x3a74   :  { %v8781_v49 = vadd.f32 %v8777_v37, %v18171_v7  ;;  %v8779_v47 = vadd.f32 %v8778_v15, %v8608_v55  ;;  %12780 = vmatprep.subr.mxu0 %v17908_v44  ;;  %v17162_v37 = vld [vmem:[#allocation20 + $0x10] sm:$0xff] }
0x3a75   :  { %18225 = vst [vmem:[#allocation68_spill] sm:$0xff] %v17162_v37 }
0x3a76   :  { %v8783_v23 = vsub.f32 0.0, %v8781_v49  ;;  %v8782_v36 = vadd.f32 %v8779_v47, %v18172_v21  ;;  %v17157_v47 = vld [vmem:[#allocation20 + $0x18] sm:$0xff]  ;;  %v17167_v49 = vld [vmem:[#allocation20 + $0x8] sm:$0xff] }
0x3a77   :  { %12781 = vmatpush3.xpose.msk.msra.mxu0 %vm651_vm2, %v17142_v46  ;;  %18224 = vst [vmem:[#allocation65_spill] sm:$0xff] %v17157_v47  ;;  %18226 = vst [vmem:[#allocation62_spill] sm:$0xff] %v17167_v49 }
0x3a78   :  { %v8784_v35 = vmul.f32 1.442695, %v8783_v23  ;;  %12782 = vmatprep.subr.mxu0 %v17908_v44  ;;  %v17172_v23 = vld [vmem:[#allocation20] sm:$0xff] }
0x3a79   :  { %18227 = vst [vmem:[#allocation85_spill] sm:$0xff] %v17172_v23 }
0x3a7a   :  { %13133 = vpow2.f32 %v8784_v35  ;;  %v8790_v35 = vsub.f32 0.0, %v8782_v36 }
0x3a7b   :  { %13135 = vtanh.f32 %v8782_v36 }
0x3a7c   :  { %v8791_v15 = vmul.f32 1.442695, %v8790_v35 }
0x3a87   :  { %v13134_v42 = vpop.eup %13133 }
0x3a88   :  { %v8786_v28 = vadd.f32 1.0, %v13134_v42  ;;  %v13136_v11 = vpop.eup %13135  ;;  %v17152_v42 = vld [vmem:[#allocation20 + $0x20] sm:$0xff] }
0x3a8a   :  { %13137 = vrcp.f32 %v8786_v28  ;;  %v17147_v28 = vld [vmem:[#allocation20 + $0x28] sm:$0xff] }
0x3a8b   :  { %12783 = vmatpush3.xpose.msk.msra.mxu0 %vm651_vm2, %v17147_v28  ;;  %13139 = vpow2.f32 %v8791_v15 }
0x3a8c   :  { %12784 = vmatprep.subr.mxu0 %v17908_v44 }
0x3a8f   :  { %12785 = vmatpush3.xpose.msk.msra.mxu0 %vm651_vm2, %v17152_v42 }
0x3a90   :  { %12786 = vmatprep.subr.mxu0 %v17908_v44 }
0x3a93   :  { %12787 = vmatpush3.xpose.msk.msra.mxu0 %vm651_vm2, %v17157_v47 }
0x3a94   :  { %12788 = vmatprep.subr.mxu0 %v17908_v44 }
0x3a97   :  { %v13138_v24 = vpop.eup %13137  ;;  %12789 = vmatpush3.xpose.msk.msra.mxu0 %vm651_vm2, %v17162_v37 }
0x3a98   :  { %v8797_v6 = vmul.f32 %v13138_v24, %v13136_v11  ;;  %12790 = vmatprep.subr.mxu0 %v17908_v44  ;;  %v13140_v55 = vpop.eup %13139 }
0x3a99   :  { %v8793_v11 = vadd.f32 1.0, %v13140_v55 }
0x3a9a   :  { %8799 = vrot.lane.b32.xlu1 %v8797_v6, %s13532_s28  ;;  %v8796_v6 = vmul.f32 %v13138_v24, %v16737_v3  ;;  %v17188_v24 = vld [vmem:[#allocation22] ss:$0 sm:$0xff] }
0x3a9b   :  { %12791 = vmatpush3.xpose.msk.msra.mxu0 %vm651_vm2, %v17167_v49  ;;  %13141 = vrcp.f32 %v8793_v11  ;;  %18229 = vst [vmem:[#allocation88_spill] sm:$0xff] %v17188_v24 }
0x3a9c   :  { %12792 = vmatprep.subr.mxu0 %v17908_v44 }
0x3a9f   :  { %12793 = vmatpush3.xpose.msk.msra.mxu0 %vm651_vm2, %v17172_v23 }
0x3aa0   :  { %12797 = vmatprep.subr.mxu0 %v17908_v44 }
0x3aa8   :  { %v13142_v49 = vpop.eup %13141 }
0x3b0c   :  { %v8800_v21 = vpop.permute.xlu1 %8799 }
0x3b0d   :  { %v17178_v7 = vadd.f32 %v8800_v21, %v8796_v6 }
0x3b0f   :  { %18228 = vst [vmem:[#allocation87_spill] sm:$0xff] %v17178_v7  ;;  %13143 = vtanh.f32 %v17178_v7 }
0x3b1c   :  { %v13144_v37 = vpop.eup %13143 }
0x3b1d   :  { %v8804_v47 = vmul.f32 %v13144_v37, %v13142_v49 }
0x3b1f   :  { %8814 = vrot.lane.b32.xlu0 %v8804_v47, %s13532_s28 }
0x3b91   :  { %v17182_v23 = vpop.permute.xlu0 %8814 }
0x3b92   :  { %12795 = vmatmul.mubr.msk.f32.vlgmr.msra.gmra.mxu0 %vm651_vm2, %v17182_v23 }
0x3b93   :  { %12829 = vmatprep.mubr.msk.f32.mxu0 %vm13533_vm7, %v17908_v44 }
0x3c52   :  { %v8908_v3 = vpop.f32.mrf.mxu0 }
0x3c53   :  { %v8909_v21 = vadd.f32 %v17188_v24, %v8908_v3 }
0x3c54   :  { %v12796_v36 = vpop.f32.mrf.mxu0 }
0x3c55   :  { %v8919_v35 = vrot.slane %v8909_v21, %v18188_v31 }
0x3c57   :  { %v8920_v15 = vcombine.high %v8919_v35, %v8919_v35  ;;  %v8927_v37 = vrot.slane %v8919_v35, %v18188_v31 }
0x3c59   :  { %v8938_v47 = vrot.slane %v8927_v37, %v18189_v17  ;;  %v8934_v49 = vrot.slane %v8920_v15, %v18188_v31 }
0x3c5b   :  { %v8945_v55 = vmul.f32 %v8938_v47, %v18190_v56  ;;  %v8942_v11 = vrot.slane %v8934_v49, %v18189_v17 }
0x3c5d   :  { %v8947_v6 = vsel %vm651_vm2, %v8945_v55, 0.0  ;;  %v8946_v7 = vmul.f32 %v8942_v11, %v18191_v19  ;;  %v17272_v19 = vld [vmem:[#allocation26 + $0x10] sm:$0xff] }
0x3c5e   :  { %8948 = vadd.xlane.f32.xlu1 %v8947_v6  ;;  %18240 = vst [vmem:[#allocation96_spill] sm:$0xff] %v17272_v19 }
0x3c5f   :  { %v8950_v3 = vsel %vm651_vm2, %v8946_v7, 0.0 }
0x3c60   :  { %8951 = vadd.xlane.f32.xlu0 %v8950_v3 }
0x3ce7   :  { %v8949_v21 = vpop.xlane.xlu1 %8948 }
0x3ce8   :  { %v8953_v36 = vmul.f32 0.125, %v8949_v21 }
0x3ce9   :  { %v8952_v24 = vpop.xlane.xlu0 %8951 }
0x3cea   :  { %v8954_v35 = vmul.f32 0.125, %v8952_v24  ;;  %v8960_v37 = vrot.slane %v8953_v36, %v18192_v4  ;;  %v17207_v24 = vld [vmem:[#allocation26 + $0x78] sm:$0xff]  ;;  %v17212_v36 = vld [vmem:[#allocation26 + $0x70] sm:$0xff] }
0x3ceb   :  { %12798 = vmatpush3.xpose.msk.msra.mxu0 %vm651_vm2, %v17207_v24 }
0x3cec   :  { %v8964_v15 = vrot.slane %v8954_v35, %v18192_v4  ;;  %12799 = vmatprep.subr.mxu0 %v17908_v44  ;;  %v17217_v35 = vld [vmem:[#allocation26 + $0x68] sm:$0xff]  ;;  %v17267_v4 = vld [vmem:[#allocation26 + $0x18] sm:$0xff] }
0x3ced   :  { %18239 = vst [vmem:[#allocation95_spill] sm:$0xff] %v17267_v4 }
0x3cee   :  { %v8965_v47 = vsel %vm3796_vm8, %v8964_v15, %v8960_v37  ;;  %v17222_v37 = vld [vmem:[#allocation26 + $0x60] sm:$0xff]  ;;  %v17227_v15 = vld [vmem:[#allocation26 + $0x58] sm:$0xff] }
0x3cef   :  { %v8967_v49 = vsel %vm3783_vm9, %v8965_v47, -1e+09  ;;  %12800 = vmatpush3.xpose.msk.msra.mxu0 %vm651_vm2, %v17212_v36  ;;  %18230 = vst [vmem:[#allocation73_spill] sm:$0xff] %v17222_v37  ;;  %18231 = vst [vmem:[#allocation90_spill] sm:$0xff] %v17227_v15  ;;  %v17232_v47 = vld [vmem:[#allocation26 + $0x50] sm:$0xff] }
0x3cf0   :  { %v8968_v55 = vsel %vm3800_vm10, %v8967_v49, -inf  ;;  %12801 = vmatprep.subr.mxu0 %v17908_v44  ;;  %18232 = vst [vmem:[#allocation91_spill] sm:$0xff] %v17232_v47 }
0x3cf1   :  { %8969 = vmax.xlane.f32.xlu0 %v8968_v55  ;;  %v17242_v55 = vld [vmem:[#allocation26 + $0x40] sm:$0xff] }
0x3cf2   :  { %18234 = vst [vmem:[#allocation80_spill] sm:$0xff] %v17242_v55 }
0x3cf3   :  { %12802 = vmatpush3.xpose.msk.msra.mxu0 %vm651_vm2, %v17217_v35 }
0x3cf4   :  { %12803 = vmatprep.subr.mxu0 %v17908_v44 }
0x3cf7   :  { %12804 = vmatpush3.xpose.msk.msra.mxu0 %vm651_vm2, %v17222_v37 }
0x3cf8   :  { %12805 = vmatprep.subr.mxu0 %v17908_v44 }
0x3cfb   :  { %12806 = vmatpush3.xpose.msk.msra.mxu0 %vm651_vm2, %v17227_v15 }
0x3cfc   :  { %12807 = vmatprep.subr.mxu0 %v17908_v44 }
0x3cff   :  { %12808 = vmatpush3.xpose.msk.msra.mxu0 %vm651_vm2, %v17232_v47 }
0x3d00   :  { %12809 = vmatprep.subr.mxu0 %v17908_v44 }
0x3d7a   :  { %v8970_v11 = vpop.xlane.xlu0 %8969 }
0x3d7b   :  { %v8971_v6 = vsub.f32 %v8967_v49, %v8970_v11  ;;  %v17237_v49 = vld [vmem:[#allocation26 + $0x48] sm:$0xff]  ;;  %v17247_v11 = vld [vmem:[#allocation26 + $0x38] sm:$0xff] }
0x3d7c   :  { %18233 = vst [vmem:[#allocation92_spill] sm:$0xff] %v17237_v49  ;;  %12810 = vmatpush3.xpose.msk.msra.mxu0 %vm651_vm2, %v17237_v49  ;;  %18235 = vst [vmem:[#allocation81_spill] sm:$0xff] %v17247_v11 }
0x3d7d   :  { %v8972_v7 = vmul.f32 1.442695, %v8971_v6  ;;  %12811 = vmatprep.subr.mxu0 %v17908_v44  ;;  %v17252_v6 = vld [vmem:[#allocation26 + $0x30] sm:$0xff] }
0x3d7e   :  { %18236 = vst [vmem:[#allocation93_spill] sm:$0xff] %v17252_v6 }
0x3d7f   :  { %13145 = vpow2.f32 %v8972_v7  ;;  %v17257_v7 = vld [vmem:[#allocation26 + $0x28] sm:$0xff] }
0x3d80   :  { %12812 = vmatpush3.xpose.msk.msra.mxu0 %vm651_vm2, %v17242_v55  ;;  %18237 = vst [vmem:[#allocation94_spill] sm:$0xff] %v17257_v7 }
0x3d81   :  { %12813 = vmatprep.subr.mxu0 %v17908_v44 }
0x3d84   :  { %12814 = vmatpush3.xpose.msk.msra.mxu0 %vm651_vm2, %v17247_v11 }
0x3d85   :  { %12815 = vmatprep.subr.mxu0 %v17908_v44 }
0x3d88   :  { %12816 = vmatpush3.xpose.msk.msra.mxu0 %vm651_vm2, %v17252_v6 }
0x3d89   :  { %12817 = vmatprep.subr.mxu0 %v17908_v44 }
0x3d8c   :  { %v13146_v3 = vpop.eup %13145  ;;  %12818 = vmatpush3.xpose.msk.msra.mxu0 %vm651_vm2, %v17257_v7 }
0x3d8d   :  { %v8974_v21 = vsel %vm3800_vm10, %v13146_v3, 0.0  ;;  %12819 = vmatprep.subr.mxu0 %v17908_v44 }
0x3d8e   :  { %8975 = vadd.xlane.f32.xlu1 %v8974_v21  ;;  %v17262_v21 = vld [vmem:[#allocation26 + $0x20] sm:$0xff] }
0x3d8f   :  { %18238 = vst [vmem:[#allocation89_spill] sm:$0xff] %v17262_v21 }
0x3d90   :  { %12820 = vmatpush3.xpose.msk.msra.mxu0 %vm651_vm2, %v17262_v21  ;;  %v17277_v21 = vld [vmem:[#allocation26 + $0x8] sm:$0xff] }
0x3d91   :  { %12821 = vmatprep.subr.mxu0 %v17908_v44  ;;  %18241 = vst [vmem:[#allocation86_spill] sm:$0xff] %v17277_v21 }
0x3d94   :  { %12822 = vmatpush3.xpose.msk.msra.mxu0 %vm651_vm2, %v17267_v4 }
0x3d95   :  { %12823 = vmatprep.subr.mxu0 %v17908_v44 }
0x3d98   :  { %12824 = vmatpush3.xpose.msk.msra.mxu0 %vm651_vm2, %v17272_v19  ;;  %v17288_v19 = vld [vmem:[#allocation26] sm:$0xff] }
0x3d99   :  { %12825 = vmatprep.subr.mxu0 %v17908_v44  ;;  %18242 = vst [vmem:[#allocation98_spill] sm:$0xff] %v17288_v19 }
0x3d9c   :  { %12826 = vmatpush3.xpose.msk.msra.mxu0 %vm651_vm2, %v17277_v21 }
0x3d9d   :  { %12827 = vmatprep.subr.mxu0 %v17908_v44 }
0x3da0   :  { %12828 = vmatpush3.xpose.msk.msra.mxu0 %vm651_vm2, %v17288_v19 }
0x3da1   :  { %12217 = vmatprep.subr.msk.mxu0 %vm439_vm1, %v16850_v54 }
0x3e17   :  { %v8976_v26 = vpop.xlane.xlu1 %8975 }
0x3e18   :  { %13147 = vrcp.f32 %v8976_v26 }
0x3e25   :  { %v13148_v56 = vpop.eup %13147 }
0x3e26   :  { %v8978_v31 = vmul.f32 %v13148_v56, %v13146_v3 }
0x3e28   :  { %v8989_v26 = vrot.slane %v8978_v31, %v18194_v1  ;;  %11028 = vst.msk [vmem:[%s17609_s23 + $0xc] sm:$0x3] %vm3800_vm10, %v8978_v31  ;;  %v8982_v4 = vrot.slane %v8978_v31, %v18189_v17 }
0x3e2a   :  { %8991 = vbcast.lane.b32.xlu1 %v8989_v26, 256  ;;  %8984 = vbcast.lane.b32.xlu0 %v8982_v4, 256 }
0x3e9c   :  { %v8992_v56 = vpop.permute.xlu1 %8991  ;;  %v8985_v3 = vpop.permute.xlu0 %8984 }
0x3e9d   :  { %v8994_v1 = vmul.f32 %v8992_v56, %v14880_v59  ;;  %v8993_v21 = vmul.f32 %v8985_v3, %v14878_v62 }
0x3e9f   :  { %v9002_v31 = vsel %vm651_vm2, %v8994_v1, 0.0  ;;  %v8995_v17 = vsel %vm651_vm2, %v8993_v21, 0.0 }
0x3ea0   :  { %v9003_v26 = vrot.slane %v9002_v31, 4  ;;  %v8996_v4 = vrot.slane %v8995_v17, 4 }
0x3ea2   :  { %v9004_v7 = vadd.f32 %v9003_v26, %v9002_v31  ;;  %v8997_v6 = vadd.f32 %v8996_v4, %v8995_v17 }
0x3ea4   :  { %v9005_v11 = vrot.slane %v9004_v7, 2  ;;  %v8998_v55 = vrot.slane %v8997_v6, 2 }
0x3ea6   :  { %v9006_v19 = vadd.f32 %v9005_v11, %v9004_v7  ;;  %v8999_v49 = vadd.f32 %v8998_v55, %v8997_v6  ;;  %v18276_v7 = vld [vmem:[#allocation79_spill] sm:$0xff] }
0x3ea8   :  { %v9007_v47 = vrot.slane %v9006_v19, 1  ;;  %v9000_v54 = vrot.slane %v8999_v49, 1 }
0x3eaa   :  { %v9008_v15 = vadd.f32 %v9007_v47, %v9006_v19  ;;  %v9001_v37 = vadd.f32 %v9000_v54, %v8999_v49  ;;  %v17365_v19 = vld [vmem:[%s17607_s21] ss:$0 sm:$0xff] }
0x3eac   :  { %v9027_v56 = vsel %vm3796_vm8, %v9008_v15, %v9001_v37  ;;  %v18275_v37 = vld [vmem:[#allocation78_spill] sm:$0xff] }
0x3ead   :  { %12830 = vmatmul.mubr.msk.f32.vlgmr.msra.gmra.mxu0 %vm651_vm2, %v9027_v56 }
0x3eae   :  { %12218 = vmatpush3.xpose.msk.msra.mxu0 %vm439_vm1, %v16852_v41 }
0x3eaf   :  { %12219 = vmatprep.subr.msk.mxu0 %vm439_vm1, %v16854_v22  ;;  %v18243_v22 = vld [vmem:[#allocation71_spill] sm:$0xff] }
0x3eb2   :  { %12220 = vmatpush3.xpose.msk.msra.mxu0 %vm439_vm1, %v16862_v58  ;;  %v18244_v58 = vld [vmem:[#allocation74_spill] sm:$0xff] }
0x3eb3   :  { %12221 = vmatprep.subr.msk.mxu0 %vm439_vm1, %v16864_v63  ;;  %v18245_v63 = vld [vmem:[#allocation75_spill] sm:$0xff] }
0x3eb6   :  { %12222 = vmatpush3.xpose.msk.msra.mxu0 %vm439_vm1, %v16870_v50  ;;  %v18246_v50 = vld [vmem:[#allocation39_spill] sm:$0xff] }
0x3eb7   :  { %12223 = vmatprep.subr.msk.mxu0 %vm439_vm1, %v16872_v48  ;;  %v18247_v48 = vld [vmem:[#allocation40_spill] sm:$0xff] }
0x3eba   :  { %12224 = vmatpush3.xpose.msk.msra.mxu0 %vm439_vm1, %v16878_v40  ;;  %v18248_v40 = vld [vmem:[#allocation41_spill] sm:$0xff] }
0x3ebb   :  { %12225 = vmatprep.subr.msk.mxu0 %vm439_vm1, %v16880_v5  ;;  %v18249_v5 = vld [vmem:[#allocation42_spill] sm:$0xff] }
0x3ebe   :  { %12226 = vmatpush3.xpose.msk.msra.mxu0 %vm439_vm1, %v16886_v57  ;;  %v18250_v57 = vld [vmem:[#allocation43_spill] sm:$0xff] }
0x3ebf   :  { %12227 = vmatprep.subr.msk.mxu0 %vm439_vm1, %v16888_v45  ;;  %v18251_v45 = vld [vmem:[#allocation44_spill] sm:$0xff] }
0x3ec2   :  { %12228 = vmatpush3.xpose.msk.msra.mxu0 %vm439_vm1, %v16894_v10  ;;  %v18252_v10 = vld [vmem:[#allocation45_spill] sm:$0xff] }
0x3ec3   :  { %12229 = vmatprep.subr.msk.mxu0 %vm439_vm1, %v16896_v16  ;;  %v18253_v16 = vld [vmem:[#allocation46_spill] sm:$0xff] }
0x3ec6   :  { %12230 = vmatpush3.xpose.msk.msra.mxu0 %vm439_vm1, %v16902_v2  ;;  %v18254_v2 = vld [vmem:[#allocation47_spill] sm:$0xff] }
0x3ec7   :  { %12231 = vmatprep.subr.msk.mxu0 %vm439_vm1, %v16904_v18  ;;  %v18255_v18 = vld [vmem:[#allocation48_spill] sm:$0xff] }
0x3eca   :  { %12232 = vmatpush3.xpose.msk.msra.mxu0 %vm439_vm1, %v16910_v60  ;;  %v18256_v60 = vld [vmem:[#allocation49_spill] sm:$0xff] }
0x3ecb   :  { %12233 = vmatprep.subr.msk.mxu0 %vm439_vm1, %v16912_v14  ;;  %v18257_v14 = vld [vmem:[#allocation50_spill] sm:$0xff] }
0x3ece   :  { %12234 = vmatpush3.xpose.msk.msra.mxu0 %vm439_vm1, %v16918_v52  ;;  %v18258_v52 = vld [vmem:[#allocation51_spill] sm:$0xff] }
0x3ecf   :  { %12235 = vmatprep.subr.msk.mxu0 %vm439_vm1, %v16920_v29  ;;  %v18259_v29 = vld [vmem:[#allocation52_spill] sm:$0xff] }
0x3ed2   :  { %12236 = vmatpush3.xpose.msk.msra.mxu0 %vm439_vm1, %v16926_v27  ;;  %v18260_v27 = vld [vmem:[#allocation53_spill] sm:$0xff] }
0x3ed3   :  { %12237 = vmatprep.subr.msk.mxu0 %vm439_vm1, %v16928_v0  ;;  %v18261_v0 = vld [vmem:[#allocation54_spill] sm:$0xff] }
0x3ed6   :  { %12238 = vmatpush3.xpose.msk.msra.mxu0 %vm439_vm1, %v16934_v9  ;;  %v18262_v9 = vld [vmem:[#allocation55_spill] sm:$0xff] }
0x3ed7   :  { %12239 = vmatprep.subr.msk.mxu0 %vm439_vm1, %v16936_v32  ;;  %v18263_v32 = vld [vmem:[#allocation56_spill] sm:$0xff] }
0x3eda   :  { %12240 = vmatpush3.xpose.msk.msra.mxu0 %vm439_vm1, %v16942_v38  ;;  %v18264_v38 = vld [vmem:[#allocation57_spill] sm:$0xff] }
0x3edb   :  { %12241 = vmatprep.subr.msk.mxu0 %vm439_vm1, %v16944_v34  ;;  %v18265_v34 = vld [vmem:[#allocation58_spill] sm:$0xff] }
0x3ede   :  { %12242 = vmatpush3.xpose.msk.msra.mxu0 %vm439_vm1, %v16950_v43  ;;  %v18266_v43 = vld [vmem:[#allocation59_spill] sm:$0xff] }
0x3edf   :  { %12243 = vmatprep.subr.msk.mxu0 %vm439_vm1, %v16952_v20  ;;  %v18267_v20 = vld [vmem:[#allocation60_spill] sm:$0xff] }
0x3ee2   :  { %12244 = vmatpush3.xpose.msk.msra.mxu0 %vm439_vm1, %v16958_v30  ;;  %v18268_v30 = vld [vmem:[#allocation61_spill] sm:$0xff] }
0x3ee3   :  { %12245 = vmatprep.subr.msk.mxu0 %vm439_vm1, %v16960_v25  ;;  %v18269_v25 = vld [vmem:[#allocation63_spill] sm:$0xff] }
0x3ee6   :  { %12246 = vmatpush3.xpose.msk.msra.mxu0 %vm439_vm1, %v16966_v12  ;;  %v18270_v12 = vld [vmem:[#allocation65_spill] sm:$0xff] }
0x3ee7   :  { %12247 = vmatprep.subr.msk.mxu0 %vm439_vm1, %v17105_v13 }
0x3eea   :  { %12248 = vmatpush3.xpose.msk.msra.mxu0 %vm439_vm1, %v17109_v61  ;;  %v18271_v61 = vld [vmem:[#allocation68_spill] sm:$0xff] }
0x3f6d   :  { %v9144_v17 = vpop.f32.mrf.mxu0 }
0x3f6e   :  { %v17368_v1 = vadd.f32 %v17365_v19, %v9144_v17 }
0x3f6f   :  { %v12831_v41 = vpop.f32.mrf.mxu0 }
0x3f70   :  { %12845 = vmatmul.mubr.f32.vlgmr.msra.gmra.mxu1 %v17368_v1 }
0x3f71   :  { %12184 = vmatpush3.xpose.msk.msra.mxu1 %vm651_vm2, %v16973_v53  ;;  %12215 = vmatprep.mubr.msk.f32.mxu1 %vm651_vm2, %v17182_v23  ;;  %v18272_v53 = vld [vmem:[#allocation62_spill] sm:$0xff] }
0x3f72   :  { %12185 = vmatprep.subr.msk.mxu1 %vm651_vm2, %v16975_v51  ;;  %v18273_v51 = vld [vmem:[#allocation85_spill] sm:$0xff] }
0x3f75   :  { %12186 = vmatpush3.xpose.msk.msra.mxu1 %vm651_vm2, %v16984_v39 }
0x3f76   :  { %12187 = vmatprep.subr.msk.mxu1 %vm651_vm2, %v16986_v33  ;;  %v18274_v33 = vld [vmem:[#allocation64_spill] sm:$0xff] }
0x3f79   :  { %12188 = vmatpush3.xpose.msk.msra.mxu1 %vm651_vm2, %v18243_v22 }
0x3f7a   :  { %12189 = vmatprep.subr.msk.mxu1 %vm651_vm2, %v18244_v58  ;;  %v18277_v58 = vld [vmem:[#allocation87_spill] sm:$0xff] }
0x3f7d   :  { %12190 = vmatpush3.xpose.msk.msra.mxu1 %vm651_vm2, %v18245_v63 }
0x3f7e   :  { %12191 = vmatprep.subr.msk.mxu1 %vm651_vm2, %v18246_v50 }
0x3f81   :  { %12192 = vmatpush3.xpose.msk.msra.mxu1 %vm651_vm2, %v18247_v48 }
0x3f82   :  { %12193 = vmatprep.subr.msk.mxu1 %vm651_vm2, %v18248_v40 }
0x3f85   :  { %12194 = vmatpush3.xpose.msk.msra.mxu1 %vm651_vm2, %v18249_v5 }
0x3f86   :  { %12195 = vmatprep.subr.msk.mxu1 %vm651_vm2, %v18250_v57 }
0x3f89   :  { %12196 = vmatpush3.xpose.msk.msra.mxu1 %vm651_vm2, %v18251_v45 }
0x3f8a   :  { %12197 = vmatprep.subr.msk.mxu1 %vm651_vm2, %v18252_v10  ;;  %v18278_v10 = vld [vmem:[#allocation73_spill] sm:$0xff] }
0x3f8d   :  { %12198 = vmatpush3.xpose.msk.msra.mxu1 %vm651_vm2, %v18253_v16  ;;  %v18280_v16 = vld [vmem:[#allocation91_spill] sm:$0xff] }
0x3f8e   :  { %12199 = vmatprep.subr.msk.mxu1 %vm651_vm2, %v18254_v2  ;;  %v18283_v2 = vld [vmem:[#allocation81_spill] sm:$0xff] }
0x3f91   :  { %12200 = vmatpush3.xpose.msk.msra.mxu1 %vm651_vm2, %v18255_v18  ;;  %v18284_v18 = vld [vmem:[#allocation93_spill] sm:$0xff] }
0x3f92   :  { %12201 = vmatprep.subr.msk.mxu1 %vm651_vm2, %v18256_v60  ;;  %v18285_v60 = vld [vmem:[#allocation94_spill] sm:$0xff] }
0x3f95   :  { %12202 = vmatpush3.xpose.msk.msra.mxu1 %vm651_vm2, %v18257_v14  ;;  %v18286_v14 = vld [vmem:[#allocation89_spill] sm:$0xff] }
0x3f96   :  { %12203 = vmatprep.subr.msk.mxu1 %vm651_vm2, %v18258_v52  ;;  %v18287_v52 = vld [vmem:[#allocation95_spill] sm:$0xff] }
0x3f99   :  { %12204 = vmatpush3.xpose.msk.msra.mxu1 %vm651_vm2, %v18259_v29  ;;  %v18288_v29 = vld [vmem:[#allocation96_spill] sm:$0xff] }
0x3f9a   :  { %12205 = vmatprep.subr.msk.mxu1 %vm651_vm2, %v18260_v27  ;;  %v18289_v27 = vld [vmem:[#allocation86_spill] sm:$0xff] }
0x3f9d   :  { %12206 = vmatpush3.xpose.msk.msra.mxu1 %vm651_vm2, %v18261_v0  ;;  %v18290_v0 = vld [vmem:[#allocation98_spill] sm:$0xff] }
0x3f9e   :  { %12207 = vmatprep.subr.msk.mxu1 %vm651_vm2, %v18262_v9 }
0x3fa1   :  { %12208 = vmatpush3.xpose.msk.msra.mxu1 %vm651_vm2, %v18263_v32  ;;  %v18291_v32 = vld [vmem:[#allocation88_spill] sm:$0xff] }
0x3fa2   :  { %12209 = vmatprep.subr.msk.mxu1 %vm651_vm2, %v18264_v38 }
0x3fa5   :  { %12210 = vmatpush3.xpose.msk.msra.mxu1 %vm651_vm2, %v18265_v34 }
0x3fa6   :  { %12211 = vmatprep.subr.msk.mxu1 %vm651_vm2, %v18266_v43  ;;  %v18292_v43 = vld [vmem:[#allocation82_spill] sm:$0xff] }
0x3fa9   :  { %12212 = vmatpush3.xpose.msk.msra.mxu1 %vm651_vm2, %v18267_v20 }
0x3faa   :  { %12213 = vmatprep.subr.msk.mxu1 %vm651_vm2, %v18268_v30 }
0x3fad   :  { %12214 = vmatpush3.xpose.msk.msra.mxu1 %vm651_vm2, %v18269_v25 }
0x3fae   :  { %12847 = vmatprep.subr.mxu1 %v17908_v44 }
0x3fb0   :  { %12216 = vmatmul.mubr.msk.f32.vlgmr.msra.gmra.mxu1 %vm651_vm2, %v17182_v23 }
0x3fb1   :  { %12848 = vmatpush3.xpose.msk.msra.mxu1 %vm651_vm2, %v17137_v8  ;;  %12863 = vmatprep.mubr.msk.f32.mxu1 %vm13533_vm7, %v17908_v44 }
0x3fb2   :  { %12849 = vmatprep.subr.mxu1 %v17908_v44 }
0x3fb5   :  { %12850 = vmatpush3.xpose.msk.msra.mxu1 %vm651_vm2, %v17142_v46 }
0x3fb6   :  { %12851 = vmatprep.subr.mxu1 %v17908_v44 }
0x3fb9   :  { %12852 = vmatpush3.xpose.msk.msra.mxu1 %vm651_vm2, %v17147_v28 }
0x3fba   :  { %12853 = vmatprep.subr.mxu1 %v17908_v44 }
0x3fbd   :  { %12854 = vmatpush3.xpose.msk.msra.mxu1 %vm651_vm2, %v17152_v42 }
0x3fbe   :  { %12855 = vmatprep.subr.mxu1 %v17908_v44 }
0x3fc1   :  { %12856 = vmatpush3.xpose.msk.msra.mxu1 %vm651_vm2, %v18270_v12  ;;  %v18293_v12 = vld [vmem:[#allocation37_spill] sm:$0xff] }
0x3fc2   :  { %12857 = vmatprep.subr.mxu1 %v17908_v44 }
0x3fc5   :  { %12858 = vmatpush3.xpose.msk.msra.mxu1 %vm651_vm2, %v18271_v61 }
0x3fc6   :  { %12859 = vmatprep.subr.mxu1 %v17908_v44 }
0x3fc9   :  { %12860 = vmatpush3.xpose.msk.msra.mxu1 %vm651_vm2, %v18272_v53 }
0x3fca   :  { %12861 = vmatprep.subr.mxu1 %v17908_v44 }
0x3fcd   :  { %12862 = vmatpush3.xpose.msk.msra.mxu1 %vm651_vm2, %v18273_v51  ;;  %v18294_v51 = vld [vmem:[#allocation76_spill] sm:$0xff] }
0x3fce   :  { %12866 = vmatprep.subr.mxu1 %v17908_v44 }
0x4030   :  { %v9229_v39 = vpop.f32.mrf.mxu1 }
0x4031   :  { %v9230_v13 = vadd.f32 %v18274_v33, %v9229_v39 }
0x4032   :  { %v12846_v8 = vpop.f32.mrf.mxu1 }
0x4033   :  { %v9233_v46 = vmax.f32 %v9230_v13, 0.0  ;;  %v18295_v13 = vld [vmem:[#allocation77_spill] sm:$0xff] }
0x4035   :  { %12249 = vmatprep.mubr.msk.f32.mxu0 %vm439_vm1, %v9233_v46 }
0x4036   :  { %12250 = vmatmul.mubr.msk.f32.vlgmr.msra.gmra.mxu0 %vm439_vm1, %v9233_v46 }
0x4070   :  { %v9460_v28 = vpop.f32.mrf.mxu1 }
0x4072   :  { %v9462_v11 = vpop.f32.mrf.mxu1 }
0x40f6   :  { %v9630_v42 = vpop.f32.mrf.mxu0 }
0x40f7   :  { %v9631_v23 = vadd.f32 %v9630_v42, %v9460_v28 }
0x40f8   :  { %v9632_v55 = vpop.f32.mrf.mxu0 }
0x40f9   :  { %v9635_v15 = vadd.f32 %v9631_v23, %v18275_v37  ;;  %v9633_v6 = vadd.f32 %v9632_v55, %v9462_v11 }
0x40fb   :  { %v9637_v47 = vsub.f32 0.0, %v9635_v15  ;;  %v9636_v21 = vadd.f32 %v9633_v6, %v18276_v7  ;;  %v18296_v15 = vld [vmem:[#allocation83_spill] sm:$0xff] }
0x40fd   :  { %v9638_v49 = vmul.f32 1.442695, %v9637_v47  ;;  %v9644_v56 = vsub.f32 0.0, %v9636_v21 }
0x40ff   :  { %13149 = vpow2.f32 %v9638_v49  ;;  %v9645_v17 = vmul.f32 1.442695, %v9644_v56  ;;  %v13538_v56 = vmov 0  }
0x4100   :  { %13151 = vtanh.f32 %v9636_v21  ;;  %12933 = vset.pattern.permute.xlu1 %v13538_v56 }
0x410c   :  { %v13150_v3 = vpop.eup %13149 }
0x410d   :  { %v9640_v31 = vadd.f32 1.0, %v13150_v3  ;;  %v13152_v26 = vpop.eup %13151 }
0x410f   :  { %13153 = vrcp.f32 %v9640_v31 }
0x4110   :  { %13155 = vpow2.f32 %v9645_v17 }
0x411c   :  { %v13154_v4 = vpop.eup %13153 }
0x411d   :  { %v9651_v54 = vmul.f32 %v13154_v4, %v13152_v26  ;;  %v13156_v41 = vpop.eup %13155  ;;  %v9650_v63 = vmul.f32 %v13154_v4, %v18277_v58  ;;  %v18298_v58 = vld [vmem:[#allocation38_spill] sm:$0xff] }
0x411e   :  { %v9647_v22 = vadd.f32 1.0, %v13156_v41 }
0x411f   :  { %9653 = vrot.lane.b32.xlu1 %v9651_v54, %s13532_s28  ;;  %v13537_v54 = vmov 1  }
0x4120   :  { %13157 = vrcp.f32 %v9647_v22  ;;  %12934 = vset.pattern.permute.xlu0 %v13537_v54 }
0x412d   :  { %v13158_v40 = vpop.eup %13157 }
0x4191   :  { %v9654_v50 = vpop.permute.xlu1 %9653 }
0x4192   :  { %v9656_v48 = vadd.f32 %v9654_v50, %v9650_v63 }
0x4194   :  { %13159 = vtanh.f32 %v9656_v48  ;;  %v13174_v48 = vld [vmem:[%s17918_s17] sm:$0x3] }
0x41a1   :  { %v13160_v5 = vpop.eup %13159 }
0x41a2   :  { %v9658_v57 = vmul.f32 %v13160_v5, %v13158_v40  ;;  %v13539_v40 = vmov 2   ;;  %v13540_v5 = vmov 4  }
0x41a4   :  { %9668 = vrot.lane.b32.xlu0 %v9658_v57, %s13532_s28  ;;  %v13541_v57 = vmov 3  }
0x4216   :  { %v9669_v45 = vpop.permute.xlu0 %9668 }
0x4217   :  { %12864 = vmatmul.mubr.msk.f32.vlgmr.msra.gmra.mxu1 %vm651_vm2, %v9669_v45  ;;  %v13542_v45 = vmov 5  }
0x4218   :  { %12867 = vmatpush3.xpose.msk.msra.mxu1 %vm651_vm2, %v17207_v24  ;;  %12898 = vmatprep.mubr.msk.f32.mxu1 %vm13533_vm7, %v17908_v44  ;;  %v18279_v24 = vld [vmem:[#allocation90_spill] sm:$0xff] }
0x4219   :  { %12868 = vmatprep.subr.mxu1 %v17908_v44 }
0x421c   :  { %12869 = vmatpush3.xpose.msk.msra.mxu1 %vm651_vm2, %v17212_v36  ;;  %v18281_v36 = vld [vmem:[#allocation92_spill] sm:$0xff] }
0x421d   :  { %12870 = vmatprep.subr.mxu1 %v17908_v44 }
0x4220   :  { %12871 = vmatpush3.xpose.msk.msra.mxu1 %vm651_vm2, %v17217_v35  ;;  %v18282_v35 = vld [vmem:[#allocation80_spill] sm:$0xff] }
0x4221   :  { %12872 = vmatprep.subr.mxu1 %v17908_v44 }
0x4224   :  { %12873 = vmatpush3.xpose.msk.msra.mxu1 %vm651_vm2, %v18278_v10  ;;  %v13543_v10 = vmov 6  }
0x4225   :  { %12874 = vmatprep.subr.mxu1 %v17908_v44 }
0x4228   :  { %12875 = vmatpush3.xpose.msk.msra.mxu1 %vm651_vm2, %v18279_v24  ;;  %v13544_v24 = vmov 7  }
0x4229   :  { %12876 = vmatprep.subr.mxu1 %v17908_v44 }
0x422c   :  { %12877 = vmatpush3.xpose.msk.msra.mxu1 %vm651_vm2, %v18280_v16 }
0x422d   :  { %12878 = vmatprep.subr.mxu1 %v17908_v44 }
0x4230   :  { %12879 = vmatpush3.xpose.msk.msra.mxu1 %vm651_vm2, %v18281_v36 }
0x4231   :  { %12880 = vmatprep.subr.mxu1 %v17908_v44 }
0x4234   :  { %12881 = vmatpush3.xpose.msk.msra.mxu1 %vm651_vm2, %v18282_v35 }
0x4235   :  { %12882 = vmatprep.subr.mxu1 %v17908_v44 }
0x4238   :  { %12883 = vmatpush3.xpose.msk.msra.mxu1 %vm651_vm2, %v18283_v2 }
0x4239   :  { %12884 = vmatprep.subr.mxu1 %v17908_v44 }
0x423c   :  { %12885 = vmatpush3.xpose.msk.msra.mxu1 %vm651_vm2, %v18284_v18 }
0x423d   :  { %12886 = vmatprep.subr.mxu1 %v17908_v44 }
0x4240   :  { %12887 = vmatpush3.xpose.msk.msra.mxu1 %vm651_vm2, %v18285_v60 }
0x4241   :  { %12888 = vmatprep.subr.mxu1 %v17908_v44 }
0x4244   :  { %12889 = vmatpush3.xpose.msk.msra.mxu1 %vm651_vm2, %v18286_v14 }
0x4245   :  { %12890 = vmatprep.subr.mxu1 %v17908_v44 }
0x4248   :  { %12891 = vmatpush3.xpose.msk.msra.mxu1 %vm651_vm2, %v18287_v52 }
0x4249   :  { %12892 = vmatprep.subr.mxu1 %v17908_v44 }
0x424c   :  { %12893 = vmatpush3.xpose.msk.msra.mxu1 %vm651_vm2, %v18288_v29 }
0x424d   :  { %12894 = vmatprep.subr.mxu1 %v17908_v44 }
0x4250   :  { %12895 = vmatpush3.xpose.msk.msra.mxu1 %vm651_vm2, %v18289_v27 }
0x4251   :  { %12896 = vmatprep.subr.mxu1 %v17908_v44 }
0x4254   :  { %12897 = vmatpush3.xpose.msk.msra.mxu1 %vm651_vm2, %v18290_v0 }
0x42d7   :  { %v9762_v9 = vpop.f32.mrf.mxu1 }
0x42d8   :  { %v9763_v38 = vadd.f32 %v18291_v32, %v9762_v9 }
0x42d9   :  { %v12865_v34 = vpop.f32.mrf.mxu1 }
0x42da   :  { %v9773_v20 = vrot.slane %v9763_v38, %v18292_v43 }
0x42dc   :  { %v9774_v30 = vcombine.high %v9773_v20, %v9773_v20  ;;  %v9781_v25 = vrot.slane %v9773_v20, %v18292_v43 }
0x42de   :  { %v9792_v61 = vrot.slane %v9781_v25, %v18293_v12  ;;  %v9788_v53 = vrot.slane %v9774_v30, %v18292_v43 }
0x42e0   :  { %v9799_v39 = vmul.f32 %v9792_v61, %v18294_v51  ;;  %v9796_v44 = vrot.slane %v9788_v53, %v18293_v12  ;;  %v18300_v61 = vld [vmem:[#allocation70_spill] sm:$0xff] }
0x42e2   :  { %v9801_v33 = vsel %vm651_vm2, %v9799_v39, 0.0  ;;  %v9800_v8 = vmul.f32 %v9796_v44, %v18295_v13 }
0x42e3   :  { %9802 = vadd.xlane.f32.xlu1 %v9801_v33  ;;  %v18301_v33 = vld [vmem:[#allocation67_spill] sm:$0xff] }
0x42e4   :  { %v9804_v46 = vsel %vm651_vm2, %v9800_v8, 0.0  ;;  %v18302_v8 = vld [vmem:[#allocation97_spill] sm:$0xff] }
0x42e5   :  { %9805 = vadd.xlane.f32.xlu0 %v9804_v46 }
0x436c   :  { %v9803_v28 = vpop.xlane.xlu1 %9802 }
0x436d   :  { %v9807_v42 = vmul.f32 0.125, %v9803_v28 }
0x436e   :  { %v9806_v23 = vpop.xlane.xlu0 %9805 }
0x436f   :  { %v9808_v37 = vmul.f32 0.125, %v9806_v23  ;;  %v9814_v47 = vrot.slane %v9807_v42, %v18296_v15  ;;  %v18303_v42 = vld [vmem:[#allocation69_spill] sm:$0xff] }
0x4371   :  { %v9818_v49 = vrot.slane %v9808_v37, %v18296_v15  ;;  %v18304_v15 = vld [vmem:[#allocation72_spill] sm:$0xff] }
0x4373   :  { %v9819_v55 = vsel %vm3796_vm8, %v9818_v49, %v9814_v47 }
0x4374   :  { %v9821_v6 = vsel %vm3783_vm9, %v9819_v55, -1e+09 }
0x4375   :  { %v9822_v7 = vsel %vm3800_vm10, %v9821_v6, -inf }
0x4376   :  { %9823 = vmax.xlane.f32.xlu0 %v9822_v7 }
0x43ff   :  { %v9824_v21 = vpop.xlane.xlu0 %9823 }
0x4400   :  { %v9825_v3 = vsub.f32 %v9821_v6, %v9824_v21 }
0x4402   :  { %v9826_v31 = vmul.f32 1.442695, %v9825_v3 }
0x4404   :  { %13161 = vpow2.f32 %v9826_v31 }
0x4411   :  { %v13162_v26 = vpop.eup %13161 }
0x4412   :  { %v9828_v4 = vsel %vm3800_vm10, %v13162_v26, 0.0 }
0x4413   :  { %9829 = vadd.xlane.f32.xlu1 %v9828_v4 }
0x449c   :  { %v9830_v17 = vpop.xlane.xlu1 %9829 }
0x449d   :  { %13163 = vrcp.f32 %v9830_v17 }
0x44aa   :  { %v13164_v41 = vpop.eup %13163 }
0x44ab   :  { %v9832_v22 = vmul.f32 %v13164_v41, %v13162_v26 }
0x44ad   :  { %v9843_v63 = vrot.slane %v9832_v22, %v18298_v58  ;;  %11122 = vst.msk [vmem:[%s17609_s23 + $0xe] sm:$0x3] %vm3800_vm10, %v9832_v22  ;;  %v9836_v50 = vrot.slane %v9832_v22, %v18293_v12  ;;  %v18299_v12 = vld [vmem:[#allocation66_spill] sm:$0xff] }
0x44af   :  { %9845 = vbcast.lane.b32.xlu1 %v9843_v63, 256  ;;  %9838 = vbcast.lane.b32.xlu0 %v9836_v50, 256 }
0x44b3   :  { %4027 = vperm.xlu1 %12933, %v13174_v48   ;;  %4879 = vperm.xlu0 %12934, %v13174_v48  }
0x44b7   :  { %12935 = vset.pattern.permute.xlu1 %v13539_v40  ;;  %12937 = vset.pattern.permute.xlu0 %v13540_v5 }
0x44b8   :  { %5733 = vperm.xlu1 %12935, %v13174_v48   ;;  %7441 = vperm.xlu0 %12937, %v13174_v48  }
0x44bc   :  { %12936 = vset.pattern.permute.xlu1 %v13541_v57  ;;  %12940 = vset.pattern.permute.xlu0 %v13544_v24 }
0x44bd   :  { %6587 = vperm.xlu1 %12936, %v13174_v48   ;;  %10003 = vperm.xlu0 %12940, %v13174_v48  }
0x44c1   :  { %12938 = vset.pattern.permute.xlu1 %v13542_v45 }
0x44c2   :  { %8295 = vperm.xlu1 %12938, %v13174_v48  }
0x44c6   :  { %12939 = vset.pattern.permute.xlu1 %v13543_v10 }
0x44c7   :  { %9149 = vperm.xlu1 %12939, %v13174_v48  }
0x4521   :  { %v9846_v16 = vpop.permute.xlu1 %9845  ;;  %v9839_v36 = vpop.permute.xlu0 %9838 }
0x4522   :  { %v9848_v35 = vmul.f32 %v9846_v16, %v14880_v59  ;;  %v9847_v2 = vmul.f32 %v9839_v36, %v14878_v62 }
0x4524   :  { %v9856_v18 = vsel %vm651_vm2, %v9848_v35, 0.0  ;;  %v9849_v60 = vsel %vm651_vm2, %v9847_v2, 0.0 }
0x4525   :  { %v9857_v14 = vrot.slane %v9856_v18, 4  ;;  %v9850_v52 = vrot.slane %v9849_v60, 4 }
0x4527   :  { %v9858_v29 = vadd.f32 %v9857_v14, %v9856_v18  ;;  %v9851_v27 = vadd.f32 %v9850_v52, %v9849_v60 }
0x4529   :  { %v9859_v0 = vrot.slane %v9858_v29, 2  ;;  %v9852_v9 = vrot.slane %v9851_v27, 2 }
0x452b   :  { %v9860_v32 = vadd.f32 %v9859_v0, %v9858_v29  ;;  %v9853_v38 = vadd.f32 %v9852_v9, %v9851_v27 }
0x452d   :  { %v9861_v34 = vrot.slane %v9860_v32, 1  ;;  %v9854_v43 = vrot.slane %v9853_v38, 1 }
0x452e   :  { %v4028_v20 = vpop.permute.xlu1 %4027  ;;  %v4880_v30 = vpop.permute.xlu0 %4879 }
0x452f   :  { %v9862_v25 = vadd.f32 %v9861_v34, %v9860_v32  ;;  %v9855_v59 = vadd.f32 %v9854_v43, %v9853_v38  ;;  %v4030_v62 = vmul.f32 %v4028_v20, %v18299_v12  ;;  %v4882_v53 = vmul.f32 %v4880_v30, %v18300_v61 }
0x4531   :  { %4031 = vst [vmem:[%s17608_s22] sm:$0x3] %v4030_v62  ;;  %10557 = vst [vmem:[%s17608_s22 + $0x2] sm:$0x3] %v4882_v53  ;;  %v9881_v51 = vsel %vm3796_vm8, %v9862_v25, %v9855_v59 }
0x4532   :  { %12899 = vmatmul.mubr.msk.f32.vlgmr.msra.gmra.mxu1 %vm651_vm2, %v9881_v51 }
0x4533   :  { %v5734_v39 = vpop.permute.xlu1 %5733  ;;  %v7442_v44 = vpop.permute.xlu0 %7441 }
0x4534   :  { %v5736_v13 = vmul.f32 %v5734_v39, %v18301_v33  ;;  %v7444_v46 = vmul.f32 %v7442_v44, %v18302_v8 }
0x4536   :  { %10651 = vst [vmem:[%s17608_s22 + $0x4] sm:$0x3] %v5736_v13  ;;  %10839 = vst [vmem:[%s17608_s22 + $0x8] sm:$0x3] %v7444_v46 }
0x4538   :  { %v6588_v28 = vpop.permute.xlu1 %6587  ;;  %v10004_v6 = vpop.permute.xlu0 %10003 }
0x4539   :  { %v6590_v23 = vmul.f32 %v6588_v28, %v18303_v42 }
0x453b   :  { %10745 = vst [vmem:[%s17608_s22 + $0x6] sm:$0x3] %v6590_v23 }
0x453d   :  { %v8296_v37 = vpop.permute.xlu1 %8295 }
0x453e   :  { %v8298_v47 = vmul.f32 %v8296_v37, %v18304_v15 }
0x4540   :  { %10933 = vst [vmem:[%s17608_s22 + $0xa] sm:$0x3] %v8298_v47 }
0x4542   :  { %v9150_v49 = vpop.permute.xlu1 %9149 }
0x4543   :  { %v9152_v55 = vmul.f32 %v9150_v49, %v17368_v1 }
0x4545   :  { %11027 = vst [vmem:[%s17608_s22 + $0xc] sm:$0x3] %v9152_v55 }
0x45f2   :  { %v9998_v11 = vpop.f32.mrf.mxu1 }
0x45f3   :  { %v9999_v7 = vadd.f32 %v17365_v19, %v9998_v11 }
0x45f4   :  { %v12900_v21 = vpop.f32.mrf.mxu1 }
0x45f5   :  { %v10006_v3 = vmul.f32 %v10004_v6, %v9999_v7 }
0x45f7   :  { %11121 = vst [vmem:[%s17608_s22 + $0xe] sm:$0x3] %v10006_v3 }
0x45f8   :  { %10019 = vsyncpa [#allocation4], 1 }
0x45f9   :  { %10020 = vsyncpa [#allocation6], 1 }
0x45fa   :  { %10021 = vsyncpa [#allocation9], 1 }
0x45fb   :  { %10022 = vsyncpa [#allocation12], 1 }
0x45fc   :  { %10023 = vsyncpa [#allocation15], 1 }
0x45fd   :  { %10024 = vsyncpa [#allocation18], 1 }
0x45fe   :  { %10025 = vsyncpa [#allocation21], 1 }
0x45ff   :  { %10026 = vsyncpa [#allocation24], 1 }
0x4600   :  { %10027 = vsyncpa [#allocation27], 1 }

</bundles_post_ra>
